<compile_context>
chip_gen: v6e
topology: v6e:2x2x1
jax: 0.10.0
libtpu: 0.0.40
codegen_flags: <defaults>
</compile_context>

<pallas_src>
import functools

import numpy as np
import jax
import jax.numpy as jnp
from jax.experimental import pallas as pl
from jax.experimental.pallas import tpu as pltpu

LANE = 128


def _ru(x, m):
    return -(-x // m) * m


# ---------------------------------------------------------------------------
# Generic tiled matmul (full-K block, bf16 operands, f32 accumulation,
# lane-dense N supplied by the caller via padded weight matrices).
# ---------------------------------------------------------------------------
def _mm_kernel(a_ref, b_ref, o_ref):
    o_ref[...] = jnp.dot(a_ref[...], b_ref[...],
                         preferred_element_type=jnp.float32).astype(o_ref.dtype)


def pallas_matmul(a, b, out_dtype=jnp.float32, tm_max=1024):
    """out = a @ b. K and N are small in this net -> single full-K/full-N block,
    only the (large) M dim is tiled (up to 1024 rows per step)."""
    M, K = a.shape
    K2, N = b.shape
    assert K == K2
    a = a.astype(jnp.bfloat16)
    b = b.astype(jnp.bfloat16)
    tm = min(tm_max, _ru(M, 8))
    Mp = _ru(M, tm)
    if Mp != M:
        a = jnp.pad(a, ((0, Mp - M), (0, 0)))
    out = pl.pallas_call(
        _mm_kernel,
        out_shape=jax.ShapeDtypeStruct((Mp, N), out_dtype),
        grid_spec=pltpu.PrefetchScalarGridSpec(
            num_scalar_prefetch=0,
            grid=(Mp // tm,),
            in_specs=[pl.BlockSpec((tm, K), lambda i: (i, 0)),
                      pl.BlockSpec((K, N), lambda i: (0, 0))],
            out_specs=pl.BlockSpec((tm, N), lambda i: (i, 0)),
        ),
        compiler_params=pltpu.CompilerParams(
            dimension_semantics=("parallel",)),
    )(a, b)
    return out if Mp == M else out[:M]


# ---------------------------------------------------------------------------
# Fully fused spectral chain:
#   encoder 3x3 conv -> n_blocks x (LN + freq-mix + tanh + res,
#                                   LN + causal K-tap temporal conv + tanh + res)
#   -> decoder 3x3 conv
# One grid step = one batch element; everything stays in VMEM between layers.
# Shifted taps use shift-after-matmul: shift_s(x) @ W == shift_s(x @ W), done
# with pltpu.roll (XLU) + an iota mask (no scratch stores).  Per-tap matmuls
# are kept separate (Fout = 400 already exceeds the 256-wide MXU; concatenating
# taps would require non-128-aligned lane splits of the result).
# ---------------------------------------------------------------------------
def _chain_kernel(spec_ref, enc_w_ref, enc_b_ref, a_sum_ref, a_bc_ref,
                  intra_w_ref, inter_w_ref, vec_ref, dec_w_ref, dec_b_ref,
                  out_ref, *, n_blocks, conv_shifts, inter_shifts, t_real):
    T = out_ref.shape[0]
    row = jax.lax.broadcasted_iota(jnp.int32, (T, 1), 0)

    def shifted_matmul_sum(x_bf16, get_w, shifts):
        # sum_i shift_{s_i}(x) @ W_i   (shift_s: rows move to larger t by s,
        # zero filled; s < 0 moves toward smaller t).
        acc = None
        for i, s in enumerate(shifts):
            if s >= T or -s >= T:        # tap falls entirely outside the block
                continue
            p = jnp.dot(x_bf16, get_w(i), preferred_element_type=jnp.float32)
            if s != 0:
                p = pltpu.roll(p, shift=s % T, axis=0)       # XLU rotate
                if s > 0:
                    p = jnp.where(row >= s, p, 0.0)
                else:
                    p = jnp.where(row < T + s, p, 0.0)
            acc = p if acc is None else acc + p
        return acc

    def layer_norm(z, gamma, beta):
        # Per-frequency LayerNorm over the D embedding channels.
        # Stats via bf16 MXU matmuls against a skinny (F*D, 128) group-sum
        # reducer + 0/1 broadcast-back; centered variance (no cancellation).
        a_sum = a_sum_ref[...]
        a_bc = a_bc_ref[...]
        zb = z.astype(jnp.bfloat16)
        mean_g = jnp.dot(zb, a_sum, preferred_element_type=jnp.float32)
        mean = jnp.dot(mean_g.astype(jnp.bfloat16), a_bc,
                       preferred_element_type=jnp.float32)
        xc = z - mean
        xcb = xc.astype(jnp.bfloat16)
        var_g = jnp.dot(xcb * xcb, a_sum, preferred_element_type=jnp.float32)
        istd_g = jax.lax.rsqrt(var_g + 1e-5)
        istd = jnp.dot(istd_g.astype(jnp.bfloat16), a_bc,
                       preferred_element_type=jnp.float32)
        return xc * istd * gamma + beta

    # ---- encoder: 3x3 'same' conv as 3 time-shifted banded matmuls ----
    x_in = spec_ref[...]                                        # (T, Fci) bf16
    z = shifted_matmul_sum(x_in, lambda i: enc_w_ref[i], conv_shifts)
    z = z + enc_b_ref[...]                                      # (T, F*D) f32

    # ---- GridNet-style blocks (stand-ins for BLSTM intra/inter paths) ----
    for blk in range(n_blocks):
        vecs = vec_ref[blk]                                     # (6, F*D) f32
        # intra: LN -> dense frequency mix -> tanh -> residual
        zn = layer_norm(z, vecs[0:1], vecs[1:2])
        h = jnp.dot(zn.astype(jnp.bfloat16), intra_w_ref[blk],
                    preferred_element_type=jnp.float32) + vecs[2:3]
        z = jnp.tanh(h) + z
        # inter: LN -> causal K-tap temporal conv -> tanh -> residual
        zn = layer_norm(z, vecs[3:4], vecs[4:5])
        znb = zn.astype(jnp.bfloat16)
        h = shifted_matmul_sum(znb, lambda i: inter_w_ref[blk, i], inter_shifts)
        z = jnp.tanh(h + vecs[5:6]) + z

    # ---- decoder: mask time-padded frames (keeps the T-padding semantics
    #      identical to the unpadded sequence), then 3x3 'same' conv ----
    if t_real != T:
        z = jnp.where(row < t_real, z, 0.0)
    y = shifted_matmul_sum(z.astype(jnp.bfloat16),
                           lambda i: dec_w_ref[i], conv_shifts)
    out_ref[...] = (y + dec_b_ref[...]).astype(out_ref.dtype)


# ---------------------------------------------------------------------------
# JAX glue
# ---------------------------------------------------------------------------
def mod_pad_jax(x, chunk_size, pad):
    mod = 0
    if x.shape[-1] % chunk_size != 0:
        mod = chunk_size - x.shape[-1] % chunk_size
    x = jnp.pad(x, ((0, 0), (0, 0), (0, mod)))
    x = jnp.pad(x, ((0, 0), (0, 0), (pad[0], pad[1])))
    return x, mod


# ---------------------------------------------------------------------------
# Net
# ---------------------------------------------------------------------------
class NetPallas:
    def __init__(self, stft_chunk_size=32, stft_pad_size=16, stft_back_pad=0,
                 num_ch=2, D=16, n_blocks=2, num_src=2, t_kernel=4,
                 lookahead=True, seed=0):
        self.stft_chunk_size = stft_chunk_size
        self.stft_pad_size = stft_pad_size
        self.stft_back_pad = stft_back_pad
        self.num_ch = num_ch
        self.D = D
        self.n_blocks = n_blocks
        self.num_src = num_src
        self.t_kernel = t_kernel
        self.lookahead = lookahead
        self.nfft = stft_back_pad + stft_chunk_size + stft_pad_size
        self.hop = stft_chunk_size
        self.nfreq = self.nfft // 2 + 1
        self._build_constants(seed)

    # ----- fixed bases, window, and structured weight matrices -----
    def _build_constants(self, seed):
        rng = np.random.default_rng(seed)
        nfft, F, D = self.nfft, self.nfreq, self.D
        M, S, K = self.num_ch, self.num_src, self.t_kernel
        Cin, Cout = 2 * M, 2 * S
        FD = F * D
        self.FD = FD
        self.fci = F * Cin
        self.fco = F * Cout
        self.fci_pad = _ru(self.fci, LANE)       # lane-dense STFT-domain widths
        self.fco_pad = _ru(self.fco, LANE)

        n = np.arange(nfft)
        f = np.arange(F)
        ang = 2.0 * np.pi * np.outer(n, f) / nfft
        cos, sin = np.cos(ang), np.sin(ang)
        win = np.sqrt(0.85 * np.hanning(nfft) + 0.15).astype(np.float32)
        self.win_np = win

        # STFT projection: rows (m,n) -> cols (f, c=2m+{Re,Im}); window folded
        # in; columns zero-padded to a 128 multiple (lane-dense stores).
        stft_big = np.zeros((M, nfft, F, Cin), np.float32)
        for m in range(M):
            stft_big[m, :, :, 2 * m] = cos * win[:, None]
            stft_big[m, :, :, 2 * m + 1] = -sin * win[:, None]
        stft_big = stft_big.reshape(M * nfft, self.fci)
        stft_big = np.pad(stft_big, ((0, 0), (0, self.fci_pad - self.fci)))
        self.stft_big = jnp.asarray(stft_big, jnp.bfloat16)

        # iSTFT projection: rows (f, c=2s+{Re,Im}) padded to 128, cols (s, n)
        # padded to 128; synthesis window folded in.
        cscale = np.full((F,), 2.0)
        cscale[0] = 1.0
        if nfft % 2 == 0:
            cscale[-1] = 1.0
        inv_cos = (cos * cscale[None, :]).T / nfft
        inv_sin = (-sin * cscale[None, :]).T / nfft
        istft_big = np.zeros((F, Cout, S, nfft), np.float32)
        for s in range(S):
            istft_big[:, 2 * s, s, :] = inv_cos * win[None, :]
            istft_big[:, 2 * s + 1, s, :] = inv_sin * win[None, :]
        istft_big = istft_big.reshape(self.fco, S * nfft)
        self.istft_cols = S * nfft
        istft_big = np.pad(istft_big,
                           ((0, self.fco_pad - self.fco),
                            (0, _ru(S * nfft, LANE) - S * nfft)))
        self.istft_big = jnp.asarray(istft_big, jnp.bfloat16)

        # 3x3 'same' conv as 3 time-shifted banded matmuls over flat (f,c).
        def conv_taps(w, rows_pad, cols_pad):    # w: (3, 3, cin, cout)
            cin, cout = w.shape[2], w.shape[3]
            taps = np.zeros((3, F, cin, F, cout), np.float32)
            for dt in range(3):
                for df in range(3):
                    for fi in range(F):
                        fo = fi - df + 1
                        if 0 <= fo < F:
                            taps[dt, fi, :, fo, :] = w[dt, df]
            taps = taps.reshape(3, F * cin, F * cout)
            return np.pad(taps, ((0, 0), (0, rows_pad - F * cin),
                                 (0, cols_pad - F * cout)))

        enc_w = (0.1 * rng.standard_normal((3, 3, Cin, D))).astype(np.float32)
        # TODO(synk): reference decoder is ConvTranspose2d; stride 1 / pad 1 is
        # shape-equivalent to this 3x3 'same' conv stand-in.
        dec_w = (0.1 * rng.standard_normal((3, 3, D, Cout))).astype(np.float32)
        self.enc_taps = jnp.asarray(conv_taps(enc_w, self.fci_pad, FD),
                                    jnp.bfloat16)
        self.enc_bias = jnp.zeros((1, FD), jnp.float32)
        self.dec_taps = jnp.asarray(conv_taps(dec_w, FD, self.fco_pad),
                                    jnp.bfloat16)
        self.dec_bias = jnp.zeros((1, self.fco_pad), jnp.float32)
        self.conv_shifts = (1, 0, -1)            # time shift per tap dt=0,1,2

        # Skinny LayerNorm reducers: group-sum (F*D, 128) + 0/1 broadcast-back
        # (128, F*D), both bf16.  (The F=25 group columns pad to one lane tile.)
        gpad = _ru(F, LANE)
        a_sum = np.zeros((FD, gpad), np.float32)
        a_bc = np.zeros((gpad, FD), np.float32)
        for fi in range(F):
            a_sum[fi * D:(fi + 1) * D, fi] = 1.0 / D
            a_bc[fi, fi * D:(fi + 1) * D] = 1.0
        self.ln_a_sum = jnp.asarray(a_sum, jnp.bfloat16)
        self.ln_a_bc = jnp.asarray(a_bc, jnp.bfloat16)

        # GridNet-style blocks: intra = dense F-mix kron(wf, I_D),
        # inter = causal K-tap temporal conv kron(I_F, wt[k]).
        # NOTE(review item 6): the Kronecker form is kept dense on purpose: at
        # these sizes (F=25, D=16, both << 128 lanes) the per-axis
        # reformulation pads 25->128 / 16->128 and does MORE MXU work than the
        # structural zeros; the crossover is only reached for F, D >~ 128.
        eyeD = np.eye(D, dtype=np.float32)
        eyeF = np.eye(F, dtype=np.float32)
        intra_ws, inter_ws, vecss = [], [], []
        for _ in range(self.n_blocks):
            wf = (0.1 * rng.standard_normal((F, F))).astype(np.float32)
            wt = (0.1 * rng.standard_normal((K, D, D))).astype(np.float32)
            intra_ws.append(np.kron(wf, eyeD))
            inter_ws.append(np.stack([np.kron(eyeF, wt[k]) for k in range(K)]))
            vecss.append(np.stack([
                np.ones(FD, np.float32),    # ln_f gamma
                np.zeros(FD, np.float32),   # ln_f beta
                np.zeros(FD, np.float32),   # intra bias
                np.ones(FD, np.float32),    # ln_t gamma
                np.zeros(FD, np.float32),   # ln_t beta
                np.zeros(FD, np.float32),   # inter bias
            ]))
        self.intra_w = jnp.asarray(np.stack(intra_ws), jnp.bfloat16)   # (nB,FD,FD)
        self.inter_w = jnp.asarray(np.stack(inter_ws), jnp.bfloat16)   # (nB,K,FD,FD)
        self.blk_vecs = jnp.asarray(np.stack(vecss), jnp.float32)      # (nB,6,FD)
        self.inter_shifts = tuple(range(K))

    # ----- fully fused spectral chain -----
    def _run_chain(self, spec, t_real):
        Bb, T_pad, Fci = spec.shape
        FD, K, nB = self.FD, self.t_kernel, self.n_blocks
        gpad = self.ln_a_sum.shape[1]
        Fco = self.fco_pad
        kernel = functools.partial(
            _chain_kernel, n_blocks=nB, conv_shifts=self.conv_shifts,
            inter_shifts=self.inter_shifts, t_real=t_real)
        # TODO(synk): T-tiling (v7x, very long audio) needs cross-tile
        # halo/carry through the shifted conv taps; whole-T blocks kept here.
        return pl.pallas_call(
            kernel,
            out_shape=jax.ShapeDtypeStruct((Bb, T_pad, Fco), jnp.bfloat16),
            grid_spec=pltpu.PrefetchScalarGridSpec(
                num_scalar_prefetch=0,
                grid=(Bb,),
                in_specs=[
                    pl.BlockSpec((None, T_pad, Fci), lambda b: (b, 0, 0)),
                    pl.BlockSpec((3, Fci, FD), lambda b: (0, 0, 0)),
                    pl.BlockSpec((1, FD), lambda b: (0, 0)),
                    pl.BlockSpec((FD, gpad), lambda b: (0, 0)),
                    pl.BlockSpec((gpad, FD), lambda b: (0, 0)),
                    pl.BlockSpec((nB, FD, FD), lambda b: (0, 0, 0)),
                    pl.BlockSpec((nB, K, FD, FD), lambda b: (0, 0, 0, 0)),
                    pl.BlockSpec((nB, 6, FD), lambda b: (0, 0, 0)),
                    pl.BlockSpec((3, FD, Fco), lambda b: (0, 0, 0)),
                    pl.BlockSpec((1, Fco), lambda b: (0, 0)),
                ],
                out_specs=pl.BlockSpec((None, T_pad, Fco), lambda b: (b, 0, 0)),
            ),
            compiler_params=pltpu.CompilerParams(
                dimension_semantics=("parallel",),
                vmem_limit_bytes=64 * 1024 * 1024),
        )(spec, self.enc_taps, self.enc_bias, self.ln_a_sum, self.ln_a_bc,
          self.intra_w, self.inter_w, self.blk_vecs, self.dec_taps,
          self.dec_bias)

    # ----- vectorized overlap-add (2 strided adds, host-constant normalizer) -----
    def _overlap_add(self, rec, Bb, T, Lp):
        nfft, hop, S = self.nfft, self.hop, self.num_src
        n_pieces = -(-nfft // hop)
        sig = jnp.zeros((Bb, S, Lp), jnp.float32)
        for p in range(n_pieces):
            lo = p * hop
            wp = min(hop, nfft - lo)
            piece = rec[:, :, :, lo:lo + wp]
            if wp < hop:
                piece = jnp.pad(piece, ((0, 0), (0, 0), (0, 0), (0, hop - wp)))
            piece = jnp.transpose(piece, (0, 2, 1, 3)).reshape(Bb, S, T * hop)
            end = min(lo + T * hop, Lp)
            sig = sig.at[:, :, lo:end].add(piece[:, :, :end - lo])

        wsum = np.zeros((Lp,), np.float32)
        w2 = self.win_np * self.win_np
        for i in range(T):                  # host-side numpy, traced as constant
            wsum[i * hop:i * hop + nfft] += w2
        wsum = np.maximum(wsum, 1e-8)
        return sig / jnp.asarray(wsum)[None, None, :]

    # ----- STFT -> fused spectral chain -> iSTFT -----
    def _tfgridnet(self, x):
        Bb, M, Lp = x.shape
        nfft, hop, S = self.nfft, self.hop, self.num_src
        T = (Lp - nfft) // hop + 1

        # STFT: bf16 frame gather + one fused (window x DFT x mic-interleave)
        # matmul with a lane-dense (128-wide) output.
        # TODO(synk): fully folding the framing into shifted matmul taps would
        # remove this gather entirely; kept as a bf16 gather for now.
        t_i = np.arange(T)[:, None, None]
        m_i = np.arange(M)[None, :, None]
        n_i = np.arange(nfft)[None, None, :]
        idx = jnp.asarray((m_i * Lp + t_i * hop + n_i).reshape(T, M * nfft),
                          jnp.int32)
        frames = x.astype(jnp.bfloat16).reshape(Bb, M * Lp)[:, idx]  # (B,T,M*nfft)
        spec = pallas_matmul(frames.reshape(Bb * T, M * nfft), self.stft_big,
                             out_dtype=jnp.bfloat16)
        spec = spec.reshape(Bb, T, self.fci_pad)

        # Pad the time axis to a sublane multiple (exact semantics preserved by
        # the in-kernel masking of padded frames before the decoder taps).
        T_pad = _ru(T, 8)
        if T_pad != T:
            spec = jnp.pad(spec, ((0, 0), (0, T_pad - T), (0, 0)))

        # Encoder -> blocks -> decoder, all in one fused pallas_call.
        y = self._run_chain(spec, T)[:, :T]              # (B, T, fco_pad) bf16

        # iSTFT: one fused (inverse-DFT x window x source-split) matmul + OLA.
        rec = pallas_matmul(y.reshape(Bb * T, self.fco_pad), self.istft_big)
        rec = rec[:, :self.istft_cols].reshape(Bb, T, S, nfft)
        sig = self._overlap_add(rec, Bb, T, Lp)

        start = self.stft_back_pad
        return sig[:, :, start:start + T * hop]

    # ----- Net.forward -----
    def __call__(self, inputs, input_state=None, pad=True):
        if inputs.ndim == 2:
            inputs = inputs[:, None, :]
        # TODO(synk): streaming state buffers are not implemented (stateless forward).
        x = inputs
        mod = 0
        if pad:
            pad_cfg = ((self.stft_back_pad, self.stft_pad_size)
                       if self.lookahead else (0, 0))
            x, mod = mod_pad_jax(x, self.stft_chunk_size, pad_cfg)
        y = self._tfgridnet(x)
        if mod != 0:
            y = y[:, :, :-mod]
        return y


# ---------------------------------------------------------------------------
if __name__ == "__main__":
    key = jax.random.PRNGKey(0)
    batch, mics, samples = 2, 2, 100
    x = jax.random.normal(key, (batch, mics, samples), dtype=jnp.float32)

    net = NetPallas(stft_chunk_size=32, stft_pad_size=16, stft_back_pad=0,
                    num_ch=mics, D=16, n_blocks=2, num_src=2, t_kernel=4,
                    seed=0)

    forward = jax.jit(net.__call__)
    y = forward(x)
    y = jax.block_until_ready(y)

    assert y.shape == (batch, net.num_src, samples), y.shape
    assert bool(jnp.all(jnp.isfinite(y)))
    print("KERNEL_OK")
</pallas_src>

<mosaic_0001>
module attributes {stable_mosaic.version = 11 : i64} {
  func.func @_mm_kernel(%arg0: i32, %arg1: memref<8x96xbf16, #tpu.memory_space<vmem>>, %arg2: memref<96x128xbf16, #tpu.memory_space<vmem>>, %arg3: memref<8x128xbf16, #tpu.memory_space<vmem>>) attributes {dimension_semantics = [#tpu.dimension_semantics<parallel>], iteration_bounds = array<i64: 1>, scalar_prefetch = 0 : i64, scratch_operands = 0 : i64, tpu.core_type = #tpu.core_type<tc>, window_params = [{transform_indices = @transform_0, window_bounds = array<i64: 8, 96>}, {pipeline_mode = #tpu.pipeline_mode<synchronous>, transform_indices = @transform_1, window_bounds = array<i64: 96, 128>}, {transform_indices = @transform_2, window_bounds = array<i64: 8, 128>}]} {
    %c0 = arith.constant 0 : index
    %c0_0 = arith.constant 0 : index
    %0 = vector.load %arg1[%c0, %c0_0] : memref<8x96xbf16, #tpu.memory_space<vmem>>, vector<8x96xbf16>
    %c0_1 = arith.constant 0 : index
    %c0_2 = arith.constant 0 : index
    %1 = vector.load %arg2[%c0_1, %c0_2] : memref<96x128xbf16, #tpu.memory_space<vmem>>, vector<96x128xbf16>
    %cst = arith.constant dense<0.000000e+00> : vector<8x128xf32>
    %2 = tpu.matmul %0, %1, %cst {dimension_numbers = #tpu.dot_dimension_numbers<[1], [0], [0], [1], [0, 0, 1, 1], [], []>} : vector<8x96xbf16>, vector<96x128xbf16>, vector<8x128xf32> -> vector<8x128xf32>
    %3 = arith.truncf %2 : vector<8x128xf32> to vector<8x128xbf16>
    %c0_3 = arith.constant 0 : index
    %c0_4 = arith.constant 0 : index
    %4 = vector.load %arg3[%c0_3, %c0_4] : memref<8x128xbf16, #tpu.memory_space<vmem>>, vector<8x128xbf16>
    tpu.vector_store %arg3[%c0_3, %c0_4], %3 {strides = array<i32>} : memref<8x128xbf16, #tpu.memory_space<vmem>>, vector<8x128xbf16>,
    return
  }
  func.func @transform_0(%arg0: i32) -> (i32, i32) {
    %c0_i32 = arith.constant 0 : i32
    %c0_i32_0 = arith.constant 0 : i32
    return %arg0, %c0_i32 : i32, i32
  }
  func.func @transform_1(%arg0: i32) -> (i32, i32) {
    %c0_i32 = arith.constant 0 : i32
    %c0_i32_0 = arith.constant 0 : i32
    %c0_i32_1 = arith.constant 0 : i32
    return %c0_i32, %c0_i32_0 : i32, i32
  }
  func.func @transform_2(%arg0: i32) -> (i32, i32) {
    %c0_i32 = arith.constant 0 : i32
    %c0_i32_0 = arith.constant 0 : i32
    return %arg0, %c0_i32 : i32, i32
  }
}

module attributes {stable_mosaic.version = 11 : i64} {
  func.func @_mm_kernel(%arg0: i32, %arg1: memref<8x128xbf16, #tpu.memory_space<vmem>>, %arg2: memref<128x128xbf16, #tpu.memory_space<vmem>>, %arg3: memref<8x128xf32, #tpu.memory_space<vmem>>) attributes {dimension_semantics = [#tpu.dimension_semantics<parallel>], iteration_bounds = array<i64: 1>, scalar_prefetch = 0 : i64, scratch_operands = 0 : i64, tpu.core_type = #tpu.core_type<tc>, window_params = [{transform_indices = @transform_0, window_bounds = array<i64: 8, 128>}, {pipeline_mode = #tpu.pipeline_mode<synchronous>, transform_indices = @transform_1, window_bounds = array<i64: 128, 128>}, {transform_indices = @transform_2, window_bounds = array<i64: 8, 128>}]} {
    %c0 = arith.constant 0 : index
    %c0_0 = arith.constant 0 : index
    %0 = vector.load %arg1[%c0, %c0_0] : memref<8x128xbf16, #tpu.memory_space<vmem>>, vector<8x128xbf16>
    %c0_1 = arith.constant 0 : index
    %c0_2 = arith.constant 0 : index
    %1 = vector.load %arg2[%c0_1, %c0_2] : memref<128x128xbf16, #tpu.memory_space<vmem>>, vector<128x128xbf16>
    %cst = arith.constant dense<0.000000e+00> : vector<8x128xf32>
    %2 = tpu.matmul %0, %1, %cst {dimension_numbers = #tpu.dot_dimension_numbers<[1], [0], [0], [1], [0, 0, 1, 1], [], []>} : vector<8x128xbf16>, vector<128x128xbf16>, vector<8x128xf32> -> vector<8x128xf32>
    %c0_3 = arith.constant 0 : index
    %c0_4 = arith.constant 0 : index
    %3 = vector.load %arg3[%c0_3, %c0_4] : memref<8x128xf32, #tpu.memory_space<vmem>>, vector<8x128xf32>
    tpu.vector_store %arg3[%c0_3, %c0_4], %2 {strides = array<i32>} : memref<8x128xf32, #tpu.memory_space<vmem>>, vector<8x128xf32>,
    return
  }
  func.func @transform_0(%arg0: i32) -> (i32, i32) {
    %c0_i32 = arith.constant 0 : i32
    %c0_i32_0 = arith.constant 0 : i32
    return %arg0, %c0_i32 : i32, i32
  }
  func.func @transform_1(%arg0: i32) -> (i32, i32) {
    %c0_i32 = arith.constant 0 : i32
    %c0_i32_0 = arith.constant 0 : i32
    %c0_i32_1 = arith.constant 0 : i32
    return %c0_i32, %c0_i32_0 : i32, i32
  }
  func.func @transform_2(%arg0: i32) -> (i32, i32) {
    %c0_i32 = arith.constant 0 : i32
    %c0_i32_0 = arith.constant 0 : i32
    return %arg0, %c0_i32 : i32, i32
  }
}

module attributes {stable_mosaic.version = 11 : i64} {
  func.func @_chain_kernel(%arg0: i32, %arg1: memref<1x8x128xbf16, #tpu.memory_space<vmem>>, %arg2: memref<3x128x400xbf16, #tpu.memory_space<vmem>>, %arg3: memref<1x400xf32, #tpu.memory_space<vmem>>, %arg4: memref<400x128xbf16, #tpu.memory_space<vmem>>, %arg5: memref<128x400xbf16, #tpu.memory_space<vmem>>, %arg6: memref<2x400x400xbf16, #tpu.memory_space<vmem>>, %arg7: memref<2x4x400x400xbf16, #tpu.memory_space<vmem>>, %arg8: memref<2x6x400xf32, #tpu.memory_space<vmem>>, %arg9: memref<3x400x128xbf16, #tpu.memory_space<vmem>>, %arg10: memref<1x128xf32, #tpu.memory_space<vmem>>, %arg11: memref<1x8x128xbf16, #tpu.memory_space<vmem>>) attributes {dimension_semantics = [#tpu.dimension_semantics<parallel>], iteration_bounds = array<i64: 2>, scalar_prefetch = 0 : i64, scratch_operands = 0 : i64, tpu.core_type = #tpu.core_type<tc>, window_params = [{transform_indices = @transform_0, window_bounds = array<i64: 1, 8, 128>}, {pipeline_mode = #tpu.pipeline_mode<synchronous>, transform_indices = @transform_1, window_bounds = array<i64: 3, 128, 400>}, {pipeline_mode = #tpu.pipeline_mode<synchronous>, transform_indices = @transform_2, window_bounds = array<i64: 1, 400>}, {pipeline_mode = #tpu.pipeline_mode<synchronous>, transform_indices = @transform_3, window_bounds = array<i64: 400, 128>}, {pipeline_mode = #tpu.pipeline_mode<synchronous>, transform_indices = @transform_4, window_bounds = array<i64: 128, 400>}, {pipeline_mode = #tpu.pipeline_mode<synchronous>, transform_indices = @transform_5, window_bounds = array<i64: 2, 400, 400>}, {pipeline_mode = #tpu.pipeline_mode<synchronous>, transform_indices = @transform_6, window_bounds = array<i64: 2, 4, 400, 400>}, {pipeline_mode = #tpu.pipeline_mode<synchronous>, transform_indices = @transform_7, window_bounds = array<i64: 2, 6, 400>}, {pipeline_mode = #tpu.pipeline_mode<synchronous>, transform_indices = @transform_8, window_bounds = array<i64: 3, 400, 128>}, {pipeline_mode = #tpu.pipeline_mode<synchronous>, transform_indices = @transform_9, window_bounds = array<i64: 1, 128>}, {transform_indices = @transform_10, window_bounds = array<i64: 1, 8, 128>}]} {
    %0 = tpu.iota {dimensions = array<i32: 0>} : vector<8x1xi32>
    %c0 = arith.constant 0 : index
    %c0_0 = arith.constant 0 : index
    %c0_1 = arith.constant 0 : index
    %1 = vector.load %arg1[%c0, %c0_0, %c0_1] : memref<1x8x128xbf16, #tpu.memory_space<vmem>>, vector<1x8x128xbf16>
    %2 = vector.shape_cast %1 : vector<1x8x128xbf16> to vector<8x128xbf16>
    %c0_2 = arith.constant 0 : index
    %c0_3 = arith.constant 0 : index
    %c0_4 = arith.constant 0 : index
    %3 = vector.load %arg2[%c0_2, %c0_3, %c0_4] : memref<3x128x400xbf16, #tpu.memory_space<vmem>>, vector<1x128x400xbf16>
    %4 = vector.shape_cast %3 : vector<1x128x400xbf16> to vector<128x400xbf16>
    %cst = arith.constant dense<0.000000e+00> : vector<8x400xf32>
    %5 = tpu.matmul %2, %4, %cst {dimension_numbers = #tpu.dot_dimension_numbers<[1], [0], [0], [1], [0, 0, 1, 1], [], []>} : vector<8x128xbf16>, vector<128x400xbf16>, vector<8x400xf32> -> vector<8x400xf32>
    %c1_i32 = arith.constant 1 : i32
    %6 = tpu.dynamic_rotate %5 by %c1_i32 dim 0 : vector<8x400xf32>, i32 -> vector<8x400xf32>
    %c1_i32_5 = arith.constant 1 : i32
    %7 = vector.broadcast %c1_i32_5 : i32 to vector<8x1xi32>
    %8 = arith.cmpi sge, %0, %7 : vector<8x1xi32>
    %cst_6 = arith.constant 0.000000e+00 : f32
    %9 = vector.shape_cast %8 : vector<8x1xi1> to vector<8x1xi1>
    %10 = vector.broadcast %9 : vector<8x1xi1> to vector<8x400xi1>
    %11 = vector.broadcast %cst_6 : f32 to vector<8x400xf32>
    %12 = arith.select %10, %6, %11 : vector<8x400xi1>, vector<8x400xf32>
    %c1 = arith.constant 1 : index
    %c0_7 = arith.constant 0 : index
    %c0_8 = arith.constant 0 : index
    %13 = vector.load %arg2[%c1, %c0_7, %c0_8] : memref<3x128x400xbf16, #tpu.memory_space<vmem>>, vector<1x128x400xbf16>
    %14 = vector.shape_cast %13 : vector<1x128x400xbf16> to vector<128x400xbf16>
    %cst_9 = arith.constant dense<0.000000e+00> : vector<8x400xf32>
    %15 = tpu.matmul %2, %14, %cst_9 {dimension_numbers = #tpu.dot_dimension_numbers<[1], [0], [0], [1], [0, 0, 1, 1], [], []>} : vector<8x128xbf16>, vector<128x400xbf16>, vector<8x400xf32> -> vector<8x400xf32>
    %16 = arith.addf %12, %15 : vector<8x400xf32>
    %c2 = arith.constant 2 : index
    %c0_10 = arith.constant 0 : index
    %c0_11 = arith.constant 0 : index
    %17 = vector.load %arg2[%c2, %c0_10, %c0_11] : memref<3x128x400xbf16, #tpu.memory_space<vmem>>, vector<1x128x400xbf16>
    %18 = vector.shape_cast %17 : vector<1x128x400xbf16> to vector<128x400xbf16>
    %cst_12 = arith.constant dense<0.000000e+00> : vector<8x400xf32>
    %19 = tpu.matmul %2, %18, %cst_12 {dimension_numbers = #tpu.dot_dimension_numbers<[1], [0], [0], [1], [0, 0, 1, 1], [], []>} : vector<8x128xbf16>, vector<128x400xbf16>, vector<8x400xf32> -> vector<8x400xf32>
    %c7_i32 = arith.constant 7 : i32
    %20 = tpu.dynamic_rotate %19 by %c7_i32 dim 0 : vector<8x400xf32>, i32 -> vector<8x400xf32>
    %c7_i32_13 = arith.constant 7 : i32
    %21 = vector.broadcast %c7_i32_13 : i32 to vector<8x1xi32>
    %22 = arith.cmpi slt, %0, %21 : vector<8x1xi32>
    %cst_14 = arith.constant 0.000000e+00 : f32
    %23 = vector.shape_cast %22 : vector<8x1xi1> to vector<8x1xi1>
    %24 = vector.broadcast %23 : vector<8x1xi1> to vector<8x400xi1>
    %25 = vector.broadcast %cst_14 : f32 to vector<8x400xf32>
    %26 = arith.select %24, %20, %25 : vector<8x400xi1>, vector<8x400xf32>
    %27 = arith.addf %16, %26 : vector<8x400xf32>
    %c0_15 = arith.constant 0 : index
    %c0_16 = arith.constant 0 : index
    %28 = vector.load %arg3[%c0_15, %c0_16] : memref<1x400xf32, #tpu.memory_space<vmem>>, vector<1x400xf32>
    %29 = vector.broadcast %28 : vector<1x400xf32> to vector<8x400xf32>
    %30 = arith.addf %27, %29 : vector<8x400xf32>
    %c0_17 = arith.constant 0 : index
    %c0_18 = arith.constant 0 : index
    %c0_19 = arith.constant 0 : index
    %31 = vector.load %arg8[%c0_17, %c0_18, %c0_19] : memref<2x6x400xf32, #tpu.memory_space<vmem>>, vector<1x6x400xf32>
    %32 = vector.shape_cast %31 : vector<1x6x400xf32> to vector<6x400xf32>
    %33 = vector.extract_strided_slice %32 {offsets = [0, 0], sizes = [1, 400], strides = [1, 1]} : vector<6x400xf32> to vector<1x400xf32>
    %34 = vector.extract_strided_slice %32 {offsets = [1, 0], sizes = [1, 400], strides = [1, 1]} : vector<6x400xf32> to vector<1x400xf32>
    %c0_20 = arith.constant 0 : index
    %c0_21 = arith.constant 0 : index
    %35 = vector.load %arg4[%c0_20, %c0_21] : memref<400x128xbf16, #tpu.memory_space<vmem>>, vector<400x128xbf16>
    %c0_22 = arith.constant 0 : index
    %c0_23 = arith.constant 0 : index
    %36 = vector.load %arg5[%c0_22, %c0_23] : memref<128x400xbf16, #tpu.memory_space<vmem>>, vector<128x400xbf16>
    %37 = arith.truncf %30 : vector<8x400xf32> to vector<8x400xbf16>
    %cst_24 = arith.constant dense<0.000000e+00> : vector<8x128xf32>
    %38 = tpu.matmul %37, %35, %cst_24 {dimension_numbers = #tpu.dot_dimension_numbers<[1], [0], [0], [1], [0, 0, 1, 1], [], []>} : vector<8x400xbf16>, vector<400x128xbf16>, vector<8x128xf32> -> vector<8x128xf32>
    %39 = arith.truncf %38 : vector<8x128xf32> to vector<8x128xbf16>
    %cst_25 = arith.constant dense<0.000000e+00> : vector<8x400xf32>
    %40 = tpu.matmul %39, %36, %cst_25 {dimension_numbers = #tpu.dot_dimension_numbers<[1], [0], [0], [1], [0, 0, 1, 1], [], []>} : vector<8x128xbf16>, vector<128x400xbf16>, vector<8x400xf32> -> vector<8x400xf32>
    %41 = arith.subf %30, %40 : vector<8x400xf32>
    %42 = arith.truncf %41 : vector<8x400xf32> to vector<8x400xbf16>
    %43 = arith.mulf %42, %42 : vector<8x400xbf16>
    %cst_26 = arith.constant dense<0.000000e+00> : vector<8x128xf32>
    %44 = tpu.matmul %43, %35, %cst_26 {dimension_numbers = #tpu.dot_dimension_numbers<[1], [0], [0], [1], [0, 0, 1, 1], [], []>} : vector<8x400xbf16>, vector<400x128xbf16>, vector<8x128xf32> -> vector<8x128xf32>
    %cst_27 = arith.constant 9.99999974E-6 : f32
    %45 = vector.broadcast %cst_27 : f32 to vector<8x128xf32>
    %46 = arith.addf %44, %45 : vector<8x128xf32>
    %47 = math.rsqrt %46 : vector<8x128xf32>
    %48 = arith.truncf %47 : vector<8x128xf32> to vector<8x128xbf16>
    %cst_28 = arith.constant dense<0.000000e+00> : vector<8x400xf32>
    %49 = tpu.matmul %48, %36, %cst_28 {dimension_numbers = #tpu.dot_dimension_numbers<[1], [0], [0], [1], [0, 0, 1, 1], [], []>} : vector<8x128xbf16>, vector<128x400xbf16>, vector<8x400xf32> -> vector<8x400xf32>
    %50 = arith.mulf %41, %49 : vector<8x400xf32>
    %51 = vector.broadcast %33 : vector<1x400xf32> to vector<8x400xf32>
    %52 = arith.mulf %50, %51 : vector<8x400xf32>
    %53 = vector.broadcast %34 : vector<1x400xf32> to vector<8x400xf32>
    %54 = arith.addf %52, %53 : vector<8x400xf32>
    %55 = arith.truncf %54 : vector<8x400xf32> to vector<8x400xbf16>
    %c0_29 = arith.constant 0 : index
    %c0_30 = arith.constant 0 : index
    %c0_31 = arith.constant 0 : index
    %56 = vector.load %arg6[%c0_29, %c0_30, %c0_31] : memref<2x400x400xbf16, #tpu.memory_space<vmem>>, vector<1x400x400xbf16>
    %57 = vector.shape_cast %56 : vector<1x400x400xbf16> to vector<400x400xbf16>
    %cst_32 = arith.constant dense<0.000000e+00> : vector<8x400xf32>
    %58 = tpu.matmul %55, %57, %cst_32 {dimension_numbers = #tpu.dot_dimension_numbers<[1], [0], [0], [1], [0, 0, 1, 1], [], []>} : vector<8x400xbf16>, vector<400x400xbf16>, vector<8x400xf32> -> vector<8x400xf32>
    %59 = vector.extract_strided_slice %32 {offsets = [2, 0], sizes = [1, 400], strides = [1, 1]} : vector<6x400xf32> to vector<1x400xf32>
    %60 = vector.broadcast %59 : vector<1x400xf32> to vector<8x400xf32>
    %61 = arith.addf %58, %60 : vector<8x400xf32>
    %62 = math.tanh %61 : vector<8x400xf32>
    %63 = arith.addf %62, %30 : vector<8x400xf32>
    %64 = vector.extract_strided_slice %32 {offsets = [3, 0], sizes = [1, 400], strides = [1, 1]} : vector<6x400xf32> to vector<1x400xf32>
    %65 = vector.extract_strided_slice %32 {offsets = [4, 0], sizes = [1, 400], strides = [1, 1]} : vector<6x400xf32> to vector<1x400xf32>
    %c0_33 = arith.constant 0 : index
    %c0_34 = arith.constant 0 : index
    %66 = vector.load %arg4[%c0_33, %c0_34] : memref<400x128xbf16, #tpu.memory_space<vmem>>, vector<400x128xbf16>
    %c0_35 = arith.constant 0 : index
    %c0_36 = arith.constant 0 : index
    %67 = vector.load %arg5[%c0_35, %c0_36] : memref<128x400xbf16, #tpu.memory_space<vmem>>, vector<128x400xbf16>
    %68 = arith.truncf %63 : vector<8x400xf32> to vector<8x400xbf16>
    %cst_37 = arith.constant dense<0.000000e+00> : vector<8x128xf32>
    %69 = tpu.matmul %68, %66, %cst_37 {dimension_numbers = #tpu.dot_dimension_numbers<[1], [0], [0], [1], [0, 0, 1, 1], [], []>} : vector<8x400xbf16>, vector<400x128xbf16>, vector<8x128xf32> -> vector<8x128xf32>
    %70 = arith.truncf %69 : vector<8x128xf32> to vector<8x128xbf16>
    %cst_38 = arith.constant dense<0.000000e+00> : vector<8x400xf32>
    %71 = tpu.matmul %70, %67, %cst_38 {dimension_numbers = #tpu.dot_dimension_numbers<[1], [0], [0], [1], [0, 0, 1, 1], [], []>} : vector<8x128xbf16>, vector<128x400xbf16>, vector<8x400xf32> -> vector<8x400xf32>
    %72 = arith.subf %63, %71 : vector<8x400xf32>
    %73 = arith.truncf %72 : vector<8x400xf32> to vector<8x400xbf16>
    %74 = arith.mulf %73, %73 : vector<8x400xbf16>
    %cst_39 = arith.constant dense<0.000000e+00> : vector<8x128xf32>
    %75 = tpu.matmul %74, %66, %cst_39 {dimension_numbers = #tpu.dot_dimension_numbers<[1], [0], [0], [1], [0, 0, 1, 1], [], []>} : vector<8x400xbf16>, vector<400x128xbf16>, vector<8x128xf32> -> vector<8x128xf32>
    %cst_40 = arith.constant 9.99999974E-6 : f32
    %76 = vector.broadcast %cst_40 : f32 to vector<8x128xf32>
    %77 = arith.addf %75, %76 : vector<8x128xf32>
    %78 = math.rsqrt %77 : vector<8x128xf32>
    %79 = arith.truncf %78 : vector<8x128xf32> to vector<8x128xbf16>
    %cst_41 = arith.constant dense<0.000000e+00> : vector<8x400xf32>
    %80 = tpu.matmul %79, %67, %cst_41 {dimension_numbers = #tpu.dot_dimension_numbers<[1], [0], [0], [1], [0, 0, 1, 1], [], []>} : vector<8x128xbf16>, vector<128x400xbf16>, vector<8x400xf32> -> vector<8x400xf32>
    %81 = arith.mulf %72, %80 : vector<8x400xf32>
    %82 = vector.broadcast %64 : vector<1x400xf32> to vector<8x400xf32>
    %83 = arith.mulf %81, %82 : vector<8x400xf32>
    %84 = vector.broadcast %65 : vector<1x400xf32> to vector<8x400xf32>
    %85 = arith.addf %83, %84 : vector<8x400xf32>
    %86 = arith.truncf %85 : vector<8x400xf32> to vector<8x400xbf16>
    %c0_42 = arith.constant 0 : index
    %c0_43 = arith.constant 0 : index
    %c0_44 = arith.constant 0 : index
    %c0_45 = arith.constant 0 : index
    %87 = vector.load %arg7[%c0_42, %c0_43, %c0_44, %c0_45] : memref<2x4x400x400xbf16, #tpu.memory_space<vmem>>, vector<1x1x400x400xbf16>
    %88 = vector.shape_cast %87 : vector<1x1x400x400xbf16> to vector<400x400xbf16>
    %cst_46 = arith.constant dense<0.000000e+00> : vector<8x400xf32>
    %89 = tpu.matmul %86, %88, %cst_46 {dimension_numbers = #tpu.dot_dimension_numbers<[1], [0], [0], [1], [0, 0, 1, 1], [], []>} : vector<8x400xbf16>, vector<400x400xbf16>, vector<8x400xf32> -> vector<8x400xf32>
    %c0_47 = arith.constant 0 : index
    %c1_48 = arith.constant 1 : index
    %c0_49 = arith.constant 0 : index
    %c0_50 = arith.constant 0 : index
    %90 = vector.load %arg7[%c0_47, %c1_48, %c0_49, %c0_50] : memref<2x4x400x400xbf16, #tpu.memory_space<vmem>>, vector<1x1x400x400xbf16>
    %91 = vector.shape_cast %90 : vector<1x1x400x400xbf16> to vector<400x400xbf16>
    %cst_51 = arith.constant dense<0.000000e+00> : vector<8x400xf32>
    %92 = tpu.matmul %86, %91, %cst_51 {dimension_numbers = #tpu.dot_dimension_numbers<[1], [0], [0], [1], [0, 0, 1, 1], [], []>} : vector<8x400xbf16>, vector<400x400xbf16>, vector<8x400xf32> -> vector<8x400xf32>
    %c1_i32_52 = arith.constant 1 : i32
    %93 = tpu.dynamic_rotate %92 by %c1_i32_52 dim 0 : vector<8x400xf32>, i32 -> vector<8x400xf32>
    %c1_i32_53 = arith.constant 1 : i32
    %94 = vector.broadcast %c1_i32_53 : i32 to vector<8x1xi32>
    %95 = arith.cmpi sge, %0, %94 : vector<8x1xi32>
    %cst_54 = arith.constant 0.000000e+00 : f32
    %96 = vector.shape_cast %95 : vector<8x1xi1> to vector<8x1xi1>
    %97 = vector.broadcast %96 : vector<8x1xi1> to vector<8x400xi1>
    %98 = vector.broadcast %cst_54 : f32 to vector<8x400xf32>
    %99 = arith.select %97, %93, %98 : vector<8x400xi1>, vector<8x400xf32>
    %100 = arith.addf %89, %99 : vector<8x400xf32>
    %c0_55 = arith.constant 0 : index
    %c2_56 = arith.constant 2 : index
    %c0_57 = arith.constant 0 : index
    %c0_58 = arith.constant 0 : index
    %101 = vector.load %arg7[%c0_55, %c2_56, %c0_57, %c0_58] : memref<2x4x400x400xbf16, #tpu.memory_space<vmem>>, vector<1x1x400x400xbf16>
    %102 = vector.shape_cast %101 : vector<1x1x400x400xbf16> to vector<400x400xbf16>
    %cst_59 = arith.constant dense<0.000000e+00> : vector<8x400xf32>
    %103 = tpu.matmul %86, %102, %cst_59 {dimension_numbers = #tpu.dot_dimension_numbers<[1], [0], [0], [1], [0, 0, 1, 1], [], []>} : vector<8x400xbf16>, vector<400x400xbf16>, vector<8x400xf32> -> vector<8x400xf32>
    %c2_i32 = arith.constant 2 : i32
    %104 = tpu.dynamic_rotate %103 by %c2_i32 dim 0 : vector<8x400xf32>, i32 -> vector<8x400xf32>
    %c2_i32_60 = arith.constant 2 : i32
    %105 = vector.broadcast %c2_i32_60 : i32 to vector<8x1xi32>
    %106 = arith.cmpi sge, %0, %105 : vector<8x1xi32>
    %cst_61 = arith.constant 0.000000e+00 : f32
    %107 = vector.shape_cast %106 : vector<8x1xi1> to vector<8x1xi1>
    %108 = vector.broadcast %107 : vector<8x1xi1> to vector<8x400xi1>
    %109 = vector.broadcast %cst_61 : f32 to vector<8x400xf32>
    %110 = arith.select %108, %104, %109 : vector<8x400xi1>, vector<8x400xf32>
    %111 = arith.addf %100, %110 : vector<8x400xf32>
    %c0_62 = arith.constant 0 : index
    %c3 = arith.constant 3 : index
    %c0_63 = arith.constant 0 : index
    %c0_64 = arith.constant 0 : index
    %112 = vector.load %arg7[%c0_62, %c3, %c0_63, %c0_64] : memref<2x4x400x400xbf16, #tpu.memory_space<vmem>>, vector<1x1x400x400xbf16>
    %113 = vector.shape_cast %112 : vector<1x1x400x400xbf16> to vector<400x400xbf16>
    %cst_65 = arith.constant dense<0.000000e+00> : vector<8x400xf32>
    %114 = tpu.matmul %86, %113, %cst_65 {dimension_numbers = #tpu.dot_dimension_numbers<[1], [0], [0], [1], [0, 0, 1, 1], [], []>} : vector<8x400xbf16>, vector<400x400xbf16>, vector<8x400xf32> -> vector<8x400xf32>
    %c3_i32 = arith.constant 3 : i32
    %115 = tpu.dynamic_rotate %114 by %c3_i32 dim 0 : vector<8x400xf32>, i32 -> vector<8x400xf32>
    %c3_i32_66 = arith.constant 3 : i32
    %116 = vector.broadcast %c3_i32_66 : i32 to vector<8x1xi32>
    %117 = arith.cmpi sge, %0, %116 : vector<8x1xi32>
    %cst_67 = arith.constant 0.000000e+00 : f32
    %118 = vector.shape_cast %117 : vector<8x1xi1> to vector<8x1xi1>
    %119 = vector.broadcast %118 : vector<8x1xi1> to vector<8x400xi1>
    %120 = vector.broadcast %cst_67 : f32 to vector<8x400xf32>
    %121 = arith.select %119, %115, %120 : vector<8x400xi1>, vector<8x400xf32>
    %122 = arith.addf %111, %121 : vector<8x400xf32>
    %123 = vector.extract_strided_slice %32 {offsets = [5, 0], sizes = [1, 400], strides = [1, 1]} : vector<6x400xf32> to vector<1x400xf32>
    %124 = vector.broadcast %123 : vector<1x400xf32> to vector<8x400xf32>
    %125 = arith.addf %122, %124 : vector<8x400xf32>
    %126 = math.tanh %125 : vector<8x400xf32>
    %127 = arith.addf %126, %63 : vector<8x400xf32>
    %c1_68 = arith.constant 1 : index
    %c0_69 = arith.constant 0 : index
    %c0_70 = arith.constant 0 : index
    %128 = vector.load %arg8[%c1_68, %c0_69, %c0_70] : memref<2x6x400xf32, #tpu.memory_space<vmem>>, vector<1x6x400xf32>
    %129 = vector.shape_cast %128 : vector<1x6x400xf32> to vector<6x400xf32>
    %130 = vector.extract_strided_slice %129 {offsets = [0, 0], sizes = [1, 400], strides = [1, 1]} : vector<6x400xf32> to vector<1x400xf32>
    %131 = vector.extract_strided_slice %129 {offsets = [1, 0], sizes = [1, 400], strides = [1, 1]} : vector<6x400xf32> to vector<1x400xf32>
    %c0_71 = arith.constant 0 : index
    %c0_72 = arith.constant 0 : index
    %132 = vector.load %arg4[%c0_71, %c0_72] : memref<400x128xbf16, #tpu.memory_space<vmem>>, vector<400x128xbf16>
    %c0_73 = arith.constant 0 : index
    %c0_74 = arith.constant 0 : index
    %133 = vector.load %arg5[%c0_73, %c0_74] : memref<128x400xbf16, #tpu.memory_space<vmem>>, vector<128x400xbf16>
    %134 = arith.truncf %127 : vector<8x400xf32> to vector<8x400xbf16>
    %cst_75 = arith.constant dense<0.000000e+00> : vector<8x128xf32>
    %135 = tpu.matmul %134, %132, %cst_75 {dimension_numbers = #tpu.dot_dimension_numbers<[1], [0], [0], [1], [0, 0, 1, 1], [], []>} : vector<8x400xbf16>, vector<400x128xbf16>, vector<8x128xf32> -> vector<8x128xf32>
    %136 = arith.truncf %135 : vector<8x128xf32> to vector<8x128xbf16>
    %cst_76 = arith.constant dense<0.000000e+00> : vector<8x400xf32>
    %137 = tpu.matmul %136, %133, %cst_76 {dimension_numbers = #tpu.dot_dimension_numbers<[1], [0], [0], [1], [0, 0, 1, 1], [], []>} : vector<8x128xbf16>, vector<128x400xbf16>, vector<8x400xf32> -> vector<8x400xf32>
    %138 = arith.subf %127, %137 : vector<8x400xf32>
    %139 = arith.truncf %138 : vector<8x400xf32> to vector<8x400xbf16>
    %140 = arith.mulf %139, %139 : vector<8x400xbf16>
    %cst_77 = arith.constant dense<0.000000e+00> : vector<8x128xf32>
    %141 = tpu.matmul %140, %132, %cst_77 {dimension_numbers = #tpu.dot_dimension_numbers<[1], [0], [0], [1], [0, 0, 1, 1], [], []>} : vector<8x400xbf16>, vector<400x128xbf16>, vector<8x128xf32> -> vector<8x128xf32>
    %cst_78 = arith.constant 9.99999974E-6 : f32
    %142 = vector.broadcast %cst_78 : f32 to vector<8x128xf32>
    %143 = arith.addf %141, %142 : vector<8x128xf32>
    %144 = math.rsqrt %143 : vector<8x128xf32>
    %145 = arith.truncf %144 : vector<8x128xf32> to vector<8x128xbf16>
    %cst_79 = arith.constant dense<0.000000e+00> : vector<8x400xf32>
    %146 = tpu.matmul %145, %133, %cst_79 {dimension_numbers = #tpu.dot_dimension_numbers<[1], [0], [0], [1], [0, 0, 1, 1], [], []>} : vector<8x128xbf16>, vector<128x400xbf16>, vector<8x400xf32> -> vector<8x400xf32>
    %147 = arith.mulf %138, %146 : vector<8x400xf32>
    %148 = vector.broadcast %130 : vector<1x400xf32> to vector<8x400xf32>
    %149 = arith.mulf %147, %148 : vector<8x400xf32>
    %150 = vector.broadcast %131 : vector<1x400xf32> to vector<8x400xf32>
    %151 = arith.addf %149, %150 : vector<8x400xf32>
    %152 = arith.truncf %151 : vector<8x400xf32> to vector<8x400xbf16>
    %c1_80 = arith.constant 1 : index
    %c0_81 = arith.constant 0 : index
    %c0_82 = arith.constant 0 : index
    %153 = vector.load %arg6[%c1_80, %c0_81, %c0_82] : memref<2x400x400xbf16, #tpu.memory_space<vmem>>, vector<1x400x400xbf16>
    %154 = vector.shape_cast %153 : vector<1x400x400xbf16> to vector<400x400xbf16>
    %cst_83 = arith.constant dense<0.000000e+00> : vector<8x400xf32>
    %155 = tpu.matmul %152, %154, %cst_83 {dimension_numbers = #tpu.dot_dimension_numbers<[1], [0], [0], [1], [0, 0, 1, 1], [], []>} : vector<8x400xbf16>, vector<400x400xbf16>, vector<8x400xf32> -> vector<8x400xf32>
    %156 = vector.extract_strided_slice %129 {offsets = [2, 0], sizes = [1, 400], strides = [1, 1]} : vector<6x400xf32> to vector<1x400xf32>
    %157 = vector.broadcast %156 : vector<1x400xf32> to vector<8x400xf32>
    %158 = arith.addf %155, %157 : vector<8x400xf32>
    %159 = math.tanh %158 : vector<8x400xf32>
    %160 = arith.addf %159, %127 : vector<8x400xf32>
    %161 = vector.extract_strided_slice %129 {offsets = [3, 0], sizes = [1, 400], strides = [1, 1]} : vector<6x400xf32> to vector<1x400xf32>
    %162 = vector.extract_strided_slice %129 {offsets = [4, 0], sizes = [1, 400], strides = [1, 1]} : vector<6x400xf32> to vector<1x400xf32>
    %c0_84 = arith.constant 0 : index
    %c0_85 = arith.constant 0 : index
    %163 = vector.load %arg4[%c0_84, %c0_85] : memref<400x128xbf16, #tpu.memory_space<vmem>>, vector<400x128xbf16>
    %c0_86 = arith.constant 0 : index
    %c0_87 = arith.constant 0 : index
    %164 = vector.load %arg5[%c0_86, %c0_87] : memref<128x400xbf16, #tpu.memory_space<vmem>>, vector<128x400xbf16>
    %165 = arith.truncf %160 : vector<8x400xf32> to vector<8x400xbf16>
    %cst_88 = arith.constant dense<0.000000e+00> : vector<8x128xf32>
    %166 = tpu.matmul %165, %163, %cst_88 {dimension_numbers = #tpu.dot_dimension_numbers<[1], [0], [0], [1], [0, 0, 1, 1], [], []>} : vector<8x400xbf16>, vector<400x128xbf16>, vector<8x128xf32> -> vector<8x128xf32>
    %167 = arith.truncf %166 : vector<8x128xf32> to vector<8x128xbf16>
    %cst_89 = arith.constant dense<0.000000e+00> : vector<8x400xf32>
    %168 = tpu.matmul %167, %164, %cst_89 {dimension_numbers = #tpu.dot_dimension_numbers<[1], [0], [0], [1], [0, 0, 1, 1], [], []>} : vector<8x128xbf16>, vector<128x400xbf16>, vector<8x400xf32> -> vector<8x400xf32>
    %169 = arith.subf %160, %168 : vector<8x400xf32>
    %170 = arith.truncf %169 : vector<8x400xf32> to vector<8x400xbf16>
    %171 = arith.mulf %170, %170 : vector<8x400xbf16>
    %cst_90 = arith.constant dense<0.000000e+00> : vector<8x128xf32>
    %172 = tpu.matmul %171, %163, %cst_90 {dimension_numbers = #tpu.dot_dimension_numbers<[1], [0], [0], [1], [0, 0, 1, 1], [], []>} : vector<8x400xbf16>, vector<400x128xbf16>, vector<8x128xf32> -> vector<8x128xf32>
    %cst_91 = arith.constant 9.99999974E-6 : f32
    %173 = vector.broadcast %cst_91 : f32 to vector<8x128xf32>
    %174 = arith.addf %172, %173 : vector<8x128xf32>
    %175 = math.rsqrt %174 : vector<8x128xf32>
    %176 = arith.truncf %175 : vector<8x128xf32> to vector<8x128xbf16>
    %cst_92 = arith.constant dense<0.000000e+00> : vector<8x400xf32>
    %177 = tpu.matmul %176, %164, %cst_92 {dimension_numbers = #tpu.dot_dimension_numbers<[1], [0], [0], [1], [0, 0, 1, 1], [], []>} : vector<8x128xbf16>, vector<128x400xbf16>, vector<8x400xf32> -> vector<8x400xf32>
    %178 = arith.mulf %169, %177 : vector<8x400xf32>
    %179 = vector.broadcast %161 : vector<1x400xf32> to vector<8x400xf32>
    %180 = arith.mulf %178, %179 : vector<8x400xf32>
    %181 = vector.broadcast %162 : vector<1x400xf32> to vector<8x400xf32>
    %182 = arith.addf %180, %181 : vector<8x400xf32>
    %183 = arith.truncf %182 : vector<8x400xf32> to vector<8x400xbf16>
    %c1_93 = arith.constant 1 : index
    %c0_94 = arith.constant 0 : index
    %c0_95 = arith.constant 0 : index
    %c0_96 = arith.constant 0 : index
    %184 = vector.load %arg7[%c1_93, %c0_94, %c0_95, %c0_96] : memref<2x4x400x400xbf16, #tpu.memory_space<vmem>>, vector<1x1x400x400xbf16>
    %185 = vector.shape_cast %184 : vector<1x1x400x400xbf16> to vector<400x400xbf16>
    %cst_97 = arith.constant dense<0.000000e+00> : vector<8x400xf32>
    %186 = tpu.matmul %183, %185, %cst_97 {dimension_numbers = #tpu.dot_dimension_numbers<[1], [0], [0], [1], [0, 0, 1, 1], [], []>} : vector<8x400xbf16>, vector<400x400xbf16>, vector<8x400xf32> -> vector<8x400xf32>
    %c1_98 = arith.constant 1 : index
    %c1_99 = arith.constant 1 : index
    %c0_100 = arith.constant 0 : index
    %c0_101 = arith.constant 0 : index
    %187 = vector.load %arg7[%c1_98, %c1_99, %c0_100, %c0_101] : memref<2x4x400x400xbf16, #tpu.memory_space<vmem>>, vector<1x1x400x400xbf16>
    %188 = vector.shape_cast %187 : vector<1x1x400x400xbf16> to vector<400x400xbf16>
    %cst_102 = arith.constant dense<0.000000e+00> : vector<8x400xf32>
    %189 = tpu.matmul %183, %188, %cst_102 {dimension_numbers = #tpu.dot_dimension_numbers<[1], [0], [0], [1], [0, 0, 1, 1], [], []>} : vector<8x400xbf16>, vector<400x400xbf16>, vector<8x400xf32> -> vector<8x400xf32>
    %c1_i32_103 = arith.constant 1 : i32
    %190 = tpu.dynamic_rotate %189 by %c1_i32_103 dim 0 : vector<8x400xf32>, i32 -> vector<8x400xf32>
    %c1_i32_104 = arith.constant 1 : i32
    %191 = vector.broadcast %c1_i32_104 : i32 to vector<8x1xi32>
    %192 = arith.cmpi sge, %0, %191 : vector<8x1xi32>
    %cst_105 = arith.constant 0.000000e+00 : f32
    %193 = vector.shape_cast %192 : vector<8x1xi1> to vector<8x1xi1>
    %194 = vector.broadcast %193 : vector<8x1xi1> to vector<8x400xi1>
    %195 = vector.broadcast %cst_105 : f32 to vector<8x400xf32>
    %196 = arith.select %194, %190, %195 : vector<8x400xi1>, vector<8x400xf32>
    %197 = arith.addf %186, %196 : vector<8x400xf32>
    %c1_106 = arith.constant 1 : index
    %c2_107 = arith.constant 2 : index
    %c0_108 = arith.constant 0 : index
    %c0_109 = arith.constant 0 : index
    %198 = vector.load %arg7[%c1_106, %c2_107, %c0_108, %c0_109] : memref<2x4x400x400xbf16, #tpu.memory_space<vmem>>, vector<1x1x400x400xbf16>
    %199 = vector.shape_cast %198 : vector<1x1x400x400xbf16> to vector<400x400xbf16>
    %cst_110 = arith.constant dense<0.000000e+00> : vector<8x400xf32>
    %200 = tpu.matmul %183, %199, %cst_110 {dimension_numbers = #tpu.dot_dimension_numbers<[1], [0], [0], [1], [0, 0, 1, 1], [], []>} : vector<8x400xbf16>, vector<400x400xbf16>, vector<8x400xf32> -> vector<8x400xf32>
    %c2_i32_111 = arith.constant 2 : i32
    %201 = tpu.dynamic_rotate %200 by %c2_i32_111 dim 0 : vector<8x400xf32>, i32 -> vector<8x400xf32>
    %c2_i32_112 = arith.constant 2 : i32
    %202 = vector.broadcast %c2_i32_112 : i32 to vector<8x1xi32>
    %203 = arith.cmpi sge, %0, %202 : vector<8x1xi32>
    %cst_113 = arith.constant 0.000000e+00 : f32
    %204 = vector.shape_cast %203 : vector<8x1xi1> to vector<8x1xi1>
    %205 = vector.broadcast %204 : vector<8x1xi1> to vector<8x400xi1>
    %206 = vector.broadcast %cst_113 : f32 to vector<8x400xf32>
    %207 = arith.select %205, %201, %206 : vector<8x400xi1>, vector<8x400xf32>
    %208 = arith.addf %197, %207 : vector<8x400xf32>
    %c1_114 = arith.constant 1 : index
    %c3_115 = arith.constant 3 : index
    %c0_116 = arith.constant 0 : index
    %c0_117 = arith.constant 0 : index
    %209 = vector.load %arg7[%c1_114, %c3_115, %c0_116, %c0_117] : memref<2x4x400x400xbf16, #tpu.memory_space<vmem>>, vector<1x1x400x400xbf16>
    %210 = vector.shape_cast %209 : vector<1x1x400x400xbf16> to vector<400x400xbf16>
    %cst_118 = arith.constant dense<0.000000e+00> : vector<8x400xf32>
    %211 = tpu.matmul %183, %210, %cst_118 {dimension_numbers = #tpu.dot_dimension_numbers<[1], [0], [0], [1], [0, 0, 1, 1], [], []>} : vector<8x400xbf16>, vector<400x400xbf16>, vector<8x400xf32> -> vector<8x400xf32>
    %c3_i32_119 = arith.constant 3 : i32
    %212 = tpu.dynamic_rotate %211 by %c3_i32_119 dim 0 : vector<8x400xf32>, i32 -> vector<8x400xf32>
    %c3_i32_120 = arith.constant 3 : i32
    %213 = vector.broadcast %c3_i32_120 : i32 to vector<8x1xi32>
    %214 = arith.cmpi sge, %0, %213 : vector<8x1xi32>
    %cst_121 = arith.constant 0.000000e+00 : f32
    %215 = vector.shape_cast %214 : vector<8x1xi1> to vector<8x1xi1>
    %216 = vector.broadcast %215 : vector<8x1xi1> to vector<8x400xi1>
    %217 = vector.broadcast %cst_121 : f32 to vector<8x400xf32>
    %218 = arith.select %216, %212, %217 : vector<8x400xi1>, vector<8x400xf32>
    %219 = arith.addf %208, %218 : vector<8x400xf32>
    %220 = vector.extract_strided_slice %129 {offsets = [5, 0], sizes = [1, 400], strides = [1, 1]} : vector<6x400xf32> to vector<1x400xf32>
    %221 = vector.broadcast %220 : vector<1x400xf32> to vector<8x400xf32>
    %222 = arith.addf %219, %221 : vector<8x400xf32>
    %223 = math.tanh %222 : vector<8x400xf32>
    %224 = arith.addf %223, %160 : vector<8x400xf32>
    %c4_i32 = arith.constant 4 : i32
    %225 = vector.broadcast %c4_i32 : i32 to vector<8x1xi32>
    %226 = arith.cmpi slt, %0, %225 : vector<8x1xi32>
    %cst_122 = arith.constant 0.000000e+00 : f32
    %227 = vector.shape_cast %226 : vector<8x1xi1> to vector<8x1xi1>
    %228 = vector.broadcast %227 : vector<8x1xi1> to vector<8x400xi1>
    %229 = vector.broadcast %cst_122 : f32 to vector<8x400xf32>
    %230 = arith.select %228, %224, %229 : vector<8x400xi1>, vector<8x400xf32>
    %231 = arith.truncf %230 : vector<8x400xf32> to vector<8x400xbf16>
    %c0_123 = arith.constant 0 : index
    %c0_124 = arith.constant 0 : index
    %c0_125 = arith.constant 0 : index
    %232 = vector.load %arg9[%c0_123, %c0_124, %c0_125] : memref<3x400x128xbf16, #tpu.memory_space<vmem>>, vector<1x400x128xbf16>
    %233 = vector.shape_cast %232 : vector<1x400x128xbf16> to vector<400x128xbf16>
    %cst_126 = arith.constant dense<0.000000e+00> : vector<8x128xf32>
    %234 = tpu.matmul %231, %233, %cst_126 {dimension_numbers = #tpu.dot_dimension_numbers<[1], [0], [0], [1], [0, 0, 1, 1], [], []>} : vector<8x400xbf16>, vector<400x128xbf16>, vector<8x128xf32> -> vector<8x128xf32>
    %c1_i32_127 = arith.constant 1 : i32
    %235 = tpu.dynamic_rotate %234 by %c1_i32_127 dim 0 : vector<8x128xf32>, i32 -> vector<8x128xf32>
    %c1_i32_128 = arith.constant 1 : i32
    %236 = vector.broadcast %c1_i32_128 : i32 to vector<8x1xi32>
    %237 = arith.cmpi sge, %0, %236 : vector<8x1xi32>
    %cst_129 = arith.constant 0.000000e+00 : f32
    %238 = vector.shape_cast %237 : vector<8x1xi1> to vector<8x1xi1>
    %239 = vector.broadcast %238 : vector<8x1xi1> to vector<8x128xi1>
    %240 = vector.broadcast %cst_129 : f32 to vector<8x128xf32>
    %241 = arith.select %239, %235, %240 : vector<8x128xi1>, vector<8x128xf32>
    %c1_130 = arith.constant 1 : index
    %c0_131 = arith.constant 0 : index
    %c0_132 = arith.constant 0 : index
    %242 = vector.load %arg9[%c1_130, %c0_131, %c0_132] : memref<3x400x128xbf16, #tpu.memory_space<vmem>>, vector<1x400x128xbf16>
    %243 = vector.shape_cast %242 : vector<1x400x128xbf16> to vector<400x128xbf16>
    %cst_133 = arith.constant dense<0.000000e+00> : vector<8x128xf32>
    %244 = tpu.matmul %231, %243, %cst_133 {dimension_numbers = #tpu.dot_dimension_numbers<[1], [0], [0], [1], [0, 0, 1, 1], [], []>} : vector<8x400xbf16>, vector<400x128xbf16>, vector<8x128xf32> -> vector<8x128xf32>
    %245 = arith.addf %241, %244 : vector<8x128xf32>
    %c2_134 = arith.constant 2 : index
    %c0_135 = arith.constant 0 : index
    %c0_136 = arith.constant 0 : index
    %246 = vector.load %arg9[%c2_134, %c0_135, %c0_136] : memref<3x400x128xbf16, #tpu.memory_space<vmem>>, vector<1x400x128xbf16>
    %247 = vector.shape_cast %246 : vector<1x400x128xbf16> to vector<400x128xbf16>
    %cst_137 = arith.constant dense<0.000000e+00> : vector<8x128xf32>
    %248 = tpu.matmul %231, %247, %cst_137 {dimension_numbers = #tpu.dot_dimension_numbers<[1], [0], [0], [1], [0, 0, 1, 1], [], []>} : vector<8x400xbf16>, vector<400x128xbf16>, vector<8x128xf32> -> vector<8x128xf32>
    %c7_i32_138 = arith.constant 7 : i32
    %249 = tpu.dynamic_rotate %248 by %c7_i32_138 dim 0 : vector<8x128xf32>, i32 -> vector<8x128xf32>
    %c7_i32_139 = arith.constant 7 : i32
    %250 = vector.broadcast %c7_i32_139 : i32 to vector<8x1xi32>
    %251 = arith.cmpi slt, %0, %250 : vector<8x1xi32>
    %cst_140 = arith.constant 0.000000e+00 : f32
    %252 = vector.shape_cast %251 : vector<8x1xi1> to vector<8x1xi1>
    %253 = vector.broadcast %252 : vector<8x1xi1> to vector<8x128xi1>
    %254 = vector.broadcast %cst_140 : f32 to vector<8x128xf32>
    %255 = arith.select %253, %249, %254 : vector<8x128xi1>, vector<8x128xf32>
    %256 = arith.addf %245, %255 : vector<8x128xf32>
    %c0_141 = arith.constant 0 : index
    %c0_142 = arith.constant 0 : index
    %257 = vector.load %arg10[%c0_141, %c0_142] : memref<1x128xf32, #tpu.memory_space<vmem>>, vector<1x128xf32>
    %258 = vector.broadcast %257 : vector<1x128xf32> to vector<8x128xf32>
    %259 = arith.addf %256, %258 : vector<8x128xf32>
    %260 = arith.truncf %259 : vector<8x128xf32> to vector<8x128xbf16>
    %c0_143 = arith.constant 0 : index
    %c0_144 = arith.constant 0 : index
    %c0_145 = arith.constant 0 : index
    %261 = vector.load %arg11[%c0_143, %c0_144, %c0_145] : memref<1x8x128xbf16, #tpu.memory_space<vmem>>, vector<1x8x128xbf16>
    %262 = vector.shape_cast %261 : vector<1x8x128xbf16> to vector<8x128xbf16>
    %263 = vector.shape_cast %260 : vector<8x128xbf16> to vector<1x8x128xbf16>
    tpu.vector_store %arg11[%c0_143, %c0_144, %c0_145], %263 {strides = array<i32>} : memref<1x8x128xbf16, #tpu.memory_space<vmem>>, vector<1x8x128xbf16>,
    return
  }
  func.func @transform_0(%arg0: i32) -> (i32, i32, i32) {
    %c0_i32 = arith.constant 0 : i32
    %c0_i32_0 = arith.constant 0 : i32
    %c0_i32_1 = arith.constant 0 : i32
    return %arg0, %c0_i32, %c0_i32_0 : i32, i32, i32
  }
  func.func @transform_1(%arg0: i32) -> (i32, i32, i32) {
    %c0_i32 = arith.constant 0 : i32
    %c0_i32_0 = arith.constant 0 : i32
    %c0_i32_1 = arith.constant 0 : i32
    %c0_i32_2 = arith.constant 0 : i32
    return %c0_i32, %c0_i32_0, %c0_i32_1 : i32, i32, i32
  }
  func.func @transform_2(%arg0: i32) -> (i32, i32) {
    %c0_i32 = arith.constant 0 : i32
    %c0_i32_0 = arith.constant 0 : i32
    %c0_i32_1 = arith.constant 0 : i32
    return %c0_i32, %c0_i32_0 : i32, i32
  }
  func.func @transform_3(%arg0: i32) -> (i32, i32) {
    %c0_i32 = arith.constant 0 : i32
    %c0_i32_0 = arith.constant 0 : i32
    %c0_i32_1 = arith.constant 0 : i32
    return %c0_i32, %c0_i32_0 : i32, i32
  }
  func.func @transform_4(%arg0: i32) -> (i32, i32) {
    %c0_i32 = arith.constant 0 : i32
    %c0_i32_0 = arith.constant 0 : i32
    %c0_i32_1 = arith.constant 0 : i32
    return %c0_i32, %c0_i32_0 : i32, i32
  }
  func.func @transform_5(%arg0: i32) -> (i32, i32, i32) {
    %c0_i32 = arith.constant 0 : i32
    %c0_i32_0 = arith.constant 0 : i32
    %c0_i32_1 = arith.constant 0 : i32
    %c0_i32_2 = arith.constant 0 : i32
    return %c0_i32, %c0_i32_0, %c0_i32_1 : i32, i32, i32
  }
  func.func @transform_6(%arg0: i32) -> (i32, i32, i32, i32) {
    %c0_i32 = arith.constant 0 : i32
    %c0_i32_0 = arith.constant 0 : i32
    %c0_i32_1 = arith.constant 0 : i32
    %c0_i32_2 = arith.constant 0 : i32
    %c0_i32_3 = arith.constant 0 : i32
    return %c0_i32, %c0_i32_0, %c0_i32_1, %c0_i32_2 : i32, i32, i32, i32
  }
  func.func @transform_7(%arg0: i32) -> (i32, i32, i32) {
    %c0_i32 = arith.constant 0 : i32
    %c0_i32_0 = arith.constant 0 : i32
    %c0_i32_1 = arith.constant 0 : i32
    %c0_i32_2 = arith.constant 0 : i32
    return %c0_i32, %c0_i32_0, %c0_i32_1 : i32, i32, i32
  }
  func.func @transform_8(%arg0: i32) -> (i32, i32, i32) {
    %c0_i32 = arith.constant 0 : i32
    %c0_i32_0 = arith.constant 0 : i32
    %c0_i32_1 = arith.constant 0 : i32
    %c0_i32_2 = arith.constant 0 : i32
    return %c0_i32, %c0_i32_0, %c0_i32_1 : i32, i32, i32
  }
  func.func @transform_9(%arg0: i32) -> (i32, i32) {
    %c0_i32 = arith.constant 0 : i32
    %c0_i32_0 = arith.constant 0 : i32
    %c0_i32_1 = arith.constant 0 : i32
    return %c0_i32, %c0_i32_0 : i32, i32
  }
  func.func @transform_10(%arg0: i32) -> (i32, i32, i32) {
    %c0_i32 = arith.constant 0 : i32
    %c0_i32_0 = arith.constant 0 : i32
    %c0_i32_1 = arith.constant 0 : i32
    return %arg0, %c0_i32, %c0_i32_0 : i32, i32, i32
  }
}

</mosaic_0001>

<bundles_post_ra>
// kernel: a_call__.3
= control target key start
LH: loop header
LB: loop body
LE: loop exit
PB: predicated region body
PF: predicated region fallthrough
CT: control target
= control target key end

     0   :  { %7 = vsyncpa [#allocation3], 0  ;;  %s189_s9 = smov [#allocation2]   ;;  %s218_s0 = inlined_call_operand.vmem [shape: bf16[8,96], index: 0, kind: input, shape index: {}]   ;;  %s219_s1 = inlined_call_operand.hbm [shape: bf16[96,128], index: 1, kind: input, shape index: {}]   ;;  %s220_s2 = inlined_call_operand.vmem [shape: bf16[8,128], index: 2, kind: output, shape index: {}]  }
   0x1   :  { %s15_s10 = sshll.u32 %s189_s9, 4  ;;  %s16_s10 = int_to_ptr.vmem [resolvable:$true] %s15_s10 }
   0x2   :  { %s175_s11 = scalar_lea.vmem %s16_s10, 768  ;;  %p180_p1 = scmp.lt.s32.totalorder %s16_s10, %s16_s10 }
   0x3   :  { %p176_p0 = scmp.ne.s32.totalorder %s16_s10, %s175_s11  ;;  %p181_p2 = scmp.lt.s32.totalorder %s175_s11, %s175_s11 }
   0x5   :  { %p182_p3 = por %p181_p2, %p180_p1 }
   0x7   :  { %p183_p4 = pnand %p182_p3, %p176_p0 }
   0x9   :  { %186 = shalt.err (!%p183_p4)
}
   0xa   :  { %s190_s12 = smov 64   ;;  %s191_s13 = smov 4  }
   0xb   :  { %21 = dma.hbm_to_vmem [thread:$0]  %s219_s1, 768, %s16_s10, [#allocation3], %s190_s12, %s190_s12, %s191_s13  }
   0xc   :  { %187 = dma.done.wait [#allocation3], 768  }
   0xd   :  { %188 = vsyncadd [#allocation3], 4294966528  ;;  %v192_v0 = vmov 0.0   ;;  %vm193_vm0 = vmmov 0   ;;  %v161_v1 = vld [vmem:[#allocation2 + $0x28] sm:$0xff]   ;;  %v162_v2 = vld [vmem:[#allocation2 + $0x20] sm:$0xff]  }
   0xe   :  { %140 = vmatprep.subr.bf16.mxu0 %v192_v0  ;;  %152 = vmatprep.mubr.msk.bf16.mxu0 %vm193_vm0, %v192_v0  ;;  %v163_v3 = vld [vmem:[#allocation2 + $0x18] sm:$0xff]   ;;  %v164_v4 = vld [vmem:[#allocation2 + $0x10] sm:$0xff]   ;;  %v165_v5 = vld [vmem:[#allocation2 + $0x8] sm:$0xff]   ;;  %vm75_vm1 = vcmask 785408  }
   0xf   :  { %141 = vmatpush3.bf16.msra.mxu0 %v161_v1  ;;  %v166_v6 = vld [vmem:[#allocation2] sm:$0xff]  }
  0x10   :  { %142 = vmatprep.subr.bf16.mxu0 %v192_v0  ;;  %v26_v7 = vld [vmem:[%s218_s0] sm:$0xf] }
  0x13   :  { %143 = vmatpush3.bf16.msra.mxu0 %v162_v2 }
  0x14   :  { %144 = vmatprep.subr.bf16.mxu0 %v192_v0 }
  0x17   :  { %145 = vmatpush3.bf16.msra.mxu0 %v163_v3 }
  0x18   :  { %146 = vmatprep.subr.bf16.mxu0 %v192_v0 }
  0x1b   :  { %147 = vmatpush3.bf16.msra.mxu0 %v164_v4 }
  0x1c   :  { %148 = vmatprep.subr.bf16.mxu0 %v192_v0 }
  0x1f   :  { %149 = vmatpush3.bf16.msra.mxu0 %v165_v5 }
  0x20   :  { %150 = vmatprep.subr.bf16.mxu0 %v192_v0 }
  0x23   :  { %151 = vmatpush3.bf16.msra.mxu0 %v166_v6 }
  0x26   :  { %153 = vmatmul.mubr.msk.bf16.vlgmr.msra.gmra.mxu0 %vm75_vm1, %v26_v7 }
  0xe6   :  { %v113_v8 = vpop.f32.mrf.mxu0 }
  0xe7   :  { %v119_v9 = vpack.c.bf16 %v113_v8, %v113_v8 }
  0xe8   :  { %v154_v10 = vpop.f32.mrf.mxu0 }
  0xe9   :  { %120 = vst [vmem:[%s220_s2] sm:$0xf] %v119_v9 }
  0xea   :  { %v116_v11 = vpop.f32.mrf.mxu0 }
  0xec   :  { %v155_v12 = vpop.f32.mrf.mxu0 }
  0xed   :  { %125 = vsyncpa [#allocation3], 1 }

// kernel: a_call__.5
= control target key start
LH: loop header
LB: loop body
LE: loop exit
PB: predicated region body
PF: predicated region fallthrough
CT: control target
= control target key end

     0   :  { %v169_v0 = vmov 0.0   ;;  %vm170_vm0 = vmmov 0   ;;  %s216_s1 = inlined_call_operand.vmem [shape: bf16[128,128], index: 1, kind: input, shape index: {}]   ;;  %s217_s0 = inlined_call_operand.vmem [shape: bf16[8,128], index: 0, kind: input, shape index: {}]   ;;  %s218_s2 = inlined_call_operand.vmem [shape: f32[8,128], index: 2, kind: output, shape index: {}]  }
   0x1   :  { %139 = vmatprep.subr.bf16.mxu0 %v169_v0  ;;  %v161_v1 = vld [vmem:[%s216_s1 + $0x38] sm:$0xff]   ;;  %155 = vmatprep.mubr.msk.bf16.mxu0 %vm170_vm0, %v169_v0  ;;  %v162_v2 = vld [vmem:[%s216_s1 + $0x30] sm:$0xff]   ;;  %v163_v3 = vld [vmem:[%s216_s1 + $0x28] sm:$0xff]  }
   0x2   :  { %140 = vmatpush3.bf16.msra.mxu0 %v161_v1  ;;  %v164_v4 = vld [vmem:[%s216_s1 + $0x20] sm:$0xff]   ;;  %v165_v5 = vld [vmem:[%s216_s1 + $0x18] sm:$0xff]   ;;  %v166_v6 = vld [vmem:[%s216_s1 + $0x10] sm:$0xff]  }
   0x3   :  { %141 = vmatprep.subr.bf16.mxu0 %v169_v0  ;;  %v167_v7 = vld [vmem:[%s216_s1 + $0x8] sm:$0xff]   ;;  %v168_v8 = vld [vmem:[%s216_s1] sm:$0xff]  }
   0x4   :  { %v12_v9 = vld [vmem:[%s217_s0] sm:$0xf] }
   0x6   :  { %142 = vmatpush3.bf16.msra.mxu0 %v162_v2 }
   0x7   :  { %143 = vmatprep.subr.bf16.mxu0 %v169_v0 }
   0xa   :  { %144 = vmatpush3.bf16.msra.mxu0 %v163_v3 }
   0xb   :  { %145 = vmatprep.subr.bf16.mxu0 %v169_v0 }
   0xe   :  { %146 = vmatpush3.bf16.msra.mxu0 %v164_v4 }
   0xf   :  { %147 = vmatprep.subr.bf16.mxu0 %v169_v0 }
  0x12   :  { %148 = vmatpush3.bf16.msra.mxu0 %v165_v5 }
  0x13   :  { %149 = vmatprep.subr.bf16.mxu0 %v169_v0 }
  0x16   :  { %150 = vmatpush3.bf16.msra.mxu0 %v166_v6 }
  0x17   :  { %151 = vmatprep.subr.bf16.mxu0 %v169_v0 }
  0x1a   :  { %152 = vmatpush3.bf16.msra.mxu0 %v167_v7 }
  0x1b   :  { %153 = vmatprep.subr.bf16.mxu0 %v169_v0 }
  0x1e   :  { %154 = vmatpush3.bf16.msra.mxu0 %v168_v8 }
  0x21   :  { %156 = vmatmul.mubr.bf16.vlgmr.msra.gmra.mxu0 %v12_v9 }
  0xe1   :  { %v111_v10 = vpop.f32.mrf.mxu0 }
  0xe2   :  { %117 = vst [vmem:[%s218_s2] sm:$0xff] %v111_v10 }
  0xe3   :  { %v157_v11 = vpop.f32.mrf.mxu0 }
  0xe5   :  { %v114_v12 = vpop.f32.mrf.mxu0 }
  0xe7   :  { %v158_v13 = vpop.f32.mrf.mxu0 }

// kernel: a_call__.4
= control target key start
LH: loop header
LB: loop body
LE: loop exit
PB: predicated region body
PF: predicated region fallthrough
CT: control target
= control target key end

     0   :  { %15 = vsyncpa [#allocation3], 0  ;;  %s17661_s0 = inlined_call_operand.vmem [shape: bf16[2,8,128], index: 0, kind: input, shape index: {}]   ;;  %s17662_s1 = inlined_call_operand.hbm [shape: bf16[3,128,400], index: 1, kind: input, shape index: {}]   ;;  %s17663_s2 = inlined_call_operand.vmem [shape: f32[1,400], index: 2, kind: input, shape index: {}]   ;;  %s17664_s3 = inlined_call_operand.hbm [shape: bf16[400,128], index: 3, kind: input, shape index: {}]   ;;  %s17665_s4 = inlined_call_operand.hbm [shape: bf16[128,400], index: 4, kind: input, shape index: {}]   ;;  %s17666_s5 = inlined_call_operand.hbm [shape: bf16[2,400,400], index: 5, kind: input, shape index: {}]   ;;  %s17667_s6 = inlined_call_operand.hbm [shape: bf16[2,4,400,400], index: 6, kind: input, shape index: {}]   ;;  %s17668_s7 = inlined_call_operand.hbm [shape: f32[2,6,400], index: 7, kind: input, shape index: {}]   ;;  %s17669_s8 = inlined_call_operand.hbm [shape: bf16[3,400,128], index: 8, kind: input, shape index: {}]   ;;  %s17670_s9 = inlined_call_operand.vmem [shape: f32[1,128], index: 9, kind: input, shape index: {}]   ;;  %s17671_s10 = inlined_call_operand.vmem [shape: bf16[2,8,128], index: 10, kind: output, shape index: {}]  }
   0x1   :  { %16 = vsyncpa [#allocation5], 0 }
   0x2   :  { %17 = vsyncpa [#allocation8], 0 }
   0x3   :  { %18 = vsyncpa [#allocation11], 0  ;;  %s16086_s13 = smov 0  }
   0x4 LB: > { %s16017_s14 = smov [#allocation4]   ;;  %s16092_s16 = sadd.s32 4294967295, %s16015_s13   ;;  %s16015_s13 = sphi %s16086_s13, %s24_s13  }
   0x5   : > { %s298_s15 = sshll.u32 %s16017_s14, 4  ;;  %p12161_p0 = scmp.ge.s32.totalorder %s16015_s13, 1  ;;  %s299_s15 = int_to_ptr.vmem [resolvable:$true] %s298_s15 }
   0x6   : > { %p270_p1 = scmp.lt.s32.totalorder %s16015_s13, 3  ;;  %p13761_p2 = scmp.eq.s32.totalorder %s16092_s16, 0 }
   0x7   : > { %s16018_s19 = smov [#allocation7]   ;;  %s16019_s21 = smov [#allocation10]  }
   0x8   : > { %p16097_p3 = pnand %p12161_p0, %p270_p1  ;;  %s324_s20 = sshll.u32 %s16018_s19, 4  ;;  %s16109_s20 = int_to_ptr.vmem [resolvable:$true] %s324_s20 }
   0x9   : > { %s350_s22 = sshll.u32 %s16019_s21, 4  ;;  %s15822_s24 = scalar_lea.vmem %s299_s15, 3200  ;;  %s16111_s22 = int_to_ptr.vmem [resolvable:$true] %s350_s22 }
   0xa   : > { %p13739_p4 = pneg %p16097_p3  ;;  %p15823_p7 = scmp.ne.s32.totalorder %s299_s15, %s15822_s24 }
   0xb   : > { %p15830_p10 = scmp.lt.s32.totalorder %s299_s15, %s299_s15  ;;  %p15831_p11 = scmp.lt.s32.totalorder %s15822_s24, %s15822_s24 }
   0xc   : > { %p16105_p5 = pnand %p13761_p2, %p13739_p4 }
   0xd   : > { %p15832_p12 = por %p15831_p11, %p15830_p10 }
   0xe   : > { %p16115_p6 = pneg %p16105_p5 }
  0x10   : > { %p15825_p8 = pnand %p15823_p7, %p16115_p6 }
  0x12   : > { %p15826_p9 = pneg %p15825_p8 }
  0x14   : > { %p15833_p13 = pnand %p15832_p12, %p15826_p9 }
  0x16   : > { %15836 = shalt.err (!%p15833_p13)
}
  0x17   : > { %s16020_s25 = smov 64   ;;  %s16021_s26 = smov 4  }
  0x18   : > { %13745 = dma.hbm_to_vmem [thread:$0]  (!%p16105_p5), %s17664_s3, 3200, %s299_s15, [#allocation5], %s16020_s25, %s16020_s25, %s16021_s26  }
  0x19   : > { %s15848_s29 = scalar_lea.vmem %s16109_s20, 25600  ;;  %p15856_p7 = scmp.lt.s32.totalorder %s16109_s20, %s16109_s20 }
  0x1a   : > { %p15849_p0 = scmp.ne.s32.totalorder %s16109_s20, %s15848_s29  ;;  %p15857_p8 = scmp.lt.s32.totalorder %s15848_s29, %s15848_s29 }
  0x1c   : > { %p15851_p1 = pnand %p15849_p0, %p16115_p6  ;;  %p15858_p9 = por %p15857_p8, %p15856_p7 }
  0x1e   : > { %p15852_p4 = pneg %p15851_p1 }
  0x20   : > { %p15859_p10 = pnand %p15858_p9, %p15852_p4 }
  0x22   : > { %15862 = shalt.err (!%p15859_p10)
}
  0x23   : > { %s16022_s30 = smov 256   ;;  %s16023_s11 = smov 16  }
  0x24   : > { %13751 = dma.hbm_to_vmem [thread:$0]  (!%p16105_p5), %s17666_s5, 25600, %s16109_s20, [#allocation8], %s16022_s30, %s16022_s30, %s16023_s11  }
  0x25   : > { %s15874_s15 = scalar_lea.vmem %s16111_s22, 1024  ;;  %p15882_p0 = scmp.lt.s32.totalorder %s16111_s22, %s16111_s22 }
  0x26   : > { %p15875_p11 = scmp.ne.s32.totalorder %s16111_s22, %s15874_s15  ;;  %p15883_p1 = scmp.lt.s32.totalorder %s15874_s15, %s15874_s15 }
  0x28   : > { %p15877_p12 = pnand %p15875_p11, %p16115_p6  ;;  %p15884_p4 = por %p15883_p1, %p15882_p0 }
  0x2a   : > { %p15878_p13 = pneg %p15877_p12 }
  0x2c   : > { %p15885_p7 = pnand %p15884_p4, %p15878_p13 }
  0x2e   : > { %15888 = shalt.err (!%p15885_p7)
}
  0x2f   : > { %s16024_s19 = smov 512   ;;  %s16025_s21 = smov 32  }
  0x30   : > { %13757 = dma.hbm_to_vmem [thread:$0]  (!%p16105_p5), %s17668_s7, 1024, %s16111_s22, [#allocation11], %s16024_s19, %s16024_s19, %s16025_s21  }
  0x31   : > { %s16026_s20 = smov [#allocation2]   ;;  %s16027_s29 = smov [#allocation6]  }
  0x32   : > { %s282_s28 = sshll.u32 %s16026_s20, 4  ;;  %s311_s12 = sshll.u32 %s16027_s29, 4  ;;  %s283_s28 = int_to_ptr.vmem [resolvable:$true] %s282_s28  ;;  %s312_s12 = int_to_ptr.vmem [resolvable:$true] %s311_s12 }
  0x33   : > { %s15900_s14 = scalar_lea.vmem %s283_s28, 12288  ;;  %p15908_p11 = scmp.lt.s32.totalorder %s283_s28, %s283_s28 }
  0x34   : > { %p15901_p8 = scmp.ne.s32.totalorder %s283_s28, %s15900_s14  ;;  %p15909_p12 = scmp.lt.s32.totalorder %s15900_s14, %s15900_s14 }
  0x36   : > { %p15903_p9 = pnand %p15901_p8, %p16115_p6  ;;  %p15910_p13 = por %p15909_p12, %p15908_p11 }
  0x38   : > { %p15904_p10 = pneg %p15903_p9 }
  0x3a   : > { %p15911_p0 = pnand %p15910_p13, %p15904_p10 }
  0x3c   : > { %15914 = shalt.err (!%p15911_p0)
}
  0x3d   : > { %13742 = dma.hbm_to_vmem [thread:$0]  (!%p16105_p5), %s17662_s1, 12288, %s283_s28, [#allocation3], %s16022_s30, %s16022_s30, %s16023_s11  }
  0x3e   : > { %s15926_s19 = scalar_lea.vmem %s312_s12, 4096  ;;  %p15934_p8 = scmp.lt.s32.totalorder %s312_s12, %s312_s12 }
  0x3f   : > { %p15927_p1 = scmp.ne.s32.totalorder %s312_s12, %s15926_s19  ;;  %p15935_p9 = scmp.lt.s32.totalorder %s15926_s19, %s15926_s19 }
  0x41   : > { %p15929_p4 = pnand %p15927_p1, %p16115_p6  ;;  %p15936_p11 = por %p15935_p9, %p15934_p8 }
  0x43   : > { %p15930_p7 = pneg %p15929_p4 }
  0x45   : > { %p15937_p10 = pnand %p15936_p11, %p15930_p7 }
  0x47   : > { %15940 = shalt.err (!%p15937_p10)
}
  0x48   : > { %13748 = dma.hbm_to_vmem [thread:$0]  (!%p16105_p5), %s17665_s4, 4096, %s312_s12, [#allocation5], %s16022_s30, %s16022_s30, %s16023_s11  }
  0x49   : > { %s16028_s27 = smov [#allocation9]   ;;  %s16029_s28 = smov [#allocation12]  }
  0x4a   : > { %s337_s20 = sshll.u32 %s16028_s27, 4  ;;  %s363_s29 = sshll.u32 %s16029_s28, 4  ;;  %s338_s20 = int_to_ptr.vmem [resolvable:$true] %s337_s20  ;;  %s364_s29 = int_to_ptr.vmem [resolvable:$true] %s363_s29 }
  0x4b   : > { %s15952_s14 = scalar_lea.vmem %s338_s20, 102400  ;;  %p15960_p1 = scmp.lt.s32.totalorder %s338_s20, %s338_s20 }
  0x4c   : > { %p15953_p12 = scmp.ne.s32.totalorder %s338_s20, %s15952_s14  ;;  %p15961_p4 = scmp.lt.s32.totalorder %s15952_s14, %s15952_s14 }
  0x4e   : > { %p15955_p13 = pnand %p15953_p12, %p16115_p6  ;;  %p15962_p7 = por %p15961_p4, %p15960_p1 }
  0x50   : > { %p15956_p0 = pneg %p15955_p13 }
  0x52   : > { %p15963_p8 = pnand %p15962_p7, %p15956_p0 }
  0x54   : > { %15966 = shalt.err (!%p15963_p8)
}
  0x55   : > { %13754 = dma.hbm_to_vmem [thread:$0]  (!%p16105_p5), %s17667_s6, 102400, %s338_s20, [#allocation8], %s16022_s30, %s16022_s30, %s16023_s11  }
  0x56   : > { %s15978_s15 = scalar_lea.vmem %s364_s29, 9600  ;;  %p15986_p12 = scmp.lt.s32.totalorder %s364_s29, %s364_s29 }
  0x57   : > { %p15979_p9 = scmp.ne.s32.totalorder %s364_s29, %s15978_s15  ;;  %p15987_p13 = scmp.lt.s32.totalorder %s15978_s15, %s15978_s15 }
  0x59   : > { %p15981_p11 = pnand %p15979_p9, %p16115_p6  ;;  %p15988_p1 = por %p15987_p13, %p15986_p12 }
  0x5b   : > { %p15982_p10 = pneg %p15981_p11 }
  0x5d   : > { %p15989_p0 = pnand %p15988_p1, %p15982_p10 }
  0x5f   : > { %15992 = shalt.err (!%p15989_p0)
}
  0x60   : > { %13760 = dma.hbm_to_vmem [thread:$0]  (!%p16105_p5), %s17669_s8, 9600, %s364_s29, [#allocation11], %s16020_s25, %s16020_s25, %s16021_s26  }
  0x61   : > { %389 = sbr.rel (%p16097_p3) target bundleno = 5735 (0x1667), region = 60 }
  0x66   : > { %15998 = dma.done.wait (%p13761_p2), [#allocation3], 12288  }
  0x67   : > { %16000 = vsyncadd (%p13761_p2), [#allocation3], 4294955008 }
  0x68   : > { %16002 = dma.done.wait (%p13761_p2), [#allocation5], 7296  }
  0x69   : > { %16004 = vsyncadd (%p13761_p2), [#allocation5], 4294960000 }
  0x6a   : > { %16006 = dma.done.wait (%p13761_p2), [#allocation8], 128000  }
  0x6b   : > { %16008 = vsyncadd (%p13761_p2), [#allocation8], 4294839296 }
  0x6c   : > { %16010 = dma.done.wait (%p13761_p2), [#allocation11], 10624  }
  0x6d   : > { %16012 = vsyncadd (%p13761_p2), [#allocation11], 4294956672  ;;  %v17672_v0 = vmov 0   ;;  %v13797_v1 = vld [vmem:[#allocation2 + $0xe4] ss:$16 sps:$4 sm:$0xff]   ;;  %p449_p2 = scmp.lt.s32.totalorder %s16092_s16, 1 }
  0x6e   : > { %685 = vmatprep.mubr.bf16.mxu1 %v17672_v0  ;;  %971 = vmatprep.mubr.bf16.mxu0 %v17672_v0  ;;  %v13799_v2 = vld [vmem:[#allocation2 + $0x1e4] ss:$16 sps:$4 sm:$0xff]   ;;  %v13801_v3 = vld [vmem:[#allocation2 + $0xe0] ss:$16 sps:$4 sm:$0xff]   ;;  %v13847_v33 = vld [vmem:[#allocation2 + $0xec] ss:$16 sps:$4 sm:$0xff]  }
  0x6f   : > { %653 = vmatprep.subr.bf16.mxu1 %v13797_v1  ;;  %v13802_v4 = vld [vmem:[#allocation2 + $0x1e0] ss:$16 sps:$4 sm:$0xff]   ;;  %939 = vmatprep.subr.bf16.mxu0 %v13799_v2  ;;  %v13803_v5 = vld [vmem:[#allocation2 + $0xc4] ss:$16 sps:$4 sm:$0xff]   ;;  %s17936_s16 = smov (!%p449_p2, %s16092_s16), 1  ;;  %vm1581_vm2 = vcmask 130048  }
  0x70   : > { %654 = vmatpush1.bf16.msra.mxu1 %v13801_v3  ;;  %940 = vmatpush1.bf16.msra.mxu0 %v13802_v4  ;;  %v13805_v6 = vld [vmem:[#allocation2 + $0x1c4] ss:$16 sps:$4 sm:$0xff]   ;;  %v13807_v7 = vld [vmem:[#allocation2 + $0xc0] ss:$16 sps:$4 sm:$0xff]   ;;  %s12178_s17 = sshll.u32 %s17936_s16, 2 }
  0x71   : > { %655 = vmatprep.subr.bf16.mxu1 %v13803_v5  ;;  %v13808_v8 = vld [vmem:[#allocation2 + $0x1c0] ss:$16 sps:$4 sm:$0xff]   ;;  %941 = vmatprep.subr.bf16.mxu0 %v13805_v6  ;;  %v13809_v9 = vld [vmem:[#allocation2 + $0xa4] ss:$16 sps:$4 sm:$0xff]   ;;  %s452_s25 = scalar_lea.vmem %s17661_s0, %s12178_s17  ;;  %v13845_v36 = vld [vmem:[#allocation2 + $0xe8] ss:$16 sps:$4 sm:$0xff]   ;;  %s456_s28 = scalar_lea.vmem %s17671_s10, %s12178_s17 }
  0x72   : > { %v13811_v10 = vld [vmem:[#allocation2 + $0x1a4] ss:$16 sps:$4 sm:$0xff]   ;;  %v13813_v11 = vld [vmem:[#allocation2 + $0xa0] ss:$16 sps:$4 sm:$0xff]   ;;  %v13853_v38 = vld [vmem:[#allocation2 + $0xcc] ss:$16 sps:$4 sm:$0xff]  }
  0x73   : > { %v13814_v12 = vld [vmem:[#allocation2 + $0x1a0] ss:$16 sps:$4 sm:$0xff]   ;;  %v13815_v13 = vld [vmem:[#allocation2 + $0x84] ss:$16 sps:$4 sm:$0xff]   ;;  %v13851_v40 = vld [vmem:[#allocation2 + $0xc8] ss:$16 sps:$4 sm:$0xff]  }
  0x74   : > { %656 = vmatpush1.bf16.msra.mxu1 %v13807_v7  ;;  %942 = vmatpush1.bf16.msra.mxu0 %v13808_v8  ;;  %v13817_v14 = vld [vmem:[#allocation2 + $0x184] ss:$16 sps:$4 sm:$0xff]   ;;  %v13819_v15 = vld [vmem:[#allocation2 + $0x80] ss:$16 sps:$4 sm:$0xff]   ;;  %v13859_v42 = vld [vmem:[#allocation2 + $0xac] ss:$16 sps:$4 sm:$0xff]  }
  0x75   : > { %657 = vmatprep.subr.bf16.mxu1 %v13809_v9  ;;  %943 = vmatprep.subr.bf16.mxu0 %v13811_v10  ;;  %v13820_v16 = vld [vmem:[#allocation2 + $0x180] ss:$16 sps:$4 sm:$0xff]   ;;  %v13821_v17 = vld [vmem:[#allocation2 + $0x64] ss:$16 sps:$4 sm:$0xff]   ;;  %v13857_v44 = vld [vmem:[#allocation2 + $0xa8] ss:$16 sps:$4 sm:$0xff]  }
  0x76   : > { %v13823_v18 = vld [vmem:[#allocation2 + $0x164] ss:$16 sps:$4 sm:$0xff]   ;;  %v13825_v19 = vld [vmem:[#allocation2 + $0x60] ss:$16 sps:$4 sm:$0xff]   ;;  %v13865_v46 = vld [vmem:[#allocation2 + $0x8c] ss:$16 sps:$4 sm:$0xff]  }
  0x77   : > { %v13826_v20 = vld [vmem:[#allocation2 + $0x160] ss:$16 sps:$4 sm:$0xff]   ;;  %v13827_v21 = vld [vmem:[#allocation2 + $0x44] ss:$16 sps:$4 sm:$0xff]   ;;  %v13863_v48 = vld [vmem:[#allocation2 + $0x88] ss:$16 sps:$4 sm:$0xff]  }
  0x78   : > { %658 = vmatpush1.bf16.msra.mxu1 %v13813_v11  ;;  %944 = vmatpush1.bf16.msra.mxu0 %v13814_v12  ;;  %v13829_v22 = vld [vmem:[#allocation2 + $0x144] ss:$16 sps:$4 sm:$0xff]   ;;  %v13831_v23 = vld [vmem:[#allocation2 + $0x40] ss:$16 sps:$4 sm:$0xff]   ;;  %v13871_v50 = vld [vmem:[#allocation2 + $0x6c] ss:$16 sps:$4 sm:$0xff]  }
  0x79   : > { %659 = vmatprep.subr.bf16.mxu1 %v13815_v13  ;;  %945 = vmatprep.subr.bf16.mxu0 %v13817_v14  ;;  %v13832_v24 = vld [vmem:[#allocation2 + $0x140] ss:$16 sps:$4 sm:$0xff]   ;;  %v13833_v25 = vld [vmem:[#allocation2 + $0x24] ss:$16 sps:$4 sm:$0xff]   ;;  %v13869_v52 = vld [vmem:[#allocation2 + $0x68] ss:$16 sps:$4 sm:$0xff]  }
  0x7a   : > { %v13835_v26 = vld [vmem:[#allocation2 + $0x124] ss:$16 sps:$4 sm:$0xff]   ;;  %v13837_v27 = vld [vmem:[#allocation2 + $0x20] ss:$16 sps:$4 sm:$0xff]   ;;  %v13877_v54 = vld [vmem:[#allocation2 + $0x4c] ss:$16 sps:$4 sm:$0xff]  }
  0x7b   : > { %v13838_v28 = vld [vmem:[#allocation2 + $0x120] ss:$16 sps:$4 sm:$0xff]   ;;  %v13839_v29 = vld [vmem:[#allocation2 + $0x4] ss:$16 sps:$4 sm:$0xff]   ;;  %v13875_v56 = vld [vmem:[#allocation2 + $0x48] ss:$16 sps:$4 sm:$0xff]  }
  0x7c   : > { %660 = vmatpush1.bf16.msra.mxu1 %v13819_v15  ;;  %946 = vmatpush1.bf16.msra.mxu0 %v13820_v16  ;;  %v13841_v30 = vld [vmem:[#allocation2 + $0x104] ss:$16 sps:$4 sm:$0xff]   ;;  %v13843_v31 = vld [vmem:[#allocation2] ss:$16 sps:$4 sm:$0xff]   ;;  %v13883_v58 = vld [vmem:[#allocation2 + $0x2c] ss:$16 sps:$4 sm:$0xff]  }
  0x7d   : > { %661 = vmatprep.subr.bf16.mxu1 %v13821_v17  ;;  %947 = vmatprep.subr.bf16.mxu0 %v13823_v18  ;;  %v13844_v32 = vld [vmem:[#allocation2 + $0x100] ss:$16 sps:$4 sm:$0xff]   ;;  %v13850_v34 = vld [vmem:[#allocation2 + $0x2e4] ss:$16 sps:$4 sm:$0xff]   ;;  %v13881_v60 = vld [vmem:[#allocation2 + $0x28] ss:$16 sps:$4 sm:$0xff]  }
  0x7e   : > { %v16226_v35 = vld [vmem:[%s452_s25] sm:$0xf]  ;;  %v13856_v39 = vld [vmem:[#allocation2 + $0x2c4] ss:$16 sps:$4 sm:$0xff]   ;;  %v13889_v62 = vld [vmem:[#allocation2 + $0xc] ss:$16 sps:$4 sm:$0xff]  }
  0x7f   : > { %v13848_v37 = vld [vmem:[#allocation2 + $0x2e0] ss:$16 sps:$4 sm:$0xff]   ;;  %v13862_v43 = vld [vmem:[#allocation2 + $0x2a4] ss:$16 sps:$4 sm:$0xff]   ;;  %v13887_v1 = vld [vmem:[#allocation2 + $0x8] ss:$16 sps:$4 sm:$0xff]  }
  0x80   : > { %662 = vmatpush1.bf16.msra.mxu1 %v13825_v19  ;;  %948 = vmatpush1.bf16.msra.mxu0 %v13826_v20  ;;  %v13854_v41 = vld [vmem:[#allocation2 + $0x2c0] ss:$16 sps:$4 sm:$0xff]   ;;  %v13868_v47 = vld [vmem:[#allocation2 + $0x284] ss:$16 sps:$4 sm:$0xff]   ;;  %v13895_v3 = vld [vmem:[#allocation2 + $0x1ec] ss:$16 sps:$4 sm:$0xff]  }
  0x81   : > { %663 = vmatprep.subr.bf16.mxu1 %v13827_v21  ;;  %949 = vmatprep.subr.bf16.mxu0 %v13829_v22  ;;  %v13860_v45 = vld [vmem:[#allocation2 + $0x2a0] ss:$16 sps:$4 sm:$0xff]   ;;  %v13874_v51 = vld [vmem:[#allocation2 + $0x264] ss:$16 sps:$4 sm:$0xff]   ;;  %v13893_v4 = vld [vmem:[#allocation2 + $0x1e8] ss:$16 sps:$4 sm:$0xff]  }
  0x82   : > { %v13866_v49 = vld [vmem:[#allocation2 + $0x280] ss:$16 sps:$4 sm:$0xff]   ;;  %v13880_v55 = vld [vmem:[#allocation2 + $0x244] ss:$16 sps:$4 sm:$0xff]   ;;  %v13898_v5 = vld [vmem:[#allocation2 + $0x1cc] ss:$16 sps:$4 sm:$0xff]  }
  0x83   : > { %v13872_v53 = vld [vmem:[#allocation2 + $0x260] ss:$16 sps:$4 sm:$0xff]   ;;  %v13886_v59 = vld [vmem:[#allocation2 + $0x224] ss:$16 sps:$4 sm:$0xff]   ;;  %v13896_v6 = vld [vmem:[#allocation2 + $0x1c8] ss:$16 sps:$4 sm:$0xff]  }
  0x84   : > { %664 = vmatpush1.bf16.msra.mxu1 %v13831_v23  ;;  %950 = vmatpush1.bf16.msra.mxu0 %v13832_v24  ;;  %v13878_v57 = vld [vmem:[#allocation2 + $0x240] ss:$16 sps:$4 sm:$0xff]   ;;  %v13892_v63 = vld [vmem:[#allocation2 + $0x204] ss:$16 sps:$4 sm:$0xff]   ;;  %v13901_v7 = vld [vmem:[#allocation2 + $0x1ac] ss:$16 sps:$4 sm:$0xff]  }
  0x85   : > { %665 = vmatprep.subr.bf16.mxu1 %v13833_v25  ;;  %951 = vmatprep.subr.bf16.mxu0 %v13835_v26  ;;  %v13884_v61 = vld [vmem:[#allocation2 + $0x220] ss:$16 sps:$4 sm:$0xff]   ;;  %v13899_v8 = vld [vmem:[#allocation2 + $0x1a8] ss:$16 sps:$4 sm:$0xff]   ;;  %v13904_v9 = vld [vmem:[#allocation2 + $0x18c] ss:$16 sps:$4 sm:$0xff]  }
  0x86   : > { %v13890_v2 = vld [vmem:[#allocation2 + $0x200] ss:$16 sps:$4 sm:$0xff]   ;;  %v13902_v10 = vld [vmem:[#allocation2 + $0x188] ss:$16 sps:$4 sm:$0xff]   ;;  %v13907_v11 = vld [vmem:[#allocation2 + $0x16c] ss:$16 sps:$4 sm:$0xff]  }
  0x87   : > { %v13905_v12 = vld [vmem:[#allocation2 + $0x168] ss:$16 sps:$4 sm:$0xff]   ;;  %v13910_v13 = vld [vmem:[#allocation2 + $0x14c] ss:$16 sps:$4 sm:$0xff]  }
  0x88   : > { %666 = vmatpush1.bf16.msra.mxu1 %v13837_v27  ;;  %952 = vmatpush1.bf16.msra.mxu0 %v13838_v28  ;;  %v13908_v14 = vld [vmem:[#allocation2 + $0x148] ss:$16 sps:$4 sm:$0xff]   ;;  %v13913_v15 = vld [vmem:[#allocation2 + $0x12c] ss:$16 sps:$4 sm:$0xff]   ;;  %v13943_v28 = vld [vmem:[#allocation4 + $0x70] sm:$0xff]  }
  0x89   : > { %667 = vmatprep.subr.bf16.mxu1 %v13839_v29  ;;  %953 = vmatprep.subr.bf16.mxu0 %v13841_v30  ;;  %v13911_v16 = vld [vmem:[#allocation2 + $0x128] ss:$16 sps:$4 sm:$0xff]   ;;  %v13916_v17 = vld [vmem:[#allocation2 + $0x10c] ss:$16 sps:$4 sm:$0xff]  }
  0x8a   : > { %v13914_v18 = vld [vmem:[#allocation2 + $0x108] ss:$16 sps:$4 sm:$0xff]   ;;  %v13919_v19 = vld [vmem:[#allocation2 + $0x2ec] ss:$16 sps:$4 sm:$0xff]  }
  0x8b   : > { %v13917_v20 = vld [vmem:[#allocation2 + $0x2e8] ss:$16 sps:$4 sm:$0xff]   ;;  %v13922_v21 = vld [vmem:[#allocation2 + $0x2cc] ss:$16 sps:$4 sm:$0xff]  }
  0x8c   : > { %668 = vmatpush1.bf16.msra.mxu1 %v13843_v31  ;;  %954 = vmatpush1.bf16.msra.mxu0 %v13844_v32  ;;  %v13920_v22 = vld [vmem:[#allocation2 + $0x2c8] ss:$16 sps:$4 sm:$0xff]   ;;  %v13925_v23 = vld [vmem:[#allocation2 + $0x2ac] ss:$16 sps:$4 sm:$0xff]   ;;  %v13944_v31 = vld [vmem:[#allocation4 + $0x30] sm:$0xff]  }
  0x8d   : > { %694 = vmatprep.subr.bf16.mxu1 %v13847_v33  ;;  %1218 = vmatprep.subr.bf16.mxu0 %v13850_v34  ;;  %v13923_v24 = vld [vmem:[#allocation2 + $0x2a8] ss:$16 sps:$4 sm:$0xff]   ;;  %v13928_v25 = vld [vmem:[#allocation2 + $0x28c] ss:$16 sps:$4 sm:$0xff]  }
  0x8e   : > { %v13941_v26 = vld [vmem:[#allocation4 + $0x78] sm:$0xff]   ;;  %v13945_v32 = vld [vmem:[#allocation4 + $0x68] sm:$0xff]  }
  0x8f   : > { %686 = vmatmul.mubr.bf16.vlgmr.msra.gmra.mxu1 %v16226_v35  ;;  %972 = vmatmul.mubr.bf16.vlgmr.msra.gmra.mxu0 %v16226_v35  ;;  %v13942_v27 = vld [vmem:[#allocation4 + $0x38] sm:$0xff]   ;;  %v13946_v34 = vld [vmem:[#allocation4 + $0x28] sm:$0xff]  }
  0x90   : > { %695 = vmatpush1.bf16.msra.mxu1 %v13845_v36  ;;  %1219 = vmatpush1.bf16.msra.mxu0 %v13848_v37  ;;  %v13926_v29 = vld [vmem:[#allocation2 + $0x288] ss:$16 sps:$4 sm:$0xff]   ;;  %v13931_v30 = vld [vmem:[#allocation2 + $0x26c] ss:$16 sps:$4 sm:$0xff]   ;;  %v13947_v37 = vld [vmem:[#allocation4 + $0x60] sm:$0xff]  }
  0x91   : > { %696 = vmatprep.subr.bf16.mxu1 %v13853_v38  ;;  %1220 = vmatprep.subr.bf16.mxu0 %v13856_v39  ;;  %v13929_v33 = vld [vmem:[#allocation2 + $0x268] ss:$16 sps:$4 sm:$0xff]   ;;  %v13934_v36 = vld [vmem:[#allocation2 + $0x24c] ss:$16 sps:$4 sm:$0xff]   ;;  %v13948_v39 = vld [vmem:[#allocation4 + $0x20] sm:$0xff]  }
  0x92   : > { %726 = vmatprep.mubr.bf16.mxu1 %v17672_v0  ;;  %1250 = vmatprep.mubr.bf16.mxu0 %v17672_v0  ;;  %v13932_v38 = vld [vmem:[#allocation2 + $0x248] ss:$16 sps:$4 sm:$0xff]  }
  0x94   : > { %697 = vmatpush1.bf16.msra.mxu1 %v13851_v40  ;;  %1221 = vmatpush1.bf16.msra.mxu0 %v13854_v41  ;;  %v13937_v40 = vld [vmem:[#allocation2 + $0x22c] ss:$16 sps:$4 sm:$0xff]  }
  0x95   : > { %698 = vmatprep.subr.bf16.mxu1 %v13859_v42  ;;  %1222 = vmatprep.subr.bf16.mxu0 %v13862_v43  ;;  %v13949_v41 = vld [vmem:[#allocation4 + $0x58] sm:$0xff]  }
  0x96   : > { %v13935_v42 = vld [vmem:[#allocation2 + $0x228] ss:$16 sps:$4 sm:$0xff]  }
  0x97   : > { %v13950_v43 = vld [vmem:[#allocation4 + $0x18] sm:$0xff]  }
  0x98   : > { %699 = vmatpush1.bf16.msra.mxu1 %v13857_v44  ;;  %1223 = vmatpush1.bf16.msra.mxu0 %v13860_v45  ;;  %v13940_v44 = vld [vmem:[#allocation2 + $0x20c] ss:$16 sps:$4 sm:$0xff]   ;;  %v13938_v45 = vld [vmem:[#allocation2 + $0x208] ss:$16 sps:$4 sm:$0xff]  }
  0x99   : > { %700 = vmatprep.subr.bf16.mxu1 %v13865_v46  ;;  %1224 = vmatprep.subr.bf16.mxu0 %v13868_v47  ;;  %v13951_v46 = vld [vmem:[#allocation4 + $0x50] sm:$0xff]  }
  0x9a   : > { %v13952_v47 = vld [vmem:[#allocation4 + $0x10] sm:$0xff]  }
  0x9c   : > { %701 = vmatpush1.bf16.msra.mxu1 %v13863_v48  ;;  %1225 = vmatpush1.bf16.msra.mxu0 %v13866_v49  ;;  %v13953_v48 = vld [vmem:[#allocation4 + $0x48] sm:$0xff]  }
  0x9d   : > { %702 = vmatprep.subr.bf16.mxu1 %v13871_v50  ;;  %1226 = vmatprep.subr.bf16.mxu0 %v13874_v51  ;;  %v13954_v49 = vld [vmem:[#allocation4 + $0x8] sm:$0xff]   ;;  %v13955_v50 = vld [vmem:[#allocation4 + $0x40] sm:$0xff]  }
  0x9e   : > { %v13956_v51 = vld [vmem:[#allocation4] sm:$0xff]  }
  0xa0   : > { %703 = vmatpush1.bf16.msra.mxu1 %v13869_v52  ;;  %1227 = vmatpush1.bf16.msra.mxu0 %v13872_v53  ;;  %v13957_v52 = vld [vmem:[#allocation4 + $0xb8] sm:$0xff]   ;;  %v13958_v53 = vld [vmem:[#allocation4 + $0xb0] sm:$0xff]  }
  0xa1   : > { %704 = vmatprep.subr.bf16.mxu1 %v13877_v54  ;;  %1228 = vmatprep.subr.bf16.mxu0 %v13880_v55  ;;  %v13959_v54 = vld [vmem:[#allocation4 + $0xa8] sm:$0xff]   ;;  %v13961_v55 = vld [vmem:[#allocation4 + $0x98] sm:$0xff]  }
  0xa4   : > { %705 = vmatpush1.bf16.msra.mxu1 %v13875_v56  ;;  %1229 = vmatpush1.bf16.msra.mxu0 %v13878_v57  ;;  %v13962_v56 = vld [vmem:[#allocation4 + $0x90] sm:$0xff]   ;;  %v13963_v57 = vld [vmem:[#allocation4 + $0x88] sm:$0xff]  }
  0xa5   : > { %706 = vmatprep.subr.bf16.mxu1 %v13883_v58  ;;  %1230 = vmatprep.subr.bf16.mxu0 %v13886_v59  ;;  %v13964_v58 = vld [vmem:[#allocation4 + $0x80] sm:$0xff]  }
  0xa6   : > { %v13965_v59 = vld [vmem:[#allocation4 + $0xc0] sm:$0xff]  }
  0xa8   : > { %707 = vmatpush1.bf16.msra.mxu1 %v13881_v60  ;;  %1231 = vmatpush1.bf16.msra.mxu0 %v13884_v61 }
  0xa9   : > { %708 = vmatprep.subr.bf16.mxu1 %v13889_v62  ;;  %1232 = vmatprep.subr.bf16.mxu0 %v13892_v63 }
  0xac   : > { %709 = vmatpush1.bf16.msra.mxu1 %v13887_v1  ;;  %1233 = vmatpush1.bf16.msra.mxu0 %v13890_v2 }
  0xad   : > { %980 = vmatprep.subr.bf16.mxu1 %v13895_v3  ;;  %13469 = vmatprep.subr.bf16.mxu0 %v13941_v26 }
  0xaf   : > { %727 = vmatmul.mubr.bf16.vlgmr.msra.gmra.mxu1 %v16226_v35  ;;  %1251 = vmatmul.mubr.bf16.vlgmr.msra.gmra.mxu0 %v16226_v35 }
  0xb0   : > { %981 = vmatpush1.bf16.msra.mxu1 %v13893_v4  ;;  %1012 = vmatprep.mubr.bf16.mxu1 %v17672_v0 }
  0xb1   : > { %982 = vmatprep.subr.bf16.mxu1 %v13898_v5  ;;  %13470 = vmatpush3.bf16.msra.mxu0 %v13942_v27  ;;  %v458_v5 = vlaneseq }
  0xb2   : > { %13471 = vmatprep.subr.bf16.mxu0 %v13943_v28 }
  0xb4   : > { %983 = vmatpush1.bf16.msra.mxu1 %v13896_v6  ;;  %v16247_v6 = vshrl.u32 %v458_v5, 7  ;;  %v13972_v5 = vld [vmem:[#allocation6 + $0xc4] ss:$16 sps:$4 sm:$0xff]  }
  0xb5   : > { %984 = vmatprep.subr.bf16.mxu1 %v13901_v7  ;;  %13472 = vmatpush3.bf16.msra.mxu0 %v13944_v31 }
  0xb6   : > { %13473 = vmatprep.subr.bf16.mxu0 %v13945_v32  ;;  %17789 = vst [vmem:[#allocation17_spill] sm:$0xff] %v16247_v6  ;;  %vm739_vm0 = vcmp.ge.s32.totalorder %v16247_v6, 1  ;;  %vm1304_vm1 = vcmp.lt.s32.totalorder %v16247_v6, 7 }
  0xb8   : > { %985 = vmatpush1.bf16.msra.mxu1 %v13899_v8 }
  0xb9   : > { %986 = vmatprep.subr.bf16.mxu1 %v13904_v9  ;;  %13474 = vmatpush3.bf16.msra.mxu0 %v13946_v34  ;;  %v1315_v9 = vld [vmem:[%s17663_s2] sm:$0xf] }
  0xba   : > { %13475 = vmatprep.subr.bf16.mxu0 %v13947_v37 }
  0xbc   : > { %987 = vmatpush1.bf16.msra.mxu1 %v13902_v10 }
  0xbd   : > { %988 = vmatprep.subr.bf16.mxu1 %v13907_v11  ;;  %13476 = vmatpush3.bf16.msra.mxu0 %v13948_v39  ;;  %v16256_v11 = vsub.s32 0, %v16247_v6 }
  0xbe   : > { %13477 = vmatprep.subr.bf16.mxu0 %v13949_v41 }
  0xbf   : > { %17790 = vst [vmem:[#allocation18_spill] sm:$0xff] %v16256_v11 }
  0xc0   : > { %989 = vmatpush1.bf16.msra.mxu1 %v13905_v12 }
  0xc1   : > { %990 = vmatprep.subr.bf16.mxu1 %v13910_v13  ;;  %13478 = vmatpush3.bf16.msra.mxu0 %v13950_v43  ;;  %v16280_v43 = vsub.s32 2, %v16247_v6 }
  0xc2   : > { %13479 = vmatprep.subr.bf16.mxu0 %v13951_v46 }
  0xc3   : > { %17792 = vst [vmem:[#allocation20_spill] sm:$0xff] %v16280_v43 }
  0xc4   : > { %991 = vmatpush1.bf16.msra.mxu1 %v13908_v14  ;;  %v16260_v14 = vsub.s32 1, %v16247_v6 }
  0xc5   : > { %992 = vmatprep.subr.bf16.mxu1 %v13913_v15  ;;  %13480 = vmatpush3.bf16.msra.mxu0 %v13952_v47 }
  0xc6   : > { %13481 = vmatprep.subr.bf16.mxu0 %v13953_v48  ;;  %17791 = vst [vmem:[#allocation19_spill] sm:$0xff] %v16260_v14 }
  0xc8   : > { %993 = vmatpush1.bf16.msra.mxu1 %v13911_v16 }
  0xc9   : > { %994 = vmatprep.subr.bf16.mxu1 %v13916_v17  ;;  %13482 = vmatpush3.bf16.msra.mxu0 %v13954_v49 }
  0xca   : > { %13483 = vmatprep.subr.bf16.mxu0 %v13955_v50 }
  0xcc   : > { %995 = vmatpush1.bf16.msra.mxu1 %v13914_v18 }
  0xcd   : > { %1259 = vmatprep.subr.bf16.mxu1 %v13919_v19  ;;  %13484 = vmatpush3.bf16.msra.mxu0 %v13956_v51 }
  0xcf   : > { %1013 = vmatmul.mubr.bf16.vlgmr.msra.gmra.mxu1 %v16226_v35 }
  0xd0   : > { %1260 = vmatpush1.bf16.msra.mxu1 %v13917_v20  ;;  %1291 = vmatprep.mubr.bf16.mxu1 %v17672_v0 }
  0xd1   : > { %1261 = vmatprep.subr.bf16.mxu1 %v13922_v21  ;;  %v1320_v21 = vrot.slane %v1315_v9, %v16256_v11 }
  0xd4   : > { %1262 = vmatpush1.bf16.msra.mxu1 %v13920_v22 }
  0xd5   : > { %1263 = vmatprep.subr.bf16.mxu1 %v13925_v23 }
  0xd8   : > { %1264 = vmatpush1.bf16.msra.mxu1 %v13923_v24 }
  0xd9   : > { %1265 = vmatprep.subr.bf16.mxu1 %v13928_v25  ;;  %v1324_v25 = vrot.slane %v1315_v9, %v16260_v14 }
  0xdc   : > { %1266 = vmatpush1.bf16.msra.mxu1 %v13926_v29 }
  0xdd   : > { %1267 = vmatprep.subr.bf16.mxu1 %v13931_v30 }
  0xe0   : > { %1268 = vmatpush1.bf16.msra.mxu1 %v13929_v33 }
  0xe1   : > { %1269 = vmatprep.subr.bf16.mxu1 %v13934_v36 }
  0xe4   : > { %1270 = vmatpush1.bf16.msra.mxu1 %v13932_v38 }
  0xe5   : > { %1271 = vmatprep.subr.bf16.mxu1 %v13937_v40 }
  0xe8   : > { %1272 = vmatpush1.bf16.msra.mxu1 %v13935_v42 }
  0xe9   : > { %1273 = vmatprep.subr.bf16.mxu1 %v13940_v44 }
  0xec   : > { %1274 = vmatpush1.bf16.msra.mxu1 %v13938_v45  ;;  %v16283_v45 = vsub.s32 3, %v16247_v6  ;;  %v16493_v6 = vld [vmem:[#allocation6 + $0x40] ss:$16 sps:$4 sm:$0xff]  }
  0xed   : > { %1625 = vmatprep.subr.bf16.mxu1 %v17672_v0  ;;  %17815 = vst [vmem:[#allocation43_spill] sm:$0xff] %v16493_v6 }
  0xee   : > { %17793 = vst [vmem:[#allocation21_spill] sm:$0xff] %v16283_v45 }
  0xef   : > { %1292 = vmatmul.mubr.bf16.vlgmr.msra.gmra.mxu1 %v16226_v35  ;;  %v13960_v35 = vld [vmem:[#allocation4 + $0xa0] sm:$0xff]  }
  0xf0   : > { %1626 = vmatpush1.bf16.msra.mxu1 %v13957_v52  ;;  %v1328_v52 = vrot.slane %v1315_v9, %v16280_v43 }
  0xf1   : > { %1627 = vmatprep.subr.bf16.mxu1 %v17672_v0 }
  0xf4   : > { %1628 = vmatpush1.bf16.msra.mxu1 %v13958_v53 }
  0xf5   : > { %1629 = vmatprep.subr.bf16.mxu1 %v17672_v0 }
  0xf8   : > { %1630 = vmatpush1.bf16.msra.mxu1 %v13959_v54 }
  0xf9   : > { %1631 = vmatprep.subr.bf16.mxu1 %v17672_v0 }
  0xfc   : > { %1632 = vmatpush1.bf16.msra.mxu1 %v13960_v35 }
  0xfd   : > { %1633 = vmatprep.subr.bf16.mxu1 %v17672_v0 }
 0x100   : > { %1634 = vmatpush1.bf16.msra.mxu1 %v13961_v55  ;;  %v1332_v55 = vrot.slane %v1315_v9, %v16283_v45  ;;  %v13977_v9 = vld [vmem:[#allocation6 + $0xc8] ss:$16 sps:$4 sm:$0xff]   ;;  %v16490_v45 = vld [vmem:[#allocation6 + $0x4c] ss:$16 sps:$4 sm:$0xff]  }
 0x101   : > { %1635 = vmatprep.subr.bf16.mxu1 %v17672_v0  ;;  %17814 = vst [vmem:[#allocation42_spill] sm:$0xff] %v16490_v45 }
 0x104   : > { %1636 = vmatpush1.bf16.msra.mxu1 %v13962_v56 }
 0x105   : > { %1637 = vmatprep.subr.bf16.mxu1 %v17672_v0 }
 0x108   : > { %1638 = vmatpush1.bf16.msra.mxu1 %v13963_v57 }
 0x109   : > { %1639 = vmatprep.subr.bf16.mxu1 %v17672_v0 }
 0x10c   : > { %1640 = vmatpush1.bf16.msra.mxu1 %v13964_v58 }
 0x10d   : > { %1655 = vmatprep.subr.bf16.mxu1 %v17672_v0 }
 0x110   : > { %1656 = vmatpush2.bf16.msra.mxu1 %v13965_v59 }
 0x14f   : > { %v687_v60 = vpop.f32.mrf.mxu1  ;;  %v973_v61 = vpop.f32.mrf.mxu0 }
 0x150   : > { %v735_v7 = vrot.slane %v687_v60, 7 }
 0x151   : > { %v689_v62 = vpop.f32.mrf.mxu1  ;;  %v975_v63 = vpop.f32.mrf.mxu0 }
 0x152   : > { %v736_v8 = vrot.slane %v689_v62, 7  ;;  %v742_v10 = vsel %vm739_vm0, %v735_v7, 0.0  ;;  %v13974_v7 = vld [vmem:[#allocation6 + $0xcc] ss:$16 sps:$4 sm:$0xff]  }
 0x153   : > { %v691_v1 = vpop.f32.mrf.mxu1  ;;  %v977_v2 = vpop.f32.mrf.mxu0  ;;  %v1021_v17 = vadd.f32 %v973_v61, %v742_v10  ;;  %v13978_v10 = vld [vmem:[#allocation6 + $0xa4] ss:$16 sps:$4 sm:$0xff]  }
 0x154   : > { %v743_v15 = vsel %vm739_vm0, %v736_v8, 0.0  ;;  %v13966_v1 = vld [vmem:[#allocation6 + $0xe4] ss:$16 sps:$4 sm:$0xff]   ;;  %v13968_v2 = vld [vmem:[#allocation6 + $0xec] ss:$16 sps:$4 sm:$0xff]  }
 0x155   : > { %v692_v3 = vpop.f32.mrf.mxu1  ;;  %v978_v4 = vpop.f32.mrf.mxu0  ;;  %v1022_v23 = vadd.f32 %v975_v63, %v743_v15  ;;  %1826 = vmatprep.subr.bf16.mxu0 %v13966_v1  ;;  %1867 = vmatprep.subr.bf16.mxu1 %v13968_v2  ;;  %v13976_v8 = vld [vmem:[#allocation6 + $0xc0] ss:$16 sps:$4 sm:$0xff]   ;;  %v13983_v15 = vld [vmem:[#allocation6 + $0xa8] ss:$16 sps:$4 sm:$0xff]  }
 0x156   : > { %v13970_v3 = vld [vmem:[#allocation6 + $0xe0] ss:$16 sps:$4 sm:$0xff]   ;;  %v13971_v4 = vld [vmem:[#allocation6 + $0xe8] ss:$16 sps:$4 sm:$0xff]  }
 0x157   : > { %v16357_v1 = vld [vmem:[#allocation4 + $0x20] sm:$0xff]   ;;  %v16361_v2 = vld [vmem:[#allocation4 + $0x58] sm:$0xff]  }
 0x16f   : > { %v728_v12 = vpop.f32.mrf.mxu1  ;;  %v1252_v13 = vpop.f32.mrf.mxu0 }
 0x170   : > { %v1300_v16 = vrot.slane %v1252_v13, 1  ;;  %v737_v41 = vrot.slane %v728_v12, 7  ;;  %v13980_v12 = vld [vmem:[#allocation6 + $0xac] ss:$16 sps:$4 sm:$0xff]   ;;  %v13982_v13 = vld [vmem:[#allocation6 + $0xa0] ss:$16 sps:$4 sm:$0xff]  }
 0x171   : > { %v730_v18 = vpop.f32.mrf.mxu1  ;;  %v1254_v19 = vpop.f32.mrf.mxu0 }
 0x172   : > { %v1307_v20 = vsel %vm1304_vm1, %v1300_v16, 0.0  ;;  %v1301_v22 = vrot.slane %v1254_v19, 1  ;;  %v738_v42 = vrot.slane %v730_v18, 7  ;;  %v744_v46 = vsel %vm739_vm0, %v737_v41, 0.0  ;;  %v13984_v16 = vld [vmem:[#allocation6 + $0x84] ss:$16 sps:$4 sm:$0xff]  }
 0x173   : > { %v1311_v24 = vadd.f32 %v1307_v20, %v1021_v17  ;;  %v732_v26 = vpop.f32.mrf.mxu1  ;;  %v1256_v27 = vpop.f32.mrf.mxu0  ;;  %v13986_v17 = vld [vmem:[#allocation6 + $0x8c] ss:$16 sps:$4 sm:$0xff]   ;;  %v13988_v18 = vld [vmem:[#allocation6 + $0x80] ss:$16 sps:$4 sm:$0xff]   ;;  %v13989_v19 = vld [vmem:[#allocation6 + $0x88] ss:$16 sps:$4 sm:$0xff]  }
 0x174   : > { %v1308_v28 = vsel %vm1304_vm1, %v1301_v22, 0.0  ;;  %v745_v50 = vsel %vm739_vm0, %v738_v42, 0.0  ;;  %v13990_v20 = vld [vmem:[#allocation6 + $0x64] ss:$16 sps:$4 sm:$0xff]   ;;  %v13994_v22 = vld [vmem:[#allocation6 + $0x60] ss:$16 sps:$4 sm:$0xff]  }
 0x175   : > { %v1312_v29 = vadd.f32 %v1308_v28, %v1022_v23  ;;  %v733_v30 = vpop.f32.mrf.mxu1  ;;  %v1257_v31 = vpop.f32.mrf.mxu0  ;;  %v16270_v32 = vadd.f32 %v1320_v21, %v1311_v24  ;;  %v13992_v21 = vld [vmem:[#allocation6 + $0x6c] ss:$16 sps:$4 sm:$0xff]   ;;  %v13995_v23 = vld [vmem:[#allocation6 + $0x68] ss:$16 sps:$4 sm:$0xff]   ;;  %v13996_v24 = vld [vmem:[#allocation6 + $0x44] ss:$16 sps:$4 sm:$0xff]  }
 0x176   : > { %v14000_v26 = vld [vmem:[#allocation6 + $0x40] ss:$16 sps:$4 sm:$0xff]   ;;  %v14001_v27 = vld [vmem:[#allocation6 + $0x48] ss:$16 sps:$4 sm:$0xff]   ;;  %v14002_v28 = vld [vmem:[#allocation6 + $0x24] ss:$16 sps:$4 sm:$0xff]  }
 0x177   : > { %v16272_v33 = vadd.f32 %v1324_v25, %v1312_v29  ;;  %v1427_v36 = vpack.c.bf16 %v16270_v32, %v16270_v32  ;;  %v13998_v25 = vld [vmem:[#allocation6 + $0x4c] ss:$16 sps:$4 sm:$0xff]   ;;  %v16305_v30 = vld [vmem:[#allocation6 + $0x20] ss:$16 sps:$4 sm:$0xff]   ;;  %v16307_v31 = vld [vmem:[#allocation6 + $0x28] ss:$16 sps:$4 sm:$0xff]  }
 0x178   : > { %v14004_v29 = vld [vmem:[#allocation6 + $0x2c] ss:$16 sps:$4 sm:$0xff]  }
 0x179   : > { %v1428_v34 = vpack.c.bf16 %v16272_v33, %v16272_v33 }
 0x17b   : > { %1617 = vmatprep.mubr.bf16.mxu0 %v1428_v34  ;;  %v16311_v34 = vld [vmem:[#allocation6 + $0x4] ss:$16 sps:$4 sm:$0xff]  }
 0x17c   : > { %1618 = vmatmul.mubr.bf16.vlgmr.msra.gmra.mxu0 %v1427_v36  ;;  %v16313_v36 = vld [vmem:[#allocation6 + $0xc] ss:$16 sps:$4 sm:$0xff]  }
 0x17d   : > { %1858 = vmatprep.mubr.bf16.mxu0 %v17672_v0  ;;  %1827 = vmatpush1.bf16.msra.mxu0 %v13970_v3  ;;  %v16364_v3 = vld [vmem:[#allocation4 + $0x98] sm:$0xff]  }
 0x17e   : > { %1828 = vmatprep.subr.bf16.mxu0 %v13972_v5  ;;  %v16371_v5 = vld [vmem:[#allocation4 + $0x50] sm:$0xff]  }
 0x181   : > { %1829 = vmatpush1.bf16.msra.mxu0 %v13976_v8  ;;  %v16377_v8 = vld [vmem:[#allocation4 + $0x10] sm:$0xff]  }
 0x182   : > { %1830 = vmatprep.subr.bf16.mxu0 %v13978_v10  ;;  %v16384_v10 = vld [vmem:[#allocation4 + $0x88] sm:$0xff]  }
 0x185   : > { %1831 = vmatpush1.bf16.msra.mxu0 %v13982_v13  ;;  %v16391_v13 = vld [vmem:[#allocation4 + $0x40] sm:$0xff]  }
 0x186   : > { %1832 = vmatprep.subr.bf16.mxu0 %v13984_v16  ;;  %v16397_v16 = vld [vmem:[#allocation4] sm:$0xff]  }
 0x189   : > { %1833 = vmatpush1.bf16.msra.mxu0 %v13988_v18  ;;  %v16404_v18 = vld [vmem:[#allocation4 + $0xc0] sm:$0xff]  }
 0x18a   : > { %1834 = vmatprep.subr.bf16.mxu0 %v13990_v20 }
 0x18d   : > { %1835 = vmatpush1.bf16.msra.mxu0 %v13994_v22 }
 0x18e   : > { %1836 = vmatprep.subr.bf16.mxu0 %v13996_v24 }
 0x18f   : > { %v1014_v37 = vpop.f32.mrf.mxu1 }
 0x190   : > { %v1023_v48 = vadd.f32 %v1014_v37, %v744_v46  ;;  %v16315_v37 = vld [vmem:[#allocation6] ss:$16 sps:$4 sm:$0xff]  }
 0x191   : > { %v1016_v38 = vpop.f32.mrf.mxu1  ;;  %1837 = vmatpush1.bf16.msra.mxu0 %v14000_v26 }
 0x192   : > { %v1024_v54 = vadd.f32 %v1016_v38, %v745_v50  ;;  %1838 = vmatprep.subr.bf16.mxu0 %v14002_v28  ;;  %v16317_v38 = vld [vmem:[#allocation6 + $0x8] ss:$16 sps:$4 sm:$0xff]  }
 0x193   : > { %v1018_v39 = vpop.f32.mrf.mxu1 }
 0x194   : > { %v15629_v39 = vld [vmem:[#allocation4 + $0x78] sm:$0xff]  }
 0x195   : > { %v1019_v40 = vpop.f32.mrf.mxu1  ;;  %1839 = vmatpush1.bf16.msra.mxu0 %v16305_v30 }
 0x196   : > { %1840 = vmatprep.subr.bf16.mxu0 %v16311_v34 }
 0x199   : > { %1841 = vmatpush1.bf16.msra.mxu0 %v16315_v37 }
 0x19a   : > { %13491 = vmatprep.subr.bf16.mxu0 %v15629_v39 }
 0x1af   : > { %v1293_v44 = vpop.f32.mrf.mxu1 }
 0x1b0   : > { %v1302_v47 = vrot.slane %v1293_v44, 1 }
 0x1b1   : > { %v1295_v49 = vpop.f32.mrf.mxu1 }
 0x1b2   : > { %v1309_v51 = vsel %vm1304_vm1, %v1302_v47, 0.0  ;;  %v1303_v53 = vrot.slane %v1295_v49, 1 }
 0x1b3   : > { %v1313_v35 = vadd.f32 %v1309_v51, %v1023_v48  ;;  %v1297_v56 = vpop.f32.mrf.mxu1 }
 0x1b4   : > { %v1310_v57 = vsel %vm1304_vm1, %v1303_v53, 0.0  ;;  %v16324_v53 = vld [vmem:[#allocation4 + $0xb8] sm:$0xff]   ;;  %v16337_v56 = vld [vmem:[#allocation4 + $0x30] sm:$0xff]  }
 0x1b5   : > { %v1314_v58 = vadd.f32 %v1310_v57, %v1024_v54  ;;  %v1298_v59 = vpop.f32.mrf.mxu1  ;;  %v16295_v60 = vadd.f32 %v1328_v52, %v1313_v35  ;;  %v16327_v54 = vld [vmem:[#allocation4 + $0x38] sm:$0xff]   ;;  %v16331_v35 = vld [vmem:[#allocation4 + $0x70] sm:$0xff]   ;;  %v16341_v57 = vld [vmem:[#allocation4 + $0x68] sm:$0xff]  }
 0x1b6   : > { %v16347_v59 = vld [vmem:[#allocation4 + $0x28] sm:$0xff]  }
 0x1b7   : > { %17794 = vst [vmem:[#allocation22_spill] sm:$0xff] %v16295_v60  ;;  %v16297_v61 = vadd.f32 %v1332_v55, %v1314_v58  ;;  %v1429_v63 = vpack.c.bf16 %v16295_v60, %v16295_v60  ;;  %v16334_v55 = vld [vmem:[#allocation4 + $0xb0] sm:$0xff]   ;;  %v16344_v58 = vld [vmem:[#allocation4 + $0xa8] sm:$0xff]  }
 0x1b9   : > { %17795 = vst [vmem:[#allocation23_spill] sm:$0xff] %v16297_v61  ;;  %v1430_v62 = vpack.c.bf16 %v16297_v61, %v16297_v61 }
 0x1bb   : > { %12301 = vmatprep.mubr.msk.bf16.mxu1 %vm1581_vm2, %v1430_v62  ;;  %v16351_v62 = vld [vmem:[#allocation4 + $0x60] sm:$0xff]  }
 0x1bc   : > { %1658 = vmatmul.mubr.bf16.vlgmr.msra.gmra.mxu1 %v1429_v63  ;;  %v16354_v63 = vld [vmem:[#allocation4 + $0xa0] sm:$0xff]  }
 0x1bd   : > { %1899 = vmatprep.mubr.bf16.mxu1 %v17672_v0  ;;  %1868 = vmatpush1.bf16.msra.mxu1 %v13971_v4  ;;  %v16367_v4 = vld [vmem:[#allocation4 + $0x18] sm:$0xff]  }
 0x1be   : > { %1869 = vmatprep.subr.bf16.mxu1 %v13974_v7  ;;  %v16374_v7 = vld [vmem:[#allocation4 + $0x90] sm:$0xff]  }
 0x1c1   : > { %1870 = vmatpush1.bf16.msra.mxu1 %v13977_v9  ;;  %v16381_v9 = vld [vmem:[#allocation4 + $0x48] sm:$0xff]  }
 0x1c2   : > { %1871 = vmatprep.subr.bf16.mxu1 %v13980_v12  ;;  %v16387_v12 = vld [vmem:[#allocation4 + $0x8] sm:$0xff]  }
 0x1c5   : > { %1872 = vmatpush1.bf16.msra.mxu1 %v13983_v15  ;;  %v16394_v15 = vld [vmem:[#allocation4 + $0x80] sm:$0xff]  }
 0x1c6   : > { %1873 = vmatprep.subr.bf16.mxu1 %v13986_v17  ;;  %v16401_v17 = vld [vmem:[#allocation6 + $0xe4] ss:$16 sps:$4 sm:$0xff]  }
 0x1c9   : > { %1874 = vmatpush1.bf16.msra.mxu1 %v13989_v19  ;;  %v16407_v19 = vld [vmem:[#allocation6 + $0xec] ss:$16 sps:$4 sm:$0xff]  }
 0x1ca   : > { %1875 = vmatprep.subr.bf16.mxu1 %v13992_v21 }
 0x1cd   : > { %1876 = vmatpush1.bf16.msra.mxu1 %v13995_v23 }
 0x1ce   : > { %1877 = vmatprep.subr.bf16.mxu1 %v13998_v25 }
 0x1d1   : > { %1878 = vmatpush1.bf16.msra.mxu1 %v14001_v27 }
 0x1d2   : > { %1879 = vmatprep.subr.bf16.mxu1 %v14004_v29 }
 0x1d5   : > { %1880 = vmatpush1.bf16.msra.mxu1 %v16307_v31 }
 0x1d6   : > { %1881 = vmatprep.subr.bf16.mxu1 %v16313_v36 }
 0x1d9   : > { %1882 = vmatpush1.bf16.msra.mxu1 %v16317_v38 }
 0x1da   : > { %1963 = vmatprep.subr.bf16.mxu1 %v17672_v0 }
 0x23c   : > { %v13485_v40 = vpop.f32.mrf.mxu0 }
 0x23e   : > { %v13486_v41 = vpop.f32.mrf.mxu0 }
 0x23f   : > { %v13487_v46 = vadd.f32 %v13486_v41, %v13485_v40 }
 0x240   : > { %v13488_v42 = vpop.f32.mrf.mxu0 }
 0x242   : > { %v13489_v44 = vpop.f32.mrf.mxu0 }
 0x27c   : > { %v1659_v47 = vpop.f32.mrf.mxu1 }
 0x27d   : > { %v1660_v48 = vadd.f32 %v13487_v46, %v1659_v47 }
 0x27e   : > { %v1661_v49 = vpop.f32.mrf.mxu1 }
 0x27f   : > { %v1665_v50 = vpack.c.bf16 %v1660_v48, %v1660_v48 }
 0x280   : > { %v1662_v51 = vpop.f32.mrf.mxu1 }
 0x281   : > { %1859 = vmatmul.mubr.bf16.vlgmr.msra.gmra.mxu0 %v1665_v50  ;;  %1900 = vmatmul.mubr.bf16.vlgmr.msra.gmra.mxu1 %v1665_v50  ;;  %v16431_v51 = vld [vmem:[#allocation6 + $0xe0] ss:$16 sps:$4 sm:$0xff]  }
 0x282   : > { %v1663_v52 = vpop.f32.mrf.mxu1  ;;  %1964 = vmatpush1.bf16.msra.mxu1 %v16324_v53  ;;  %13492 = vmatpush3.bf16.msra.mxu0 %v16327_v54 }
 0x283   : > { %1965 = vmatprep.subr.bf16.mxu1 %v17672_v0  ;;  %13493 = vmatprep.subr.bf16.mxu0 %v16331_v35  ;;  %v16434_v52 = vld [vmem:[#allocation6 + $0xe8] ss:$16 sps:$4 sm:$0xff]  }
 0x284   : > { %17796 = vst [vmem:[#allocation24_spill] sm:$0xff] %v16434_v52 }
 0x286   : > { %1966 = vmatpush1.bf16.msra.mxu1 %v16334_v55  ;;  %13494 = vmatpush3.bf16.msra.mxu0 %v16337_v56 }
 0x287   : > { %1967 = vmatprep.subr.bf16.mxu1 %v17672_v0  ;;  %13495 = vmatprep.subr.bf16.mxu0 %v16341_v57 }
 0x28a   : > { %1968 = vmatpush1.bf16.msra.mxu1 %v16344_v58  ;;  %13496 = vmatpush3.bf16.msra.mxu0 %v16347_v59 }
 0x28b   : > { %1969 = vmatprep.subr.bf16.mxu1 %v17672_v0  ;;  %13497 = vmatprep.subr.bf16.mxu0 %v16351_v62 }
 0x28e   : > { %1970 = vmatpush1.bf16.msra.mxu1 %v16354_v63  ;;  %13498 = vmatpush3.bf16.msra.mxu0 %v16357_v1 }
 0x28f   : > { %1971 = vmatprep.subr.bf16.mxu1 %v17672_v0  ;;  %13499 = vmatprep.subr.bf16.mxu0 %v16361_v2 }
 0x292   : > { %1972 = vmatpush1.bf16.msra.mxu1 %v16364_v3  ;;  %13500 = vmatpush3.bf16.msra.mxu0 %v16367_v4 }
 0x293   : > { %1973 = vmatprep.subr.bf16.mxu1 %v17672_v0  ;;  %13501 = vmatprep.subr.bf16.mxu0 %v16371_v5 }
 0x296   : > { %1974 = vmatpush1.bf16.msra.mxu1 %v16374_v7  ;;  %13502 = vmatpush3.bf16.msra.mxu0 %v16377_v8 }
 0x297   : > { %1975 = vmatprep.subr.bf16.mxu1 %v17672_v0  ;;  %13503 = vmatprep.subr.bf16.mxu0 %v16381_v9 }
 0x29a   : > { %1976 = vmatpush1.bf16.msra.mxu1 %v16384_v10  ;;  %13504 = vmatpush3.bf16.msra.mxu0 %v16387_v12 }
 0x29b   : > { %1977 = vmatprep.subr.bf16.mxu1 %v17672_v0  ;;  %13505 = vmatprep.subr.bf16.mxu0 %v16391_v13 }
 0x29e   : > { %1978 = vmatpush1.bf16.msra.mxu1 %v16394_v15  ;;  %13506 = vmatpush3.bf16.msra.mxu0 %v16397_v16 }
 0x29f   : > { %1993 = vmatprep.subr.bf16.mxu1 %v17672_v0  ;;  %2005 = vmatprep.subr.bf16.mxu0 %v16401_v17 }
 0x2a2   : > { %1994 = vmatpush2.bf16.msra.mxu1 %v16404_v18 }
 0x2a3   : > { %2046 = vmatprep.subr.bf16.mxu1 %v16407_v19 }
 0x341   : > { %v1860_v20 = vpop.f32.mrf.mxu0  ;;  %v1901_v21 = vpop.f32.mrf.mxu1 }
 0x342   : > { %v16411_v22 = vsub.f32 %v16270_v32, %v1860_v20  ;;  %v16414_v23 = vsub.f32 %v16295_v60, %v1901_v21  ;;  %v16437_v20 = vld [vmem:[#allocation6 + $0xc4] ss:$16 sps:$4 sm:$0xff]   ;;  %v16440_v21 = vld [vmem:[#allocation6 + $0xcc] ss:$16 sps:$4 sm:$0xff]   ;;  %v14038_v60 = vld [vmem:[#allocation7 + $0x2e0] ss:$16 sps:$4 sm:$0xff]  }
 0x343   : > { %v1862_v24 = vpop.f32.mrf.mxu0  ;;  %v1903_v25 = vpop.f32.mrf.mxu1  ;;  %17797 = vst [vmem:[#allocation25_spill] sm:$0xff] %v16437_v20  ;;  %17798 = vst [vmem:[#allocation26_spill] sm:$0xff] %v16440_v21 }
 0x344   : > { %v16417_v26 = vsub.f32 %v16272_v33, %v1862_v24  ;;  %v16420_v27 = vsub.f32 %v16297_v61, %v1903_v25  ;;  %v1912_v28 = vpack.c.bf16 %v16411_v22, %v16411_v22  ;;  %v1914_v29 = vpack.c.bf16 %v16414_v23, %v16414_v23  ;;  %v16445_v24 = vld [vmem:[#allocation6 + $0xc0] ss:$16 sps:$4 sm:$0xff]   ;;  %v16448_v25 = vld [vmem:[#allocation6 + $0xc8] ss:$16 sps:$4 sm:$0xff]  }
 0x345   : > { %v1864_v39 = vpop.f32.mrf.mxu0  ;;  %v1905_v40 = vpop.f32.mrf.mxu1  ;;  %17799 = vst [vmem:[#allocation27_spill] sm:$0xff] %v16445_v24  ;;  %17800 = vst [vmem:[#allocation28_spill] sm:$0xff] %v16448_v25 }
 0x346   : > { %v1913_v41 = vpack.c.bf16 %v16417_v26, %v16417_v26  ;;  %v1915_v42 = vpack.c.bf16 %v16420_v27, %v16420_v27  ;;  %v1916_v49 = vmul.bf16 %v1912_v28, %v1912_v28  ;;  %v1918_v50 = vmul.bf16 %v1914_v29, %v1914_v29  ;;  %v16451_v28 = vld [vmem:[#allocation6 + $0xa4] ss:$16 sps:$4 sm:$0xff]   ;;  %v16454_v29 = vld [vmem:[#allocation6 + $0xac] ss:$16 sps:$4 sm:$0xff]   ;;  %v16457_v39 = vld [vmem:[#allocation6 + $0xa0] ss:$16 sps:$4 sm:$0xff]  }
 0x347   : > { %v1865_v44 = vpop.f32.mrf.mxu0  ;;  %v1906_v46 = vpop.f32.mrf.mxu1  ;;  %17801 = vst [vmem:[#allocation29_spill] sm:$0xff] %v16451_v28  ;;  %17802 = vst [vmem:[#allocation30_spill] sm:$0xff] %v16454_v29  ;;  %v16460_v40 = vld [vmem:[#allocation6 + $0xa8] ss:$16 sps:$4 sm:$0xff]  }
 0x348   : > { %v1917_v47 = vmul.bf16 %v1913_v41, %v1913_v41  ;;  %v1919_v48 = vmul.bf16 %v1915_v42, %v1915_v42  ;;  %17803 = vst [vmem:[#allocation31_spill] sm:$0xff] %v16457_v39  ;;  %17804 = vst [vmem:[#allocation32_spill] sm:$0xff] %v16460_v40  ;;  %v16463_v41 = vld [vmem:[#allocation6 + $0x84] ss:$16 sps:$4 sm:$0xff]   ;;  %v16466_v42 = vld [vmem:[#allocation6 + $0x8c] ss:$16 sps:$4 sm:$0xff]  }
 0x349   : > { %17805 = vst [vmem:[#allocation33_spill] sm:$0xff] %v16463_v41  ;;  %17806 = vst [vmem:[#allocation34_spill] sm:$0xff] %v16466_v42  ;;  %v16469_v44 = vld [vmem:[#allocation6 + $0x80] ss:$16 sps:$4 sm:$0xff]   ;;  %v16472_v46 = vld [vmem:[#allocation6 + $0x88] ss:$16 sps:$4 sm:$0xff]  }
 0x34a   : > { %1955 = vmatprep.mubr.bf16.mxu0 %v1917_v47  ;;  %12334 = vmatprep.mubr.msk.bf16.mxu1 %vm1581_vm2, %v1919_v48  ;;  %17807 = vst [vmem:[#allocation35_spill] sm:$0xff] %v16469_v44  ;;  %17808 = vst [vmem:[#allocation36_spill] sm:$0xff] %v16472_v46  ;;  %v16475_v47 = vld [vmem:[#allocation6 + $0x64] ss:$16 sps:$4 sm:$0xff]   ;;  %v16478_v48 = vld [vmem:[#allocation6 + $0x6c] ss:$16 sps:$4 sm:$0xff]  }
 0x34b   : > { %1956 = vmatmul.mubr.bf16.vlgmr.msra.gmra.mxu0 %v1916_v49  ;;  %1996 = vmatmul.mubr.bf16.vlgmr.msra.gmra.mxu1 %v1918_v50  ;;  %17809 = vst [vmem:[#allocation37_spill] sm:$0xff] %v16475_v47  ;;  %17810 = vst [vmem:[#allocation38_spill] sm:$0xff] %v16478_v48  ;;  %v16481_v49 = vld [vmem:[#allocation6 + $0x60] ss:$16 sps:$4 sm:$0xff]   ;;  %v16484_v50 = vld [vmem:[#allocation6 + $0x68] ss:$16 sps:$4 sm:$0xff]  }
 0x34c   : > { %2006 = vmatpush1.bf16.msra.mxu0 %v16431_v51  ;;  %2047 = vmatpush1.bf16.msra.mxu1 %v16434_v52  ;;  %17811 = vst [vmem:[#allocation39_spill] sm:$0xff] %v16481_v49  ;;  %17812 = vst [vmem:[#allocation40_spill] sm:$0xff] %v16484_v50 }
 0x34d   : > { %2007 = vmatprep.subr.bf16.mxu0 %v16437_v20  ;;  %2048 = vmatprep.subr.bf16.mxu1 %v16440_v21  ;;  %v14089_v20 = vld [vmem:[#allocation7 + $0xe8] ss:$16 sps:$4 sm:$0xff]  }
 0x34e   : > { %2037 = vmatprep.mubr.bf16.mxu0 %v17672_v0  ;;  %2078 = vmatprep.mubr.bf16.mxu1 %v17672_v0  ;;  %v16487_v0 = vld [vmem:[#allocation6 + $0x44] ss:$16 sps:$4 sm:$0xff]  }
 0x34f   : > { %17813 = vst [vmem:[#allocation41_spill] sm:$0xff] %v16487_v0 }
 0x350   : > { %2008 = vmatpush1.bf16.msra.mxu0 %v16445_v24  ;;  %2049 = vmatpush1.bf16.msra.mxu1 %v16448_v25 }
 0x351   : > { %2009 = vmatprep.subr.bf16.mxu0 %v16451_v28  ;;  %2050 = vmatprep.subr.bf16.mxu1 %v16454_v29 }
 0x354   : > { %2010 = vmatpush1.bf16.msra.mxu0 %v16457_v39  ;;  %2051 = vmatpush1.bf16.msra.mxu1 %v16460_v40 }
 0x355   : > { %2011 = vmatprep.subr.bf16.mxu0 %v16463_v41  ;;  %2052 = vmatprep.subr.bf16.mxu1 %v16466_v42 }
 0x358   : > { %2012 = vmatpush1.bf16.msra.mxu0 %v16469_v44  ;;  %2053 = vmatpush1.bf16.msra.mxu1 %v16472_v46  ;;  %v16499_v46 = vld [vmem:[#allocation6 + $0x24] ss:$16 sps:$4 sm:$0xff]  }
 0x359   : > { %2013 = vmatprep.subr.bf16.mxu0 %v16475_v47  ;;  %2054 = vmatprep.subr.bf16.mxu1 %v16478_v48  ;;  %v16496_v48 = vld [vmem:[#allocation6 + $0x48] ss:$16 sps:$4 sm:$0xff]   ;;  %17817 = vst [vmem:[#allocation45_spill] sm:$0xff] %v16499_v46 }
 0x35a   : > { %17816 = vst [vmem:[#allocation44_spill] sm:$0xff] %v16496_v48 }
 0x35c   : > { %2014 = vmatpush1.bf16.msra.mxu0 %v16481_v49  ;;  %2055 = vmatpush1.bf16.msra.mxu1 %v16484_v50  ;;  %v16502_v50 = vld [vmem:[#allocation6 + $0x2c] ss:$16 sps:$4 sm:$0xff]  }
 0x35d   : > { %2015 = vmatprep.subr.bf16.mxu0 %v16487_v0  ;;  %2056 = vmatprep.subr.bf16.mxu1 %v16490_v45  ;;  %17818 = vst [vmem:[#allocation46_spill] sm:$0xff] %v16502_v50  ;;  %v14040_v45 = vld [vmem:[#allocation7 + $0x2e4] ss:$16 sps:$4 sm:$0xff]  }
 0x360   : > { %2016 = vmatpush1.bf16.msra.mxu0 %v16493_v6  ;;  %2057 = vmatpush1.bf16.msra.mxu1 %v16496_v48  ;;  %v14016_v48 = vld [vmem:[#allocation7 + $0xe4] ss:$16 sps:$4 sm:$0xff]  }
 0x361   : > { %2017 = vmatprep.subr.bf16.mxu0 %v16499_v46  ;;  %2058 = vmatprep.subr.bf16.mxu1 %v16502_v50  ;;  %v14019_v46 = vld [vmem:[#allocation7 + $0xc4] ss:$16 sps:$4 sm:$0xff]  }
 0x364   : > { %2018 = vmatpush1.bf16.msra.mxu0 %v16305_v30  ;;  %2059 = vmatpush1.bf16.msra.mxu1 %v16307_v31 }
 0x365   : > { %2019 = vmatprep.subr.bf16.mxu0 %v16311_v34  ;;  %2060 = vmatprep.subr.bf16.mxu1 %v16313_v36 }
 0x368   : > { %2020 = vmatpush1.bf16.msra.mxu0 %v16315_v37  ;;  %2061 = vmatpush1.bf16.msra.mxu1 %v16317_v38  ;;  %v14014_v37 = vld [vmem:[#allocation7 + $0xe0] ss:$16 sps:$4 sm:$0xff]  }
 0x369   : > { %2754 = vmatprep.subr.bf16.mxu0 %v14016_v48  ;;  %2795 = vmatprep.subr.bf16.mxu1 %v14040_v45  ;;  %v14046_v48 = vld [vmem:[#allocation7 + $0x2c4] ss:$16 sps:$4 sm:$0xff]   ;;  %v14017_v45 = vld [vmem:[#allocation7 + $0xc0] ss:$16 sps:$4 sm:$0xff]  }
 0x40b   : > { %v13507_v42 = vpop.f32.mrf.mxu0  ;;  %v1997_v40 = vpop.f32.mrf.mxu1 }
 0x40d   : > { %v13508_v29 = vpop.f32.mrf.mxu0  ;;  %v1999_v50 = vpop.f32.mrf.mxu1 }
 0x40e   : > { %v13509_v25 = vadd.f32 %v13508_v29, %v13507_v42  ;;  %v14044_v50 = vld [vmem:[#allocation7 + $0x2c0] ss:$16 sps:$4 sm:$0xff]   ;;  %v14022_v29 = vld [vmem:[#allocation7 + $0xa4] ss:$16 sps:$4 sm:$0xff]  }
 0x40f   : > { %v13510_v30 = vpop.f32.mrf.mxu0  ;;  %v2000_v21 = vpop.f32.mrf.mxu1  ;;  %v14023_v42 = vld [vmem:[#allocation7 + $0x80] ss:$16 sps:$4 sm:$0xff]  }
 0x410   : > { %v1958_v31 = vadd.f32 1e-05, %v13509_v25  ;;  %v14052_v21 = vld [vmem:[#allocation7 + $0x2a4] ss:$16 sps:$4 sm:$0xff]   ;;  %v14056_v30 = vld [vmem:[#allocation7 + $0x280] ss:$16 sps:$4 sm:$0xff]  }
 0x411   : > { %v13511_v52 = vpop.f32.mrf.mxu0  ;;  %v2001_v34 = vpop.f32.mrf.mxu1  ;;  %v14025_v25 = vld [vmem:[#allocation7 + $0x84] ss:$16 sps:$4 sm:$0xff]  }
 0x412   : > { %v1998_v61 = vadd.f32 %v1997_v40, %v1958_v31  ;;  %v14020_v52 = vld [vmem:[#allocation7 + $0xa0] ss:$16 sps:$4 sm:$0xff]   ;;  %v14058_v40 = vld [vmem:[#allocation7 + $0x284] ss:$16 sps:$4 sm:$0xff]  }
 0x413   : > { %v14028_v31 = vld [vmem:[#allocation7 + $0x64] ss:$16 sps:$4 sm:$0xff]   ;;  %v14062_v34 = vld [vmem:[#allocation7 + $0x260] ss:$16 sps:$4 sm:$0xff]  }
 0x414   : > { %15589 = vrsqrt.f32 %v1998_v61  ;;  %v14050_v61 = vld [vmem:[#allocation7 + $0x2a0] ss:$16 sps:$4 sm:$0xff]  }
 0x421   : > { %v15590_v36 = vpop.eup %15589 }
 0x422   : > { %v2004_v38 = vpack.c.bf16 %v15590_v36, %v15590_v36  ;;  %v14031_v36 = vld [vmem:[#allocation7 + $0x44] ss:$16 sps:$4 sm:$0xff]  }
 0x424   : > { %2038 = vmatmul.mubr.bf16.vlgmr.msra.gmra.mxu0 %v2004_v38  ;;  %2079 = vmatmul.mubr.bf16.vlgmr.msra.gmra.mxu1 %v2004_v38  ;;  %v14029_v38 = vld [vmem:[#allocation7 + $0x40] ss:$16 sps:$4 sm:$0xff]  }
 0x425   : > { %2755 = vmatpush1.bf16.msra.mxu0 %v14014_v37  ;;  %2796 = vmatpush1.bf16.msra.mxu1 %v14038_v60  ;;  %v14064_v60 = vld [vmem:[#allocation7 + $0x264] ss:$16 sps:$4 sm:$0xff]  }
 0x426   : > { %2756 = vmatprep.subr.bf16.mxu0 %v14019_v46  ;;  %2797 = vmatprep.subr.bf16.mxu1 %v14046_v48  ;;  %v14026_v46 = vld [vmem:[#allocation7 + $0x60] ss:$16 sps:$4 sm:$0xff]   ;;  %v14070_v37 = vld [vmem:[#allocation7 + $0x244] ss:$16 sps:$4 sm:$0xff]  }
 0x427   : > { %v14068_v48 = vld [vmem:[#allocation7 + $0x240] ss:$16 sps:$4 sm:$0xff]  }
 0x429   : > { %2757 = vmatpush1.bf16.msra.mxu0 %v14017_v45  ;;  %2798 = vmatpush1.bf16.msra.mxu1 %v14044_v50  ;;  %v14034_v45 = vld [vmem:[#allocation7 + $0x24] ss:$16 sps:$4 sm:$0xff]  }
 0x42a   : > { %2758 = vmatprep.subr.bf16.mxu0 %v14022_v29  ;;  %2799 = vmatprep.subr.bf16.mxu1 %v14052_v21  ;;  %v14076_v50 = vld [vmem:[#allocation7 + $0x224] ss:$16 sps:$4 sm:$0xff]   ;;  %v14032_v29 = vld [vmem:[#allocation7 + $0x20] ss:$16 sps:$4 sm:$0xff]  }
 0x42b   : > { %v14074_v21 = vld [vmem:[#allocation7 + $0x220] ss:$16 sps:$4 sm:$0xff]  }
 0x42d   : > { %2759 = vmatpush1.bf16.msra.mxu0 %v14020_v52  ;;  %2800 = vmatpush1.bf16.msra.mxu1 %v14050_v61  ;;  %v14037_v52 = vld [vmem:[#allocation7 + $0x4] ss:$16 sps:$4 sm:$0xff]   ;;  %v14035_v61 = vld [vmem:[#allocation7] ss:$16 sps:$4 sm:$0xff]  }
 0x42e   : > { %2760 = vmatprep.subr.bf16.mxu0 %v14025_v25  ;;  %2801 = vmatprep.subr.bf16.mxu1 %v14058_v40  ;;  %v14043_v25 = vld [vmem:[#allocation7 + $0x1e4] ss:$16 sps:$4 sm:$0xff]   ;;  %v14041_v40 = vld [vmem:[#allocation7 + $0x1e0] ss:$16 sps:$4 sm:$0xff]  }
 0x431   : > { %2761 = vmatpush1.bf16.msra.mxu0 %v14023_v42  ;;  %2802 = vmatpush1.bf16.msra.mxu1 %v14056_v30  ;;  %v14049_v42 = vld [vmem:[#allocation7 + $0x1c4] ss:$16 sps:$4 sm:$0xff]   ;;  %v14047_v30 = vld [vmem:[#allocation7 + $0x1c0] ss:$16 sps:$4 sm:$0xff]  }
 0x432   : > { %2762 = vmatprep.subr.bf16.mxu0 %v14028_v31  ;;  %2803 = vmatprep.subr.bf16.mxu1 %v14064_v60  ;;  %v14055_v31 = vld [vmem:[#allocation7 + $0x1a4] ss:$16 sps:$4 sm:$0xff]   ;;  %v14053_v60 = vld [vmem:[#allocation7 + $0x1a0] ss:$16 sps:$4 sm:$0xff]  }
 0x435   : > { %2763 = vmatpush1.bf16.msra.mxu0 %v14026_v46  ;;  %2804 = vmatpush1.bf16.msra.mxu1 %v14062_v34  ;;  %v14061_v46 = vld [vmem:[#allocation7 + $0x184] ss:$16 sps:$4 sm:$0xff]   ;;  %v14059_v34 = vld [vmem:[#allocation7 + $0x180] ss:$16 sps:$4 sm:$0xff]  }
 0x436   : > { %2764 = vmatprep.subr.bf16.mxu0 %v14031_v36  ;;  %2805 = vmatprep.subr.bf16.mxu1 %v14070_v37  ;;  %v14067_v36 = vld [vmem:[#allocation7 + $0x164] ss:$16 sps:$4 sm:$0xff]   ;;  %v14065_v37 = vld [vmem:[#allocation7 + $0x160] ss:$16 sps:$4 sm:$0xff]  }
 0x439   : > { %2765 = vmatpush1.bf16.msra.mxu0 %v14029_v38  ;;  %2806 = vmatpush1.bf16.msra.mxu1 %v14068_v48  ;;  %v14073_v38 = vld [vmem:[#allocation7 + $0x144] ss:$16 sps:$4 sm:$0xff]   ;;  %v14071_v48 = vld [vmem:[#allocation7 + $0x140] ss:$16 sps:$4 sm:$0xff]  }
 0x43a   : > { %2766 = vmatprep.subr.bf16.mxu0 %v14034_v45  ;;  %2807 = vmatprep.subr.bf16.mxu1 %v14076_v50  ;;  %v14079_v45 = vld [vmem:[#allocation7 + $0x124] ss:$16 sps:$4 sm:$0xff]  }
 0x43b   : > { %v14082_v50 = vld [vmem:[#allocation7 + $0x204] ss:$16 sps:$4 sm:$0xff]  }
 0x43d   : > { %2767 = vmatpush1.bf16.msra.mxu0 %v14032_v29  ;;  %2808 = vmatpush1.bf16.msra.mxu1 %v14074_v21  ;;  %v14077_v29 = vld [vmem:[#allocation7 + $0x120] ss:$16 sps:$4 sm:$0xff]  }
 0x43e   : > { %2768 = vmatprep.subr.bf16.mxu0 %v14037_v52  ;;  %v14080_v21 = vld [vmem:[#allocation7 + $0x200] ss:$16 sps:$4 sm:$0xff]   ;;  %2809 = vmatprep.subr.bf16.mxu1 %v14082_v50  ;;  %v14085_v52 = vld [vmem:[#allocation7 + $0x104] ss:$16 sps:$4 sm:$0xff]  }
 0x441   : > { %2769 = vmatpush1.bf16.msra.mxu0 %v14035_v61  ;;  %2810 = vmatpush1.bf16.msra.mxu1 %v14080_v21  ;;  %v14088_v61 = vld [vmem:[#allocation7 + $0x304] ss:$16 sps:$4 sm:$0xff]  }
 0x442   : > { %2770 = vmatprep.subr.bf16.mxu0 %v14043_v25  ;;  %v14083_v25 = vld [vmem:[#allocation7 + $0x100] ss:$16 sps:$4 sm:$0xff]   ;;  %2825 = vmatprep.subr.bf16.mxu1 %v14088_v61 }
 0x445   : > { %2771 = vmatpush2.bf16.msra.mxu0 %v14041_v40  ;;  %v14086_v40 = vld [vmem:[#allocation7 + $0x300] ss:$16 sps:$4 sm:$0xff]  }
 0x446   : > { %2772 = vmatprep.subr.bf16.mxu0 %v14049_v42  ;;  %2826 = vmatpush2.bf16.msra.mxu1 %v14086_v40  ;;  %v14091_v42 = vld [vmem:[#allocation7 + $0xec] ss:$16 sps:$4 sm:$0xff]  }
 0x447   : > { %2836 = vmatprep.subr.bf16.mxu1 %v14091_v42 }
 0x449   : > { %2773 = vmatpush2.bf16.msra.mxu0 %v14047_v30  ;;  %v14094_v30 = vld [vmem:[#allocation7 + $0x2ec] ss:$16 sps:$4 sm:$0xff]  }
 0x44a   : > { %2774 = vmatprep.subr.bf16.mxu0 %v14055_v31  ;;  %v16511_v31 = vld [vmem:[#allocation10] sm:$0x3f] }
 0x44b   : > { %17819 = vst [vmem:[#allocation47_spill] sm:$0xff] %v16511_v31 }
 0x44d   : > { %2775 = vmatpush2.bf16.msra.mxu0 %v14053_v60  ;;  %v16513_v60 = vld [vmem:[#allocation10 + $0x10] sm:$0x3f] }
 0x44e   : > { %2776 = vmatprep.subr.bf16.mxu0 %v14061_v46  ;;  %17820 = vst [vmem:[#allocation48_spill] sm:$0xff] %v16513_v60  ;;  %v16515_v46 = vld [vmem:[#allocation10 + $0x8] sm:$0x3f]  ;;  %v2122_v61 = vrot.slane %v16513_v60, %v16260_v14 }
 0x44f   : > { %17821 = vst [vmem:[#allocation49_spill] sm:$0xff] %v16515_v46 }
 0x451   : > { %2777 = vmatpush2.bf16.msra.mxu0 %v14059_v34  ;;  %v16517_v34 = vld [vmem:[#allocation10 + $0x18] sm:$0x3f] }
 0x452   : > { %2778 = vmatprep.subr.bf16.mxu0 %v14067_v36  ;;  %17822 = vst [vmem:[#allocation50_spill] sm:$0xff] %v16517_v34  ;;  %v2094_v36 = vrot.slane %v16511_v31, %v16256_v11  ;;  %v2106_v21 = vrot.slane %v16517_v34, %v16256_v11  ;;  %v2126_v42 = vrot.slane %v16517_v34, %v16260_v14 }
 0x455   : > { %2779 = vmatpush2.bf16.msra.mxu0 %v14065_v37  ;;  %v2102_v37 = vrot.slane %v16513_v60, %v16256_v11 }
 0x456   : > { %2780 = vmatprep.subr.bf16.mxu0 %v14073_v38 }
 0x459   : > { %2781 = vmatpush2.bf16.msra.mxu0 %v14071_v48 }
 0x45a   : > { %2782 = vmatprep.subr.bf16.mxu0 %v14079_v45 }
 0x45d   : > { %2783 = vmatpush2.bf16.msra.mxu0 %v14077_v29  ;;  %v2098_v29 = vrot.slane %v16515_v46, %v16256_v11 }
 0x45e   : > { %2784 = vmatprep.subr.bf16.mxu0 %v14085_v52  ;;  %v2114_v52 = vrot.slane %v16511_v31, %v16260_v14 }
 0x461   : > { %2785 = vmatpush2.bf16.msra.mxu0 %v14083_v25 }
 0x462   : > { %2877 = vmatprep.subr.bf16.mxu0 %v14094_v30 }
 0x4e4   : > { %v2039_v38 = vpop.f32.mrf.mxu0  ;;  %v2080_v48 = vpop.f32.mrf.mxu1 }
 0x4e5   : > { %v2087_v45 = vmul.f32 %v2039_v38, %v16411_v22  ;;  %v2089_v50 = vmul.f32 %v2080_v48, %v16414_v23  ;;  %v2118_v22 = vrot.slane %v16515_v46, %v16260_v14  ;;  %v14092_v14 = vld [vmem:[#allocation7 + $0x2e8] ss:$16 sps:$4 sm:$0xff]  }
 0x4e6   : > { %v2041_v25 = vpop.f32.mrf.mxu0  ;;  %v2082_v40 = vpop.f32.mrf.mxu1 }
 0x4e7   : > { %v2107_v23 = vmul.f32 %v2094_v36, %v2087_v45  ;;  %v2109_v30 = vmul.f32 %v2102_v37, %v2089_v50  ;;  %v2088_v38 = vmul.f32 %v2041_v25, %v16417_v26  ;;  %v2090_v48 = vmul.f32 %v2082_v40, %v16420_v27  ;;  %v14098_v26 = vld [vmem:[#allocation7 + $0x2c8] ss:$16 sps:$4 sm:$0xff]   ;;  %v14103_v27 = vld [vmem:[#allocation7 + $0xac] ss:$16 sps:$4 sm:$0xff]  }
 0x4e8   : > { %v2043_v11 = vpop.f32.mrf.mxu0  ;;  %v2084_v6 = vpop.f32.mrf.mxu1  ;;  %v14121_v45 = vld [vmem:[#allocation7 + $0x4c] ss:$16 sps:$4 sm:$0xff]   ;;  %v14125_v25 = vld [vmem:[#allocation7 + $0x28] ss:$16 sps:$4 sm:$0xff]  }
 0x4e9   : > { %v2108_v0 = vmul.f32 %v2098_v29, %v2088_v38  ;;  %v2110_v49 = vmul.f32 %v2106_v21, %v2090_v48  ;;  %v2127_v47 = vadd.f32 %v2114_v52, %v2107_v23  ;;  %v2129_v60 = vadd.f32 %v2122_v61, %v2109_v30  ;;  %v14097_v6 = vld [vmem:[#allocation7 + $0xcc] ss:$16 sps:$4 sm:$0xff]   ;;  %v14119_v29 = vld [vmem:[#allocation7 + $0x48] ss:$16 sps:$4 sm:$0xff]  }
 0x4ea   : > { %v2044_v44 = vpop.f32.mrf.mxu0  ;;  %v2085_v41 = vpop.f32.mrf.mxu1  ;;  %v14100_v11 = vld [vmem:[#allocation7 + $0x2cc] ss:$16 sps:$4 sm:$0xff]   ;;  %v14122_v21 = vld [vmem:[#allocation7 + $0x248] ss:$16 sps:$4 sm:$0xff]  }
 0x4eb   : > { %v2130_v39 = vadd.f32 %v2126_v42, %v2110_v49  ;;  %v2128_v28 = vadd.f32 %v2118_v22, %v2108_v0  ;;  %v16539_v36 = vpack.c.bf16 %v2127_v47, %v2127_v47  ;;  %v16541_v37 = vpack.c.bf16 %v2129_v60, %v2129_v60  ;;  %v14095_v0 = vld [vmem:[#allocation7 + $0xc8] ss:$16 sps:$4 sm:$0xff]   ;;  %v14109_v44 = vld [vmem:[#allocation7 + $0x8c] ss:$16 sps:$4 sm:$0xff]  }
 0x4ec   : > { %v14104_v41 = vld [vmem:[#allocation7 + $0x2a8] ss:$16 sps:$4 sm:$0xff]   ;;  %v14112_v47 = vld [vmem:[#allocation7 + $0x28c] ss:$16 sps:$4 sm:$0xff]  }
 0x4ed   : > { %v2134_v34 = vpack.c.bf16 %v2130_v39, %v2130_v39  ;;  %v2132_v24 = vpack.c.bf16 %v2128_v28, %v2128_v28  ;;  %v14106_v28 = vld [vmem:[#allocation7 + $0x2ac] ss:$16 sps:$4 sm:$0xff]   ;;  %v14101_v39 = vld [vmem:[#allocation7 + $0xa8] ss:$16 sps:$4 sm:$0xff]  }
 0x4ee   : > { %v14118_v49 = vld [vmem:[#allocation7 + $0x26c] ss:$16 sps:$4 sm:$0xff]   ;;  %v14113_v60 = vld [vmem:[#allocation7 + $0x68] ss:$16 sps:$4 sm:$0xff]  }
 0x4ef   : > { %2786 = vmatprep.mubr.bf16.mxu0 %v2132_v24  ;;  %12435 = vmatprep.mubr.msk.bf16.mxu1 %vm1581_vm2, %v2134_v34  ;;  %v14124_v50 = vld [vmem:[#allocation7 + $0x24c] ss:$16 sps:$4 sm:$0xff]   ;;  %v14128_v40 = vld [vmem:[#allocation7 + $0x228] ss:$16 sps:$4 sm:$0xff]  }
 0x4f0   : > { %2787 = vmatmul.mubr.bf16.vlgmr.msra.gmra.mxu0 %v16539_v36  ;;  %2828 = vmatmul.mubr.bf16.vlgmr.msra.gmra.mxu1 %v16541_v37  ;;  %v14127_v52 = vld [vmem:[#allocation7 + $0x2c] ss:$16 sps:$4 sm:$0xff]   ;;  %v14131_v23 = vld [vmem:[#allocation7 + $0x8] ss:$16 sps:$4 sm:$0xff]  }
 0x4f1   : > { %2837 = vmatpush1.bf16.msra.mxu1 %v14089_v20  ;;  %2878 = vmatpush1.bf16.msra.mxu0 %v14092_v14  ;;  %v14107_v14 = vld [vmem:[#allocation7 + $0x88] ss:$16 sps:$4 sm:$0xff]   ;;  %v14130_v61 = vld [vmem:[#allocation7 + $0x22c] ss:$16 sps:$4 sm:$0xff]  }
 0x4f2   : > { %2868 = vmatprep.mubr.bf16.mxu1 %v2132_v24  ;;  %12436 = vmatprep.mubr.msk.bf16.mxu0 %vm1581_vm2, %v2134_v34  ;;  %v14110_v20 = vld [vmem:[#allocation7 + $0x288] ss:$16 sps:$4 sm:$0xff]   ;;  %v14115_v24 = vld [vmem:[#allocation7 + $0x6c] ss:$16 sps:$4 sm:$0xff]  }
 0x4f3   : > { %2838 = vmatprep.subr.bf16.mxu1 %v14097_v6  ;;  %2879 = vmatprep.subr.bf16.mxu0 %v14100_v11  ;;  %v14116_v34 = vld [vmem:[#allocation7 + $0x268] ss:$16 sps:$4 sm:$0xff]   ;;  %v14133_v42 = vld [vmem:[#allocation7 + $0xc] ss:$16 sps:$4 sm:$0xff]  }
 0x4f4   : > { %v14136_v22 = vld [vmem:[#allocation7 + $0x20c] ss:$16 sps:$4 sm:$0xff]   ;;  %v14134_v30 = vld [vmem:[#allocation7 + $0x208] ss:$16 sps:$4 sm:$0xff]  }
 0x4f5   : > { %2839 = vmatpush1.bf16.msra.mxu1 %v14095_v0  ;;  %2880 = vmatpush1.bf16.msra.mxu0 %v14098_v26  ;;  %v14139_v38 = vld [vmem:[#allocation7 + $0x1ec] ss:$16 sps:$4 sm:$0xff]   ;;  %v14137_v6 = vld [vmem:[#allocation7 + $0x1e8] ss:$16 sps:$4 sm:$0xff]  }
 0x4f6   : > { %2840 = vmatprep.subr.bf16.mxu1 %v14103_v27  ;;  %2881 = vmatprep.subr.bf16.mxu0 %v14106_v28  ;;  %v14142_v48 = vld [vmem:[#allocation7 + $0x30c] ss:$16 sps:$4 sm:$0xff]   ;;  %v14140_v11 = vld [vmem:[#allocation7 + $0x308] ss:$16 sps:$4 sm:$0xff]   ;;  %v16547_v28 = vld [vmem:[#allocation4 + $0x78] sm:$0xff]  }
 0x4f7   : > { %v14145_v0 = vld [vmem:[#allocation7 + $0x1cc] ss:$16 sps:$4 sm:$0xff]   ;;  %v14143_v26 = vld [vmem:[#allocation7 + $0x1c8] ss:$16 sps:$4 sm:$0xff]  }
 0x4f8   : > { %v14148_v27 = vld [vmem:[#allocation7 + $0x1ac] ss:$16 sps:$4 sm:$0xff]  }
 0x4f9   : > { %2841 = vmatpush1.bf16.msra.mxu1 %v14101_v39  ;;  %2882 = vmatpush1.bf16.msra.mxu0 %v14104_v41  ;;  %v14146_v39 = vld [vmem:[#allocation7 + $0x1a8] ss:$16 sps:$4 sm:$0xff]   ;;  %v14151_v41 = vld [vmem:[#allocation7 + $0x18c] ss:$16 sps:$4 sm:$0xff]  }
 0x4fa   : > { %2842 = vmatprep.subr.bf16.mxu1 %v14109_v44  ;;  %2883 = vmatprep.subr.bf16.mxu0 %v14112_v47  ;;  %v14149_v44 = vld [vmem:[#allocation7 + $0x188] ss:$16 sps:$4 sm:$0xff]   ;;  %v14154_v47 = vld [vmem:[#allocation7 + $0x16c] ss:$16 sps:$4 sm:$0xff]  }
 0x4fd   : > { %2843 = vmatpush1.bf16.msra.mxu1 %v14107_v14  ;;  %2884 = vmatpush1.bf16.msra.mxu0 %v14110_v20  ;;  %v14152_v14 = vld [vmem:[#allocation7 + $0x168] ss:$16 sps:$4 sm:$0xff]  }
 0x4fe   : > { %2844 = vmatprep.subr.bf16.mxu1 %v14115_v24  ;;  %2885 = vmatprep.subr.bf16.mxu0 %v14118_v49  ;;  %v14155_v20 = vld [vmem:[#allocation7 + $0x148] ss:$16 sps:$4 sm:$0xff]   ;;  %v14160_v24 = vld [vmem:[#allocation7 + $0x12c] ss:$16 sps:$4 sm:$0xff]  }
 0x4ff   : > { %v14158_v49 = vld [vmem:[#allocation7 + $0x128] ss:$16 sps:$4 sm:$0xff]  }
 0x501   : > { %2845 = vmatpush1.bf16.msra.mxu1 %v14113_v60  ;;  %2886 = vmatpush1.bf16.msra.mxu0 %v14116_v34  ;;  %v14163_v60 = vld [vmem:[#allocation7 + $0x10c] ss:$16 sps:$4 sm:$0xff]   ;;  %v14161_v34 = vld [vmem:[#allocation7 + $0x108] ss:$16 sps:$4 sm:$0xff]  }
 0x502   : > { %2846 = vmatprep.subr.bf16.mxu1 %v14121_v45  ;;  %2887 = vmatprep.subr.bf16.mxu0 %v14124_v50  ;;  %v17823_v45 = vmov 0   ;;  %v2242_v50 = vrot.slane %v16515_v46, %v16280_v43  ;;  %v17840_v46 = vld [vmem:[#allocation22_spill] sm:$0xff] }
 0x505   : > { %2847 = vmatpush1.bf16.msra.mxu1 %v14119_v29  ;;  %2888 = vmatpush1.bf16.msra.mxu0 %v14122_v21 }
 0x506   : > { %2848 = vmatprep.subr.bf16.mxu1 %v14127_v52  ;;  %2889 = vmatprep.subr.bf16.mxu0 %v14130_v61 }
 0x509   : > { %2849 = vmatpush1.bf16.msra.mxu1 %v14125_v25  ;;  %2890 = vmatpush1.bf16.msra.mxu0 %v14128_v40 }
 0x50a   : > { %2850 = vmatprep.subr.bf16.mxu1 %v14133_v42  ;;  %2891 = vmatprep.subr.bf16.mxu0 %v14136_v22 }
 0x50d   : > { %2851 = vmatpush1.bf16.msra.mxu1 %v14131_v23  ;;  %2892 = vmatpush1.bf16.msra.mxu0 %v14134_v30 }
 0x50e   : > { %2852 = vmatprep.subr.bf16.mxu1 %v14139_v38  ;;  %2907 = vmatprep.subr.bf16.mxu0 %v14142_v48 }
 0x511   : > { %2853 = vmatpush2.bf16.msra.mxu1 %v14137_v6  ;;  %2908 = vmatpush2.bf16.msra.mxu0 %v14140_v11 }
 0x512   : > { %2854 = vmatprep.subr.bf16.mxu1 %v14145_v0  ;;  %13513 = vmatprep.subr.bf16.mxu0 %v16547_v28 }
 0x514   : > { %2910 = vmatmul.mubr.bf16.vlgmr.msra.gmra.mxu0 %v16541_v37  ;;  %v14157_v37 = vld [vmem:[#allocation7 + $0x14c] ss:$16 sps:$4 sm:$0xff]  }
 0x515   : > { %2855 = vmatpush2.bf16.msra.mxu1 %v14143_v26  ;;  %13514 = vmatpush3.bf16.msra.mxu0 %v16327_v54 }
 0x516   : > { %2856 = vmatprep.subr.bf16.mxu1 %v14148_v27  ;;  %13515 = vmatprep.subr.bf16.mxu0 %v16331_v35 }
 0x519   : > { %2857 = vmatpush2.bf16.msra.mxu1 %v14146_v39  ;;  %13516 = vmatpush3.bf16.msra.mxu0 %v16337_v56 }
 0x51a   : > { %2858 = vmatprep.subr.bf16.mxu1 %v14151_v41  ;;  %13517 = vmatprep.subr.bf16.mxu0 %v16341_v57  ;;  %v17824_v41 = vld [vmem:[#allocation25_spill] sm:$0xff] }
 0x51d   : > { %2859 = vmatpush2.bf16.msra.mxu1 %v14149_v44  ;;  %13518 = vmatpush3.bf16.msra.mxu0 %v16347_v59  ;;  %v17825_v44 = vld [vmem:[#allocation27_spill] sm:$0xff] }
 0x51e   : > { %2860 = vmatprep.subr.bf16.mxu1 %v14154_v47  ;;  %13519 = vmatprep.subr.bf16.mxu0 %v16351_v62 }
 0x521   : > { %2861 = vmatpush2.bf16.msra.mxu1 %v14152_v14  ;;  %13520 = vmatpush3.bf16.msra.mxu0 %v16357_v1  ;;  %v17828_v14 = vld [vmem:[#allocation33_spill] sm:$0xff] }
 0x522   : > { %2862 = vmatprep.subr.bf16.mxu1 %v14157_v37  ;;  %13521 = vmatprep.subr.bf16.mxu0 %v16361_v2 }
 0x525   : > { %2863 = vmatpush2.bf16.msra.mxu1 %v14155_v20  ;;  %13522 = vmatpush3.bf16.msra.mxu0 %v16367_v4  ;;  %v17829_v20 = vld [vmem:[#allocation35_spill] sm:$0xff] }
 0x526   : > { %2864 = vmatprep.subr.bf16.mxu1 %v14160_v24  ;;  %13523 = vmatprep.subr.bf16.mxu0 %v16371_v5 }
 0x529   : > { %2865 = vmatpush2.bf16.msra.mxu1 %v14158_v49  ;;  %13524 = vmatpush3.bf16.msra.mxu0 %v16377_v8  ;;  %v17830_v49 = vld [vmem:[#allocation37_spill] sm:$0xff] }
 0x52a   : > { %2866 = vmatprep.subr.bf16.mxu1 %v14163_v60  ;;  %13525 = vmatprep.subr.bf16.mxu0 %v16381_v9 }
 0x52d   : > { %2867 = vmatpush2.bf16.msra.mxu1 %v14161_v34  ;;  %13526 = vmatpush3.bf16.msra.mxu0 %v16387_v12  ;;  %v17831_v34 = vld [vmem:[#allocation39_spill] sm:$0xff] }
 0x52e   : > { %13527 = vmatprep.subr.bf16.mxu0 %v16391_v13  ;;  %2973 = vmatprep.subr.bf16.mxu1 %v17823_v45 }
 0x530   : > { %2869 = vmatmul.mubr.bf16.vlgmr.msra.gmra.mxu1 %v16539_v36  ;;  %v2238_v36 = vrot.slane %v16511_v31, %v16280_v43  ;;  %v17841_v31 = vld [vmem:[#allocation23_spill] sm:$0xff] }
 0x531   : > { %13528 = vmatpush3.bf16.msra.mxu0 %v16397_v16  ;;  %2974 = vmatpush1.bf16.msra.mxu1 %v16324_v53 }
 0x532   : > { %2975 = vmatprep.subr.bf16.mxu1 %v17823_v45  ;;  %3014 = vmatprep.subr.bf16.mxu0 %v16401_v17 }
 0x535   : > { %2976 = vmatpush1.bf16.msra.mxu1 %v16334_v55 }
 0x536   : > { %2977 = vmatprep.subr.bf16.mxu1 %v17823_v45 }
 0x539   : > { %2978 = vmatpush1.bf16.msra.mxu1 %v16344_v58 }
 0x53a   : > { %2979 = vmatprep.subr.bf16.mxu1 %v17823_v45 }
 0x53d   : > { %2980 = vmatpush1.bf16.msra.mxu1 %v16354_v63 }
 0x53e   : > { %2981 = vmatprep.subr.bf16.mxu1 %v17823_v45 }
 0x541   : > { %2982 = vmatpush1.bf16.msra.mxu1 %v16364_v3 }
 0x542   : > { %2983 = vmatprep.subr.bf16.mxu1 %v17823_v45 }
 0x545   : > { %2984 = vmatpush1.bf16.msra.mxu1 %v16374_v7 }
 0x546   : > { %2985 = vmatprep.subr.bf16.mxu1 %v17823_v45 }
 0x549   : > { %2986 = vmatpush1.bf16.msra.mxu1 %v16384_v10 }
 0x54a   : > { %2987 = vmatprep.subr.bf16.mxu1 %v17823_v45 }
 0x54d   : > { %2988 = vmatpush1.bf16.msra.mxu1 %v16394_v15 }
 0x54e   : > { %3003 = vmatprep.subr.bf16.mxu1 %v17823_v45 }
 0x551   : > { %3004 = vmatpush2.bf16.msra.mxu1 %v16404_v18 }
 0x552   : > { %3055 = vmatprep.subr.bf16.mxu1 %v16407_v19 }
 0x5b0   : > { %v2788_v29 = vpop.f32.mrf.mxu0  ;;  %v2829_v21 = vpop.f32.mrf.mxu1 }
 0x5b1   : > { %v2789_v52 = vadd.f32 %v2788_v29, %v2238_v36  ;;  %v17832_v36 = vld [vmem:[#allocation41_spill] sm:$0xff] }
 0x5b2   : > { %v2790_v61 = vpop.f32.mrf.mxu0  ;;  %v2831_v25 = vpop.f32.mrf.mxu1  ;;  %v17834_v29 = vld [vmem:[#allocation45_spill] sm:$0xff] }
 0x5b3   : > { %v2830_v40 = vadd.f32 %v2829_v21, %v2789_v52  ;;  %v2791_v42 = vadd.f32 %v2790_v61, %v2242_v50  ;;  %v17833_v50 = vld [vmem:[#allocation43_spill] sm:$0xff]  ;;  %v16614_v21 = vld [vmem:[#allocation6 + $0x20] ss:$16 sps:$4 sm:$0xff]   ;;  %v16617_v52 = vld [vmem:[#allocation6 + $0x4] ss:$16 sps:$4 sm:$0xff]  }
 0x5b4   : > { %v2792_v22 = vpop.f32.mrf.mxu0  ;;  %v2833_v23 = vpop.f32.mrf.mxu1  ;;  %17835 = vst [vmem:[#allocation25_spill] sm:$0xff] %v16614_v21  ;;  %17836 = vst [vmem:[#allocation27_spill] sm:$0xff] %v16617_v52  ;;  %v16620_v61 = vld [vmem:[#allocation6] ss:$16 sps:$4 sm:$0xff]  }
 0x5b5   : > { %15591 = vtanh.f32 %v2830_v40  ;;  %v2832_v30 = vadd.f32 %v2831_v25, %v2791_v42  ;;  %v17838_v25 = vld [vmem:[#allocation48_spill] sm:$0xff]  ;;  %v17839_v42 = vld [vmem:[#allocation50_spill] sm:$0xff] }
 0x5b6   : > { %v2793_v38 = vpop.f32.mrf.mxu0  ;;  %v2834_v48 = vpop.f32.mrf.mxu1  ;;  %v2246_v40 = vrot.slane %v17838_v25, %v16280_v43  ;;  %v2250_v22 = vrot.slane %v17839_v42, %v16280_v43 }
 0x5b7   : > { %15593 = vtanh.f32 %v2832_v30 }
 0x5c2   : > { %v15592_v6 = vpop.eup %15591 }
 0x5c3   : > { %v16592_v0 = vadd.f32 %v15592_v6, %v16270_v32  ;;  %v17826_v32 = vld [vmem:[#allocation29_spill] sm:$0xff] }
 0x5c4   : > { %v15594_v11 = vpop.eup %15593  ;;  %17837 = vst [vmem:[#allocation29_spill] sm:$0xff] %v16620_v61 }
 0x5c5   : > { %v16595_v26 = vadd.f32 %v15594_v11, %v16272_v33  ;;  %v2926_v39 = vpack.c.bf16 %v16592_v0, %v16592_v0  ;;  %v17827_v33 = vld [vmem:[#allocation31_spill] sm:$0xff] }
 0x5c7   : > { %v2927_v27 = vpack.c.bf16 %v16595_v26, %v16595_v26 }
 0x5c9   : > { %2965 = vmatprep.mubr.bf16.mxu0 %v2927_v27 }
 0x5ca   : > { %2966 = vmatmul.mubr.bf16.vlgmr.msra.gmra.mxu0 %v2926_v39 }
 0x5cb   : > { %3015 = vmatpush1.bf16.msra.mxu0 %v16431_v51  ;;  %3046 = vmatprep.mubr.bf16.mxu0 %v17823_v45 }
 0x5cc   : > { %3016 = vmatprep.subr.bf16.mxu0 %v17824_v41 }
 0x5cf   : > { %3017 = vmatpush1.bf16.msra.mxu0 %v17825_v44 }
 0x5d0   : > { %3018 = vmatprep.subr.bf16.mxu0 %v17826_v32 }
 0x5d3   : > { %3019 = vmatpush1.bf16.msra.mxu0 %v17827_v33 }
 0x5d4   : > { %v2911_v47 = vpop.f32.mrf.mxu0  ;;  %3020 = vmatprep.subr.bf16.mxu0 %v17828_v14 }
 0x5d6   : > { %v2913_v37 = vpop.f32.mrf.mxu0 }
 0x5d7   : > { %3021 = vmatpush1.bf16.msra.mxu0 %v17829_v20 }
 0x5d8   : > { %v2915_v24 = vpop.f32.mrf.mxu0  ;;  %3022 = vmatprep.subr.bf16.mxu0 %v17830_v49 }
 0x5da   : > { %v2916_v60 = vpop.f32.mrf.mxu0 }
 0x5db   : > { %3023 = vmatpush1.bf16.msra.mxu0 %v17831_v34 }
 0x5dc   : > { %3024 = vmatprep.subr.bf16.mxu0 %v17832_v36 }
 0x5df   : > { %3025 = vmatpush1.bf16.msra.mxu0 %v17833_v50 }
 0x5e0   : > { %3026 = vmatprep.subr.bf16.mxu0 %v17834_v29 }
 0x5e3   : > { %3027 = vmatpush1.bf16.msra.mxu0 %v16614_v21 }
 0x5e4   : > { %3028 = vmatprep.subr.bf16.mxu0 %v16617_v52 }
 0x5e7   : > { %3029 = vmatpush1.bf16.msra.mxu0 %v16620_v61 }
 0x5e8   : > { %13535 = vmatprep.subr.bf16.mxu0 %v16547_v28 }
 0x5f0   : > { %v2870_v23 = vpop.f32.mrf.mxu1 }
 0x5f1   : > { %v2871_v30 = vadd.f32 %v2870_v23, %v2246_v40  ;;  %v17843_v40 = vld [vmem:[#allocation26_spill] sm:$0xff] }
 0x5f2   : > { %v2872_v38 = vpop.f32.mrf.mxu1  ;;  %v17847_v23 = vld [vmem:[#allocation34_spill] sm:$0xff] }
 0x5f3   : > { %v2912_v48 = vadd.f32 %v2911_v47, %v2871_v30  ;;  %v2873_v6 = vadd.f32 %v2872_v38, %v2250_v22  ;;  %v17845_v22 = vld [vmem:[#allocation30_spill] sm:$0xff]  ;;  %v17848_v30 = vld [vmem:[#allocation36_spill] sm:$0xff] }
 0x5f4   : > { %v2874_v11 = vpop.f32.mrf.mxu1  ;;  %v17849_v38 = vld [vmem:[#allocation38_spill] sm:$0xff] }
 0x5f5   : > { %15595 = vtanh.f32 %v2912_v48  ;;  %v2914_v27 = vadd.f32 %v2913_v37, %v2873_v6  ;;  %v17842_v37 = vld [vmem:[#allocation24_spill] sm:$0xff]  ;;  %v17851_v48 = vld [vmem:[#allocation42_spill] sm:$0xff] }
 0x5f6   : > { %v2875_v39 = vpop.f32.mrf.mxu1  ;;  %v17852_v6 = vld [vmem:[#allocation44_spill] sm:$0xff]  ;;  %v17853_v11 = vld [vmem:[#allocation46_spill] sm:$0xff] }
 0x5f7   : > { %15597 = vtanh.f32 %v2914_v27  ;;  %v16652_v27 = vld [vmem:[#allocation6 + $0x28] ss:$16 sps:$4 sm:$0xff]   ;;  %v16655_v39 = vld [vmem:[#allocation6 + $0xc] ss:$16 sps:$4 sm:$0xff]  }
 0x5f8   : > { %17854 = vst [vmem:[#allocation31_spill] sm:$0xff] %v16652_v27 }
 0x602   : > { %v15596_v24 = vpop.eup %15595 }
 0x603   : > { %v16629_v28 = vadd.f32 %v15596_v24, %v17840_v46  ;;  %v17844_v46 = vld [vmem:[#allocation28_spill] sm:$0xff]  ;;  %v16658_v24 = vld [vmem:[#allocation6 + $0x8] ss:$16 sps:$4 sm:$0xff]  }
 0x604   : > { %v15598_v60 = vpop.eup %15597 }
 0x605   : > { %v16632_v25 = vadd.f32 %v15598_v60, %v17841_v31  ;;  %v2928_v47 = vpack.c.bf16 %v16629_v28, %v16629_v28  ;;  %v17846_v31 = vld [vmem:[#allocation32_spill] sm:$0xff] }
 0x607   : > { %v2929_v43 = vpack.c.bf16 %v16632_v25, %v16632_v25 }
 0x609   : > { %12437 = vmatprep.mubr.msk.bf16.mxu1 %vm1581_vm2, %v2929_v43  ;;  %v17850_v43 = vld [vmem:[#allocation40_spill] sm:$0xff] }
 0x60a   : > { %3006 = vmatmul.mubr.bf16.vlgmr.msra.gmra.mxu1 %v2928_v47 }
 0x60b   : > { %3056 = vmatpush1.bf16.msra.mxu1 %v17842_v37  ;;  %3087 = vmatprep.mubr.bf16.mxu1 %v17823_v45 }
 0x60c   : > { %3057 = vmatprep.subr.bf16.mxu1 %v17843_v40 }
 0x60f   : > { %3058 = vmatpush1.bf16.msra.mxu1 %v17844_v46 }
 0x610   : > { %3059 = vmatprep.subr.bf16.mxu1 %v17845_v22 }
 0x613   : > { %3060 = vmatpush1.bf16.msra.mxu1 %v17846_v31 }
 0x614   : > { %3061 = vmatprep.subr.bf16.mxu1 %v17847_v23 }
 0x617   : > { %3062 = vmatpush1.bf16.msra.mxu1 %v17848_v30 }
 0x618   : > { %3063 = vmatprep.subr.bf16.mxu1 %v17849_v38 }
 0x61b   : > { %3064 = vmatpush1.bf16.msra.mxu1 %v17850_v43 }
 0x61c   : > { %3065 = vmatprep.subr.bf16.mxu1 %v17851_v48 }
 0x61f   : > { %3066 = vmatpush1.bf16.msra.mxu1 %v17852_v6 }
 0x620   : > { %3067 = vmatprep.subr.bf16.mxu1 %v17853_v11 }
 0x623   : > { %3068 = vmatpush1.bf16.msra.mxu1 %v16652_v27 }
 0x624   : > { %3069 = vmatprep.subr.bf16.mxu1 %v16655_v39 }
 0x627   : > { %3070 = vmatpush1.bf16.msra.mxu1 %v16658_v24 }
 0x628   : > { %3151 = vmatprep.subr.bf16.mxu1 %v17823_v45 }
 0x68a   : > { %v13529_v60 = vpop.f32.mrf.mxu0 }
 0x68c   : > { %v13530_v47 = vpop.f32.mrf.mxu0 }
 0x68d   : > { %v13531_v52 = vadd.f32 %v13530_v47, %v13529_v60  ;;  %v14178_v60 = vld [vmem:[#allocation9 + $0x384] ss:$16 sps:$4 sm:$0xff]  }
 0x68e   : > { %v13532_v42 = vpop.f32.mrf.mxu0  ;;  %v14214_v47 = vld [vmem:[#allocation9 + $0x584] ss:$16 sps:$4 sm:$0xff]  }
 0x690   : > { %v13533_v61 = vpop.f32.mrf.mxu0 }
 0x6ca   : > { %v3007_v21 = vpop.f32.mrf.mxu1 }
 0x6cb   : > { %v3008_v11 = vadd.f32 %v13531_v52, %v3007_v21 }
 0x6cc   : > { %v3009_v29 = vpop.f32.mrf.mxu1 }
 0x6cd   : > { %v3013_v6 = vpack.c.bf16 %v3008_v11, %v3008_v11  ;;  %v14175_v11 = vld [vmem:[#allocation9 + $0x3a4] ss:$16 sps:$4 sm:$0xff]  }
 0x6ce   : > { %v3010_v27 = vpop.f32.mrf.mxu1 }
 0x6cf   : > { %3047 = vmatmul.mubr.bf16.vlgmr.msra.gmra.mxu0 %v3013_v6  ;;  %3088 = vmatmul.mubr.bf16.vlgmr.msra.gmra.mxu1 %v3013_v6  ;;  %v14200_v6 = vld [vmem:[#allocation9 + $0x5c0] ss:$16 sps:$4 sm:$0xff]   ;;  %v14208_v27 = vld [vmem:[#allocation9 + $0x5a4] ss:$16 sps:$4 sm:$0xff]  }
 0x6d0   : > { %v3011_v50 = vpop.f32.mrf.mxu1  ;;  %3152 = vmatpush1.bf16.msra.mxu1 %v16324_v53  ;;  %13536 = vmatpush3.bf16.msra.mxu0 %v16327_v54 }
 0x6d1   : > { %3153 = vmatprep.subr.bf16.mxu1 %v17823_v45  ;;  %13537 = vmatprep.subr.bf16.mxu0 %v16331_v35 }
 0x6d4   : > { %3154 = vmatpush1.bf16.msra.mxu1 %v16334_v55  ;;  %13538 = vmatpush3.bf16.msra.mxu0 %v16337_v56 }
 0x6d5   : > { %3155 = vmatprep.subr.bf16.mxu1 %v17823_v45  ;;  %13539 = vmatprep.subr.bf16.mxu0 %v16341_v57 }
 0x6d8   : > { %3156 = vmatpush1.bf16.msra.mxu1 %v16344_v58  ;;  %13540 = vmatpush3.bf16.msra.mxu0 %v16347_v59 }
 0x6d9   : > { %3157 = vmatprep.subr.bf16.mxu1 %v17823_v45  ;;  %13541 = vmatprep.subr.bf16.mxu0 %v16351_v62 }
 0x6dc   : > { %3158 = vmatpush1.bf16.msra.mxu1 %v16354_v63  ;;  %13542 = vmatpush3.bf16.msra.mxu0 %v16357_v1 }
 0x6dd   : > { %3159 = vmatprep.subr.bf16.mxu1 %v17823_v45  ;;  %13543 = vmatprep.subr.bf16.mxu0 %v16361_v2 }
 0x6e0   : > { %3160 = vmatpush1.bf16.msra.mxu1 %v16364_v3  ;;  %13544 = vmatpush3.bf16.msra.mxu0 %v16367_v4 }
 0x6e1   : > { %3161 = vmatprep.subr.bf16.mxu1 %v17823_v45  ;;  %13545 = vmatprep.subr.bf16.mxu0 %v16371_v5 }
 0x6e4   : > { %3162 = vmatpush1.bf16.msra.mxu1 %v16374_v7  ;;  %13546 = vmatpush3.bf16.msra.mxu0 %v16377_v8 }
 0x6e5   : > { %3163 = vmatprep.subr.bf16.mxu1 %v17823_v45  ;;  %13547 = vmatprep.subr.bf16.mxu0 %v16381_v9 }
 0x6e8   : > { %3164 = vmatpush1.bf16.msra.mxu1 %v16384_v10  ;;  %13548 = vmatpush3.bf16.msra.mxu0 %v16387_v12 }
 0x6e9   : > { %3165 = vmatprep.subr.bf16.mxu1 %v17823_v45  ;;  %13549 = vmatprep.subr.bf16.mxu0 %v16391_v13  ;;  %v17855_v13 = vld [vmem:[#allocation43_spill] sm:$0xff] }
 0x6ec   : > { %3166 = vmatpush1.bf16.msra.mxu1 %v16394_v15  ;;  %13550 = vmatpush3.bf16.msra.mxu0 %v16397_v16  ;;  %v17856_v15 = vld [vmem:[#allocation44_spill] sm:$0xff]  ;;  %v17857_v16 = vld [vmem:[#allocation45_spill] sm:$0xff] }
 0x6ed   : > { %3181 = vmatprep.subr.bf16.mxu1 %v17823_v45  ;;  %3193 = vmatprep.subr.bf16.mxu0 %v16401_v17  ;;  %v17858_v17 = vld [vmem:[#allocation46_spill] sm:$0xff] }
 0x6f0   : > { %3182 = vmatpush2.bf16.msra.mxu1 %v16404_v18  ;;  %v17859_v18 = vld [vmem:[#allocation25_spill] sm:$0xff] }
 0x6f1   : > { %3234 = vmatprep.subr.bf16.mxu1 %v16407_v19  ;;  %v17860_v19 = vld [vmem:[#allocation31_spill] sm:$0xff] }
 0x78f   : > { %v3048_v53 = vpop.f32.mrf.mxu0  ;;  %v3089_v54 = vpop.f32.mrf.mxu1 }
 0x790   : > { %v16697_v35 = vsub.f32 %v16592_v0, %v3048_v53  ;;  %v16700_v55 = vsub.f32 %v16629_v28, %v3089_v54  ;;  %v14176_v53 = vld [vmem:[#allocation9 + $0x380] ss:$16 sps:$4 sm:$0xff]  }
 0x791   : > { %v3050_v56 = vpop.f32.mrf.mxu0  ;;  %v3091_v57 = vpop.f32.mrf.mxu1  ;;  %v14212_v54 = vld [vmem:[#allocation9 + $0x580] ss:$16 sps:$4 sm:$0xff]  }
 0x792   : > { %v16703_v58 = vsub.f32 %v16595_v26, %v3050_v56  ;;  %v16706_v59 = vsub.f32 %v16632_v25, %v3091_v57  ;;  %v3100_v62 = vpack.c.bf16 %v16697_v35, %v16697_v35  ;;  %v3102_v63 = vpack.c.bf16 %v16700_v55, %v16700_v55  ;;  %v14181_v56 = vld [vmem:[#allocation9 + $0x364] ss:$16 sps:$4 sm:$0xff]  }
 0x793   : > { %v3052_v1 = vpop.f32.mrf.mxu0  ;;  %v3093_v2 = vpop.f32.mrf.mxu1  ;;  %v14220_v57 = vld [vmem:[#allocation9 + $0x564] ss:$16 sps:$4 sm:$0xff]  }
 0x794   : > { %v3101_v3 = vpack.c.bf16 %v16703_v58, %v16703_v58  ;;  %v3103_v4 = vpack.c.bf16 %v16706_v59, %v16706_v59  ;;  %v3104_v10 = vmul.bf16 %v3100_v62, %v3100_v62  ;;  %v3106_v12 = vmul.bf16 %v3102_v63, %v3102_v63  ;;  %v14179_v62 = vld [vmem:[#allocation9 + $0x360] ss:$16 sps:$4 sm:$0xff]   ;;  %v14184_v1 = vld [vmem:[#allocation9 + $0x344] ss:$16 sps:$4 sm:$0xff]  }
 0x795   : > { %v3053_v5 = vpop.f32.mrf.mxu0  ;;  %v3094_v7 = vpop.f32.mrf.mxu1  ;;  %v14218_v63 = vld [vmem:[#allocation9 + $0x560] ss:$16 sps:$4 sm:$0xff]   ;;  %v14226_v2 = vld [vmem:[#allocation9 + $0x544] ss:$16 sps:$4 sm:$0xff]  }
 0x796   : > { %v3105_v8 = vmul.bf16 %v3101_v3, %v3101_v3  ;;  %v3107_v9 = vmul.bf16 %v3103_v4, %v3103_v4  ;;  %v14182_v3 = vld [vmem:[#allocation9 + $0x340] ss:$16 sps:$4 sm:$0xff]   ;;  %v14187_v5 = vld [vmem:[#allocation9 + $0x324] ss:$16 sps:$4 sm:$0xff]  }
 0x797   : > { %v14224_v4 = vld [vmem:[#allocation9 + $0x540] ss:$16 sps:$4 sm:$0xff]  }
 0x798   : > { %3143 = vmatprep.mubr.bf16.mxu0 %v3105_v8  ;;  %12438 = vmatprep.mubr.msk.bf16.mxu1 %vm1581_vm2, %v3107_v9  ;;  %v14185_v7 = vld [vmem:[#allocation9 + $0x320] ss:$16 sps:$4 sm:$0xff]   ;;  %v14193_v8 = vld [vmem:[#allocation9 + $0x504] ss:$16 sps:$4 sm:$0xff]  }
 0x799   : > { %3144 = vmatmul.mubr.bf16.vlgmr.msra.gmra.mxu0 %v3104_v10  ;;  %3184 = vmatmul.mubr.bf16.vlgmr.msra.gmra.mxu1 %v3106_v12  ;;  %v14191_v9 = vld [vmem:[#allocation9 + $0x500] ss:$16 sps:$4 sm:$0xff]   ;;  %v14199_v10 = vld [vmem:[#allocation9 + $0x4e4] ss:$16 sps:$4 sm:$0xff]  }
 0x79a   : > { %3194 = vmatpush1.bf16.msra.mxu0 %v16431_v51  ;;  %3235 = vmatpush1.bf16.msra.mxu1 %v17842_v37  ;;  %v17861_v51 = vld [vmem:[#allocation27_spill] sm:$0xff]  ;;  %v14164_v37 = vld [vmem:[#allocation9 + $0x400] ss:$16 sps:$4 sm:$0xff]  }
 0x79b   : > { %3195 = vmatprep.subr.bf16.mxu0 %v17824_v41  ;;  %3236 = vmatprep.subr.bf16.mxu1 %v17843_v40  ;;  %v17862_v41 = vld [vmem:[#allocation29_spill] sm:$0xff]  ;;  %v14188_v40 = vld [vmem:[#allocation9 + $0x600] ss:$16 sps:$4 sm:$0xff]  }
 0x79c   : > { %3225 = vmatprep.mubr.bf16.mxu0 %v17823_v45  ;;  %3266 = vmatprep.mubr.bf16.mxu1 %v17823_v45  ;;  %v14197_v12 = vld [vmem:[#allocation9 + $0x4e0] ss:$16 sps:$4 sm:$0xff]  }
 0x79e   : > { %3196 = vmatpush1.bf16.msra.mxu0 %v17825_v44  ;;  %3237 = vmatpush1.bf16.msra.mxu1 %v17844_v46  ;;  %v14166_v44 = vld [vmem:[#allocation9 + $0x404] ss:$16 sps:$4 sm:$0xff]  }
 0x79f   : > { %3197 = vmatprep.subr.bf16.mxu0 %v17826_v32  ;;  %3238 = vmatprep.subr.bf16.mxu1 %v17845_v22  ;;  %v14190_v32 = vld [vmem:[#allocation9 + $0x604] ss:$16 sps:$4 sm:$0xff]  }
 0x7a0   : > { %v14169_v22 = vld [vmem:[#allocation9 + $0x3e4] ss:$16 sps:$4 sm:$0xff]  }
 0x7a2   : > { %3198 = vmatpush1.bf16.msra.mxu0 %v17827_v33  ;;  %3239 = vmatpush1.bf16.msra.mxu1 %v17846_v31  ;;  %v14196_v31 = vld [vmem:[#allocation9 + $0x5e4] ss:$16 sps:$4 sm:$0xff]  }
 0x7a3   : > { %3199 = vmatprep.subr.bf16.mxu0 %v17828_v14  ;;  %3240 = vmatprep.subr.bf16.mxu1 %v17847_v23  ;;  %v14167_v23 = vld [vmem:[#allocation9 + $0x3e0] ss:$16 sps:$4 sm:$0xff]  }
 0x7a6   : > { %3200 = vmatpush1.bf16.msra.mxu0 %v17829_v20  ;;  %3241 = vmatpush1.bf16.msra.mxu1 %v17848_v30  ;;  %v14194_v30 = vld [vmem:[#allocation9 + $0x5e0] ss:$16 sps:$4 sm:$0xff]  }
 0x7a7   : > { %3201 = vmatprep.subr.bf16.mxu0 %v17830_v49  ;;  %3242 = vmatprep.subr.bf16.mxu1 %v17849_v38  ;;  %v14172_v38 = vld [vmem:[#allocation9 + $0x3c4] ss:$16 sps:$4 sm:$0xff]  }
 0x7aa   : > { %3202 = vmatpush1.bf16.msra.mxu0 %v17831_v34  ;;  %3243 = vmatpush1.bf16.msra.mxu1 %v17850_v43  ;;  %v14202_v43 = vld [vmem:[#allocation9 + $0x5c4] ss:$16 sps:$4 sm:$0xff]  }
 0x7ab   : > { %3203 = vmatprep.subr.bf16.mxu0 %v17832_v36  ;;  %3244 = vmatprep.subr.bf16.mxu1 %v17851_v48  ;;  %v14170_v48 = vld [vmem:[#allocation9 + $0x3c0] ss:$16 sps:$4 sm:$0xff]  }
 0x7ae   : > { %3204 = vmatpush1.bf16.msra.mxu0 %v17855_v13  ;;  %3245 = vmatpush1.bf16.msra.mxu1 %v17856_v15  ;;  %v14205_v13 = vld [vmem:[#allocation9 + $0x4c4] ss:$16 sps:$4 sm:$0xff]   ;;  %v14203_v15 = vld [vmem:[#allocation9 + $0x4c0] ss:$16 sps:$4 sm:$0xff]  }
 0x7af   : > { %3205 = vmatprep.subr.bf16.mxu0 %v17857_v16  ;;  %3246 = vmatprep.subr.bf16.mxu1 %v17858_v17  ;;  %v14211_v16 = vld [vmem:[#allocation9 + $0x4a4] ss:$16 sps:$4 sm:$0xff]   ;;  %v14209_v17 = vld [vmem:[#allocation9 + $0x4a0] ss:$16 sps:$4 sm:$0xff]  }
 0x7b2   : > { %3206 = vmatpush1.bf16.msra.mxu0 %v17859_v18  ;;  %3247 = vmatpush1.bf16.msra.mxu1 %v17860_v19  ;;  %v14217_v18 = vld [vmem:[#allocation9 + $0x484] ss:$16 sps:$4 sm:$0xff]   ;;  %v14215_v19 = vld [vmem:[#allocation9 + $0x480] ss:$16 sps:$4 sm:$0xff]  }
 0x7b3   : > { %3207 = vmatprep.subr.bf16.mxu0 %v17861_v51  ;;  %3248 = vmatprep.subr.bf16.mxu1 %v16655_v39  ;;  %v14173_v39 = vld [vmem:[#allocation9 + $0x3a0] ss:$16 sps:$4 sm:$0xff]   ;;  %v14223_v51 = vld [vmem:[#allocation9 + $0x464] ss:$16 sps:$4 sm:$0xff]  }
 0x7b6   : > { %3208 = vmatpush1.bf16.msra.mxu0 %v17862_v41  ;;  %3249 = vmatpush1.bf16.msra.mxu1 %v16658_v24  ;;  %v14206_v24 = vld [vmem:[#allocation9 + $0x5a0] ss:$16 sps:$4 sm:$0xff]  }
 0x7b7   : > { %4027 = vmatprep.subr.bf16.mxu0 %v14166_v44  ;;  %4068 = vmatprep.subr.bf16.mxu1 %v14190_v32  ;;  %v14221_v41 = vld [vmem:[#allocation9 + $0x460] ss:$16 sps:$4 sm:$0xff]   ;;  %v14229_v44 = vld [vmem:[#allocation9 + $0x444] ss:$16 sps:$4 sm:$0xff]  }
 0x7b8   : > { %v14232_v32 = vld [vmem:[#allocation9 + $0x524] ss:$16 sps:$4 sm:$0xff]  }
 0x859   : > { %v13551_v33 = vpop.f32.mrf.mxu0  ;;  %v3185_v14 = vpop.f32.mrf.mxu1 }
 0x85b   : > { %v13552_v20 = vpop.f32.mrf.mxu0  ;;  %v3187_v49 = vpop.f32.mrf.mxu1 }
 0x85c   : > { %v13553_v34 = vadd.f32 %v13552_v20, %v13551_v33  ;;  %v14227_v33 = vld [vmem:[#allocation9 + $0x440] ss:$16 sps:$4 sm:$0xff]   ;;  %v14235_v20 = vld [vmem:[#allocation9 + $0x424] ss:$16 sps:$4 sm:$0xff]  }
 0x85d   : > { %v13554_v36 = vpop.f32.mrf.mxu0  ;;  %v3188_v50 = vpop.f32.mrf.mxu1  ;;  %v14238_v49 = vld [vmem:[#allocation9 + $0x624] ss:$16 sps:$4 sm:$0xff]  }
 0x85e   : > { %v3146_v29 = vadd.f32 1e-05, %v13553_v34  ;;  %v14233_v34 = vld [vmem:[#allocation9 + $0x420] ss:$16 sps:$4 sm:$0xff]   ;;  %v14241_v50 = vld [vmem:[#allocation9 + $0x40c] ss:$16 sps:$4 sm:$0xff]  }
 0x85f   : > { %v13555_v21 = vpop.f32.mrf.mxu0  ;;  %v3189_v52 = vpop.f32.mrf.mxu1  ;;  %v14236_v36 = vld [vmem:[#allocation9 + $0x620] ss:$16 sps:$4 sm:$0xff]  }
 0x860   : > { %v3186_v61 = vadd.f32 %v3185_v14, %v3146_v29  ;;  %v14230_v14 = vld [vmem:[#allocation9 + $0x520] ss:$16 sps:$4 sm:$0xff]   ;;  %v14244_v29 = vld [vmem:[#allocation9 + $0x60c] ss:$16 sps:$4 sm:$0xff]  }
 0x861   : > { %v17863_v21 = vld [vmem:[#allocation17_spill] sm:$0xff] }
 0x862   : > { %15599 = vrsqrt.f32 %v3186_v61  ;;  %v16750_v52 = vsub.s32 4, %v17863_v21  ;;  %v17865_v61 = vld [vmem:[#allocation21_spill] sm:$0xff]  ;;  %vm5632_vm3 = vcmp.ge.s32.totalorder %v17863_v21, 2  ;;  %vm6412_vm4 = vcmp.ge.s32.totalorder %v17863_v21, 3 }
 0x864   : > { %17864 = vst [vmem:[#allocation33_spill] sm:$0xff] %v16750_v52 }
 0x86f   : > { %v15600_v42 = vpop.eup %15599 }
 0x870   : > { %v3192_v46 = vpack.c.bf16 %v15600_v42, %v15600_v42  ;;  %v17866_v42 = vld [vmem:[#allocation47_spill] sm:$0xff] }
 0x872   : > { %3226 = vmatmul.mubr.bf16.vlgmr.msra.gmra.mxu0 %v3192_v46  ;;  %3267 = vmatmul.mubr.bf16.vlgmr.msra.gmra.mxu1 %v3192_v46 }
 0x873   : > { %4028 = vmatpush1.bf16.msra.mxu0 %v14164_v37  ;;  %4069 = vmatpush1.bf16.msra.mxu1 %v14188_v40  ;;  %v3282_v37 = vrot.slane %v17866_v42, %v17865_v61  ;;  %v17867_v40 = vld [vmem:[#allocation48_spill] sm:$0xff] }
 0x874   : > { %4029 = vmatprep.subr.bf16.mxu0 %v14169_v22  ;;  %4070 = vmatprep.subr.bf16.mxu1 %v14196_v31  ;;  %v3290_v46 = vrot.slane %v17867_v40, %v17865_v61 }
 0x877   : > { %4030 = vmatpush1.bf16.msra.mxu0 %v14167_v23  ;;  %4071 = vmatpush1.bf16.msra.mxu1 %v14194_v30 }
 0x878   : > { %4031 = vmatprep.subr.bf16.mxu0 %v14172_v38  ;;  %4072 = vmatprep.subr.bf16.mxu1 %v14202_v43  ;;  %v17868_v38 = vld [vmem:[#allocation49_spill] sm:$0xff] }
 0x879   : > { %v3286_v43 = vrot.slane %v17868_v38, %v17865_v61 }
 0x87b   : > { %4032 = vmatpush1.bf16.msra.mxu0 %v14170_v48  ;;  %4073 = vmatpush1.bf16.msra.mxu1 %v14200_v6  ;;  %v17869_v48 = vld [vmem:[#allocation50_spill] sm:$0xff] }
 0x87c   : > { %4033 = vmatprep.subr.bf16.mxu0 %v14175_v11  ;;  %4074 = vmatprep.subr.bf16.mxu1 %v14208_v27  ;;  %v3294_v6 = vrot.slane %v17869_v48, %v17865_v61  ;;  %v3302_v11 = vrot.slane %v17866_v42, %v16750_v52  ;;  %v3310_v27 = vrot.slane %v17867_v40, %v16750_v52  ;;  %v14269_v42 = vld [vmem:[#allocation9 + $0x368] ss:$16 sps:$4 sm:$0xff]   ;;  %v14277_v40 = vld [vmem:[#allocation9 + $0x34c] ss:$16 sps:$4 sm:$0xff]  }
 0x87f   : > { %4034 = vmatpush1.bf16.msra.mxu0 %v14173_v39  ;;  %4075 = vmatpush1.bf16.msra.mxu1 %v14206_v24  ;;  %v3306_v24 = vrot.slane %v17868_v38, %v16750_v52  ;;  %v14281_v38 = vld [vmem:[#allocation9 + $0x328] ss:$16 sps:$4 sm:$0xff]  }
 0x880   : > { %4035 = vmatprep.subr.bf16.mxu0 %v14178_v60  ;;  %4076 = vmatprep.subr.bf16.mxu1 %v14214_v47 }
 0x883   : > { %4036 = vmatpush1.bf16.msra.mxu0 %v14176_v53  ;;  %4077 = vmatpush1.bf16.msra.mxu1 %v14212_v54 }
 0x884   : > { %4037 = vmatprep.subr.bf16.mxu0 %v14181_v56  ;;  %4078 = vmatprep.subr.bf16.mxu1 %v14220_v57 }
 0x887   : > { %4038 = vmatpush1.bf16.msra.mxu0 %v14179_v62  ;;  %4079 = vmatpush1.bf16.msra.mxu1 %v14218_v63 }
 0x888   : > { %4039 = vmatprep.subr.bf16.mxu0 %v14184_v1  ;;  %4080 = vmatprep.subr.bf16.mxu1 %v14226_v2 }
 0x88b   : > { %4040 = vmatpush1.bf16.msra.mxu0 %v14182_v3  ;;  %4081 = vmatpush1.bf16.msra.mxu1 %v14224_v4 }
 0x88c   : > { %4041 = vmatprep.subr.bf16.mxu0 %v14187_v5  ;;  %4082 = vmatprep.subr.bf16.mxu1 %v14232_v32  ;;  %v14262_v32 = vld [vmem:[#allocation9 + $0x5ac] ss:$16 sps:$4 sm:$0xff]  }
 0x88f   : > { %4042 = vmatpush1.bf16.msra.mxu0 %v14185_v7  ;;  %4083 = vmatpush1.bf16.msra.mxu1 %v14230_v14  ;;  %v14260_v14 = vld [vmem:[#allocation9 + $0x5a8] ss:$16 sps:$4 sm:$0xff]  }
 0x890   : > { %4043 = vmatprep.subr.bf16.mxu0 %v14193_v8  ;;  %4098 = vmatprep.subr.bf16.mxu1 %v14238_v49  ;;  %v14268_v49 = vld [vmem:[#allocation9 + $0x58c] ss:$16 sps:$4 sm:$0xff]  }
 0x893   : > { %4044 = vmatpush2.bf16.msra.mxu0 %v14191_v9  ;;  %4099 = vmatpush2.bf16.msra.mxu1 %v14236_v36  ;;  %v14266_v36 = vld [vmem:[#allocation9 + $0x588] ss:$16 sps:$4 sm:$0xff]  }
 0x894   : > { %4045 = vmatprep.subr.bf16.mxu0 %v14199_v10  ;;  %4109 = vmatprep.subr.bf16.mxu1 %v14241_v50  ;;  %v14239_v10 = vld [vmem:[#allocation9 + $0x408] ss:$16 sps:$4 sm:$0xff]   ;;  %v14271_v50 = vld [vmem:[#allocation9 + $0x36c] ss:$16 sps:$4 sm:$0xff]  }
 0x897   : > { %4046 = vmatpush2.bf16.msra.mxu0 %v14197_v12  ;;  %v14242_v12 = vld [vmem:[#allocation9 + $0x608] ss:$16 sps:$4 sm:$0xff]  }
 0x898   : > { %4047 = vmatprep.subr.bf16.mxu0 %v14205_v13 }
 0x89b   : > { %4048 = vmatpush2.bf16.msra.mxu0 %v14203_v15  ;;  %v14250_v15 = vld [vmem:[#allocation9 + $0x5ec] ss:$16 sps:$4 sm:$0xff]  }
 0x89c   : > { %4049 = vmatprep.subr.bf16.mxu0 %v14211_v16  ;;  %v14245_v16 = vld [vmem:[#allocation9 + $0x3e8] ss:$16 sps:$4 sm:$0xff]  }
 0x89f   : > { %4050 = vmatpush2.bf16.msra.mxu0 %v14209_v17  ;;  %v14248_v17 = vld [vmem:[#allocation9 + $0x5e8] ss:$16 sps:$4 sm:$0xff]  }
 0x8a0   : > { %4051 = vmatprep.subr.bf16.mxu0 %v14217_v18  ;;  %v14253_v18 = vld [vmem:[#allocation9 + $0x3cc] ss:$16 sps:$4 sm:$0xff]  }
 0x8a3   : > { %4052 = vmatpush2.bf16.msra.mxu0 %v14215_v19  ;;  %v14256_v19 = vld [vmem:[#allocation9 + $0x5cc] ss:$16 sps:$4 sm:$0xff]  }
 0x8a4   : > { %4053 = vmatprep.subr.bf16.mxu0 %v14223_v51  ;;  %v14251_v51 = vld [vmem:[#allocation9 + $0x3c8] ss:$16 sps:$4 sm:$0xff]  }
 0x8a7   : > { %4054 = vmatpush2.bf16.msra.mxu0 %v14221_v41  ;;  %v14254_v41 = vld [vmem:[#allocation9 + $0x5c8] ss:$16 sps:$4 sm:$0xff]  }
 0x8a8   : > { %4055 = vmatprep.subr.bf16.mxu0 %v14229_v44  ;;  %v14259_v44 = vld [vmem:[#allocation9 + $0x3ac] ss:$16 sps:$4 sm:$0xff]  }
 0x8ab   : > { %4056 = vmatpush2.bf16.msra.mxu0 %v14227_v33  ;;  %v14257_v33 = vld [vmem:[#allocation9 + $0x3a8] ss:$16 sps:$4 sm:$0xff]  }
 0x8ac   : > { %4057 = vmatprep.subr.bf16.mxu0 %v14235_v20  ;;  %v14265_v20 = vld [vmem:[#allocation9 + $0x38c] ss:$16 sps:$4 sm:$0xff]  }
 0x8af   : > { %4058 = vmatpush2.bf16.msra.mxu0 %v14233_v34  ;;  %v14263_v34 = vld [vmem:[#allocation9 + $0x388] ss:$16 sps:$4 sm:$0xff]  }
 0x8b0   : > { %4150 = vmatprep.subr.bf16.mxu0 %v14244_v29  ;;  %v14274_v29 = vld [vmem:[#allocation9 + $0x56c] ss:$16 sps:$4 sm:$0xff]  }
 0x932   : > { %v3227_v22 = vpop.f32.mrf.mxu0  ;;  %v3268_v31 = vpop.f32.mrf.mxu1 }
 0x933   : > { %v3275_v23 = vmul.f32 %v3227_v22, %v16697_v35  ;;  %v3277_v30 = vmul.f32 %v3268_v31, %v16700_v55  ;;  %v3314_v35 = vrot.slane %v17869_v48, %v16750_v52  ;;  %v14275_v22 = vld [vmem:[#allocation9 + $0x348] ss:$16 sps:$4 sm:$0xff]   ;;  %v14289_v48 = vld [vmem:[#allocation9 + $0x50c] ss:$16 sps:$4 sm:$0xff]  }
 0x934   : > { %v3229_v39 = vpop.f32.mrf.mxu0  ;;  %v3270_v60 = vpop.f32.mrf.mxu1  ;;  %v14278_v31 = vld [vmem:[#allocation9 + $0x548] ss:$16 sps:$4 sm:$0xff]  }
 0x935   : > { %v3295_v55 = vmul.f32 %v3282_v37, %v3275_v23  ;;  %v3297_v47 = vmul.f32 %v3290_v46, %v3277_v30  ;;  %v3276_v53 = vmul.f32 %v3229_v39, %v16703_v58  ;;  %v3278_v54 = vmul.f32 %v3270_v60, %v16706_v59  ;;  %v14247_v59 = vld [vmem:[#allocation9 + $0x3ec] ss:$16 sps:$4 sm:$0xff]   ;;  %v14272_v37 = vld [vmem:[#allocation9 + $0x568] ss:$16 sps:$4 sm:$0xff]  }
 0x936   : > { %v3231_v56 = vpop.f32.mrf.mxu0  ;;  %v3272_v57 = vpop.f32.mrf.mxu1  ;;  %v14280_v46 = vld [vmem:[#allocation9 + $0x54c] ss:$16 sps:$4 sm:$0xff]   ;;  %v14293_v60 = vld [vmem:[#allocation9 + $0x4e8] ss:$16 sps:$4 sm:$0xff]  }
 0x937   : > { %v3296_v62 = vmul.f32 %v3286_v43, %v3276_v53  ;;  %v3298_v63 = vmul.f32 %v3294_v6, %v3278_v54  ;;  %v3315_v1 = vadd.f32 %v3302_v11, %v3295_v55  ;;  %v3317_v2 = vadd.f32 %v3310_v27, %v3297_v47  ;;  %v14283_v23 = vld [vmem:[#allocation9 + $0x32c] ss:$16 sps:$4 sm:$0xff]   ;;  %v14284_v43 = vld [vmem:[#allocation9 + $0x528] ss:$16 sps:$4 sm:$0xff]   ;;  %v14304_v47 = vld [vmem:[#allocation9 + $0xc4] ss:$16 sps:$4 sm:$0xff]  }
 0x938   : > { %v3232_v3 = vpop.f32.mrf.mxu0  ;;  %v3273_v4 = vpop.f32.mrf.mxu1  ;;  %v14286_v30 = vld [vmem:[#allocation9 + $0x52c] ss:$16 sps:$4 sm:$0xff]   ;;  %v14287_v11 = vld [vmem:[#allocation9 + $0x508] ss:$16 sps:$4 sm:$0xff]   ;;  %v14302_v54 = vld [vmem:[#allocation9 + $0xc0] ss:$16 sps:$4 sm:$0xff]  }
 0x939   : > { %v3316_v5 = vadd.f32 %v3306_v24, %v3296_v62  ;;  %v3318_v7 = vadd.f32 %v3314_v35, %v3298_v63  ;;  %v16776_v13 = vpack.c.bf16 %v3315_v1, %v3315_v1  ;;  %v16778_v58 = vpack.c.bf16 %v3317_v2, %v3317_v2  ;;  %v14292_v6 = vld [vmem:[#allocation9 + $0x62c] ss:$16 sps:$4 sm:$0xff]   ;;  %v14290_v27 = vld [vmem:[#allocation9 + $0x628] ss:$16 sps:$4 sm:$0xff]   ;;  %v14298_v24 = vld [vmem:[#allocation9 + $0xe4] ss:$16 sps:$4 sm:$0xff]  }
 0x93a   : > { %v14295_v39 = vld [vmem:[#allocation9 + $0x4ec] ss:$16 sps:$4 sm:$0xff]   ;;  %v14296_v35 = vld [vmem:[#allocation9 + $0xe0] ss:$16 sps:$4 sm:$0xff]   ;;  %v14299_v53 = vld [vmem:[#allocation9 + $0x4c8] ss:$16 sps:$4 sm:$0xff]  }
 0x93b   : > { %v16772_v8 = vpack.c.bf16 %v3316_v5, %v3316_v5  ;;  %v16774_v9 = vpack.c.bf16 %v3318_v7, %v3318_v7  ;;  %v14301_v55 = vld [vmem:[#allocation9 + $0x4cc] ss:$16 sps:$4 sm:$0xff]   ;;  %v14310_v57 = vld [vmem:[#allocation9 + $0xa4] ss:$16 sps:$4 sm:$0xff]   ;;  %v14305_v62 = vld [vmem:[#allocation9 + $0x4a8] ss:$16 sps:$4 sm:$0xff]  }
 0x93c   : > { %v14307_v56 = vld [vmem:[#allocation9 + $0x4ac] ss:$16 sps:$4 sm:$0xff]   ;;  %v14308_v63 = vld [vmem:[#allocation9 + $0xa0] ss:$16 sps:$4 sm:$0xff]   ;;  %v14316_v2 = vld [vmem:[#allocation9 + $0x84] ss:$16 sps:$4 sm:$0xff]  }
 0x93d   : > { %4059 = vmatprep.mubr.bf16.mxu0 %v16772_v8  ;;  %12539 = vmatprep.mubr.msk.bf16.mxu1 %vm1581_vm2, %v16774_v9  ;;  %v14313_v1 = vld [vmem:[#allocation9 + $0x48c] ss:$16 sps:$4 sm:$0xff]   ;;  %v14311_v3 = vld [vmem:[#allocation9 + $0x488] ss:$16 sps:$4 sm:$0xff]   ;;  %v14314_v4 = vld [vmem:[#allocation9 + $0x80] ss:$16 sps:$4 sm:$0xff]  }
 0x93e   : > { %4060 = vmatmul.mubr.bf16.vlgmr.msra.gmra.mxu0 %v16776_v13  ;;  %4101 = vmatmul.mubr.bf16.vlgmr.msra.gmra.mxu1 %v16778_v58  ;;  %v14319_v5 = vld [vmem:[#allocation9 + $0x46c] ss:$16 sps:$4 sm:$0xff]   ;;  %v14322_v7 = vld [vmem:[#allocation9 + $0x64] ss:$16 sps:$4 sm:$0xff]  }
 0x93f   : > { %4110 = vmatpush1.bf16.msra.mxu1 %v14239_v10  ;;  %4151 = vmatpush1.bf16.msra.mxu0 %v14242_v12  ;;  %v14317_v10 = vld [vmem:[#allocation9 + $0x468] ss:$16 sps:$4 sm:$0xff]   ;;  %v14320_v12 = vld [vmem:[#allocation9 + $0x60] ss:$16 sps:$4 sm:$0xff]  }
 0x940   : > { %4141 = vmatprep.mubr.bf16.mxu1 %v16772_v8  ;;  %12540 = vmatprep.mubr.msk.bf16.mxu0 %vm1581_vm2, %v16774_v9 }
 0x941   : > { %4111 = vmatprep.subr.bf16.mxu1 %v14247_v59  ;;  %4152 = vmatprep.subr.bf16.mxu0 %v14250_v15  ;;  %v14325_v59 = vld [vmem:[#allocation9 + $0x44c] ss:$16 sps:$4 sm:$0xff]   ;;  %v14328_v15 = vld [vmem:[#allocation9 + $0x44] ss:$16 sps:$4 sm:$0xff]  }
 0x943   : > { %4112 = vmatpush1.bf16.msra.mxu1 %v14245_v16  ;;  %4153 = vmatpush1.bf16.msra.mxu0 %v14248_v17  ;;  %v14323_v16 = vld [vmem:[#allocation9 + $0x448] ss:$16 sps:$4 sm:$0xff]   ;;  %v14326_v17 = vld [vmem:[#allocation9 + $0x40] ss:$16 sps:$4 sm:$0xff]  }
 0x944   : > { %4113 = vmatprep.subr.bf16.mxu1 %v14253_v18  ;;  %4154 = vmatprep.subr.bf16.mxu0 %v14256_v19  ;;  %v14331_v18 = vld [vmem:[#allocation9 + $0x42c] ss:$16 sps:$4 sm:$0xff]   ;;  %v14334_v19 = vld [vmem:[#allocation9 + $0x24] ss:$16 sps:$4 sm:$0xff]  }
 0x947   : > { %4114 = vmatpush1.bf16.msra.mxu1 %v14251_v51  ;;  %4155 = vmatpush1.bf16.msra.mxu0 %v14254_v41  ;;  %v14329_v51 = vld [vmem:[#allocation9 + $0x428] ss:$16 sps:$4 sm:$0xff]   ;;  %v14332_v41 = vld [vmem:[#allocation9 + $0x20] ss:$16 sps:$4 sm:$0xff]  }
 0x948   : > { %4115 = vmatprep.subr.bf16.mxu1 %v14259_v44  ;;  %4156 = vmatprep.subr.bf16.mxu0 %v14262_v32  ;;  %v14337_v44 = vld [vmem:[#allocation9 + $0x4] ss:$16 sps:$4 sm:$0xff]  }
 0x949   : > { %v14340_v32 = vld [vmem:[#allocation9 + $0x2e4] ss:$16 sps:$4 sm:$0xff]  }
 0x94b   : > { %4116 = vmatpush1.bf16.msra.mxu1 %v14257_v33  ;;  %4157 = vmatpush1.bf16.msra.mxu0 %v14260_v14  ;;  %v14335_v33 = vld [vmem:[#allocation9] ss:$16 sps:$4 sm:$0xff]  }
 0x94c   : > { %4117 = vmatprep.subr.bf16.mxu1 %v14265_v20  ;;  %4158 = vmatprep.subr.bf16.mxu0 %v14268_v49  ;;  %v14338_v14 = vld [vmem:[#allocation9 + $0x2e0] ss:$16 sps:$4 sm:$0xff]   ;;  %v14343_v20 = vld [vmem:[#allocation9 + $0x1e4] ss:$16 sps:$4 sm:$0xff]  }
 0x94d   : > { %v14346_v49 = vld [vmem:[#allocation9 + $0x2c4] ss:$16 sps:$4 sm:$0xff]  }
 0x94f   : > { %4118 = vmatpush1.bf16.msra.mxu1 %v14263_v34  ;;  %4159 = vmatpush1.bf16.msra.mxu0 %v14266_v36  ;;  %v14341_v34 = vld [vmem:[#allocation9 + $0x1e0] ss:$16 sps:$4 sm:$0xff]  }
 0x950   : > { %4119 = vmatprep.subr.bf16.mxu1 %v14271_v50  ;;  %4160 = vmatprep.subr.bf16.mxu0 %v14274_v29  ;;  %v14344_v36 = vld [vmem:[#allocation9 + $0x2c0] ss:$16 sps:$4 sm:$0xff]   ;;  %v14349_v50 = vld [vmem:[#allocation9 + $0x1c4] ss:$16 sps:$4 sm:$0xff]  }
 0x951   : > { %v14352_v29 = vld [vmem:[#allocation9 + $0x2a4] ss:$16 sps:$4 sm:$0xff]  }
 0x953   : > { %4120 = vmatpush1.bf16.msra.mxu1 %v14269_v42  ;;  %4161 = vmatpush1.bf16.msra.mxu0 %v14272_v37  ;;  %v14347_v42 = vld [vmem:[#allocation9 + $0x1c0] ss:$16 sps:$4 sm:$0xff]  }
 0x954   : > { %4121 = vmatprep.subr.bf16.mxu1 %v14277_v40  ;;  %4162 = vmatprep.subr.bf16.mxu0 %v14280_v46  ;;  %v14350_v37 = vld [vmem:[#allocation9 + $0x2a0] ss:$16 sps:$4 sm:$0xff]   ;;  %v14355_v40 = vld [vmem:[#allocation9 + $0x1a4] ss:$16 sps:$4 sm:$0xff]  }
 0x955   : > { %v14358_v46 = vld [vmem:[#allocation9 + $0x284] ss:$16 sps:$4 sm:$0xff]  }
 0x957   : > { %4122 = vmatpush1.bf16.msra.mxu1 %v14275_v22  ;;  %4163 = vmatpush1.bf16.msra.mxu0 %v14278_v31  ;;  %v14353_v22 = vld [vmem:[#allocation9 + $0x1a0] ss:$16 sps:$4 sm:$0xff]  }
 0x958   : > { %4123 = vmatprep.subr.bf16.mxu1 %v14283_v23  ;;  %4164 = vmatprep.subr.bf16.mxu0 %v14286_v30  ;;  %v14356_v31 = vld [vmem:[#allocation9 + $0x280] ss:$16 sps:$4 sm:$0xff]   ;;  %v14361_v23 = vld [vmem:[#allocation9 + $0x184] ss:$16 sps:$4 sm:$0xff]  }
 0x959   : > { %v14364_v30 = vld [vmem:[#allocation9 + $0x264] ss:$16 sps:$4 sm:$0xff]  }
 0x95b   : > { %4124 = vmatpush1.bf16.msra.mxu1 %v14281_v38  ;;  %4165 = vmatpush1.bf16.msra.mxu0 %v14284_v43  ;;  %v14359_v38 = vld [vmem:[#allocation9 + $0x180] ss:$16 sps:$4 sm:$0xff]  }
 0x95c   : > { %4125 = vmatprep.subr.bf16.mxu1 %v14289_v48  ;;  %4180 = vmatprep.subr.bf16.mxu0 %v14292_v6  ;;  %v14362_v43 = vld [vmem:[#allocation9 + $0x260] ss:$16 sps:$4 sm:$0xff]   ;;  %v14367_v48 = vld [vmem:[#allocation9 + $0x164] ss:$16 sps:$4 sm:$0xff]  }
 0x95d   : > { %v14370_v6 = vld [vmem:[#allocation9 + $0x244] ss:$16 sps:$4 sm:$0xff]  }
 0x95f   : > { %4126 = vmatpush2.bf16.msra.mxu1 %v14287_v11  ;;  %4181 = vmatpush2.bf16.msra.mxu0 %v14290_v27  ;;  %v14365_v11 = vld [vmem:[#allocation9 + $0x160] ss:$16 sps:$4 sm:$0xff]  }
 0x960   : > { %4127 = vmatprep.subr.bf16.mxu1 %v14295_v39  ;;  %4699 = vmatprep.subr.bf16.mxu0 %v14298_v24  ;;  %v14368_v27 = vld [vmem:[#allocation9 + $0x240] ss:$16 sps:$4 sm:$0xff]   ;;  %v14373_v39 = vld [vmem:[#allocation9 + $0x144] ss:$16 sps:$4 sm:$0xff]  }
 0x961   : > { %v14376_v24 = vld [vmem:[#allocation9 + $0x224] ss:$16 sps:$4 sm:$0xff]  }
 0x962   : > { %4183 = vmatmul.mubr.bf16.vlgmr.msra.gmra.mxu0 %v16778_v58 }
 0x963   : > { %4128 = vmatpush2.bf16.msra.mxu1 %v14293_v60  ;;  %4700 = vmatpush1.bf16.msra.mxu0 %v14296_v35  ;;  %v14371_v60 = vld [vmem:[#allocation9 + $0x140] ss:$16 sps:$4 sm:$0xff]  }
 0x964   : > { %4731 = vmatprep.mubr.bf16.mxu0 %v16772_v8  ;;  %4129 = vmatprep.subr.bf16.mxu1 %v14301_v55  ;;  %v14374_v35 = vld [vmem:[#allocation9 + $0x220] ss:$16 sps:$4 sm:$0xff]   ;;  %v14379_v55 = vld [vmem:[#allocation9 + $0x124] ss:$16 sps:$4 sm:$0xff]  }
 0x965   : > { %4701 = vmatprep.subr.bf16.mxu0 %v14304_v47  ;;  %v14382_v47 = vld [vmem:[#allocation9 + $0x204] ss:$16 sps:$4 sm:$0xff]  }
 0x967   : > { %4130 = vmatpush2.bf16.msra.mxu1 %v14299_v53  ;;  %4702 = vmatpush1.bf16.msra.mxu0 %v14302_v54  ;;  %v14377_v53 = vld [vmem:[#allocation9 + $0x120] ss:$16 sps:$4 sm:$0xff]  }
 0x968   : > { %4131 = vmatprep.subr.bf16.mxu1 %v14307_v56  ;;  %4703 = vmatprep.subr.bf16.mxu0 %v14310_v57  ;;  %v14380_v54 = vld [vmem:[#allocation9 + $0x200] ss:$16 sps:$4 sm:$0xff]   ;;  %v14385_v56 = vld [vmem:[#allocation9 + $0x104] ss:$16 sps:$4 sm:$0xff]  }
 0x969   : > { %v14388_v57 = vld [vmem:[#allocation9 + $0x304] ss:$16 sps:$4 sm:$0xff]  }
 0x96b   : > { %4132 = vmatpush2.bf16.msra.mxu1 %v14305_v62  ;;  %4704 = vmatpush1.bf16.msra.mxu0 %v14308_v63  ;;  %v14383_v62 = vld [vmem:[#allocation9 + $0x100] ss:$16 sps:$4 sm:$0xff]  }
 0x96c   : > { %4133 = vmatprep.subr.bf16.mxu1 %v14313_v1  ;;  %4705 = vmatprep.subr.bf16.mxu0 %v14316_v2  ;;  %v14386_v63 = vld [vmem:[#allocation9 + $0x300] ss:$16 sps:$4 sm:$0xff]   ;;  %v14391_v1 = vld [vmem:[#allocation9 + $0xec] ss:$16 sps:$4 sm:$0xff]  }
 0x96d   : > { %v14394_v2 = vld [vmem:[#allocation9 + $0x2ec] ss:$16 sps:$4 sm:$0xff]  }
 0x96f   : > { %4134 = vmatpush2.bf16.msra.mxu1 %v14311_v3  ;;  %4706 = vmatpush1.bf16.msra.mxu0 %v14314_v4  ;;  %v14389_v3 = vld [vmem:[#allocation9 + $0xe8] ss:$16 sps:$4 sm:$0xff]  }
 0x970   : > { %4135 = vmatprep.subr.bf16.mxu1 %v14319_v5  ;;  %4707 = vmatprep.subr.bf16.mxu0 %v14322_v7  ;;  %v14392_v4 = vld [vmem:[#allocation9 + $0x2e8] ss:$16 sps:$4 sm:$0xff]   ;;  %v14397_v5 = vld [vmem:[#allocation9 + $0xcc] ss:$16 sps:$4 sm:$0xff]  }
 0x971   : > { %v14400_v7 = vld [vmem:[#allocation9 + $0x2cc] ss:$16 sps:$4 sm:$0xff]  }
 0x973   : > { %4136 = vmatpush2.bf16.msra.mxu1 %v14317_v10  ;;  %4708 = vmatpush1.bf16.msra.mxu0 %v14320_v12  ;;  %v14395_v10 = vld [vmem:[#allocation9 + $0xc8] ss:$16 sps:$4 sm:$0xff]  }
 0x974   : > { %4137 = vmatprep.subr.bf16.mxu1 %v14325_v59  ;;  %4709 = vmatprep.subr.bf16.mxu0 %v14328_v15  ;;  %v14398_v12 = vld [vmem:[#allocation9 + $0x2c8] ss:$16 sps:$4 sm:$0xff]   ;;  %v14403_v59 = vld [vmem:[#allocation9 + $0xac] ss:$16 sps:$4 sm:$0xff]  }
 0x975   : > { %v14406_v15 = vld [vmem:[#allocation9 + $0x2ac] ss:$16 sps:$4 sm:$0xff]  }
 0x977   : > { %4138 = vmatpush2.bf16.msra.mxu1 %v14323_v16  ;;  %4710 = vmatpush1.bf16.msra.mxu0 %v14326_v17  ;;  %v14401_v16 = vld [vmem:[#allocation9 + $0xa8] ss:$16 sps:$4 sm:$0xff]  }
 0x978   : > { %4139 = vmatprep.subr.bf16.mxu1 %v14331_v18  ;;  %4711 = vmatprep.subr.bf16.mxu0 %v14334_v19  ;;  %v14404_v17 = vld [vmem:[#allocation9 + $0x2a8] ss:$16 sps:$4 sm:$0xff]   ;;  %v14409_v18 = vld [vmem:[#allocation9 + $0x8c] ss:$16 sps:$4 sm:$0xff]  }
 0x979   : > { %v14412_v19 = vld [vmem:[#allocation9 + $0x28c] ss:$16 sps:$4 sm:$0xff]  }
 0x97b   : > { %4140 = vmatpush2.bf16.msra.mxu1 %v14329_v51  ;;  %4712 = vmatpush1.bf16.msra.mxu0 %v14332_v41  ;;  %v14407_v51 = vld [vmem:[#allocation9 + $0x88] ss:$16 sps:$4 sm:$0xff]  }
 0x97c   : > { %4713 = vmatprep.subr.bf16.mxu0 %v14337_v44  ;;  %4740 = vmatprep.subr.bf16.mxu1 %v14340_v32  ;;  %v14410_v41 = vld [vmem:[#allocation9 + $0x288] ss:$16 sps:$4 sm:$0xff]   ;;  %v14415_v44 = vld [vmem:[#allocation9 + $0x6c] ss:$16 sps:$4 sm:$0xff]  }
 0x97d   : > { %v14418_v32 = vld [vmem:[#allocation9 + $0x26c] ss:$16 sps:$4 sm:$0xff]  }
 0x97e   : > { %4142 = vmatmul.mubr.bf16.vlgmr.msra.gmra.mxu1 %v16776_v13 }
 0x97f   : > { %4714 = vmatpush1.bf16.msra.mxu0 %v14335_v33  ;;  %4741 = vmatpush1.bf16.msra.mxu1 %v14338_v14  ;;  %v14413_v33 = vld [vmem:[#allocation9 + $0x68] ss:$16 sps:$4 sm:$0xff]  }
 0x980   : > { %12641 = vmatprep.mubr.msk.bf16.mxu1 %vm1581_vm2, %v16774_v9  ;;  %4715 = vmatprep.subr.bf16.mxu0 %v14343_v20  ;;  %v14416_v14 = vld [vmem:[#allocation9 + $0x268] ss:$16 sps:$4 sm:$0xff]   ;;  %v14421_v20 = vld [vmem:[#allocation9 + $0x4c] ss:$16 sps:$4 sm:$0xff]  }
 0x981   : > { %4742 = vmatprep.subr.bf16.mxu1 %v14346_v49  ;;  %v14424_v49 = vld [vmem:[#allocation9 + $0x24c] ss:$16 sps:$4 sm:$0xff]  }
 0x983   : > { %4716 = vmatpush2.bf16.msra.mxu0 %v14341_v34  ;;  %4743 = vmatpush1.bf16.msra.mxu1 %v14344_v36  ;;  %v14419_v34 = vld [vmem:[#allocation9 + $0x48] ss:$16 sps:$4 sm:$0xff]  }
 0x984   : > { %4717 = vmatprep.subr.bf16.mxu0 %v14349_v50  ;;  %4744 = vmatprep.subr.bf16.mxu1 %v14352_v29  ;;  %v14422_v36 = vld [vmem:[#allocation9 + $0x248] ss:$16 sps:$4 sm:$0xff]   ;;  %v14427_v50 = vld [vmem:[#allocation9 + $0x2c] ss:$16 sps:$4 sm:$0xff]  }
 0x985   : > { %v14430_v29 = vld [vmem:[#allocation9 + $0x22c] ss:$16 sps:$4 sm:$0xff]  }
 0x987   : > { %4718 = vmatpush2.bf16.msra.mxu0 %v14347_v42  ;;  %4745 = vmatpush1.bf16.msra.mxu1 %v14350_v37  ;;  %v14425_v42 = vld [vmem:[#allocation9 + $0x28] ss:$16 sps:$4 sm:$0xff]  }
 0x988   : > { %4719 = vmatprep.subr.bf16.mxu0 %v14355_v40  ;;  %4746 = vmatprep.subr.bf16.mxu1 %v14358_v46  ;;  %v14428_v37 = vld [vmem:[#allocation9 + $0x228] ss:$16 sps:$4 sm:$0xff]   ;;  %v14433_v40 = vld [vmem:[#allocation9 + $0xc] ss:$16 sps:$4 sm:$0xff]  }
 0x989   : > { %v14436_v46 = vld [vmem:[#allocation9 + $0x20c] ss:$16 sps:$4 sm:$0xff]  }
 0x98b   : > { %4720 = vmatpush2.bf16.msra.mxu0 %v14353_v22  ;;  %4747 = vmatpush1.bf16.msra.mxu1 %v14356_v31  ;;  %v14431_v22 = vld [vmem:[#allocation9 + $0x8] ss:$16 sps:$4 sm:$0xff]  }
 0x98c   : > { %4721 = vmatprep.subr.bf16.mxu0 %v14361_v23  ;;  %4748 = vmatprep.subr.bf16.mxu1 %v14364_v30  ;;  %v14434_v31 = vld [vmem:[#allocation9 + $0x208] ss:$16 sps:$4 sm:$0xff]   ;;  %v14439_v23 = vld [vmem:[#allocation9 + $0x1ec] ss:$16 sps:$4 sm:$0xff]  }
 0x98d   : > { %v14442_v30 = vld [vmem:[#allocation9 + $0x30c] ss:$16 sps:$4 sm:$0xff]  }
 0x98f   : > { %4722 = vmatpush2.bf16.msra.mxu0 %v14359_v38  ;;  %4749 = vmatpush1.bf16.msra.mxu1 %v14362_v43  ;;  %v14437_v38 = vld [vmem:[#allocation9 + $0x1e8] ss:$16 sps:$4 sm:$0xff]  }
 0x990   : > { %4723 = vmatprep.subr.bf16.mxu0 %v14367_v48  ;;  %4750 = vmatprep.subr.bf16.mxu1 %v14370_v6  ;;  %v14440_v43 = vld [vmem:[#allocation9 + $0x308] ss:$16 sps:$4 sm:$0xff]   ;;  %v14445_v48 = vld [vmem:[#allocation9 + $0x1cc] ss:$16 sps:$4 sm:$0xff]   ;;  %v14448_v6 = vld [vmem:[#allocation9 + $0x724] ss:$16 sps:$4 sm:$0xff]  }
 0x993   : > { %4724 = vmatpush2.bf16.msra.mxu0 %v14365_v11  ;;  %4751 = vmatpush1.bf16.msra.mxu1 %v14368_v27  ;;  %v14443_v11 = vld [vmem:[#allocation9 + $0x1c8] ss:$16 sps:$4 sm:$0xff]   ;;  %v14446_v27 = vld [vmem:[#allocation9 + $0x720] ss:$16 sps:$4 sm:$0xff]  }
 0x994   : > { %4725 = vmatprep.subr.bf16.mxu0 %v14373_v39  ;;  %4752 = vmatprep.subr.bf16.mxu1 %v14376_v24  ;;  %v14451_v39 = vld [vmem:[#allocation9 + $0x1ac] ss:$16 sps:$4 sm:$0xff]   ;;  %v14454_v24 = vld [vmem:[#allocation9 + $0x704] ss:$16 sps:$4 sm:$0xff]  }
 0x997   : > { %4726 = vmatpush2.bf16.msra.mxu0 %v14371_v60  ;;  %4753 = vmatpush1.bf16.msra.mxu1 %v14374_v35  ;;  %v14449_v60 = vld [vmem:[#allocation9 + $0x1a8] ss:$16 sps:$4 sm:$0xff]   ;;  %v14452_v35 = vld [vmem:[#allocation9 + $0x700] ss:$16 sps:$4 sm:$0xff]  }
 0x998   : > { %4727 = vmatprep.subr.bf16.mxu0 %v14379_v55  ;;  %4754 = vmatprep.subr.bf16.mxu1 %v14382_v47  ;;  %v14457_v55 = vld [vmem:[#allocation9 + $0x18c] ss:$16 sps:$4 sm:$0xff]   ;;  %v14460_v47 = vld [vmem:[#allocation9 + $0x6e4] ss:$16 sps:$4 sm:$0xff]  }
 0x99b   : > { %4728 = vmatpush2.bf16.msra.mxu0 %v14377_v53  ;;  %4755 = vmatpush1.bf16.msra.mxu1 %v14380_v54  ;;  %v14455_v53 = vld [vmem:[#allocation9 + $0x188] ss:$16 sps:$4 sm:$0xff]   ;;  %v14458_v54 = vld [vmem:[#allocation9 + $0x6e0] ss:$16 sps:$4 sm:$0xff]  }
 0x99c   : > { %4729 = vmatprep.subr.bf16.mxu0 %v14385_v56  ;;  %4770 = vmatprep.subr.bf16.mxu1 %v14388_v57  ;;  %v14463_v56 = vld [vmem:[#allocation9 + $0x16c] ss:$16 sps:$4 sm:$0xff]   ;;  %v14466_v57 = vld [vmem:[#allocation9 + $0x6c4] ss:$16 sps:$4 sm:$0xff]  }
 0x99f   : > { %4730 = vmatpush2.bf16.msra.mxu0 %v14383_v62  ;;  %4771 = vmatpush2.bf16.msra.mxu1 %v14386_v63  ;;  %v14461_v62 = vld [vmem:[#allocation9 + $0x168] ss:$16 sps:$4 sm:$0xff]   ;;  %v14464_v63 = vld [vmem:[#allocation9 + $0x6c0] ss:$16 sps:$4 sm:$0xff]  }
 0x9a0   : > { %4781 = vmatprep.subr.bf16.mxu1 %v14391_v1  ;;  %4822 = vmatprep.subr.bf16.mxu0 %v14394_v2  ;;  %v14469_v1 = vld [vmem:[#allocation9 + $0x14c] ss:$16 sps:$4 sm:$0xff]   ;;  %v14472_v2 = vld [vmem:[#allocation9 + $0x6a4] ss:$16 sps:$4 sm:$0xff]  }
 0x9a2   : > { %4732 = vmatmul.mubr.bf16.vlgmr.msra.gmra.mxu0 %v16776_v13  ;;  %4773 = vmatmul.mubr.bf16.vlgmr.msra.gmra.mxu1 %v16778_v58 }
 0x9a3   : > { %4782 = vmatpush1.bf16.msra.mxu1 %v14389_v3  ;;  %4813 = vmatprep.mubr.bf16.mxu1 %v16772_v8  ;;  %v14467_v3 = vld [vmem:[#allocation9 + $0x148] ss:$16 sps:$4 sm:$0xff]  }
 0x9a4   : > { %4823 = vmatpush1.bf16.msra.mxu0 %v14392_v4  ;;  %12642 = vmatprep.mubr.msk.bf16.mxu0 %vm1581_vm2, %v16774_v9  ;;  %v14470_v4 = vld [vmem:[#allocation9 + $0x6a0] ss:$16 sps:$4 sm:$0xff]  }
 0x9a5   : > { %4783 = vmatprep.subr.bf16.mxu1 %v14397_v5  ;;  %4824 = vmatprep.subr.bf16.mxu0 %v14400_v7  ;;  %v14475_v5 = vld [vmem:[#allocation9 + $0x12c] ss:$16 sps:$4 sm:$0xff]   ;;  %v14478_v7 = vld [vmem:[#allocation9 + $0x684] ss:$16 sps:$4 sm:$0xff]  }
 0x9a7   : > { %4784 = vmatpush1.bf16.msra.mxu1 %v14395_v10  ;;  %v14473_v10 = vld [vmem:[#allocation9 + $0x128] ss:$16 sps:$4 sm:$0xff]  }
 0x9a8   : > { %4825 = vmatpush1.bf16.msra.mxu0 %v14398_v12  ;;  %4785 = vmatprep.subr.bf16.mxu1 %v14403_v59  ;;  %v14476_v12 = vld [vmem:[#allocation9 + $0x680] ss:$16 sps:$4 sm:$0xff]   ;;  %v14481_v59 = vld [vmem:[#allocation9 + $0x10c] ss:$16 sps:$4 sm:$0xff]  }
 0x9a9   : > { %4826 = vmatprep.subr.bf16.mxu0 %v14406_v15  ;;  %v14484_v15 = vld [vmem:[#allocation9 + $0x664] ss:$16 sps:$4 sm:$0xff]  }
 0x9ab   : > { %4786 = vmatpush1.bf16.msra.mxu1 %v14401_v16  ;;  %v14479_v16 = vld [vmem:[#allocation9 + $0x108] ss:$16 sps:$4 sm:$0xff]  }
 0x9ac   : > { %4827 = vmatpush1.bf16.msra.mxu0 %v14404_v17  ;;  %4787 = vmatprep.subr.bf16.mxu1 %v14409_v18  ;;  %v14482_v17 = vld [vmem:[#allocation9 + $0x660] ss:$16 sps:$4 sm:$0xff]   ;;  %v14490_v18 = vld [vmem:[#allocation9 + $0x924] ss:$16 sps:$4 sm:$0xff]  }
 0x9ad   : > { %4828 = vmatprep.subr.bf16.mxu0 %v14412_v19  ;;  %v14487_v19 = vld [vmem:[#allocation9 + $0x644] ss:$16 sps:$4 sm:$0xff]  }
 0x9af   : > { %4788 = vmatpush1.bf16.msra.mxu1 %v14407_v51  ;;  %v14488_v51 = vld [vmem:[#allocation9 + $0x920] ss:$16 sps:$4 sm:$0xff]  }
 0x9b0   : > { %4829 = vmatpush1.bf16.msra.mxu0 %v14410_v41  ;;  %4789 = vmatprep.subr.bf16.mxu1 %v14415_v44  ;;  %v14485_v41 = vld [vmem:[#allocation9 + $0x640] ss:$16 sps:$4 sm:$0xff]   ;;  %v14496_v44 = vld [vmem:[#allocation9 + $0x904] ss:$16 sps:$4 sm:$0xff]  }
 0x9b1   : > { %4830 = vmatprep.subr.bf16.mxu0 %v14418_v32  ;;  %v14493_v32 = vld [vmem:[#allocation9 + $0x824] ss:$16 sps:$4 sm:$0xff]  }
 0x9b3   : > { %4790 = vmatpush1.bf16.msra.mxu1 %v14413_v33  ;;  %v14494_v33 = vld [vmem:[#allocation9 + $0x900] ss:$16 sps:$4 sm:$0xff]  }
 0x9b4   : > { %4831 = vmatpush1.bf16.msra.mxu0 %v14416_v14  ;;  %4791 = vmatprep.subr.bf16.mxu1 %v14421_v20  ;;  %v14491_v14 = vld [vmem:[#allocation9 + $0x820] ss:$16 sps:$4 sm:$0xff]   ;;  %v14502_v20 = vld [vmem:[#allocation9 + $0x8e4] ss:$16 sps:$4 sm:$0xff]  }
 0x9b5   : > { %4832 = vmatprep.subr.bf16.mxu0 %v14424_v49  ;;  %v14499_v49 = vld [vmem:[#allocation9 + $0x804] ss:$16 sps:$4 sm:$0xff]  }
 0x9b7   : > { %4792 = vmatpush1.bf16.msra.mxu1 %v14419_v34  ;;  %v14500_v34 = vld [vmem:[#allocation9 + $0x8e0] ss:$16 sps:$4 sm:$0xff]  }
 0x9b8   : > { %4833 = vmatpush1.bf16.msra.mxu0 %v14422_v36  ;;  %4793 = vmatprep.subr.bf16.mxu1 %v14427_v50  ;;  %v14497_v36 = vld [vmem:[#allocation9 + $0x800] ss:$16 sps:$4 sm:$0xff]   ;;  %v14508_v50 = vld [vmem:[#allocation9 + $0x8c4] ss:$16 sps:$4 sm:$0xff]  }
 0x9b9   : > { %4834 = vmatprep.subr.bf16.mxu0 %v14430_v29  ;;  %v14505_v29 = vld [vmem:[#allocation9 + $0x7e4] ss:$16 sps:$4 sm:$0xff]  }
 0x9bb   : > { %4794 = vmatpush1.bf16.msra.mxu1 %v14425_v42  ;;  %v14506_v42 = vld [vmem:[#allocation9 + $0x8c0] ss:$16 sps:$4 sm:$0xff]  }
 0x9bc   : > { %4835 = vmatpush1.bf16.msra.mxu0 %v14428_v37  ;;  %4795 = vmatprep.subr.bf16.mxu1 %v14433_v40  ;;  %v14503_v37 = vld [vmem:[#allocation9 + $0x7e0] ss:$16 sps:$4 sm:$0xff]   ;;  %v14514_v40 = vld [vmem:[#allocation9 + $0x8a4] ss:$16 sps:$4 sm:$0xff]  }
 0x9bd   : > { %4836 = vmatprep.subr.bf16.mxu0 %v14436_v46  ;;  %v14511_v46 = vld [vmem:[#allocation9 + $0x7c4] ss:$16 sps:$4 sm:$0xff]  }
 0x9bf   : > { %4796 = vmatpush1.bf16.msra.mxu1 %v14431_v22  ;;  %v14512_v22 = vld [vmem:[#allocation9 + $0x8a0] ss:$16 sps:$4 sm:$0xff]  }
 0x9c0   : > { %4837 = vmatpush1.bf16.msra.mxu0 %v14434_v31  ;;  %4797 = vmatprep.subr.bf16.mxu1 %v14439_v23  ;;  %v14509_v31 = vld [vmem:[#allocation9 + $0x7c0] ss:$16 sps:$4 sm:$0xff]   ;;  %v14520_v23 = vld [vmem:[#allocation9 + $0x884] ss:$16 sps:$4 sm:$0xff]  }
 0x9c1   : > { %4852 = vmatprep.subr.bf16.mxu0 %v14442_v30  ;;  %v14517_v30 = vld [vmem:[#allocation9 + $0x7a4] ss:$16 sps:$4 sm:$0xff]  }
 0x9c3   : > { %4798 = vmatpush2.bf16.msra.mxu1 %v14437_v38  ;;  %v14518_v38 = vld [vmem:[#allocation9 + $0x880] ss:$16 sps:$4 sm:$0xff]  }
 0x9c4   : > { %4853 = vmatpush2.bf16.msra.mxu0 %v14440_v43  ;;  %4799 = vmatprep.subr.bf16.mxu1 %v14445_v48  ;;  %v14515_v43 = vld [vmem:[#allocation9 + $0x7a0] ss:$16 sps:$4 sm:$0xff]   ;;  %v14526_v48 = vld [vmem:[#allocation9 + $0x864] ss:$16 sps:$4 sm:$0xff]  }
 0x9c5   : > { %5464 = vmatprep.subr.bf16.mxu0 %v14448_v6  ;;  %v14523_v6 = vld [vmem:[#allocation9 + $0x784] ss:$16 sps:$4 sm:$0xff]  }
 0x9c7   : > { %4855 = vmatmul.mubr.bf16.vlgmr.msra.gmra.mxu0 %v16778_v58  ;;  %4800 = vmatpush2.bf16.msra.mxu1 %v14443_v11  ;;  %v14524_v11 = vld [vmem:[#allocation9 + $0x860] ss:$16 sps:$4 sm:$0xff]  }
 0x9c8   : > { %5465 = vmatpush1.bf16.msra.mxu0 %v14446_v27  ;;  %5496 = vmatprep.mubr.bf16.mxu0 %v16772_v8  ;;  %v14521_v27 = vld [vmem:[#allocation9 + $0x780] ss:$16 sps:$4 sm:$0xff]  }
 0x9c9   : > { %4801 = vmatprep.subr.bf16.mxu1 %v14451_v39  ;;  %5466 = vmatprep.subr.bf16.mxu0 %v14454_v24  ;;  %v14532_v39 = vld [vmem:[#allocation9 + $0x844] ss:$16 sps:$4 sm:$0xff]  }
 0x9ca   : > { %v14529_v24 = vld [vmem:[#allocation9 + $0x764] ss:$16 sps:$4 sm:$0xff]  }
 0x9cb   : > { %4802 = vmatpush2.bf16.msra.mxu1 %v14449_v60  ;;  %v14530_v60 = vld [vmem:[#allocation9 + $0x840] ss:$16 sps:$4 sm:$0xff]  }
 0x9cc   : > { %5467 = vmatpush1.bf16.msra.mxu0 %v14452_v35  ;;  %4803 = vmatprep.subr.bf16.mxu1 %v14457_v55  ;;  %v14527_v35 = vld [vmem:[#allocation9 + $0x760] ss:$16 sps:$4 sm:$0xff]   ;;  %v14538_v55 = vld [vmem:[#allocation9 + $0x944] ss:$16 sps:$4 sm:$0xff]  }
 0x9cd   : > { %5468 = vmatprep.subr.bf16.mxu0 %v14460_v47  ;;  %v14535_v47 = vld [vmem:[#allocation9 + $0x744] ss:$16 sps:$4 sm:$0xff]  }
 0x9cf   : > { %4804 = vmatpush2.bf16.msra.mxu1 %v14455_v53 }
 0x9d0   : > { %5469 = vmatpush1.bf16.msra.mxu0 %v14458_v54  ;;  %4805 = vmatprep.subr.bf16.mxu1 %v14463_v56 }
 0x9d1   : > { %5470 = vmatprep.subr.bf16.mxu0 %v14466_v57  ;;  %v14536_v57 = vld [vmem:[#allocation9 + $0x940] ss:$16 sps:$4 sm:$0xff]  }
 0x9d3   : > { %4806 = vmatpush2.bf16.msra.mxu1 %v14461_v62 }
 0x9d4   : > { %5471 = vmatpush1.bf16.msra.mxu0 %v14464_v63  ;;  %4807 = vmatprep.subr.bf16.mxu1 %v14469_v1  ;;  %v14533_v1 = vld [vmem:[#allocation9 + $0x740] ss:$16 sps:$4 sm:$0xff]  }
 0x9d5   : > { %5472 = vmatprep.subr.bf16.mxu0 %v14472_v2  ;;  %v14541_v2 = vld [vmem:[#allocation9 + $0x72c] ss:$16 sps:$4 sm:$0xff]  }
 0x9d7   : > { %4808 = vmatpush2.bf16.msra.mxu1 %v14467_v3 }
 0x9d8   : > { %5473 = vmatpush1.bf16.msra.mxu0 %v14470_v4  ;;  %4809 = vmatprep.subr.bf16.mxu1 %v14475_v5  ;;  %v14544_v4 = vld [vmem:[#allocation9 + $0x92c] ss:$16 sps:$4 sm:$0xff]  }
 0x9d9   : > { %5474 = vmatprep.subr.bf16.mxu0 %v14478_v7 }
 0x9db   : > { %4810 = vmatpush2.bf16.msra.mxu1 %v14473_v10  ;;  %v14539_v10 = vld [vmem:[#allocation9 + $0x728] ss:$16 sps:$4 sm:$0xff]  }
 0x9dc   : > { %5475 = vmatpush1.bf16.msra.mxu0 %v14476_v12  ;;  %4811 = vmatprep.subr.bf16.mxu1 %v14481_v59 }
 0x9dd   : > { %5476 = vmatprep.subr.bf16.mxu0 %v14484_v15  ;;  %v14542_v15 = vld [vmem:[#allocation9 + $0x928] ss:$16 sps:$4 sm:$0xff]  }
 0x9df   : > { %4812 = vmatpush2.bf16.msra.mxu1 %v14479_v16  ;;  %v14547_v16 = vld [vmem:[#allocation9 + $0x70c] ss:$16 sps:$4 sm:$0xff]  }
 0x9e0   : > { %5477 = vmatpush1.bf16.msra.mxu0 %v14482_v17  ;;  %5505 = vmatprep.subr.bf16.mxu1 %v14490_v18  ;;  %v14550_v17 = vld [vmem:[#allocation9 + $0x90c] ss:$16 sps:$4 sm:$0xff]   ;;  %v14545_v18 = vld [vmem:[#allocation9 + $0x708] ss:$16 sps:$4 sm:$0xff]  }
 0x9e1   : > { %5478 = vmatprep.subr.bf16.mxu0 %v14487_v19  ;;  %v14548_v19 = vld [vmem:[#allocation9 + $0x908] ss:$16 sps:$4 sm:$0xff]  }
 0x9e2   : > { %4814 = vmatmul.mubr.bf16.vlgmr.msra.gmra.mxu1 %v16776_v13 }
 0x9e3   : > { %5506 = vmatpush1.bf16.msra.mxu1 %v14488_v51  ;;  %12743 = vmatprep.mubr.msk.bf16.mxu1 %vm1581_vm2, %v16774_v9  ;;  %v14553_v51 = vld [vmem:[#allocation9 + $0x6ec] ss:$16 sps:$4 sm:$0xff]  }
 0x9e4   : > { %5479 = vmatpush1.bf16.msra.mxu0 %v14485_v41  ;;  %5507 = vmatprep.subr.bf16.mxu1 %v14496_v44  ;;  %v14556_v41 = vld [vmem:[#allocation9 + $0x8ec] ss:$16 sps:$4 sm:$0xff]   ;;  %v14551_v44 = vld [vmem:[#allocation9 + $0x6e8] ss:$16 sps:$4 sm:$0xff]  }
 0x9e5   : > { %5480 = vmatprep.subr.bf16.mxu0 %v14493_v32  ;;  %v14554_v32 = vld [vmem:[#allocation9 + $0x8e8] ss:$16 sps:$4 sm:$0xff]  }
 0x9e7   : > { %5508 = vmatpush1.bf16.msra.mxu1 %v14494_v33  ;;  %v14559_v33 = vld [vmem:[#allocation9 + $0x6cc] ss:$16 sps:$4 sm:$0xff]  }
 0x9e8   : > { %5481 = vmatpush2.bf16.msra.mxu0 %v14491_v14  ;;  %5509 = vmatprep.subr.bf16.mxu1 %v14502_v20  ;;  %v14562_v14 = vld [vmem:[#allocation9 + $0x8cc] ss:$16 sps:$4 sm:$0xff]   ;;  %v14557_v20 = vld [vmem:[#allocation9 + $0x6c8] ss:$16 sps:$4 sm:$0xff]  }
 0x9e9   : > { %5482 = vmatprep.subr.bf16.mxu0 %v14499_v49  ;;  %v14560_v49 = vld [vmem:[#allocation9 + $0x8c8] ss:$16 sps:$4 sm:$0xff]  }
 0x9eb   : > { %5510 = vmatpush1.bf16.msra.mxu1 %v14500_v34  ;;  %v14565_v34 = vld [vmem:[#allocation9 + $0x6ac] ss:$16 sps:$4 sm:$0xff]  }
 0x9ec   : > { %5483 = vmatpush2.bf16.msra.mxu0 %v14497_v36  ;;  %5511 = vmatprep.subr.bf16.mxu1 %v14508_v50  ;;  %v14568_v36 = vld [vmem:[#allocation9 + $0x8ac] ss:$16 sps:$4 sm:$0xff]   ;;  %v14563_v50 = vld [vmem:[#allocation9 + $0x6a8] ss:$16 sps:$4 sm:$0xff]  }
 0x9ed   : > { %5484 = vmatprep.subr.bf16.mxu0 %v14505_v29  ;;  %v14566_v29 = vld [vmem:[#allocation9 + $0x8a8] ss:$16 sps:$4 sm:$0xff]  }
 0x9ef   : > { %5512 = vmatpush1.bf16.msra.mxu1 %v14506_v42  ;;  %v14571_v42 = vld [vmem:[#allocation9 + $0x68c] ss:$16 sps:$4 sm:$0xff]  }
 0x9f0   : > { %5485 = vmatpush2.bf16.msra.mxu0 %v14503_v37  ;;  %5513 = vmatprep.subr.bf16.mxu1 %v14514_v40  ;;  %v14574_v37 = vld [vmem:[#allocation9 + $0x88c] ss:$16 sps:$4 sm:$0xff]   ;;  %v14569_v40 = vld [vmem:[#allocation9 + $0x688] ss:$16 sps:$4 sm:$0xff]  }
 0x9f1   : > { %5486 = vmatprep.subr.bf16.mxu0 %v14511_v46  ;;  %v14572_v46 = vld [vmem:[#allocation9 + $0x888] ss:$16 sps:$4 sm:$0xff]  }
 0x9f3   : > { %5514 = vmatpush1.bf16.msra.mxu1 %v14512_v22  ;;  %v14577_v22 = vld [vmem:[#allocation9 + $0x66c] ss:$16 sps:$4 sm:$0xff]  }
 0x9f4   : > { %5487 = vmatpush2.bf16.msra.mxu0 %v14509_v31  ;;  %5515 = vmatprep.subr.bf16.mxu1 %v14520_v23  ;;  %v14580_v31 = vld [vmem:[#allocation9 + $0x86c] ss:$16 sps:$4 sm:$0xff]   ;;  %v14575_v23 = vld [vmem:[#allocation9 + $0x668] ss:$16 sps:$4 sm:$0xff]  }
 0x9f5   : > { %5488 = vmatprep.subr.bf16.mxu0 %v14517_v30  ;;  %v14578_v30 = vld [vmem:[#allocation9 + $0x868] ss:$16 sps:$4 sm:$0xff]  }
 0x9f7   : > { %5516 = vmatpush1.bf16.msra.mxu1 %v14518_v38  ;;  %v14583_v38 = vld [vmem:[#allocation9 + $0x64c] ss:$16 sps:$4 sm:$0xff]  }
 0x9f8   : > { %5489 = vmatpush2.bf16.msra.mxu0 %v14515_v43  ;;  %5517 = vmatprep.subr.bf16.mxu1 %v14526_v48  ;;  %v14586_v43 = vld [vmem:[#allocation9 + $0x84c] ss:$16 sps:$4 sm:$0xff]   ;;  %v14581_v48 = vld [vmem:[#allocation9 + $0x648] ss:$16 sps:$4 sm:$0xff]  }
 0x9f9   : > { %5490 = vmatprep.subr.bf16.mxu0 %v14523_v6  ;;  %v14584_v6 = vld [vmem:[#allocation9 + $0x848] ss:$16 sps:$4 sm:$0xff]  }
 0x9fb   : > { %5518 = vmatpush1.bf16.msra.mxu1 %v14524_v11  ;;  %v14589_v11 = vld [vmem:[#allocation9 + $0x82c] ss:$16 sps:$4 sm:$0xff]  }
 0x9fc   : > { %5491 = vmatpush2.bf16.msra.mxu0 %v14521_v27  ;;  %5519 = vmatprep.subr.bf16.mxu1 %v14532_v39  ;;  %v14592_v27 = vld [vmem:[#allocation9 + $0x94c] ss:$16 sps:$4 sm:$0xff]  }
 0x9fd   : > { %5492 = vmatprep.subr.bf16.mxu0 %v14529_v24  ;;  %v14587_v24 = vld [vmem:[#allocation9 + $0x828] ss:$16 sps:$4 sm:$0xff]  }
 0x9fe   : > { %v4061_v53 = vpop.f32.mrf.mxu0  ;;  %v4102_v54 = vpop.f32.mrf.mxu1 }
 0x9ff   : > { %v16803_v56 = vadd.f32 %v4102_v54, %v4061_v53  ;;  %5520 = vmatpush1.bf16.msra.mxu1 %v14530_v60  ;;  %v14593_v54 = vld [vmem:[#allocation9 + $0x808] ss:$16 sps:$4 sm:$0xff]  }
 0xa00   : > { %5493 = vmatpush2.bf16.msra.mxu0 %v14527_v35  ;;  %v4063_v62 = vpop.f32.mrf.mxu0  ;;  %v4104_v63 = vpop.f32.mrf.mxu1  ;;  %5535 = vmatprep.subr.bf16.mxu1 %v14538_v55  ;;  %v14590_v35 = vld [vmem:[#allocation9 + $0x948] ss:$16 sps:$4 sm:$0xff]   ;;  %v14595_v55 = vld [vmem:[#allocation9 + $0x80c] ss:$16 sps:$4 sm:$0xff]  }
 0xa01   : > { %v16805_v3 = vadd.f32 %v4104_v63, %v4063_v62  ;;  %5494 = vmatprep.subr.bf16.mxu0 %v14535_v47  ;;  %v14598_v47 = vld [vmem:[#allocation9 + $0xa44] ss:$16 sps:$4 sm:$0xff]   ;;  %v14596_v62 = vld [vmem:[#allocation9 + $0xa40] ss:$16 sps:$4 sm:$0xff]   ;;  %v14601_v63 = vld [vmem:[#allocation9 + $0x7ec] ss:$16 sps:$4 sm:$0xff]  }
 0xa02   : > { %v4065_v5 = vpop.f32.mrf.mxu0  ;;  %v4106_v7 = vpop.f32.mrf.mxu1 }
 0xa03   : > { %5536 = vmatpush2.bf16.msra.mxu1 %v14536_v57  ;;  %v14607_v5 = vld [vmem:[#allocation9 + $0x7cc] ss:$16 sps:$4 sm:$0xff]   ;;  %v14610_v7 = vld [vmem:[#allocation9 + $0xa04] ss:$16 sps:$4 sm:$0xff]  }
 0xa04   : > { %5495 = vmatpush2.bf16.msra.mxu0 %v14533_v1  ;;  %v4066_v12 = vpop.f32.mrf.mxu0  ;;  %v4107_v59 = vpop.f32.mrf.mxu1  ;;  %5546 = vmatprep.subr.bf16.mxu1 %v14541_v2  ;;  %v14604_v1 = vld [vmem:[#allocation9 + $0xa24] ss:$16 sps:$4 sm:$0xff]   ;;  %v14599_v2 = vld [vmem:[#allocation9 + $0x7e8] ss:$16 sps:$4 sm:$0xff]  }
 0xa05   : > { %5587 = vmatprep.subr.bf16.mxu0 %v14544_v4  ;;  %v14602_v4 = vld [vmem:[#allocation9 + $0xa20] ss:$16 sps:$4 sm:$0xff]   ;;  %v14613_v59 = vld [vmem:[#allocation9 + $0x7ac] ss:$16 sps:$4 sm:$0xff]  }
 0xa06   : > { %5538 = vmatmul.mubr.bf16.vlgmr.msra.gmra.mxu1 %v16778_v58  ;;  %v14608_v12 = vld [vmem:[#allocation9 + $0xa00] ss:$16 sps:$4 sm:$0xff]  }
 0xa07   : > { %5497 = vmatmul.mubr.bf16.vlgmr.msra.gmra.mxu0 %v16776_v13  ;;  %5547 = vmatpush1.bf16.msra.mxu1 %v14539_v10  ;;  %v14605_v10 = vld [vmem:[#allocation9 + $0x7c8] ss:$16 sps:$4 sm:$0xff]  }
 0xa08   : > { %5578 = vmatprep.mubr.bf16.mxu1 %v16772_v8  ;;  %5588 = vmatpush1.bf16.msra.mxu0 %v14542_v15  ;;  %v14616_v15 = vld [vmem:[#allocation9 + $0x9e4] ss:$16 sps:$4 sm:$0xff]  }
 0xa09   : > { %12744 = vmatprep.mubr.msk.bf16.mxu0 %vm1581_vm2, %v16774_v9  ;;  %5548 = vmatprep.subr.bf16.mxu1 %v14547_v16  ;;  %v14611_v16 = vld [vmem:[#allocation9 + $0x7a8] ss:$16 sps:$4 sm:$0xff]  }
 0xa0a   : > { %5589 = vmatprep.subr.bf16.mxu0 %v14550_v17  ;;  %v14614_v17 = vld [vmem:[#allocation9 + $0x9e0] ss:$16 sps:$4 sm:$0xff]  }
 0xa0b   : > { %5549 = vmatpush1.bf16.msra.mxu1 %v14545_v18  ;;  %v14619_v18 = vld [vmem:[#allocation9 + $0x78c] ss:$16 sps:$4 sm:$0xff]  }
 0xa0c   : > { %5590 = vmatpush1.bf16.msra.mxu0 %v14548_v19  ;;  %5550 = vmatprep.subr.bf16.mxu1 %v14553_v51  ;;  %v14622_v19 = vld [vmem:[#allocation9 + $0x9c4] ss:$16 sps:$4 sm:$0xff]   ;;  %v14617_v51 = vld [vmem:[#allocation9 + $0x788] ss:$16 sps:$4 sm:$0xff]  }
 0xa0d   : > { %5591 = vmatprep.subr.bf16.mxu0 %v14556_v41  ;;  %v14620_v41 = vld [vmem:[#allocation9 + $0x9c0] ss:$16 sps:$4 sm:$0xff]  }
 0xa0f   : > { %5551 = vmatpush1.bf16.msra.mxu1 %v14551_v44  ;;  %v14625_v44 = vld [vmem:[#allocation9 + $0x76c] ss:$16 sps:$4 sm:$0xff]  }
 0xa10   : > { %5592 = vmatpush1.bf16.msra.mxu0 %v14554_v32  ;;  %5552 = vmatprep.subr.bf16.mxu1 %v14559_v33  ;;  %v14628_v32 = vld [vmem:[#allocation9 + $0x9a4] ss:$16 sps:$4 sm:$0xff]   ;;  %v14623_v33 = vld [vmem:[#allocation9 + $0x768] ss:$16 sps:$4 sm:$0xff]  }
 0xa11   : > { %5593 = vmatprep.subr.bf16.mxu0 %v14562_v14  ;;  %v14626_v14 = vld [vmem:[#allocation9 + $0x9a0] ss:$16 sps:$4 sm:$0xff]  }
 0xa13   : > { %5553 = vmatpush1.bf16.msra.mxu1 %v14557_v20  ;;  %v14631_v20 = vld [vmem:[#allocation9 + $0x74c] ss:$16 sps:$4 sm:$0xff]  }
 0xa14   : > { %5594 = vmatpush1.bf16.msra.mxu0 %v14560_v49  ;;  %5554 = vmatprep.subr.bf16.mxu1 %v14565_v34  ;;  %v14634_v49 = vld [vmem:[#allocation9 + $0x984] ss:$16 sps:$4 sm:$0xff]  }
 0xa15   : > { %5595 = vmatprep.subr.bf16.mxu0 %v14568_v36 }
 0xa17   : > { %5555 = vmatpush1.bf16.msra.mxu1 %v14563_v50  ;;  %v14629_v50 = vld [vmem:[#allocation9 + $0x748] ss:$16 sps:$4 sm:$0xff]  }
 0xa18   : > { %5596 = vmatpush1.bf16.msra.mxu0 %v14566_v29  ;;  %5556 = vmatprep.subr.bf16.mxu1 %v14571_v42  ;;  %v14632_v42 = vld [vmem:[#allocation9 + $0x980] ss:$16 sps:$4 sm:$0xff]  }
 0xa19   : > { %5597 = vmatprep.subr.bf16.mxu0 %v14574_v37  ;;  %v14640_v37 = vld [vmem:[#allocation9 + $0xc44] ss:$16 sps:$4 sm:$0xff]  }
 0xa1b   : > { %5557 = vmatpush1.bf16.msra.mxu1 %v14569_v40 }
 0xa1c   : > { %5598 = vmatpush1.bf16.msra.mxu0 %v14572_v46  ;;  %5558 = vmatprep.subr.bf16.mxu1 %v14577_v22  ;;  %v14637_v46 = vld [vmem:[#allocation9 + $0x964] ss:$16 sps:$4 sm:$0xff]  }
 0xa1d   : > { %5599 = vmatprep.subr.bf16.mxu0 %v14580_v31  ;;  %v14638_v31 = vld [vmem:[#allocation9 + $0xc40] ss:$16 sps:$4 sm:$0xff]  }
 0xa1f   : > { %5559 = vmatpush1.bf16.msra.mxu1 %v14575_v23 }
 0xa20   : > { %5600 = vmatpush1.bf16.msra.mxu0 %v14578_v30  ;;  %5560 = vmatprep.subr.bf16.mxu1 %v14583_v38  ;;  %v14635_v30 = vld [vmem:[#allocation9 + $0x960] ss:$16 sps:$4 sm:$0xff]   ;;  %v14646_v38 = vld [vmem:[#allocation9 + $0xc24] ss:$16 sps:$4 sm:$0xff]  }
 0xa21   : > { %5601 = vmatprep.subr.bf16.mxu0 %v14586_v43  ;;  %v14643_v43 = vld [vmem:[#allocation9 + $0xb44] ss:$16 sps:$4 sm:$0xff]  }
 0xa22   : > { %v16812_v39 = vpop.f32.mrf.mxu0 }
 0xa23   : > { %5561 = vmatpush1.bf16.msra.mxu1 %v14581_v48  ;;  %v14644_v48 = vld [vmem:[#allocation9 + $0xc20] ss:$16 sps:$4 sm:$0xff]  }
 0xa24   : > { %5602 = vmatpush1.bf16.msra.mxu0 %v14584_v6  ;;  %v16814_v60 = vpop.f32.mrf.mxu0  ;;  %5562 = vmatprep.subr.bf16.mxu1 %v14589_v11  ;;  %v14641_v6 = vld [vmem:[#allocation9 + $0xb40] ss:$16 sps:$4 sm:$0xff]   ;;  %v14652_v11 = vld [vmem:[#allocation9 + $0xc04] ss:$16 sps:$4 sm:$0xff]  }
 0xa25   : > { %5617 = vmatprep.subr.bf16.mxu0 %v14592_v27  ;;  %v14649_v27 = vld [vmem:[#allocation9 + $0xb24] ss:$16 sps:$4 sm:$0xff]  }
 0xa26   : > { %v4188_v53 = vpop.f32.mrf.mxu0 }
 0xa27   : > { %5563 = vmatpush2.bf16.msra.mxu1 %v14587_v24  ;;  %v14647_v24 = vld [vmem:[#allocation9 + $0xb20] ss:$16 sps:$4 sm:$0xff]   ;;  %v14664_v53 = vld [vmem:[#allocation9 + $0xbc4] ss:$16 sps:$4 sm:$0xff]  }
 0xa28   : > { %5618 = vmatpush2.bf16.msra.mxu0 %v14590_v35  ;;  %v4189_v57 = vpop.f32.mrf.mxu0  ;;  %5564 = vmatprep.subr.bf16.mxu1 %v14595_v55  ;;  %v14655_v35 = vld [vmem:[#allocation9 + $0xb04] ss:$16 sps:$4 sm:$0xff]   ;;  %v14656_v55 = vld [vmem:[#allocation9 + $0xbe0] ss:$16 sps:$4 sm:$0xff]  }
 0xa29   : > { %6244 = vmatprep.subr.bf16.mxu0 %v14598_v47  ;;  %v14653_v47 = vld [vmem:[#allocation9 + $0xb00] ss:$16 sps:$4 sm:$0xff]  }
 0xa2a   : > { %v14662_v57 = vld [vmem:[#allocation9 + $0xbc0] ss:$16 sps:$4 sm:$0xff]  }
 0xa2b   : > { %5620 = vmatmul.mubr.bf16.vlgmr.msra.gmra.mxu0 %v16778_v58  ;;  %5565 = vmatpush2.bf16.msra.mxu1 %v14593_v54  ;;  %v14661_v54 = vld [vmem:[#allocation9 + $0xae4] ss:$16 sps:$4 sm:$0xff]  }
 0xa2c   : > { %6245 = vmatpush1.bf16.msra.mxu0 %v14596_v62  ;;  %6276 = vmatprep.mubr.bf16.mxu0 %v16772_v8  ;;  %v14659_v62 = vld [vmem:[#allocation9 + $0xae0] ss:$16 sps:$4 sm:$0xff]  }
 0xa2d   : > { %5566 = vmatprep.subr.bf16.mxu1 %v14601_v63  ;;  %6246 = vmatprep.subr.bf16.mxu0 %v14604_v1  ;;  %v14670_v63 = vld [vmem:[#allocation9 + $0xba4] ss:$16 sps:$4 sm:$0xff]  }
 0xa2e   : > { %v14667_v1 = vld [vmem:[#allocation9 + $0xac4] ss:$16 sps:$4 sm:$0xff]  }
 0xa2f   : > { %5567 = vmatpush2.bf16.msra.mxu1 %v14599_v2  ;;  %v14668_v2 = vld [vmem:[#allocation9 + $0xba0] ss:$16 sps:$4 sm:$0xff]  }
 0xa30   : > { %6247 = vmatpush1.bf16.msra.mxu0 %v14602_v4  ;;  %5568 = vmatprep.subr.bf16.mxu1 %v14607_v5  ;;  %v14665_v4 = vld [vmem:[#allocation9 + $0xac0] ss:$16 sps:$4 sm:$0xff]   ;;  %v14676_v5 = vld [vmem:[#allocation9 + $0xb84] ss:$16 sps:$4 sm:$0xff]  }
 0xa31   : > { %6248 = vmatprep.subr.bf16.mxu0 %v14610_v7  ;;  %v14673_v7 = vld [vmem:[#allocation9 + $0xaa4] ss:$16 sps:$4 sm:$0xff]  }
 0xa33   : > { %5569 = vmatpush2.bf16.msra.mxu1 %v14605_v10  ;;  %v14674_v10 = vld [vmem:[#allocation9 + $0xb80] ss:$16 sps:$4 sm:$0xff]  }
 0xa34   : > { %6249 = vmatpush1.bf16.msra.mxu0 %v14608_v12  ;;  %5570 = vmatprep.subr.bf16.mxu1 %v14613_v59  ;;  %v14671_v12 = vld [vmem:[#allocation9 + $0xaa0] ss:$16 sps:$4 sm:$0xff]   ;;  %v14682_v59 = vld [vmem:[#allocation9 + $0xb64] ss:$16 sps:$4 sm:$0xff]  }
 0xa35   : > { %6250 = vmatprep.subr.bf16.mxu0 %v14616_v15  ;;  %v14679_v15 = vld [vmem:[#allocation9 + $0xa84] ss:$16 sps:$4 sm:$0xff]  }
 0xa37   : > { %5571 = vmatpush2.bf16.msra.mxu1 %v14611_v16  ;;  %v4191_v16 = vrot.slane %v16803_v56, 7 }
 0xa38   : > { %6251 = vmatpush1.bf16.msra.mxu0 %v14614_v17  ;;  %5572 = vmatprep.subr.bf16.mxu1 %v14619_v18  ;;  %v14680_v17 = vld [vmem:[#allocation9 + $0xb60] ss:$16 sps:$4 sm:$0xff]   ;;  %v4192_v18 = vrot.slane %v16805_v3, 7 }
 0xa39   : > { %6252 = vmatprep.subr.bf16.mxu0 %v14622_v19  ;;  %v14677_v19 = vld [vmem:[#allocation9 + $0xa80] ss:$16 sps:$4 sm:$0xff]  }
 0xa3a   : > { %v4196_v56 = vsel %vm739_vm0, %v4192_v18, 0.0  ;;  %v14739_v18 = vld [vmem:[#allocation9 + $0xb4c] ss:$16 sps:$4 sm:$0xff]  }
 0xa3b   : > { %5573 = vmatpush2.bf16.msra.mxu1 %v14617_v51  ;;  %v14688_v51 = vld [vmem:[#allocation9 + $0xc64] ss:$16 sps:$4 sm:$0xff]  }
 0xa3c   : > { %6253 = vmatpush1.bf16.msra.mxu0 %v14620_v41  ;;  %5574 = vmatprep.subr.bf16.mxu1 %v14625_v44  ;;  %v14685_v41 = vld [vmem:[#allocation9 + $0xa64] ss:$16 sps:$4 sm:$0xff]   ;;  %v4195_v44 = vsel %vm739_vm0, %v4191_v16, 0.0  ;;  %v14731_v16 = vld [vmem:[#allocation9 + $0x968] ss:$16 sps:$4 sm:$0xff]  }
 0xa3d   : > { %6254 = vmatprep.subr.bf16.mxu0 %v14628_v32 }
 0xa3e   : > { %v4143_v34 = vpop.f32.mrf.mxu1 }
 0xa3f   : > { %v16819_v36 = vadd.f32 %v16812_v39, %v4143_v34  ;;  %5575 = vmatpush2.bf16.msra.mxu1 %v14623_v33  ;;  %v14650_v39 = vld [vmem:[#allocation9 + $0xc00] ss:$16 sps:$4 sm:$0xff]  }
 0xa40   : > { %6255 = vmatpush1.bf16.msra.mxu0 %v14626_v14  ;;  %v4145_v29 = vpop.f32.mrf.mxu1  ;;  %5576 = vmatprep.subr.bf16.mxu1 %v14631_v20  ;;  %v14686_v20 = vld [vmem:[#allocation9 + $0xc60] ss:$16 sps:$4 sm:$0xff]  }
 0xa41   : > { %v16822_v40 = vadd.f32 %v16814_v60, %v4145_v29  ;;  %6256 = vmatprep.subr.bf16.mxu0 %v14634_v49  ;;  %v14658_v60 = vld [vmem:[#allocation9 + $0xbe4] ss:$16 sps:$4 sm:$0xff]   ;;  %v14683_v34 = vld [vmem:[#allocation9 + $0xa60] ss:$16 sps:$4 sm:$0xff]  }
 0xa42   : > { %v4147_v22 = vpop.f32.mrf.mxu1 }
 0xa43   : > { %5577 = vmatpush2.bf16.msra.mxu1 %v14629_v50  ;;  %v14691_v50 = vld [vmem:[#allocation9 + $0xa4c] ss:$16 sps:$4 sm:$0xff]  }
 0xa44   : > { %6257 = vmatpush1.bf16.msra.mxu0 %v14632_v42  ;;  %v4148_v23 = vpop.f32.mrf.mxu1  ;;  %6285 = vmatprep.subr.bf16.mxu1 %v14640_v37  ;;  %v14694_v37 = vld [vmem:[#allocation9 + $0xc4c] ss:$16 sps:$4 sm:$0xff]  }
 0xa45   : > { %6258 = vmatprep.subr.bf16.mxu0 %v14637_v46  ;;  %v14689_v23 = vld [vmem:[#allocation9 + $0xa48] ss:$16 sps:$4 sm:$0xff]  }
 0xa46   : > { %5579 = vmatmul.mubr.bf16.vlgmr.msra.gmra.mxu1 %v16776_v13 }
 0xa47   : > { %6286 = vmatpush1.bf16.msra.mxu1 %v14638_v31  ;;  %12845 = vmatprep.mubr.msk.bf16.mxu1 %vm1581_vm2, %v16774_v9 }
 0xa48   : > { %6259 = vmatpush1.bf16.msra.mxu0 %v14635_v30  ;;  %6287 = vmatprep.subr.bf16.mxu1 %v14646_v38 }
 0xa49   : > { %6260 = vmatprep.subr.bf16.mxu0 %v14643_v43  ;;  %v14692_v43 = vld [vmem:[#allocation9 + $0xc48] ss:$16 sps:$4 sm:$0xff]  }
 0xa4b   : > { %6288 = vmatpush1.bf16.msra.mxu1 %v14644_v48  ;;  %v14697_v48 = vld [vmem:[#allocation9 + $0xa2c] ss:$16 sps:$4 sm:$0xff]  }
 0xa4c   : > { %6261 = vmatpush2.bf16.msra.mxu0 %v14641_v6  ;;  %6289 = vmatprep.subr.bf16.mxu1 %v14652_v11  ;;  %v14700_v6 = vld [vmem:[#allocation9 + $0xc2c] ss:$16 sps:$4 sm:$0xff]   ;;  %v14695_v11 = vld [vmem:[#allocation9 + $0xa28] ss:$16 sps:$4 sm:$0xff]  }
 0xa4d   : > { %6262 = vmatprep.subr.bf16.mxu0 %v14649_v27  ;;  %v14698_v27 = vld [vmem:[#allocation9 + $0xc28] ss:$16 sps:$4 sm:$0xff]  }
 0xa4f   : > { %6290 = vmatpush1.bf16.msra.mxu1 %v14650_v39  ;;  %v14703_v39 = vld [vmem:[#allocation9 + $0xa0c] ss:$16 sps:$4 sm:$0xff]  }
 0xa50   : > { %6263 = vmatpush2.bf16.msra.mxu0 %v14647_v24  ;;  %6291 = vmatprep.subr.bf16.mxu1 %v14658_v60  ;;  %v14706_v24 = vld [vmem:[#allocation9 + $0xc0c] ss:$16 sps:$4 sm:$0xff]   ;;  %v14701_v60 = vld [vmem:[#allocation9 + $0xa08] ss:$16 sps:$4 sm:$0xff]  }
 0xa51   : > { %6264 = vmatprep.subr.bf16.mxu0 %v14655_v35  ;;  %v14704_v35 = vld [vmem:[#allocation9 + $0xc08] ss:$16 sps:$4 sm:$0xff]  }
 0xa53   : > { %6292 = vmatpush1.bf16.msra.mxu1 %v14656_v55  ;;  %v14709_v55 = vld [vmem:[#allocation9 + $0x9ec] ss:$16 sps:$4 sm:$0xff]  }
 0xa54   : > { %6265 = vmatpush2.bf16.msra.mxu0 %v14653_v47  ;;  %6293 = vmatprep.subr.bf16.mxu1 %v14664_v53  ;;  %v14712_v47 = vld [vmem:[#allocation9 + $0xbec] ss:$16 sps:$4 sm:$0xff]   ;;  %v14707_v53 = vld [vmem:[#allocation9 + $0x9e8] ss:$16 sps:$4 sm:$0xff]  }
 0xa55   : > { %6266 = vmatprep.subr.bf16.mxu0 %v14661_v54  ;;  %v14715_v54 = vld [vmem:[#allocation9 + $0x9cc] ss:$16 sps:$4 sm:$0xff]  }
 0xa57   : > { %6294 = vmatpush1.bf16.msra.mxu1 %v14662_v57  ;;  %v14718_v57 = vld [vmem:[#allocation9 + $0xbcc] ss:$16 sps:$4 sm:$0xff]  }
 0xa58   : > { %6267 = vmatpush2.bf16.msra.mxu0 %v14659_v62  ;;  %6295 = vmatprep.subr.bf16.mxu1 %v14670_v63  ;;  %v14716_v62 = vld [vmem:[#allocation9 + $0xbc8] ss:$16 sps:$4 sm:$0xff]   ;;  %v14721_v63 = vld [vmem:[#allocation9 + $0x9ac] ss:$16 sps:$4 sm:$0xff]  }
 0xa59   : > { %6268 = vmatprep.subr.bf16.mxu0 %v14667_v1  ;;  %v14724_v1 = vld [vmem:[#allocation9 + $0xbac] ss:$16 sps:$4 sm:$0xff]  }
 0xa5b   : > { %6296 = vmatpush1.bf16.msra.mxu1 %v14668_v2  ;;  %v14719_v2 = vld [vmem:[#allocation9 + $0x9a8] ss:$16 sps:$4 sm:$0xff]  }
 0xa5c   : > { %6269 = vmatpush2.bf16.msra.mxu0 %v14665_v4  ;;  %6297 = vmatprep.subr.bf16.mxu1 %v14676_v5  ;;  %v14722_v4 = vld [vmem:[#allocation9 + $0xba8] ss:$16 sps:$4 sm:$0xff]   ;;  %v14727_v5 = vld [vmem:[#allocation9 + $0x98c] ss:$16 sps:$4 sm:$0xff]  }
 0xa5d   : > { %6270 = vmatprep.subr.bf16.mxu0 %v14673_v7  ;;  %v14730_v7 = vld [vmem:[#allocation9 + $0xb8c] ss:$16 sps:$4 sm:$0xff]  }
 0xa5f   : > { %6298 = vmatpush1.bf16.msra.mxu1 %v14674_v10  ;;  %v14725_v10 = vld [vmem:[#allocation9 + $0x988] ss:$16 sps:$4 sm:$0xff]  }
 0xa60   : > { %6271 = vmatpush2.bf16.msra.mxu0 %v14671_v12  ;;  %6299 = vmatprep.subr.bf16.mxu1 %v14682_v59  ;;  %v14728_v12 = vld [vmem:[#allocation9 + $0xb88] ss:$16 sps:$4 sm:$0xff]   ;;  %v14733_v59 = vld [vmem:[#allocation9 + $0x96c] ss:$16 sps:$4 sm:$0xff]  }
 0xa61   : > { %6272 = vmatprep.subr.bf16.mxu0 %v14679_v15  ;;  %v14736_v15 = vld [vmem:[#allocation9 + $0xb6c] ss:$16 sps:$4 sm:$0xff]  }
 0xa62   : > { %v4733_v32 = vpop.f32.mrf.mxu0  ;;  %v4774_v33 = vpop.f32.mrf.mxu1 }
 0xa63   : > { %v4734_v14 = vadd.f32 %v4733_v32, %v4195_v44  ;;  %6300 = vmatpush1.bf16.msra.mxu1 %v14680_v17  ;;  %v14734_v17 = vld [vmem:[#allocation9 + $0xb68] ss:$16 sps:$4 sm:$0xff]   ;;  %v14745_v32 = vld [vmem:[#allocation9 + $0xb2c] ss:$16 sps:$4 sm:$0xff]  }
 0xa64   : > { %6273 = vmatpush2.bf16.msra.mxu0 %v14677_v19  ;;  %v4735_v49 = vpop.f32.mrf.mxu0  ;;  %v4776_v3 = vpop.f32.mrf.mxu1  ;;  %6315 = vmatprep.subr.bf16.mxu1 %v14688_v51  ;;  %v14742_v19 = vld [vmem:[#allocation9 + $0xc6c] ss:$16 sps:$4 sm:$0xff]   ;;  %v14740_v44 = vld [vmem:[#allocation9 + $0xc68] ss:$16 sps:$4 sm:$0xff]  }
 0xa65   : > { %v16833_v29 = vadd.f32 %v4774_v33, %v4734_v14  ;;  %v4736_v42 = vadd.f32 %v4735_v49, %v4196_v56  ;;  %6274 = vmatprep.subr.bf16.mxu0 %v14685_v41  ;;  %v14737_v41 = vld [vmem:[#allocation9 + $0xb48] ss:$16 sps:$4 sm:$0xff]   ;;  %v14748_v56 = vld [vmem:[#allocation9 + $0xb0c] ss:$16 sps:$4 sm:$0xff]  }
 0xa66   : > { %v4737_v46 = vpop.f32.mrf.mxu0  ;;  %v4778_v22 = vpop.f32.mrf.mxu1 }
 0xa67   : > { %v16835_v31 = vadd.f32 %v4776_v3, %v4736_v42  ;;  %6316 = vmatpush2.bf16.msra.mxu1 %v14686_v20  ;;  %v14743_v20 = vld [vmem:[#allocation9 + $0xb28] ss:$16 sps:$4 sm:$0xff]   ;;  %v16846_v3 = vld [vmem:[#allocation4 + $0x78] sm:$0xff]   ;;  %v14754_v22 = vld [vmem:[#allocation9 + $0xacc] ss:$16 sps:$4 sm:$0xff]  }
 0xa68   : > { %6275 = vmatpush2.bf16.msra.mxu0 %v14683_v34  ;;  %v4738_v30 = vpop.f32.mrf.mxu0  ;;  %v4779_v38 = vpop.f32.mrf.mxu1  ;;  %6326 = vmatprep.subr.bf16.mxu1 %v14691_v50  ;;  %v14746_v34 = vld [vmem:[#allocation9 + $0xb08] ss:$16 sps:$4 sm:$0xff]   ;;  %v14751_v50 = vld [vmem:[#allocation9 + $0xaec] ss:$16 sps:$4 sm:$0xff]   ;;  %v16850_v42 = vld [vmem:[#allocation4 + $0x38] sm:$0xff]  }
 0xa69   : > { %6367 = vmatprep.subr.bf16.mxu0 %v14694_v37  ;;  %v16853_v37 = vld [vmem:[#allocation4 + $0x70] sm:$0xff]  }
 0xa6a   : > { %6318 = vmatmul.mubr.bf16.vlgmr.msra.gmra.mxu1 %v16778_v58  ;;  %v14749_v46 = vld [vmem:[#allocation9 + $0xae8] ss:$16 sps:$4 sm:$0xff]   ;;  %v14757_v38 = vld [vmem:[#allocation9 + $0xaac] ss:$16 sps:$4 sm:$0xff]  }
 0xa6b   : > { %6277 = vmatmul.mubr.bf16.vlgmr.msra.gmra.mxu0 %v16776_v13  ;;  %6327 = vmatpush1.bf16.msra.mxu1 %v14689_v23  ;;  %v16856_v23 = vld [vmem:[#allocation4 + $0x30] sm:$0xff]  }
 0xa6c   : > { %6358 = vmatprep.mubr.bf16.mxu1 %v16772_v8  ;;  %6368 = vmatpush1.bf16.msra.mxu0 %v14692_v43  ;;  %v14710_v8 = vld [vmem:[#allocation9 + $0xbe8] ss:$16 sps:$4 sm:$0xff]   ;;  %v16862_v43 = vld [vmem:[#allocation4 + $0x28] sm:$0xff]  }
 0xa6d   : > { %12846 = vmatprep.mubr.msk.bf16.mxu0 %vm1581_vm2, %v16774_v9  ;;  %6328 = vmatprep.subr.bf16.mxu1 %v14697_v48  ;;  %v14713_v9 = vld [vmem:[#allocation9 + $0x9c8] ss:$16 sps:$4 sm:$0xff]  }
 0xa6e   : > { %6369 = vmatprep.subr.bf16.mxu0 %v14700_v6  ;;  %v14752_v30 = vld [vmem:[#allocation9 + $0xac8] ss:$16 sps:$4 sm:$0xff]  }
 0xa6f   : > { %6329 = vmatpush1.bf16.msra.mxu1 %v14695_v11  ;;  %v16865_v48 = vld [vmem:[#allocation4 + $0x60] sm:$0xff]  }
 0xa70   : > { %6370 = vmatpush1.bf16.msra.mxu0 %v14698_v27  ;;  %6330 = vmatprep.subr.bf16.mxu1 %v14703_v39  ;;  %v14755_v6 = vld [vmem:[#allocation9 + $0xaa8] ss:$16 sps:$4 sm:$0xff]   ;;  %v14760_v11 = vld [vmem:[#allocation9 + $0xa8c] ss:$16 sps:$4 sm:$0xff]   ;;  %v16871_v39 = vld [vmem:[#allocation4 + $0x58] sm:$0xff]  }
 0xa71   : > { %6371 = vmatprep.subr.bf16.mxu0 %v14706_v24  ;;  %v16868_v27 = vld [vmem:[#allocation4 + $0x20] sm:$0xff]   ;;  %v4193_v24 = vrot.slane %v16819_v36, 7 }
 0xa72   : > { %v14761_v36 = vld [vmem:[#allocation9 + $0xa68] ss:$16 sps:$4 sm:$0xff]  }
 0xa73   : > { %6331 = vmatpush1.bf16.msra.mxu1 %v14701_v60  ;;  %v14758_v60 = vld [vmem:[#allocation9 + $0xa88] ss:$16 sps:$4 sm:$0xff]  }
 0xa74   : > { %6372 = vmatpush1.bf16.msra.mxu0 %v14704_v35  ;;  %6332 = vmatprep.subr.bf16.mxu1 %v14709_v55  ;;  %v4194_v35 = vrot.slane %v16822_v40, 7  ;;  %v14763_v55 = vld [vmem:[#allocation9 + $0xa6c] ss:$16 sps:$4 sm:$0xff]  }
 0xa75   : > { %6373 = vmatprep.subr.bf16.mxu0 %v14712_v47  ;;  %v16876_v47 = vld [vmem:[#allocation4 + $0x18] sm:$0xff]  }
 0xa76   : > { %v4198_v40 = vsel %vm739_vm0, %v4194_v35, 0.0 }
 0xa77   : > { %6333 = vmatpush1.bf16.msra.mxu1 %v14707_v53  ;;  %v16879_v53 = vld [vmem:[#allocation4 + $0x50] sm:$0xff]  }
 0xa78   : > { %6374 = vmatpush1.bf16.msra.mxu0 %v14710_v8  ;;  %6334 = vmatprep.subr.bf16.mxu1 %v14715_v54  ;;  %v4197_v8 = vsel %vm739_vm0, %v4193_v24, 0.0 }
 0xa79   : > { %6375 = vmatprep.subr.bf16.mxu0 %v14718_v57 }
 0xa7b   : > { %6335 = vmatpush1.bf16.msra.mxu1 %v14713_v9 }
 0xa7c   : > { %6376 = vmatpush1.bf16.msra.mxu0 %v14716_v62  ;;  %6336 = vmatprep.subr.bf16.mxu1 %v14721_v63  ;;  %v16886_v62 = vld [vmem:[#allocation4 + $0x10] sm:$0xff]  }
 0xa7d   : > { %6377 = vmatprep.subr.bf16.mxu0 %v14724_v1 }
 0xa7f   : > { %6337 = vmatpush1.bf16.msra.mxu1 %v14719_v2  ;;  %v16892_v2 = vld [vmem:[#allocation4 + $0x48] sm:$0xff]  }
 0xa80   : > { %6378 = vmatpush1.bf16.msra.mxu0 %v14722_v4  ;;  %6338 = vmatprep.subr.bf16.mxu1 %v14727_v5 }
 0xa81   : > { %6379 = vmatprep.subr.bf16.mxu0 %v14730_v7 }
 0xa83   : > { %6339 = vmatpush1.bf16.msra.mxu1 %v14725_v10  ;;  %v16898_v10 = vld [vmem:[#allocation4 + $0x8] sm:$0xff]  }
 0xa84   : > { %6380 = vmatpush1.bf16.msra.mxu0 %v14728_v12  ;;  %6340 = vmatprep.subr.bf16.mxu1 %v14733_v59  ;;  %v16902_v12 = vld [vmem:[#allocation4 + $0x40] sm:$0xff]   ;;  %v16906_v59 = vld [vmem:[#allocation4 + $0xb8] sm:$0xff]  }
 0xa85   : > { %6381 = vmatprep.subr.bf16.mxu0 %v14736_v15  ;;  %v16909_v15 = vld [vmem:[#allocation4] sm:$0xff]  }
 0xa87   : > { %v16842_v51 = vpop.f32.mrf.mxu0  ;;  %6341 = vmatpush1.bf16.msra.mxu1 %v14731_v16  ;;  %v16913_v16 = vld [vmem:[#allocation6 + $0xe4] ss:$16 sps:$4 sm:$0xff]  }
 0xa88   : > { %6382 = vmatpush1.bf16.msra.mxu0 %v14734_v17  ;;  %6342 = vmatprep.subr.bf16.mxu1 %v14739_v18  ;;  %v16916_v17 = vld [vmem:[#allocation4 + $0xb0] sm:$0xff]   ;;  %v16924_v18 = vld [vmem:[#allocation4 + $0xa0] sm:$0xff]  }
 0xa89   : > { %v16844_v33 = vpop.f32.mrf.mxu0  ;;  %6397 = vmatprep.subr.bf16.mxu0 %v14742_v19  ;;  %v16928_v19 = vld [vmem:[#allocation4 + $0x98] sm:$0xff]  }
 0xa8b   : > { %v4860_v14 = vpop.f32.mrf.mxu0  ;;  %6343 = vmatpush2.bf16.msra.mxu1 %v14737_v41  ;;  %v16936_v41 = vld [vmem:[#allocation4 + $0x88] sm:$0xff]  }
 0xa8c   : > { %6398 = vmatpush2.bf16.msra.mxu0 %v14740_v44  ;;  %6344 = vmatprep.subr.bf16.mxu1 %v14745_v32 }
 0xa8d   : > { %v4861_v49 = vpop.f32.mrf.mxu0  ;;  %13557 = vmatprep.subr.bf16.mxu0 %v16846_v3 }
 0xa8f   : > { %6400 = vmatmul.mubr.bf16.vlgmr.msra.gmra.mxu0 %v16778_v58  ;;  %6345 = vmatpush2.bf16.msra.mxu1 %v14743_v20  ;;  %v16859_v58 = vld [vmem:[#allocation4 + $0x68] sm:$0xff]  }
 0xa90   : > { %6346 = vmatprep.subr.bf16.mxu1 %v14748_v56  ;;  %13558 = vmatpush3.bf16.msra.mxu0 %v16850_v42 }
 0xa91   : > { %13559 = vmatprep.subr.bf16.mxu0 %v16853_v37 }
 0xa93   : > { %6347 = vmatpush2.bf16.msra.mxu1 %v14746_v34 }
 0xa94   : > { %6348 = vmatprep.subr.bf16.mxu1 %v14751_v50  ;;  %13560 = vmatpush3.bf16.msra.mxu0 %v16856_v23 }
 0xa95   : > { %13561 = vmatprep.subr.bf16.mxu0 %v16859_v58 }
 0xa97   : > { %6349 = vmatpush2.bf16.msra.mxu1 %v14749_v46 }
 0xa98   : > { %6350 = vmatprep.subr.bf16.mxu1 %v14754_v22  ;;  %13562 = vmatpush3.bf16.msra.mxu0 %v16862_v43  ;;  %v16945_v22 = vld [vmem:[#allocation4 + $0xc0] sm:$0xff]  }
 0xa99   : > { %13563 = vmatprep.subr.bf16.mxu0 %v16865_v48 }
 0xa9b   : > { %6351 = vmatpush2.bf16.msra.mxu1 %v14752_v30 }
 0xa9c   : > { %6352 = vmatprep.subr.bf16.mxu1 %v14757_v38  ;;  %13564 = vmatpush3.bf16.msra.mxu0 %v16868_v27 }
 0xa9d   : > { %13565 = vmatprep.subr.bf16.mxu0 %v16871_v39 }
 0xa9f   : > { %6353 = vmatpush2.bf16.msra.mxu1 %v14755_v6 }
 0xaa0   : > { %6354 = vmatprep.subr.bf16.mxu1 %v14760_v11  ;;  %13566 = vmatpush3.bf16.msra.mxu0 %v16876_v47  ;;  %v16950_v11 = vld [vmem:[#allocation6 + $0xec] ss:$16 sps:$4 sm:$0xff]  }
 0xaa1   : > { %13567 = vmatprep.subr.bf16.mxu0 %v16879_v53 }
 0xaa2   : > { %v4815_v54 = vpop.f32.mrf.mxu1 }
 0xaa3   : > { %v4816_v57 = vadd.f32 %v4815_v54, %v4197_v8  ;;  %6355 = vmatpush2.bf16.msra.mxu1 %v14758_v60 }
 0xaa4   : > { %v4817_v9 = vpop.f32.mrf.mxu1  ;;  %6356 = vmatprep.subr.bf16.mxu1 %v14763_v55  ;;  %13568 = vmatpush3.bf16.msra.mxu0 %v16886_v62 }
 0xaa5   : > { %v16890_v63 = vadd.f32 %v16842_v51, %v4816_v57  ;;  %v4818_v1 = vadd.f32 %v4817_v9, %v4198_v40  ;;  %13569 = vmatprep.subr.bf16.mxu0 %v16892_v2  ;;  %v16932_v51 = vld [vmem:[#allocation4 + $0x90] sm:$0xff]  }
 0xaa6   : > { %v4819_v4 = vpop.f32.mrf.mxu1 }
 0xaa7   : > { %v16896_v5 = vadd.f32 %v16844_v33, %v4818_v1  ;;  %6357 = vmatpush2.bf16.msra.mxu1 %v14761_v36  ;;  %v16940_v33 = vld [vmem:[#allocation4 + $0x80] sm:$0xff]  }
 0xaa8   : > { %v4820_v7 = vpop.f32.mrf.mxu1  ;;  %13570 = vmatpush3.bf16.msra.mxu0 %v16898_v10  ;;  %6503 = vmatprep.subr.bf16.mxu1 %v17823_v45 }
 0xaa9   : > { %13571 = vmatprep.subr.bf16.mxu0 %v16902_v12 }
 0xaaa   : > { %6359 = vmatmul.mubr.bf16.vlgmr.msra.gmra.mxu1 %v16776_v13  ;;  %v16920_v13 = vld [vmem:[#allocation4 + $0xa8] sm:$0xff]  }
 0xaab   : > { %6504 = vmatpush1.bf16.msra.mxu1 %v16906_v59 }
 0xaac   : > { %13572 = vmatpush3.bf16.msra.mxu0 %v16909_v15  ;;  %6505 = vmatprep.subr.bf16.mxu1 %v17823_v45 }
 0xaad   : > { %6544 = vmatprep.subr.bf16.mxu0 %v16913_v16 }
 0xaaf   : > { %6506 = vmatpush1.bf16.msra.mxu1 %v16916_v17 }
 0xab0   : > { %6507 = vmatprep.subr.bf16.mxu1 %v17823_v45 }
 0xab3   : > { %6508 = vmatpush1.bf16.msra.mxu1 %v16920_v13 }
 0xab4   : > { %6509 = vmatprep.subr.bf16.mxu1 %v17823_v45 }
 0xab7   : > { %6510 = vmatpush1.bf16.msra.mxu1 %v16924_v18 }
 0xab8   : > { %6511 = vmatprep.subr.bf16.mxu1 %v17823_v45 }
 0xabb   : > { %6512 = vmatpush1.bf16.msra.mxu1 %v16928_v19 }
 0xabc   : > { %6513 = vmatprep.subr.bf16.mxu1 %v17823_v45 }
 0xabf   : > { %6514 = vmatpush1.bf16.msra.mxu1 %v16932_v51 }
 0xac0   : > { %6515 = vmatprep.subr.bf16.mxu1 %v17823_v45 }
 0xac3   : > { %6516 = vmatpush1.bf16.msra.mxu1 %v16936_v41 }
 0xac4   : > { %6517 = vmatprep.subr.bf16.mxu1 %v17823_v45 }
 0xac6   : > { %v5539_v44 = vpop.f32.mrf.mxu1 }
 0xac7   : > { %v5498_v32 = vpop.f32.mrf.mxu0  ;;  %6518 = vmatpush1.bf16.msra.mxu1 %v16940_v33 }
 0xac8   : > { %v5540_v14 = vadd.f32 %v5539_v44, %v5498_v32  ;;  %v5541_v20 = vpop.f32.mrf.mxu1  ;;  %6533 = vmatprep.subr.bf16.mxu1 %v17823_v45 }
 0xac9   : > { %v5500_v56 = vpop.f32.mrf.mxu0 }
 0xaca   : > { %v5628_v49 = vrot.slane %v5540_v14, 6  ;;  %v5542_v34 = vadd.f32 %v5541_v20, %v5500_v56  ;;  %v5543_v50 = vpop.f32.mrf.mxu1 }
 0xacb   : > { %v5502_v46 = vpop.f32.mrf.mxu0  ;;  %6534 = vmatpush2.bf16.msra.mxu1 %v16945_v22  ;;  %v16968_v50 = vsub.s32 5, %v17863_v21 }
 0xacc   : > { %v5635_v30 = vsel %vm5632_vm3, %v5628_v49, 0.0  ;;  %v5629_v38 = vrot.slane %v5542_v34, 6  ;;  %v5544_v6 = vpop.f32.mrf.mxu1  ;;  %6585 = vmatprep.subr.bf16.mxu1 %v16950_v11 }
 0xacd   : > { %v5639_v24 = vadd.f32 %v5635_v30, %v16833_v29  ;;  %v5503_v60 = vpop.f32.mrf.mxu0  ;;  %17870 = vst [vmem:[#allocation35_spill] sm:$0xff] %v16968_v50 }
 0xace   : > { %v5636_v35 = vsel %vm5632_vm3, %v5629_v38, 0.0 }
 0xacf   : > { %v5640_v55 = vadd.f32 %v5636_v35, %v16835_v31  ;;  %v15714_v35 = vld [vmem:[#allocation10] sm:$0x3f] }
 0xaeb   : > { %v5621_v8 = vpop.f32.mrf.mxu0 }
 0xaed   : > { %v5623_v54 = vpop.f32.mrf.mxu0 }
 0xaef   : > { %v5625_v57 = vpop.f32.mrf.mxu0 }
 0xaf1   : > { %v5626_v36 = vpop.f32.mrf.mxu0 }
 0xb06   : > { %v5580_v40 = vpop.f32.mrf.mxu1 }
 0xb07   : > { %v5622_v9 = vadd.f32 %v5621_v8, %v5580_v40  ;;  %v6426_v8 = vrot.slane %v15714_v35, %v16968_v50  ;;  %v17003_v35 = vld [vmem:[#allocation6 + $0x84] ss:$16 sps:$4 sm:$0xff]  }
 0xb08   : > { %v5582_v1 = vpop.f32.mrf.mxu1 }
 0xb09   : > { %v5630_v4 = vrot.slane %v5622_v9, 6  ;;  %v5624_v7 = vadd.f32 %v5623_v54, %v5582_v1  ;;  %v15715_v9 = vld [vmem:[#allocation10 + $0x8] sm:$0x3f] }
 0xb0a   : > { %v5584_v44 = vpop.f32.mrf.mxu1  ;;  %v6430_v1 = vrot.slane %v15715_v9, %v16968_v50  ;;  %v17021_v9 = vld [vmem:[#allocation6 + $0x24] ss:$16 sps:$4 sm:$0xff]  }
 0xb0b   : > { %v5637_v32 = vsel %vm5632_vm3, %v5630_v4, 0.0  ;;  %v5631_v29 = vrot.slane %v5624_v7, 6  ;;  %17872 = vst [vmem:[#allocation39_spill] sm:$0xff] %v17021_v9 }
 0xb0c   : > { %v16960_v14 = vadd.f32 %v5637_v32, %v16890_v63  ;;  %v5585_v20 = vpop.f32.mrf.mxu1 }
 0xb0d   : > { %v5638_v31 = vsel %vm5632_vm3, %v5631_v29, 0.0 }
 0xb0e   : > { %v16965_v56 = vadd.f32 %v5638_v31, %v16896_v5 }
 0xb2a   : > { %v6319_v49 = vpop.f32.mrf.mxu1 }
 0xb2b   : > { %v6278_v34 = vpop.f32.mrf.mxu0 }
 0xb2c   : > { %v6320_v46 = vadd.f32 %v6319_v49, %v6278_v34  ;;  %v6321_v30 = vpop.f32.mrf.mxu1 }
 0xb2d   : > { %v6280_v38 = vpop.f32.mrf.mxu0 }
 0xb2e   : > { %v6408_v6 = vrot.slane %v6320_v46, 5  ;;  %v6322_v63 = vadd.f32 %v6321_v30, %v6280_v38  ;;  %v6323_v60 = vpop.f32.mrf.mxu1  ;;  %v16991_v30 = vld [vmem:[#allocation6 + $0xc4] ss:$16 sps:$4 sm:$0xff]  }
 0xb2f   : > { %v6282_v54 = vpop.f32.mrf.mxu0  ;;  %v16997_v38 = vld [vmem:[#allocation6 + $0xa4] ss:$16 sps:$4 sm:$0xff]   ;;  %v17000_v60 = vld [vmem:[#allocation6 + $0xa0] ss:$16 sps:$4 sm:$0xff]  }
 0xb30   : > { %v6415_v5 = vsel %vm6412_vm4, %v6408_v6, 0.0  ;;  %v6409_v57 = vrot.slane %v6322_v63, 5  ;;  %v6324_v36 = vpop.f32.mrf.mxu1  ;;  %v17006_v54 = vld [vmem:[#allocation6 + $0x80] ss:$16 sps:$4 sm:$0xff]  }
 0xb31   : > { %v6419_v40 = vadd.f32 %v6415_v5, %v5639_v24  ;;  %v6283_v4 = vpop.f32.mrf.mxu0  ;;  %v17009_v5 = vld [vmem:[#allocation6 + $0x64] ss:$16 sps:$4 sm:$0xff]  }
 0xb32   : > { %v6416_v7 = vsel %vm6412_vm4, %v6409_v57, 0.0  ;;  %v17012_v57 = vld [vmem:[#allocation6 + $0x60] ss:$16 sps:$4 sm:$0xff]   ;;  %v17015_v36 = vld [vmem:[#allocation6 + $0x44] ss:$16 sps:$4 sm:$0xff]  }
 0xb33   : > { %v6439_v44 = vadd.f32 %v6426_v8, %v6419_v40  ;;  %v6420_v32 = vadd.f32 %v6416_v7, %v5640_v55  ;;  %v16987_v55 = vld [vmem:[#allocation6 + $0xe0] ss:$16 sps:$4 sm:$0xff]   ;;  %v17027_v4 = vld [vmem:[#allocation6 + $0x4] ss:$16 sps:$4 sm:$0xff]  }
 0xb34   : > { %v17018_v40 = vld [vmem:[#allocation6 + $0x40] ss:$16 sps:$4 sm:$0xff]   ;;  %17874 = vst [vmem:[#allocation22_spill] sm:$0xff] %v17027_v4 }
 0xb35   : > { %15601 = vtanh.f32 %v6439_v44  ;;  %v6440_v29 = vadd.f32 %v6430_v1, %v6420_v32  ;;  %17871 = vst [vmem:[#allocation37_spill] sm:$0xff] %v17018_v40  ;;  %v17024_v1 = vld [vmem:[#allocation6 + $0x20] ss:$16 sps:$4 sm:$0xff]  }
 0xb36   : > { %17873 = vst [vmem:[#allocation41_spill] sm:$0xff] %v17024_v1  ;;  %v17030_v7 = vld [vmem:[#allocation6] ss:$16 sps:$4 sm:$0xff]  }
 0xb37   : > { %15603 = vtanh.f32 %v6440_v29  ;;  %17875 = vst [vmem:[#allocation23_spill] sm:$0xff] %v17030_v7 }
 0xb42   : > { %v15602_v20 = vpop.eup %15601 }
 0xb43   : > { %v16978_v49 = vadd.f32 %v15602_v20, %v16592_v0 }
 0xb44   : > { %v15604_v31 = vpop.eup %15603 }
 0xb45   : > { %v16981_v34 = vadd.f32 %v15604_v31, %v16595_v26  ;;  %v6456_v46 = vpack.c.bf16 %v16978_v49, %v16978_v49  ;;  %v16994_v26 = vld [vmem:[#allocation6 + $0xc0] ss:$16 sps:$4 sm:$0xff]  }
 0xb47   : > { %v6457_v24 = vpack.c.bf16 %v16981_v34, %v16981_v34 }
 0xb49   : > { %6495 = vmatprep.mubr.bf16.mxu0 %v6457_v24  ;;  %v15731_v24 = vld [vmem:[#allocation10 + $0x10] sm:$0x3f] }
 0xb4a   : > { %6496 = vmatmul.mubr.bf16.vlgmr.msra.gmra.mxu0 %v6456_v46  ;;  %v6434_v46 = vrot.slane %v15731_v24, %v16968_v50  ;;  %v17075_v24 = vld [vmem:[#allocation6 + $0x6c] ss:$16 sps:$4 sm:$0xff]  }
 0xb4b   : > { %6545 = vmatpush1.bf16.msra.mxu0 %v16987_v55  ;;  %6576 = vmatprep.mubr.bf16.mxu0 %v17823_v45 }
 0xb4c   : > { %6546 = vmatprep.subr.bf16.mxu0 %v16991_v30 }
 0xb4f   : > { %v6401_v0 = vpop.f32.mrf.mxu0  ;;  %6547 = vmatpush1.bf16.msra.mxu0 %v16994_v26 }
 0xb50   : > { %6548 = vmatprep.subr.bf16.mxu0 %v16997_v38 }
 0xb51   : > { %v6403_v6 = vpop.f32.mrf.mxu0 }
 0xb53   : > { %v6405_v63 = vpop.f32.mrf.mxu0  ;;  %6549 = vmatpush1.bf16.msra.mxu0 %v17000_v60 }
 0xb54   : > { %6550 = vmatprep.subr.bf16.mxu0 %v17003_v35 }
 0xb55   : > { %v6406_v8 = vpop.f32.mrf.mxu0 }
 0xb57   : > { %6551 = vmatpush1.bf16.msra.mxu0 %v17006_v54 }
 0xb58   : > { %6552 = vmatprep.subr.bf16.mxu0 %v17009_v5 }
 0xb5b   : > { %6553 = vmatpush1.bf16.msra.mxu0 %v17012_v57 }
 0xb5c   : > { %6554 = vmatprep.subr.bf16.mxu0 %v17015_v36 }
 0xb5f   : > { %6555 = vmatpush1.bf16.msra.mxu0 %v17018_v40 }
 0xb60   : > { %6556 = vmatprep.subr.bf16.mxu0 %v17021_v9 }
 0xb63   : > { %6557 = vmatpush1.bf16.msra.mxu0 %v17024_v1 }
 0xb64   : > { %6558 = vmatprep.subr.bf16.mxu0 %v17027_v4  ;;  %v15732_v4 = vld [vmem:[#allocation10 + $0x18] sm:$0x3f] }
 0xb67   : > { %6559 = vmatpush1.bf16.msra.mxu0 %v17030_v7  ;;  %v6438_v7 = vrot.slane %v15732_v4, %v16968_v50  ;;  %v17066_v4 = vld [vmem:[#allocation6 + $0xa8] ss:$16 sps:$4 sm:$0xff]  }
 0xb68   : > { %13579 = vmatprep.subr.bf16.mxu0 %v16846_v3 }
 0xb6a   : > { %v6360_v44 = vpop.f32.mrf.mxu1 }
 0xb6b   : > { %v6402_v32 = vadd.f32 %v6401_v0, %v6360_v44 }
 0xb6c   : > { %v6362_v29 = vpop.f32.mrf.mxu1 }
 0xb6d   : > { %v6410_v20 = vrot.slane %v6402_v32, 5  ;;  %v6404_v31 = vadd.f32 %v6403_v6, %v6362_v29 }
 0xb6e   : > { %v6364_v63 = vpop.f32.mrf.mxu1 }
 0xb6f   : > { %v6417_v8 = vsel %vm6412_vm4, %v6410_v20, 0.0  ;;  %v6411_v52 = vrot.slane %v6404_v31, 5  ;;  %v17072_v31 = vld [vmem:[#allocation6 + $0x88] ss:$16 sps:$4 sm:$0xff]   ;;  %v17081_v63 = vld [vmem:[#allocation6 + $0x4c] ss:$16 sps:$4 sm:$0xff]  }
 0xb70   : > { %v6421_v61 = vadd.f32 %v6417_v8, %v16960_v14  ;;  %v6365_v1 = vpop.f32.mrf.mxu1  ;;  %17877 = vst [vmem:[#allocation26_spill] sm:$0xff] %v17081_v63  ;;  %v17084_v8 = vld [vmem:[#allocation6 + $0x48] ss:$16 sps:$4 sm:$0xff]  }
 0xb71   : > { %v6418_v3 = vsel %vm6412_vm4, %v6411_v52, 0.0  ;;  %17878 = vst [vmem:[#allocation28_spill] sm:$0xff] %v17084_v8 }
 0xb72   : > { %v6441_v0 = vadd.f32 %v6434_v46, %v6421_v61  ;;  %v6422_v6 = vadd.f32 %v6418_v3, %v16965_v56  ;;  %v17053_v61 = vld [vmem:[#allocation6 + $0xe8] ss:$16 sps:$4 sm:$0xff]   ;;  %v17063_v56 = vld [vmem:[#allocation6 + $0xac] ss:$16 sps:$4 sm:$0xff]  }
 0xb73   : > { %v17078_v46 = vld [vmem:[#allocation6 + $0x68] ss:$16 sps:$4 sm:$0xff]   ;;  %v17087_v3 = vld [vmem:[#allocation6 + $0x2c] ss:$16 sps:$4 sm:$0xff]  }
 0xb74   : > { %15605 = vtanh.f32 %v6441_v0  ;;  %v6442_v44 = vadd.f32 %v6438_v7, %v6422_v6  ;;  %v17069_v7 = vld [vmem:[#allocation6 + $0x8c] ss:$16 sps:$4 sm:$0xff]   ;;  %17876 = vst [vmem:[#allocation24_spill] sm:$0xff] %v17078_v46  ;;  %17879 = vst [vmem:[#allocation30_spill] sm:$0xff] %v17087_v3  ;;  %v17090_v0 = vld [vmem:[#allocation6 + $0x28] ss:$16 sps:$4 sm:$0xff]  }
 0xb75   : > { %17880 = vst [vmem:[#allocation32_spill] sm:$0xff] %v17090_v0  ;;  %v17093_v6 = vld [vmem:[#allocation6 + $0xc] ss:$16 sps:$4 sm:$0xff]  }
 0xb76   : > { %15607 = vtanh.f32 %v6442_v44  ;;  %17881 = vst [vmem:[#allocation34_spill] sm:$0xff] %v17093_v6  ;;  %v17096_v44 = vld [vmem:[#allocation6 + $0x8] ss:$16 sps:$4 sm:$0xff]  }
 0xb77   : > { %17882 = vst [vmem:[#allocation36_spill] sm:$0xff] %v17096_v44 }
 0xb81   : > { %v15606_v32 = vpop.eup %15605 }
 0xb82   : > { %v17043_v20 = vadd.f32 %v15606_v32, %v16629_v28  ;;  %v17057_v28 = vld [vmem:[#allocation6 + $0xcc] ss:$16 sps:$4 sm:$0xff]  }
 0xb83   : > { %v15608_v29 = vpop.eup %15607 }
 0xb84   : > { %v17046_v14 = vadd.f32 %v15608_v29, %v16632_v25  ;;  %v6458_v52 = vpack.c.bf16 %v17043_v20, %v17043_v20  ;;  %v17060_v25 = vld [vmem:[#allocation6 + $0xc8] ss:$16 sps:$4 sm:$0xff]  }
 0xb86   : > { %v6459_v1 = vpack.c.bf16 %v17046_v14, %v17046_v14 }
 0xb88   : > { %12847 = vmatprep.mubr.msk.bf16.mxu1 %vm1581_vm2, %v6459_v1 }
 0xb89   : > { %6536 = vmatmul.mubr.bf16.vlgmr.msra.gmra.mxu1 %v6458_v52 }
 0xb8a   : > { %6586 = vmatpush1.bf16.msra.mxu1 %v17053_v61  ;;  %6617 = vmatprep.mubr.bf16.mxu1 %v17823_v45 }
 0xb8b   : > { %6587 = vmatprep.subr.bf16.mxu1 %v17057_v28 }
 0xb8e   : > { %6588 = vmatpush1.bf16.msra.mxu1 %v17060_v25 }
 0xb8f   : > { %6589 = vmatprep.subr.bf16.mxu1 %v17063_v56 }
 0xb92   : > { %6590 = vmatpush1.bf16.msra.mxu1 %v17066_v4 }
 0xb93   : > { %6591 = vmatprep.subr.bf16.mxu1 %v17069_v7 }
 0xb96   : > { %6592 = vmatpush1.bf16.msra.mxu1 %v17072_v31 }
 0xb97   : > { %6593 = vmatprep.subr.bf16.mxu1 %v17075_v24 }
 0xb9a   : > { %6594 = vmatpush1.bf16.msra.mxu1 %v17078_v46 }
 0xb9b   : > { %6595 = vmatprep.subr.bf16.mxu1 %v17081_v63 }
 0xb9e   : > { %6596 = vmatpush1.bf16.msra.mxu1 %v17084_v8 }
 0xb9f   : > { %6597 = vmatprep.subr.bf16.mxu1 %v17087_v3 }
 0xba2   : > { %6598 = vmatpush1.bf16.msra.mxu1 %v17090_v0 }
 0xba3   : > { %6599 = vmatprep.subr.bf16.mxu1 %v17093_v6 }
 0xba6   : > { %6600 = vmatpush1.bf16.msra.mxu1 %v17096_v44 }
 0xba7   : > { %6681 = vmatprep.subr.bf16.mxu1 %v17823_v45 }
 0xc0a   : > { %v13573_v32 = vpop.f32.mrf.mxu0 }
 0xc0c   : > { %v13574_v29 = vpop.f32.mrf.mxu0 }
 0xc0d   : > { %v13575_v50 = vadd.f32 %v13574_v29, %v13573_v32 }
 0xc0e   : > { %v13576_v1 = vpop.f32.mrf.mxu0 }
 0xc10   : > { %v13577_v52 = vpop.f32.mrf.mxu0 }
 0xc49   : > { %v6537_v21 = vpop.f32.mrf.mxu1 }
 0xc4a   : > { %v6538_v3 = vadd.f32 %v13575_v50, %v6537_v21  ;;  %v17890_v50 = vld [vmem:[#allocation23_spill] sm:$0xff] }
 0xc4b   : > { %v6539_v9 = vpop.f32.mrf.mxu1 }
 0xc4c   : > { %v6543_v8 = vpack.c.bf16 %v6538_v3, %v6538_v3  ;;  %v14790_v9 = vld [vmem:[#allocation7 + $0x604] ss:$16 sps:$4 sm:$0xff]  }
 0xc4d   : > { %v6540_v0 = vpop.f32.mrf.mxu1 }
 0xc4e   : > { %6577 = vmatmul.mubr.bf16.vlgmr.msra.gmra.mxu0 %v6543_v8  ;;  %6618 = vmatmul.mubr.bf16.vlgmr.msra.gmra.mxu1 %v6543_v8 }
 0xc4f   : > { %v6541_v40 = vpop.f32.mrf.mxu1  ;;  %6682 = vmatpush1.bf16.msra.mxu1 %v16906_v59  ;;  %13580 = vmatpush3.bf16.msra.mxu0 %v16850_v42 }
 0xc50   : > { %6683 = vmatprep.subr.bf16.mxu1 %v17823_v45  ;;  %13581 = vmatprep.subr.bf16.mxu0 %v16853_v37  ;;  %v14766_v40 = vld [vmem:[#allocation7 + $0x404] ss:$16 sps:$4 sm:$0xff]  }
 0xc53   : > { %6684 = vmatpush1.bf16.msra.mxu1 %v16916_v17  ;;  %13582 = vmatpush3.bf16.msra.mxu0 %v16856_v23 }
 0xc54   : > { %6685 = vmatprep.subr.bf16.mxu1 %v17823_v45  ;;  %13583 = vmatprep.subr.bf16.mxu0 %v16859_v58 }
 0xc57   : > { %6686 = vmatpush1.bf16.msra.mxu1 %v16920_v13  ;;  %13584 = vmatpush3.bf16.msra.mxu0 %v16862_v43 }
 0xc58   : > { %6687 = vmatprep.subr.bf16.mxu1 %v17823_v45  ;;  %13585 = vmatprep.subr.bf16.mxu0 %v16865_v48 }
 0xc5b   : > { %6688 = vmatpush1.bf16.msra.mxu1 %v16924_v18  ;;  %13586 = vmatpush3.bf16.msra.mxu0 %v16868_v27  ;;  %v17883_v18 = vld [vmem:[#allocation37_spill] sm:$0xff] }
 0xc5c   : > { %6689 = vmatprep.subr.bf16.mxu1 %v17823_v45  ;;  %13587 = vmatprep.subr.bf16.mxu0 %v16871_v39 }
 0xc5f   : > { %6690 = vmatpush1.bf16.msra.mxu1 %v16928_v19  ;;  %13588 = vmatpush3.bf16.msra.mxu0 %v16876_v47  ;;  %v17884_v19 = vld [vmem:[#allocation28_spill] sm:$0xff] }
 0xc60   : > { %6691 = vmatprep.subr.bf16.mxu1 %v17823_v45  ;;  %13589 = vmatprep.subr.bf16.mxu0 %v16879_v53 }
 0xc63   : > { %6692 = vmatpush1.bf16.msra.mxu1 %v16932_v51  ;;  %13590 = vmatpush3.bf16.msra.mxu0 %v16886_v62  ;;  %v17885_v51 = vld [vmem:[#allocation39_spill] sm:$0xff] }
 0xc64   : > { %6693 = vmatprep.subr.bf16.mxu1 %v17823_v45  ;;  %13591 = vmatprep.subr.bf16.mxu0 %v16892_v2 }
 0xc67   : > { %6694 = vmatpush1.bf16.msra.mxu1 %v16936_v41  ;;  %13592 = vmatpush3.bf16.msra.mxu0 %v16898_v10  ;;  %v17886_v41 = vld [vmem:[#allocation30_spill] sm:$0xff] }
 0xc68   : > { %6695 = vmatprep.subr.bf16.mxu1 %v17823_v45  ;;  %13593 = vmatprep.subr.bf16.mxu0 %v16902_v12 }
 0xc6b   : > { %6696 = vmatpush1.bf16.msra.mxu1 %v16940_v33  ;;  %13594 = vmatpush3.bf16.msra.mxu0 %v16909_v15  ;;  %v17887_v33 = vld [vmem:[#allocation41_spill] sm:$0xff] }
 0xc6c   : > { %6711 = vmatprep.subr.bf16.mxu1 %v17823_v45  ;;  %6723 = vmatprep.subr.bf16.mxu0 %v16913_v16 }
 0xc6f   : > { %6712 = vmatpush2.bf16.msra.mxu1 %v16945_v22  ;;  %v17888_v22 = vld [vmem:[#allocation32_spill] sm:$0xff] }
 0xc70   : > { %6764 = vmatprep.subr.bf16.mxu1 %v16950_v11  ;;  %v17889_v11 = vld [vmem:[#allocation22_spill] sm:$0xff] }
 0xd0e   : > { %v6578_v21 = vpop.f32.mrf.mxu0  ;;  %v6619_v42 = vpop.f32.mrf.mxu1 }
 0xd0f   : > { %v17135_v37 = vsub.f32 %v16978_v49, %v6578_v21  ;;  %v17138_v23 = vsub.f32 %v17043_v20, %v6619_v42 }
 0xd10   : > { %v6580_v58 = vpop.f32.mrf.mxu0  ;;  %v6621_v43 = vpop.f32.mrf.mxu1 }
 0xd11   : > { %v17141_v48 = vsub.f32 %v16981_v34, %v6580_v58  ;;  %v17144_v27 = vsub.f32 %v17046_v14, %v6621_v43  ;;  %v6630_v39 = vpack.c.bf16 %v17135_v37, %v17135_v37  ;;  %v6632_v47 = vpack.c.bf16 %v17138_v23, %v17138_v23 }
 0xd12   : > { %v6582_v53 = vpop.f32.mrf.mxu0  ;;  %v6623_v62 = vpop.f32.mrf.mxu1 }
 0xd13   : > { %v6631_v2 = vpack.c.bf16 %v17141_v48, %v17141_v48  ;;  %v6633_v10 = vpack.c.bf16 %v17144_v27, %v17144_v27  ;;  %v6634_v17 = vmul.bf16 %v6630_v39, %v6630_v39  ;;  %v6636_v13 = vmul.bf16 %v6632_v47, %v6632_v47  ;;  %v14764_v47 = vld [vmem:[#allocation7 + $0x400] ss:$16 sps:$4 sm:$0xff]  }
 0xd14   : > { %v6583_v12 = vpop.f32.mrf.mxu0  ;;  %v6624_v59 = vpop.f32.mrf.mxu1  ;;  %v14788_v53 = vld [vmem:[#allocation7 + $0x600] ss:$16 sps:$4 sm:$0xff]  }
 0xd15   : > { %v6635_v15 = vmul.bf16 %v6631_v2, %v6631_v2  ;;  %v6637_v16 = vmul.bf16 %v6633_v10, %v6633_v10  ;;  %v14769_v2 = vld [vmem:[#allocation7 + $0x3e4] ss:$16 sps:$4 sm:$0xff]   ;;  %v14767_v12 = vld [vmem:[#allocation7 + $0x3e0] ss:$16 sps:$4 sm:$0xff]  }
 0xd16   : > { %v14796_v10 = vld [vmem:[#allocation7 + $0x5e4] ss:$16 sps:$4 sm:$0xff]   ;;  %v14794_v59 = vld [vmem:[#allocation7 + $0x5e0] ss:$16 sps:$4 sm:$0xff]  }
 0xd17   : > { %6673 = vmatprep.mubr.bf16.mxu0 %v6635_v15  ;;  %12848 = vmatprep.mubr.msk.bf16.mxu1 %vm1581_vm2, %v6637_v16  ;;  %v14772_v15 = vld [vmem:[#allocation7 + $0x3c4] ss:$16 sps:$4 sm:$0xff]  }
 0xd18   : > { %6674 = vmatmul.mubr.bf16.vlgmr.msra.gmra.mxu0 %v6634_v17  ;;  %6714 = vmatmul.mubr.bf16.vlgmr.msra.gmra.mxu1 %v6636_v13  ;;  %v14802_v16 = vld [vmem:[#allocation7 + $0x5c4] ss:$16 sps:$4 sm:$0xff]   ;;  %v14770_v17 = vld [vmem:[#allocation7 + $0x3c0] ss:$16 sps:$4 sm:$0xff]  }
 0xd19   : > { %6724 = vmatpush1.bf16.msra.mxu0 %v16987_v55  ;;  %6765 = vmatpush1.bf16.msra.mxu1 %v17053_v61  ;;  %v14800_v13 = vld [vmem:[#allocation7 + $0x5c0] ss:$16 sps:$4 sm:$0xff]  }
 0xd1a   : > { %6725 = vmatprep.subr.bf16.mxu0 %v16991_v30  ;;  %6766 = vmatprep.subr.bf16.mxu1 %v17057_v28 }
 0xd1b   : > { %6755 = vmatprep.mubr.bf16.mxu0 %v17823_v45  ;;  %6796 = vmatprep.mubr.bf16.mxu1 %v17823_v45 }
 0xd1d   : > { %6726 = vmatpush1.bf16.msra.mxu0 %v16994_v26  ;;  %6767 = vmatpush1.bf16.msra.mxu1 %v17060_v25 }
 0xd1e   : > { %6727 = vmatprep.subr.bf16.mxu0 %v16997_v38  ;;  %6768 = vmatprep.subr.bf16.mxu1 %v17063_v56 }
 0xd21   : > { %6728 = vmatpush1.bf16.msra.mxu0 %v17000_v60  ;;  %6769 = vmatpush1.bf16.msra.mxu1 %v17066_v4 }
 0xd22   : > { %6729 = vmatprep.subr.bf16.mxu0 %v17003_v35  ;;  %6770 = vmatprep.subr.bf16.mxu1 %v17069_v7 }
 0xd25   : > { %6730 = vmatpush1.bf16.msra.mxu0 %v17006_v54  ;;  %6771 = vmatpush1.bf16.msra.mxu1 %v17072_v31 }
 0xd26   : > { %6731 = vmatprep.subr.bf16.mxu0 %v17009_v5  ;;  %6772 = vmatprep.subr.bf16.mxu1 %v17075_v24 }
 0xd29   : > { %6732 = vmatpush1.bf16.msra.mxu0 %v17012_v57  ;;  %6773 = vmatpush1.bf16.msra.mxu1 %v17078_v46  ;;  %v14839_v46 = vld [vmem:[#allocation7 + $0x408] ss:$16 sps:$4 sm:$0xff]  }
 0xd2a   : > { %6733 = vmatprep.subr.bf16.mxu0 %v17015_v36  ;;  %6774 = vmatprep.subr.bf16.mxu1 %v17081_v63 }
 0xd2d   : > { %6734 = vmatpush1.bf16.msra.mxu0 %v17883_v18  ;;  %6775 = vmatpush1.bf16.msra.mxu1 %v17884_v19 }
 0xd2e   : > { %6735 = vmatprep.subr.bf16.mxu0 %v17885_v51  ;;  %6776 = vmatprep.subr.bf16.mxu1 %v17886_v41 }
 0xd31   : > { %6736 = vmatpush1.bf16.msra.mxu0 %v17887_v33  ;;  %6777 = vmatpush1.bf16.msra.mxu1 %v17888_v22 }
 0xd32   : > { %6737 = vmatprep.subr.bf16.mxu0 %v17889_v11  ;;  %6778 = vmatprep.subr.bf16.mxu1 %v17093_v6 }
 0xd35   : > { %6738 = vmatpush1.bf16.msra.mxu0 %v17890_v50  ;;  %6779 = vmatpush1.bf16.msra.mxu1 %v17096_v44 }
 0xd36   : > { %7473 = vmatprep.subr.bf16.mxu0 %v14766_v40  ;;  %7514 = vmatprep.subr.bf16.mxu1 %v14790_v9  ;;  %v14775_v40 = vld [vmem:[#allocation7 + $0x3a4] ss:$16 sps:$4 sm:$0xff]  }
 0xd37   : > { %v14808_v9 = vld [vmem:[#allocation7 + $0x5a4] ss:$16 sps:$4 sm:$0xff]  }
 0xdd8   : > { %v13595_v8 = vpop.f32.mrf.mxu0  ;;  %v6715_v3 = vpop.f32.mrf.mxu1 }
 0xdda   : > { %v13596_v0 = vpop.f32.mrf.mxu0  ;;  %v6717_v32 = vpop.f32.mrf.mxu1 }
 0xddb   : > { %v13597_v29 = vadd.f32 %v13596_v0, %v13595_v8  ;;  %v14773_v8 = vld [vmem:[#allocation7 + $0x3a0] ss:$16 sps:$4 sm:$0xff]   ;;  %v14778_v0 = vld [vmem:[#allocation7 + $0x384] ss:$16 sps:$4 sm:$0xff]  }
 0xddc   : > { %v13598_v1 = vpop.f32.mrf.mxu0  ;;  %v6718_v52 = vpop.f32.mrf.mxu1  ;;  %v14814_v32 = vld [vmem:[#allocation7 + $0x584] ss:$16 sps:$4 sm:$0xff]  }
 0xddd   : > { %v6676_v21 = vadd.f32 1e-05, %v13597_v29  ;;  %v14776_v29 = vld [vmem:[#allocation7 + $0x380] ss:$16 sps:$4 sm:$0xff]   ;;  %v14781_v52 = vld [vmem:[#allocation7 + $0x364] ss:$16 sps:$4 sm:$0xff]  }
 0xdde   : > { %v13599_v42 = vpop.f32.mrf.mxu0  ;;  %v6719_v58 = vpop.f32.mrf.mxu1  ;;  %v14812_v1 = vld [vmem:[#allocation7 + $0x580] ss:$16 sps:$4 sm:$0xff]  }
 0xddf   : > { %v6716_v43 = vadd.f32 %v6715_v3, %v6676_v21  ;;  %v14806_v3 = vld [vmem:[#allocation7 + $0x5a0] ss:$16 sps:$4 sm:$0xff]   ;;  %v14820_v21 = vld [vmem:[#allocation7 + $0x564] ss:$16 sps:$4 sm:$0xff]  }
 0xde0   : > { %v14779_v42 = vld [vmem:[#allocation7 + $0x360] ss:$16 sps:$4 sm:$0xff]  }
 0xde1   : > { %15609 = vrsqrt.f32 %v6716_v43  ;;  %v14818_v58 = vld [vmem:[#allocation7 + $0x560] ss:$16 sps:$4 sm:$0xff]   ;;  %v14784_v43 = vld [vmem:[#allocation7 + $0x344] ss:$16 sps:$4 sm:$0xff]  }
 0xdee   : > { %v15610_v39 = vpop.eup %15609 }
 0xdef   : > { %v6722_v62 = vpack.c.bf16 %v15610_v39, %v15610_v39  ;;  %v14826_v39 = vld [vmem:[#allocation7 + $0x544] ss:$16 sps:$4 sm:$0xff]  }
 0xdf1   : > { %6756 = vmatmul.mubr.bf16.vlgmr.msra.gmra.mxu0 %v6722_v62  ;;  %6797 = vmatmul.mubr.bf16.vlgmr.msra.gmra.mxu1 %v6722_v62  ;;  %v14787_v62 = vld [vmem:[#allocation7 + $0x324] ss:$16 sps:$4 sm:$0xff]  }
 0xdf2   : > { %7474 = vmatpush1.bf16.msra.mxu0 %v14764_v47  ;;  %7515 = vmatpush1.bf16.msra.mxu1 %v14788_v53  ;;  %v14782_v47 = vld [vmem:[#allocation7 + $0x340] ss:$16 sps:$4 sm:$0xff]  }
 0xdf3   : > { %7475 = vmatprep.subr.bf16.mxu0 %v14769_v2  ;;  %7516 = vmatprep.subr.bf16.mxu1 %v14796_v10  ;;  %v14824_v53 = vld [vmem:[#allocation7 + $0x540] ss:$16 sps:$4 sm:$0xff]   ;;  %v14793_v10 = vld [vmem:[#allocation7 + $0x504] ss:$16 sps:$4 sm:$0xff]  }
 0xdf4   : > { %v14785_v2 = vld [vmem:[#allocation7 + $0x320] ss:$16 sps:$4 sm:$0xff]  }
 0xdf6   : > { %7476 = vmatpush1.bf16.msra.mxu0 %v14767_v12  ;;  %7517 = vmatpush1.bf16.msra.mxu1 %v14794_v59  ;;  %v14791_v12 = vld [vmem:[#allocation7 + $0x500] ss:$16 sps:$4 sm:$0xff]   ;;  %v14799_v59 = vld [vmem:[#allocation7 + $0x4e4] ss:$16 sps:$4 sm:$0xff]  }
 0xdf7   : > { %7477 = vmatprep.subr.bf16.mxu0 %v14772_v15  ;;  %7518 = vmatprep.subr.bf16.mxu1 %v14802_v16  ;;  %v14797_v15 = vld [vmem:[#allocation7 + $0x4e0] ss:$16 sps:$4 sm:$0xff]   ;;  %v14805_v16 = vld [vmem:[#allocation7 + $0x4c4] ss:$16 sps:$4 sm:$0xff]  }
 0xdfa   : > { %7478 = vmatpush1.bf16.msra.mxu0 %v14770_v17  ;;  %7519 = vmatpush1.bf16.msra.mxu1 %v14800_v13  ;;  %v14803_v17 = vld [vmem:[#allocation7 + $0x4c0] ss:$16 sps:$4 sm:$0xff]   ;;  %v14811_v13 = vld [vmem:[#allocation7 + $0x4a4] ss:$16 sps:$4 sm:$0xff]  }
 0xdfb   : > { %7479 = vmatprep.subr.bf16.mxu0 %v14775_v40  ;;  %7520 = vmatprep.subr.bf16.mxu1 %v14808_v9  ;;  %v14809_v40 = vld [vmem:[#allocation7 + $0x4a0] ss:$16 sps:$4 sm:$0xff]   ;;  %v14817_v9 = vld [vmem:[#allocation7 + $0x484] ss:$16 sps:$4 sm:$0xff]  }
 0xdfe   : > { %7480 = vmatpush1.bf16.msra.mxu0 %v14773_v8  ;;  %7521 = vmatpush1.bf16.msra.mxu1 %v14806_v3  ;;  %v14815_v8 = vld [vmem:[#allocation7 + $0x480] ss:$16 sps:$4 sm:$0xff]   ;;  %v14823_v3 = vld [vmem:[#allocation7 + $0x464] ss:$16 sps:$4 sm:$0xff]  }
 0xdff   : > { %7481 = vmatprep.subr.bf16.mxu0 %v14778_v0  ;;  %7522 = vmatprep.subr.bf16.mxu1 %v14814_v32  ;;  %v14821_v0 = vld [vmem:[#allocation7 + $0x460] ss:$16 sps:$4 sm:$0xff]   ;;  %v14829_v32 = vld [vmem:[#allocation7 + $0x444] ss:$16 sps:$4 sm:$0xff]  }
 0xe02   : > { %7482 = vmatpush1.bf16.msra.mxu0 %v14776_v29  ;;  %7523 = vmatpush1.bf16.msra.mxu1 %v14812_v1  ;;  %v14832_v29 = vld [vmem:[#allocation7 + $0x524] ss:$16 sps:$4 sm:$0xff]   ;;  %v14827_v1 = vld [vmem:[#allocation7 + $0x440] ss:$16 sps:$4 sm:$0xff]  }
 0xe03   : > { %7483 = vmatprep.subr.bf16.mxu0 %v14781_v52  ;;  %7524 = vmatprep.subr.bf16.mxu1 %v14820_v21  ;;  %v14830_v52 = vld [vmem:[#allocation7 + $0x520] ss:$16 sps:$4 sm:$0xff]   ;;  %v14835_v21 = vld [vmem:[#allocation7 + $0x424] ss:$16 sps:$4 sm:$0xff]  }
 0xe06   : > { %7484 = vmatpush1.bf16.msra.mxu0 %v14779_v42  ;;  %7525 = vmatpush1.bf16.msra.mxu1 %v14818_v58  ;;  %v14838_v42 = vld [vmem:[#allocation7 + $0x624] ss:$16 sps:$4 sm:$0xff]   ;;  %v14833_v58 = vld [vmem:[#allocation7 + $0x420] ss:$16 sps:$4 sm:$0xff]  }
 0xe07   : > { %7485 = vmatprep.subr.bf16.mxu0 %v14784_v43  ;;  %7526 = vmatprep.subr.bf16.mxu1 %v14826_v39  ;;  %v14836_v43 = vld [vmem:[#allocation7 + $0x620] ss:$16 sps:$4 sm:$0xff]   ;;  %v14841_v39 = vld [vmem:[#allocation7 + $0x40c] ss:$16 sps:$4 sm:$0xff]  }
 0xe0a   : > { %7486 = vmatpush1.bf16.msra.mxu0 %v14782_v47  ;;  %7527 = vmatpush1.bf16.msra.mxu1 %v14824_v53  ;;  %v14844_v47 = vld [vmem:[#allocation7 + $0x60c] ss:$16 sps:$4 sm:$0xff]   ;;  %v17187_v53 = vld [vmem:[#allocation10 + $0x20] sm:$0x3f] }
 0xe0b   : > { %7487 = vmatprep.subr.bf16.mxu0 %v14787_v62  ;;  %7528 = vmatprep.subr.bf16.mxu1 %v14832_v29  ;;  %17891 = vst [vmem:[#allocation38_spill] sm:$0xff] %v17187_v53  ;;  %v17189_v62 = vld [vmem:[#allocation10 + $0x30] sm:$0x3f] }
 0xe0e   : > { %7488 = vmatpush1.bf16.msra.mxu0 %v14785_v2  ;;  %7529 = vmatpush1.bf16.msra.mxu1 %v14830_v52  ;;  %v17191_v2 = vld [vmem:[#allocation10 + $0x28] sm:$0x3f] }
 0xe0f   : > { %7489 = vmatprep.subr.bf16.mxu0 %v14793_v10  ;;  %7544 = vmatprep.subr.bf16.mxu1 %v14838_v42  ;;  %17892 = vst [vmem:[#allocation40_spill] sm:$0xff] %v17191_v2  ;;  %v17193_v10 = vld [vmem:[#allocation10 + $0x38] sm:$0x3f] }
 0xe12   : > { %7490 = vmatpush2.bf16.msra.mxu0 %v14791_v12  ;;  %7545 = vmatpush2.bf16.msra.mxu1 %v14836_v43  ;;  %v17893_v12 = vld [vmem:[#allocation18_spill] sm:$0xff] }
 0xe13   : > { %7491 = vmatprep.subr.bf16.mxu0 %v14799_v59  ;;  %7555 = vmatprep.subr.bf16.mxu1 %v14841_v39  ;;  %v6812_v59 = vrot.slane %v17187_v53, %v17893_v12 }
 0xe16   : > { %7492 = vmatpush2.bf16.msra.mxu0 %v14797_v15  ;;  %v6820_v15 = vrot.slane %v17189_v62, %v17893_v12 }
 0xe17   : > { %7493 = vmatprep.subr.bf16.mxu0 %v14805_v16 }
 0xe1a   : > { %7494 = vmatpush2.bf16.msra.mxu0 %v14803_v17 }
 0xe1b   : > { %7495 = vmatprep.subr.bf16.mxu0 %v14811_v13 }
 0xe1e   : > { %7496 = vmatpush2.bf16.msra.mxu0 %v14809_v40 }
 0xe1f   : > { %7497 = vmatprep.subr.bf16.mxu0 %v14817_v9  ;;  %v6816_v9 = vrot.slane %v17191_v2, %v17893_v12 }
 0xe22   : > { %7498 = vmatpush2.bf16.msra.mxu0 %v14815_v8  ;;  %v6824_v8 = vrot.slane %v17193_v10, %v17893_v12 }
 0xe23   : > { %7499 = vmatprep.subr.bf16.mxu0 %v14823_v3  ;;  %v17894_v3 = vld [vmem:[#allocation19_spill] sm:$0xff] }
 0xe24   : > { %v6844_v52 = vrot.slane %v17193_v10, %v17894_v3 }
 0xe26   : > { %7500 = vmatpush2.bf16.msra.mxu0 %v14821_v0  ;;  %v6832_v0 = vrot.slane %v17187_v53, %v17894_v3 }
 0xe27   : > { %7501 = vmatprep.subr.bf16.mxu0 %v14829_v32  ;;  %v6840_v32 = vrot.slane %v17189_v62, %v17894_v3 }
 0xe2a   : > { %7502 = vmatpush2.bf16.msra.mxu0 %v14827_v1 }
 0xe2b   : > { %7503 = vmatprep.subr.bf16.mxu0 %v14835_v21 }
 0xe2e   : > { %7504 = vmatpush2.bf16.msra.mxu0 %v14833_v58 }
 0xe2f   : > { %7596 = vmatprep.subr.bf16.mxu0 %v14844_v47 }
 0xeb1   : > { %v6757_v16 = vpop.f32.mrf.mxu0  ;;  %v6798_v17 = vpop.f32.mrf.mxu1 }
 0xeb2   : > { %v6805_v13 = vmul.f32 %v6757_v16, %v17135_v37  ;;  %v6807_v40 = vmul.f32 %v6798_v17, %v17138_v23  ;;  %v6836_v37 = vrot.slane %v17191_v2, %v17894_v3  ;;  %v14842_v3 = vld [vmem:[#allocation7 + $0x608] ss:$16 sps:$4 sm:$0xff]  }
 0xeb3   : > { %v6759_v29 = vpop.f32.mrf.mxu0  ;;  %v6800_v1 = vpop.f32.mrf.mxu1 }
 0xeb4   : > { %v6825_v23 = vmul.f32 %v6812_v59, %v6805_v13  ;;  %v6827_v21 = vmul.f32 %v6820_v15, %v6807_v40  ;;  %v6806_v42 = vmul.f32 %v6759_v29, %v17141_v48  ;;  %v6808_v58 = vmul.f32 %v6800_v1, %v17144_v27  ;;  %v14847_v48 = vld [vmem:[#allocation7 + $0x3ec] ss:$16 sps:$4 sm:$0xff]   ;;  %v14851_v13 = vld [vmem:[#allocation7 + $0x3c8] ss:$16 sps:$4 sm:$0xff]  }
 0xeb5   : > { %v6761_v43 = vpop.f32.mrf.mxu0  ;;  %v6802_v39 = vpop.f32.mrf.mxu1  ;;  %v14850_v27 = vld [vmem:[#allocation7 + $0x5ec] ss:$16 sps:$4 sm:$0xff]   ;;  %v14854_v40 = vld [vmem:[#allocation7 + $0x5c8] ss:$16 sps:$4 sm:$0xff]  }
 0xeb6   : > { %v6826_v47 = vmul.f32 %v6816_v9, %v6806_v42  ;;  %v6828_v12 = vmul.f32 %v6824_v8, %v6808_v58  ;;  %v6845_v16 = vadd.f32 %v6832_v0, %v6825_v23  ;;  %v6847_v17 = vadd.f32 %v6840_v32, %v6827_v21  ;;  %v14859_v9 = vld [vmem:[#allocation7 + $0x3ac] ss:$16 sps:$4 sm:$0xff]   ;;  %v14860_v0 = vld [vmem:[#allocation7 + $0x5a8] ss:$16 sps:$4 sm:$0xff]  }
 0xeb7   : > { %v6762_v44 = vpop.f32.mrf.mxu0  ;;  %v6803_v6 = vpop.f32.mrf.mxu1  ;;  %v14862_v8 = vld [vmem:[#allocation7 + $0x5ac] ss:$16 sps:$4 sm:$0xff]   ;;  %v14863_v32 = vld [vmem:[#allocation7 + $0x388] ss:$16 sps:$4 sm:$0xff]  }
 0xeb8   : > { %v6848_v22 = vadd.f32 %v6844_v52, %v6828_v12  ;;  %v6846_v41 = vadd.f32 %v6836_v37, %v6826_v47  ;;  %v17215_v59 = vpack.c.bf16 %v6845_v16, %v6845_v16  ;;  %v17217_v15 = vpack.c.bf16 %v6847_v17, %v6847_v17  ;;  %v14845_v6 = vld [vmem:[#allocation7 + $0x3e8] ss:$16 sps:$4 sm:$0xff]   ;;  %v14871_v1 = vld [vmem:[#allocation7 + $0x36c] ss:$16 sps:$4 sm:$0xff]  }
 0xeb9   : > { %v14848_v44 = vld [vmem:[#allocation7 + $0x5e8] ss:$16 sps:$4 sm:$0xff]   ;;  %v14874_v52 = vld [vmem:[#allocation7 + $0x56c] ss:$16 sps:$4 sm:$0xff]  }
 0xeba   : > { %v6852_v19 = vpack.c.bf16 %v6848_v22, %v6848_v22  ;;  %v6850_v63 = vpack.c.bf16 %v6846_v41, %v6846_v41  ;;  %v14853_v41 = vld [vmem:[#allocation7 + $0x3cc] ss:$16 sps:$4 sm:$0xff]   ;;  %v14866_v29 = vld [vmem:[#allocation7 + $0x588] ss:$16 sps:$4 sm:$0xff]  }
 0xebb   : > { %v14856_v22 = vld [vmem:[#allocation7 + $0x5cc] ss:$16 sps:$4 sm:$0xff]   ;;  %v14869_v37 = vld [vmem:[#allocation7 + $0x368] ss:$16 sps:$4 sm:$0xff]  }
 0xebc   : > { %7505 = vmatprep.mubr.bf16.mxu0 %v6850_v63  ;;  %12949 = vmatprep.mubr.msk.bf16.mxu1 %vm1581_vm2, %v6852_v19  ;;  %v14872_v23 = vld [vmem:[#allocation7 + $0x568] ss:$16 sps:$4 sm:$0xff]   ;;  %v14877_v21 = vld [vmem:[#allocation7 + $0x34c] ss:$16 sps:$4 sm:$0xff]  }
 0xebd   : > { %7506 = vmatmul.mubr.bf16.vlgmr.msra.gmra.mxu0 %v17215_v59  ;;  %7547 = vmatmul.mubr.bf16.vlgmr.msra.gmra.mxu1 %v17217_v15  ;;  %v14880_v42 = vld [vmem:[#allocation7 + $0x54c] ss:$16 sps:$4 sm:$0xff]   ;;  %v14875_v58 = vld [vmem:[#allocation7 + $0x348] ss:$16 sps:$4 sm:$0xff]  }
 0xebe   : > { %7556 = vmatpush1.bf16.msra.mxu1 %v14839_v46  ;;  %7597 = vmatpush1.bf16.msra.mxu0 %v14842_v3  ;;  %v14857_v46 = vld [vmem:[#allocation7 + $0x3a8] ss:$16 sps:$4 sm:$0xff]   ;;  %v14883_v39 = vld [vmem:[#allocation7 + $0x32c] ss:$16 sps:$4 sm:$0xff]  }
 0xebf   : > { %7587 = vmatprep.mubr.bf16.mxu1 %v6850_v63  ;;  %12950 = vmatprep.mubr.msk.bf16.mxu0 %vm1581_vm2, %v6852_v19  ;;  %v14865_v63 = vld [vmem:[#allocation7 + $0x38c] ss:$16 sps:$4 sm:$0xff]   ;;  %v14878_v43 = vld [vmem:[#allocation7 + $0x548] ss:$16 sps:$4 sm:$0xff]  }
 0xec0   : > { %7557 = vmatprep.subr.bf16.mxu1 %v14847_v48  ;;  %7598 = vmatprep.subr.bf16.mxu0 %v14850_v27  ;;  %v14868_v19 = vld [vmem:[#allocation7 + $0x58c] ss:$16 sps:$4 sm:$0xff]   ;;  %v14881_v12 = vld [vmem:[#allocation7 + $0x328] ss:$16 sps:$4 sm:$0xff]  }
 0xec1   : > { %v14886_v47 = vld [vmem:[#allocation7 + $0x52c] ss:$16 sps:$4 sm:$0xff]   ;;  %v14884_v16 = vld [vmem:[#allocation7 + $0x528] ss:$16 sps:$4 sm:$0xff]  }
 0xec2   : > { %7558 = vmatpush1.bf16.msra.mxu1 %v14845_v6  ;;  %7599 = vmatpush1.bf16.msra.mxu0 %v14848_v44  ;;  %v14889_v17 = vld [vmem:[#allocation7 + $0x50c] ss:$16 sps:$4 sm:$0xff]   ;;  %v14887_v48 = vld [vmem:[#allocation7 + $0x508] ss:$16 sps:$4 sm:$0xff]  }
 0xec3   : > { %7559 = vmatprep.subr.bf16.mxu1 %v14853_v41  ;;  %7600 = vmatprep.subr.bf16.mxu0 %v14856_v22  ;;  %v14892_v3 = vld [vmem:[#allocation7 + $0x62c] ss:$16 sps:$4 sm:$0xff]   ;;  %v14890_v27 = vld [vmem:[#allocation7 + $0x628] ss:$16 sps:$4 sm:$0xff]   ;;  %v17223_v22 = vld [vmem:[#allocation4 + $0x78] sm:$0xff]  }
 0xec4   : > { %v14895_v6 = vld [vmem:[#allocation7 + $0x4ec] ss:$16 sps:$4 sm:$0xff]   ;;  %v14893_v44 = vld [vmem:[#allocation7 + $0x4e8] ss:$16 sps:$4 sm:$0xff]  }
 0xec5   : > { %v14898_v41 = vld [vmem:[#allocation7 + $0x4cc] ss:$16 sps:$4 sm:$0xff]  }
 0xec6   : > { %7560 = vmatpush1.bf16.msra.mxu1 %v14851_v13  ;;  %7601 = vmatpush1.bf16.msra.mxu0 %v14854_v40  ;;  %v14896_v13 = vld [vmem:[#allocation7 + $0x4c8] ss:$16 sps:$4 sm:$0xff]   ;;  %v17227_v40 = vld [vmem:[#allocation4 + $0x38] sm:$0xff]  }
 0xec7   : > { %7561 = vmatprep.subr.bf16.mxu1 %v14859_v9  ;;  %7602 = vmatprep.subr.bf16.mxu0 %v14862_v8  ;;  %v14901_v9 = vld [vmem:[#allocation7 + $0x4ac] ss:$16 sps:$4 sm:$0xff]  }
 0xec8   : > { %v17230_v8 = vld [vmem:[#allocation4 + $0x70] sm:$0xff]  }
 0xeca   : > { %7562 = vmatpush1.bf16.msra.mxu1 %v14857_v46  ;;  %7603 = vmatpush1.bf16.msra.mxu0 %v14860_v0  ;;  %v14899_v46 = vld [vmem:[#allocation7 + $0x4a8] ss:$16 sps:$4 sm:$0xff]  }
 0xecb   : > { %7563 = vmatprep.subr.bf16.mxu1 %v14865_v63  ;;  %7604 = vmatprep.subr.bf16.mxu0 %v14868_v19  ;;  %v17233_v0 = vld [vmem:[#allocation4 + $0x30] sm:$0xff]   ;;  %v17236_v63 = vld [vmem:[#allocation4 + $0x68] sm:$0xff]  }
 0xecc   : > { %v14902_v19 = vld [vmem:[#allocation7 + $0x488] ss:$16 sps:$4 sm:$0xff]  }
 0xece   : > { %7564 = vmatpush1.bf16.msra.mxu1 %v14863_v32  ;;  %7605 = vmatpush1.bf16.msra.mxu0 %v14866_v29  ;;  %v17239_v32 = vld [vmem:[#allocation4 + $0x28] sm:$0xff]   ;;  %v14907_v29 = vld [vmem:[#allocation7 + $0x46c] ss:$16 sps:$4 sm:$0xff]  }
 0xecf   : > { %7565 = vmatprep.subr.bf16.mxu1 %v14871_v1  ;;  %7606 = vmatprep.subr.bf16.mxu0 %v14874_v52  ;;  %v17242_v1 = vld [vmem:[#allocation4 + $0x60] sm:$0xff]  }
 0xed0   : > { %v14905_v52 = vld [vmem:[#allocation7 + $0x468] ss:$16 sps:$4 sm:$0xff]  }
 0xed2   : > { %7566 = vmatpush1.bf16.msra.mxu1 %v14869_v37  ;;  %7607 = vmatpush1.bf16.msra.mxu0 %v14872_v23  ;;  %v17245_v37 = vld [vmem:[#allocation4 + $0x20] sm:$0xff]  }
 0xed3   : > { %7567 = vmatprep.subr.bf16.mxu1 %v14877_v21  ;;  %7608 = vmatprep.subr.bf16.mxu0 %v14880_v42  ;;  %v14910_v23 = vld [vmem:[#allocation7 + $0x44c] ss:$16 sps:$4 sm:$0xff]   ;;  %v17248_v21 = vld [vmem:[#allocation4 + $0x58] sm:$0xff]   ;;  %v14908_v42 = vld [vmem:[#allocation7 + $0x448] ss:$16 sps:$4 sm:$0xff]  }
 0xed6   : > { %7568 = vmatpush1.bf16.msra.mxu1 %v14875_v58  ;;  %7609 = vmatpush1.bf16.msra.mxu0 %v14878_v43  ;;  %v17251_v58 = vld [vmem:[#allocation4 + $0x18] sm:$0xff]   ;;  %v14913_v43 = vld [vmem:[#allocation7 + $0x42c] ss:$16 sps:$4 sm:$0xff]  }
 0xed7   : > { %7569 = vmatprep.subr.bf16.mxu1 %v14883_v39  ;;  %7610 = vmatprep.subr.bf16.mxu0 %v14886_v47  ;;  %v17254_v39 = vld [vmem:[#allocation4 + $0x50] sm:$0xff]  }
 0xed8   : > { %17895 = vst [vmem:[#allocation42_spill] sm:$0xff] %v17254_v39  ;;  %v14911_v47 = vld [vmem:[#allocation7 + $0x428] ss:$16 sps:$4 sm:$0xff]  }
 0xeda   : > { %7570 = vmatpush1.bf16.msra.mxu1 %v14881_v12  ;;  %7611 = vmatpush1.bf16.msra.mxu0 %v14884_v16  ;;  %v17257_v12 = vld [vmem:[#allocation4 + $0x10] sm:$0xff]   ;;  %v17260_v16 = vld [vmem:[#allocation4 + $0x48] sm:$0xff]  }
 0xedb   : > { %7571 = vmatprep.subr.bf16.mxu1 %v14889_v17  ;;  %7626 = vmatprep.subr.bf16.mxu0 %v14892_v3  ;;  %17896 = vst [vmem:[#allocation43_spill] sm:$0xff] %v17257_v12  ;;  %17897 = vst [vmem:[#allocation44_spill] sm:$0xff] %v17260_v16  ;;  %v17263_v17 = vld [vmem:[#allocation4 + $0x8] sm:$0xff]   ;;  %v17266_v3 = vld [vmem:[#allocation4 + $0x40] sm:$0xff]  }
 0xedc   : > { %17898 = vst [vmem:[#allocation45_spill] sm:$0xff] %v17263_v17  ;;  %17899 = vst [vmem:[#allocation46_spill] sm:$0xff] %v17266_v3 }
 0xede   : > { %7572 = vmatpush2.bf16.msra.mxu1 %v14887_v48  ;;  %7627 = vmatpush2.bf16.msra.mxu0 %v14890_v27  ;;  %v17271_v48 = vld [vmem:[#allocation4] sm:$0xff]   ;;  %v17274_v27 = vld [vmem:[#allocation4 + $0xb8] sm:$0xff]  }
 0xedf   : > { %7573 = vmatprep.subr.bf16.mxu1 %v14895_v6  ;;  %13601 = vmatprep.subr.bf16.mxu0 %v17223_v22  ;;  %17900 = vst [vmem:[#allocation25_spill] sm:$0xff] %v17271_v48  ;;  %v17278_v6 = vld [vmem:[#allocation6 + $0xe4] ss:$16 sps:$4 sm:$0xff]  }
 0xee0   : > { %17901 = vst [vmem:[#allocation31_spill] sm:$0xff] %v17278_v6 }
 0xee1   : > { %7629 = vmatmul.mubr.bf16.vlgmr.msra.gmra.mxu0 %v17217_v15  ;;  %v14904_v15 = vld [vmem:[#allocation7 + $0x48c] ss:$16 sps:$4 sm:$0xff]  }
 0xee2   : > { %7574 = vmatpush2.bf16.msra.mxu1 %v14893_v44  ;;  %13602 = vmatpush3.bf16.msra.mxu0 %v17227_v40  ;;  %v17281_v44 = vld [vmem:[#allocation4 + $0xb0] sm:$0xff]  }
 0xee3   : > { %7575 = vmatprep.subr.bf16.mxu1 %v14898_v41  ;;  %13603 = vmatprep.subr.bf16.mxu0 %v17230_v8  ;;  %v17289_v41 = vld [vmem:[#allocation4 + $0xa0] sm:$0xff]  }
 0xee6   : > { %7576 = vmatpush2.bf16.msra.mxu1 %v14896_v13  ;;  %13604 = vmatpush3.bf16.msra.mxu0 %v17233_v0  ;;  %v17293_v13 = vld [vmem:[#allocation4 + $0x98] sm:$0xff]  }
 0xee7   : > { %7577 = vmatprep.subr.bf16.mxu1 %v14901_v9  ;;  %13605 = vmatprep.subr.bf16.mxu0 %v17236_v63  ;;  %v17297_v9 = vld [vmem:[#allocation4 + $0x90] sm:$0xff]  }
 0xee8   : > { %17902 = vst [vmem:[#allocation27_spill] sm:$0xff] %v17297_v9 }
 0xeea   : > { %7578 = vmatpush2.bf16.msra.mxu1 %v14899_v46  ;;  %13606 = vmatpush3.bf16.msra.mxu0 %v17239_v32  ;;  %v17301_v46 = vld [vmem:[#allocation4 + $0x88] sm:$0xff]  }
 0xeeb   : > { %7579 = vmatprep.subr.bf16.mxu1 %v14904_v15  ;;  %13607 = vmatprep.subr.bf16.mxu0 %v17242_v1  ;;  %17903 = vst [vmem:[#allocation29_spill] sm:$0xff] %v17301_v46  ;;  %v17305_v15 = vld [vmem:[#allocation4 + $0x80] sm:$0xff]  }
 0xeec   : > { %17904 = vst [vmem:[#allocation47_spill] sm:$0xff] %v17305_v15 }
 0xeee   : > { %7580 = vmatpush2.bf16.msra.mxu1 %v14902_v19  ;;  %13608 = vmatpush3.bf16.msra.mxu0 %v17245_v37  ;;  %v17309_v19 = vld [vmem:[#allocation4 + $0xc0] sm:$0xff]  }
 0xeef   : > { %7581 = vmatprep.subr.bf16.mxu1 %v14907_v29  ;;  %13609 = vmatprep.subr.bf16.mxu0 %v17248_v21  ;;  %17905 = vst [vmem:[#allocation48_spill] sm:$0xff] %v17309_v19  ;;  %v17312_v29 = vld [vmem:[#allocation6 + $0xec] ss:$16 sps:$4 sm:$0xff]  }
 0xef0   : > { %17906 = vst [vmem:[#allocation49_spill] sm:$0xff] %v17312_v29 }
 0xef2   : > { %7582 = vmatpush2.bf16.msra.mxu1 %v14905_v52  ;;  %13610 = vmatpush3.bf16.msra.mxu0 %v17251_v58  ;;  %v17907_v52 = vld [vmem:[#allocation20_spill] sm:$0xff] }
 0xef3   : > { %7583 = vmatprep.subr.bf16.mxu1 %v14910_v23  ;;  %13611 = vmatprep.subr.bf16.mxu0 %v17254_v39  ;;  %v6957_v23 = vrot.slane %v17187_v53, %v17907_v52 }
 0xef6   : > { %7584 = vmatpush2.bf16.msra.mxu1 %v14908_v42  ;;  %13612 = vmatpush3.bf16.msra.mxu0 %v17257_v12  ;;  %v6961_v42 = vrot.slane %v17191_v2, %v17907_v52 }
 0xef7   : > { %7585 = vmatprep.subr.bf16.mxu1 %v14913_v43  ;;  %13613 = vmatprep.subr.bf16.mxu0 %v17260_v16 }
 0xefa   : > { %7586 = vmatpush2.bf16.msra.mxu1 %v14911_v47  ;;  %13614 = vmatpush3.bf16.msra.mxu0 %v17263_v17 }
 0xefb   : > { %13615 = vmatprep.subr.bf16.mxu0 %v17266_v3  ;;  %7692 = vmatprep.subr.bf16.mxu1 %v17823_v45 }
 0xefd   : > { %7588 = vmatmul.mubr.bf16.vlgmr.msra.gmra.mxu1 %v17215_v59  ;;  %v17285_v59 = vld [vmem:[#allocation4 + $0xa8] sm:$0xff]  }
 0xefe   : > { %13616 = vmatpush3.bf16.msra.mxu0 %v17271_v48  ;;  %7693 = vmatpush1.bf16.msra.mxu1 %v17274_v27 }
 0xeff   : > { %7694 = vmatprep.subr.bf16.mxu1 %v17823_v45  ;;  %7733 = vmatprep.subr.bf16.mxu0 %v17278_v6 }
 0xf02   : > { %7695 = vmatpush1.bf16.msra.mxu1 %v17281_v44 }
 0xf03   : > { %7696 = vmatprep.subr.bf16.mxu1 %v17823_v45 }
 0xf06   : > { %7697 = vmatpush1.bf16.msra.mxu1 %v17285_v59 }
 0xf07   : > { %7698 = vmatprep.subr.bf16.mxu1 %v17823_v45 }
 0xf0a   : > { %7699 = vmatpush1.bf16.msra.mxu1 %v17289_v41 }
 0xf0b   : > { %7700 = vmatprep.subr.bf16.mxu1 %v17823_v45 }
 0xf0e   : > { %7701 = vmatpush1.bf16.msra.mxu1 %v17293_v13 }
 0xf0f   : > { %7702 = vmatprep.subr.bf16.mxu1 %v17823_v45 }
 0xf12   : > { %7703 = vmatpush1.bf16.msra.mxu1 %v17297_v9 }
 0xf13   : > { %7704 = vmatprep.subr.bf16.mxu1 %v17823_v45 }
 0xf16   : > { %7705 = vmatpush1.bf16.msra.mxu1 %v17301_v46 }
 0xf17   : > { %7706 = vmatprep.subr.bf16.mxu1 %v17823_v45 }
 0xf1a   : > { %7707 = vmatpush1.bf16.msra.mxu1 %v17305_v15 }
 0xf1b   : > { %7722 = vmatprep.subr.bf16.mxu1 %v17823_v45 }
 0xf1e   : > { %7723 = vmatpush2.bf16.msra.mxu1 %v17309_v19 }
 0xf1f   : > { %7774 = vmatprep.subr.bf16.mxu1 %v17312_v29 }
 0xf7d   : > { %v7507_v43 = vpop.f32.mrf.mxu0  ;;  %v7548_v47 = vpop.f32.mrf.mxu1 }
 0xf7e   : > { %v7508_v6 = vadd.f32 %v7507_v43, %v6957_v23 }
 0xf7f   : > { %v7509_v48 = vpop.f32.mrf.mxu0  ;;  %v7550_v15 = vpop.f32.mrf.mxu1 }
 0xf80   : > { %v7549_v3 = vadd.f32 %v7548_v47, %v7508_v6  ;;  %v7510_v17 = vadd.f32 %v7509_v48, %v6961_v42 }
 0xf81   : > { %v7511_v46 = vpop.f32.mrf.mxu0  ;;  %v7552_v16 = vpop.f32.mrf.mxu1 }
 0xf82   : > { %15611 = vtanh.f32 %v7549_v3  ;;  %v7551_v19 = vadd.f32 %v7550_v15, %v7510_v17 }
 0xf83   : > { %v7512_v12 = vpop.f32.mrf.mxu0  ;;  %v7553_v9 = vpop.f32.mrf.mxu1 }
 0xf84   : > { %15613 = vtanh.f32 %v7551_v19 }
 0xf8f   : > { %v15612_v29 = vpop.eup %15611 }
 0xf90   : > { %v17320_v53 = vadd.f32 %v15612_v29, %v16978_v49 }
 0xf91   : > { %v15614_v39 = vpop.eup %15613 }
 0xf92   : > { %v17323_v2 = vadd.f32 %v15614_v39, %v16981_v34  ;;  %v7645_v48 = vpack.c.bf16 %v17320_v53, %v17320_v53 }
 0xf94   : > { %v7646_v23 = vpack.c.bf16 %v17323_v2, %v17323_v2 }
 0xf96   : > { %7684 = vmatprep.mubr.bf16.mxu0 %v7646_v23 }
 0xf97   : > { %7685 = vmatmul.mubr.bf16.vlgmr.msra.gmra.mxu0 %v7645_v48 }
 0xf98   : > { %7734 = vmatpush1.bf16.msra.mxu0 %v16987_v55  ;;  %7765 = vmatprep.mubr.bf16.mxu0 %v17823_v45 }
 0xf99   : > { %7735 = vmatprep.subr.bf16.mxu0 %v16991_v30  ;;  %v6965_v30 = vrot.slane %v17189_v62, %v17907_v52 }
 0xf9c   : > { %7736 = vmatpush1.bf16.msra.mxu0 %v16994_v26  ;;  %v6969_v26 = vrot.slane %v17193_v10, %v17907_v52 }
 0xf9d   : > { %7737 = vmatprep.subr.bf16.mxu0 %v16997_v38 }
 0xfa0   : > { %7738 = vmatpush1.bf16.msra.mxu0 %v17000_v60 }
 0xfa1   : > { %v7630_v49 = vpop.f32.mrf.mxu0  ;;  %7739 = vmatprep.subr.bf16.mxu0 %v17003_v35 }
 0xfa3   : > { %v7632_v34 = vpop.f32.mrf.mxu0 }
 0xfa4   : > { %7740 = vmatpush1.bf16.msra.mxu0 %v17006_v54 }
 0xfa5   : > { %v7634_v39 = vpop.f32.mrf.mxu0  ;;  %7741 = vmatprep.subr.bf16.mxu0 %v17009_v5 }
 0xfa7   : > { %v7635_v55 = vpop.f32.mrf.mxu0 }
 0xfa8   : > { %7742 = vmatpush1.bf16.msra.mxu0 %v17012_v57 }
 0xfa9   : > { %7743 = vmatprep.subr.bf16.mxu0 %v17015_v36 }
 0xfac   : > { %7744 = vmatpush1.bf16.msra.mxu0 %v17883_v18 }
 0xfad   : > { %7745 = vmatprep.subr.bf16.mxu0 %v17885_v51 }
 0xfb0   : > { %7746 = vmatpush1.bf16.msra.mxu0 %v17887_v33 }
 0xfb1   : > { %7747 = vmatprep.subr.bf16.mxu0 %v17889_v11 }
 0xfb4   : > { %7748 = vmatpush1.bf16.msra.mxu0 %v17890_v50 }
 0xfb5   : > { %13623 = vmatprep.subr.bf16.mxu0 %v17223_v22  ;;  %v17911_v22 = vld [vmem:[#allocation30_spill] sm:$0xff] }
 0xfbd   : > { %v7589_v38 = vpop.f32.mrf.mxu1 }
 0xfbe   : > { %v7590_v60 = vadd.f32 %v7589_v38, %v6965_v30 }
 0xfbf   : > { %v7591_v35 = vpop.f32.mrf.mxu1 }
 0xfc0   : > { %v7631_v54 = vadd.f32 %v7630_v49, %v7590_v60  ;;  %v7592_v5 = vadd.f32 %v7591_v35, %v6969_v26  ;;  %v15775_v35 = vld [vmem:[#allocation6 + $0xe0] ss:$16 sps:$4 sm:$0xff]  }
 0xfc1   : > { %v7593_v57 = vpop.f32.mrf.mxu1 }
 0xfc2   : > { %15615 = vtanh.f32 %v7631_v54  ;;  %v7633_v36 = vadd.f32 %v7632_v34, %v7592_v5  ;;  %v15776_v54 = vld [vmem:[#allocation6 + $0xc4] ss:$16 sps:$4 sm:$0xff]   ;;  %v15777_v5 = vld [vmem:[#allocation6 + $0xc0] ss:$16 sps:$4 sm:$0xff]  }
 0xfc3   : > { %v7594_v18 = vpop.f32.mrf.mxu1  ;;  %v15778_v57 = vld [vmem:[#allocation6 + $0xa4] ss:$16 sps:$4 sm:$0xff]  }
 0xfc4   : > { %15617 = vtanh.f32 %v7633_v36  ;;  %v15779_v36 = vld [vmem:[#allocation6 + $0xa0] ss:$16 sps:$4 sm:$0xff]   ;;  %v15780_v18 = vld [vmem:[#allocation6 + $0x84] ss:$16 sps:$4 sm:$0xff]  }
 0xfcf   : > { %v15616_v51 = vpop.eup %15615 }
 0xfd0   : > { %v17351_v11 = vadd.f32 %v15616_v51, %v17043_v20  ;;  %v17908_v20 = vld [vmem:[#allocation24_spill] sm:$0xff] }
 0xfd1   : > { %v15618_v33 = vpop.eup %15617  ;;  %v15781_v51 = vld [vmem:[#allocation6 + $0x80] ss:$16 sps:$4 sm:$0xff]  }
 0xfd2   : > { %v17354_v50 = vadd.f32 %v15618_v33, %v17046_v14  ;;  %v7647_v10 = vpack.c.bf16 %v17351_v11, %v17351_v11  ;;  %v17909_v14 = vld [vmem:[#allocation26_spill] sm:$0xff] }
 0xfd3   : > { %v15782_v33 = vld [vmem:[#allocation6 + $0x64] ss:$16 sps:$4 sm:$0xff]  }
 0xfd4   : > { %v7648_v62 = vpack.c.bf16 %v17354_v50, %v17354_v50 }
 0xfd6   : > { %12951 = vmatprep.mubr.msk.bf16.mxu1 %vm1581_vm2, %v7648_v62  ;;  %v15783_v62 = vld [vmem:[#allocation6 + $0x60] ss:$16 sps:$4 sm:$0xff]  }
 0xfd7   : > { %7725 = vmatmul.mubr.bf16.vlgmr.msra.gmra.mxu1 %v7647_v10  ;;  %v15784_v10 = vld [vmem:[#allocation6 + $0x44] ss:$16 sps:$4 sm:$0xff]  }
 0xfd8   : > { %7775 = vmatpush1.bf16.msra.mxu1 %v17053_v61  ;;  %7806 = vmatprep.mubr.bf16.mxu1 %v17823_v45  ;;  %v17910_v61 = vld [vmem:[#allocation28_spill] sm:$0xff] }
 0xfd9   : > { %7776 = vmatprep.subr.bf16.mxu1 %v17057_v28  ;;  %v17912_v28 = vld [vmem:[#allocation32_spill] sm:$0xff] }
 0xfdc   : > { %7777 = vmatpush1.bf16.msra.mxu1 %v17060_v25  ;;  %v17913_v25 = vld [vmem:[#allocation34_spill] sm:$0xff] }
 0xfdd   : > { %7778 = vmatprep.subr.bf16.mxu1 %v17063_v56  ;;  %v17914_v56 = vld [vmem:[#allocation36_spill] sm:$0xff] }
 0xfe0   : > { %7779 = vmatpush1.bf16.msra.mxu1 %v17066_v4 }
 0xfe1   : > { %7780 = vmatprep.subr.bf16.mxu1 %v17069_v7 }
 0xfe4   : > { %7781 = vmatpush1.bf16.msra.mxu1 %v17072_v31 }
 0xfe5   : > { %7782 = vmatprep.subr.bf16.mxu1 %v17075_v24 }
 0xfe8   : > { %7783 = vmatpush1.bf16.msra.mxu1 %v17908_v20  ;;  %v15785_v20 = vld [vmem:[#allocation6 + $0x40] ss:$16 sps:$4 sm:$0xff]  }
 0xfe9   : > { %7784 = vmatprep.subr.bf16.mxu1 %v17909_v14  ;;  %v15786_v14 = vld [vmem:[#allocation6 + $0x24] ss:$16 sps:$4 sm:$0xff]  }
 0xfec   : > { %7785 = vmatpush1.bf16.msra.mxu1 %v17910_v61  ;;  %v15787_v61 = vld [vmem:[#allocation6 + $0x20] ss:$16 sps:$4 sm:$0xff]  }
 0xfed   : > { %7786 = vmatprep.subr.bf16.mxu1 %v17911_v22  ;;  %v15788_v22 = vld [vmem:[#allocation6 + $0x4] ss:$16 sps:$4 sm:$0xff]  }
 0xff0   : > { %7787 = vmatpush1.bf16.msra.mxu1 %v17912_v28  ;;  %v15789_v28 = vld [vmem:[#allocation6] ss:$16 sps:$4 sm:$0xff]  }
 0xff1   : > { %7788 = vmatprep.subr.bf16.mxu1 %v17913_v25  ;;  %v17926_v25 = vld [vmem:[#allocation49_spill] sm:$0xff] }
 0xff4   : > { %7789 = vmatpush1.bf16.msra.mxu1 %v17914_v56  ;;  %v14914_v56 = vld [vmem:[#allocation9 + $0x1080] ss:$16 sps:$4 sm:$0xff]  }
 0xff5   : > { %7870 = vmatprep.subr.bf16.mxu1 %v17823_v45 }
0x1057   : > { %v13617_v4 = vpop.f32.mrf.mxu0 }
0x1059   : > { %v13618_v7 = vpop.f32.mrf.mxu0 }
0x105a   : > { %v13619_v12 = vadd.f32 %v13618_v7, %v13617_v4  ;;  %v14916_v4 = vld [vmem:[#allocation9 + $0x1084] ss:$16 sps:$4 sm:$0xff]  }
0x105b   : > { %v13620_v31 = vpop.f32.mrf.mxu0  ;;  %v14919_v7 = vld [vmem:[#allocation9 + $0x1064] ss:$16 sps:$4 sm:$0xff]  }
0x105c   : > { %v14917_v31 = vld [vmem:[#allocation9 + $0x1060] ss:$16 sps:$4 sm:$0xff]  }
0x105d   : > { %v13621_v24 = vpop.f32.mrf.mxu0 }
0x105e   : > { %v14922_v24 = vld [vmem:[#allocation9 + $0x1044] ss:$16 sps:$4 sm:$0xff]  }
0x1097   : > { %v7726_v16 = vpop.f32.mrf.mxu1 }
0x1098   : > { %v7727_v17 = vadd.f32 %v13619_v12, %v7726_v16  ;;  %v14920_v12 = vld [vmem:[#allocation9 + $0x1040] ss:$16 sps:$4 sm:$0xff]   ;;  %v14925_v16 = vld [vmem:[#allocation9 + $0x1024] ss:$16 sps:$4 sm:$0xff]  }
0x1099   : > { %v7728_v3 = vpop.f32.mrf.mxu1 }
0x109a   : > { %v7732_v6 = vpack.c.bf16 %v7727_v17, %v7727_v17  ;;  %v14923_v17 = vld [vmem:[#allocation9 + $0x1020] ss:$16 sps:$4 sm:$0xff]   ;;  %v14928_v3 = vld [vmem:[#allocation9 + $0x1004] ss:$16 sps:$4 sm:$0xff]  }
0x109b   : > { %v7729_v9 = vpop.f32.mrf.mxu1 }
0x109c   : > { %7766 = vmatmul.mubr.bf16.vlgmr.msra.gmra.mxu0 %v7732_v6  ;;  %7807 = vmatmul.mubr.bf16.vlgmr.msra.gmra.mxu1 %v7732_v6  ;;  %v14926_v6 = vld [vmem:[#allocation9 + $0x1000] ss:$16 sps:$4 sm:$0xff]   ;;  %v14931_v9 = vld [vmem:[#allocation9 + $0xfe4] ss:$16 sps:$4 sm:$0xff]  }
0x109d   : > { %v7730_v46 = vpop.f32.mrf.mxu1  ;;  %7871 = vmatpush1.bf16.msra.mxu1 %v17274_v27  ;;  %13624 = vmatpush3.bf16.msra.mxu0 %v17227_v40  ;;  %v17915_v40 = vld [vmem:[#allocation42_spill] sm:$0xff]  ;;  %v17924_v27 = vld [vmem:[#allocation31_spill] sm:$0xff] }
0x109e   : > { %7872 = vmatprep.subr.bf16.mxu1 %v17823_v45  ;;  %13625 = vmatprep.subr.bf16.mxu0 %v17230_v8  ;;  %v17916_v8 = vld [vmem:[#allocation27_spill] sm:$0xff]  ;;  %v14929_v46 = vld [vmem:[#allocation9 + $0xfe0] ss:$16 sps:$4 sm:$0xff]  }
0x10a1   : > { %7873 = vmatpush1.bf16.msra.mxu1 %v17281_v44  ;;  %13626 = vmatpush3.bf16.msra.mxu0 %v17233_v0  ;;  %v17917_v0 = vld [vmem:[#allocation43_spill] sm:$0xff]  ;;  %v17925_v44 = vld [vmem:[#allocation48_spill] sm:$0xff] }
0x10a2   : > { %7874 = vmatprep.subr.bf16.mxu1 %v17823_v45  ;;  %13627 = vmatprep.subr.bf16.mxu0 %v17236_v63  ;;  %v17918_v63 = vld [vmem:[#allocation44_spill] sm:$0xff] }
0x10a5   : > { %7875 = vmatpush1.bf16.msra.mxu1 %v17285_v59  ;;  %13628 = vmatpush3.bf16.msra.mxu0 %v17239_v32  ;;  %v17919_v32 = vld [vmem:[#allocation29_spill] sm:$0xff] }
0x10a6   : > { %7876 = vmatprep.subr.bf16.mxu1 %v17823_v45  ;;  %13629 = vmatprep.subr.bf16.mxu0 %v17242_v1  ;;  %v17920_v1 = vld [vmem:[#allocation45_spill] sm:$0xff] }
0x10a9   : > { %7877 = vmatpush1.bf16.msra.mxu1 %v17289_v41  ;;  %13630 = vmatpush3.bf16.msra.mxu0 %v17245_v37  ;;  %v17921_v37 = vld [vmem:[#allocation46_spill] sm:$0xff] }
0x10aa   : > { %7878 = vmatprep.subr.bf16.mxu1 %v17823_v45  ;;  %13631 = vmatprep.subr.bf16.mxu0 %v17248_v21  ;;  %v17922_v21 = vld [vmem:[#allocation47_spill] sm:$0xff] }
0x10ad   : > { %7879 = vmatpush1.bf16.msra.mxu1 %v17293_v13  ;;  %13632 = vmatpush3.bf16.msra.mxu0 %v17251_v58  ;;  %v17923_v58 = vld [vmem:[#allocation25_spill] sm:$0xff] }
0x10ae   : > { %7880 = vmatprep.subr.bf16.mxu1 %v17823_v45  ;;  %13633 = vmatprep.subr.bf16.mxu0 %v17915_v40  ;;  %v14934_v40 = vld [vmem:[#allocation9 + $0xfc4] ss:$16 sps:$4 sm:$0xff]  }
0x10b1   : > { %7881 = vmatpush1.bf16.msra.mxu1 %v17916_v8  ;;  %13634 = vmatpush3.bf16.msra.mxu0 %v17917_v0  ;;  %v14932_v8 = vld [vmem:[#allocation9 + $0xfc0] ss:$16 sps:$4 sm:$0xff]   ;;  %v14937_v0 = vld [vmem:[#allocation9 + $0xfa4] ss:$16 sps:$4 sm:$0xff]  }
0x10b2   : > { %7882 = vmatprep.subr.bf16.mxu1 %v17823_v45  ;;  %13635 = vmatprep.subr.bf16.mxu0 %v17918_v63  ;;  %v14935_v63 = vld [vmem:[#allocation9 + $0xfa0] ss:$16 sps:$4 sm:$0xff]  }
0x10b5   : > { %7883 = vmatpush1.bf16.msra.mxu1 %v17919_v32  ;;  %13636 = vmatpush3.bf16.msra.mxu0 %v17920_v1  ;;  %v14940_v32 = vld [vmem:[#allocation9 + $0x1184] ss:$16 sps:$4 sm:$0xff]   ;;  %v14938_v1 = vld [vmem:[#allocation9 + $0x1180] ss:$16 sps:$4 sm:$0xff]  }
0x10b6   : > { %7884 = vmatprep.subr.bf16.mxu1 %v17823_v45  ;;  %13637 = vmatprep.subr.bf16.mxu0 %v17921_v37  ;;  %v14943_v37 = vld [vmem:[#allocation9 + $0x1164] ss:$16 sps:$4 sm:$0xff]  }
0x10b9   : > { %7885 = vmatpush1.bf16.msra.mxu1 %v17922_v21  ;;  %13638 = vmatpush3.bf16.msra.mxu0 %v17923_v58  ;;  %v14941_v21 = vld [vmem:[#allocation9 + $0x1160] ss:$16 sps:$4 sm:$0xff]   ;;  %v14946_v58 = vld [vmem:[#allocation9 + $0x1144] ss:$16 sps:$4 sm:$0xff]  }
0x10ba   : > { %7900 = vmatprep.subr.bf16.mxu1 %v17823_v45  ;;  %7912 = vmatprep.subr.bf16.mxu0 %v17924_v27  ;;  %v14944_v27 = vld [vmem:[#allocation9 + $0x1140] ss:$16 sps:$4 sm:$0xff]  }
0x10bd   : > { %7901 = vmatpush2.bf16.msra.mxu1 %v17925_v44  ;;  %v14949_v44 = vld [vmem:[#allocation9 + $0x1124] ss:$16 sps:$4 sm:$0xff]  }
0x10be   : > { %8747 = vmatprep.subr.bf16.mxu1 %v14916_v4  ;;  %v14958_v4 = vld [vmem:[#allocation9 + $0x10c4] ss:$16 sps:$4 sm:$0xff]  }
0x115c   : > { %v7767_v59 = vpop.f32.mrf.mxu0  ;;  %v7808_v41 = vpop.f32.mrf.mxu1 }
0x115d   : > { %v17412_v13 = vsub.f32 %v17320_v53, %v7767_v59  ;;  %v17415_v15 = vsub.f32 %v17351_v11, %v7808_v41  ;;  %v14947_v59 = vld [vmem:[#allocation9 + $0x1120] ss:$16 sps:$4 sm:$0xff]   ;;  %v14952_v41 = vld [vmem:[#allocation9 + $0x1104] ss:$16 sps:$4 sm:$0xff]  }
0x115e   : > { %v7769_v19 = vpop.f32.mrf.mxu0  ;;  %v7810_v29 = vpop.f32.mrf.mxu1 }
0x115f   : > { %v17418_v52 = vsub.f32 %v17323_v2, %v7769_v19  ;;  %v17421_v42 = vsub.f32 %v17354_v50, %v7810_v29  ;;  %v7819_v43 = vpack.c.bf16 %v17412_v13, %v17412_v13  ;;  %v7821_v47 = vpack.c.bf16 %v17415_v15, %v17415_v15  ;;  %v14950_v19 = vld [vmem:[#allocation9 + $0x1100] ss:$16 sps:$4 sm:$0xff]   ;;  %v14955_v29 = vld [vmem:[#allocation9 + $0x10e4] ss:$16 sps:$4 sm:$0xff]  }
0x1160   : > { %v7771_v23 = vpop.f32.mrf.mxu0  ;;  %v7812_v48 = vpop.f32.mrf.mxu1 }
0x1161   : > { %v7820_v49 = vpack.c.bf16 %v17418_v52, %v17418_v52  ;;  %v7822_v34 = vpack.c.bf16 %v17421_v42, %v17421_v42  ;;  %v7823_v38 = vmul.bf16 %v7819_v43, %v7819_v43  ;;  %v7825_v60 = vmul.bf16 %v7821_v47, %v7821_v47  ;;  %v14953_v43 = vld [vmem:[#allocation9 + $0x10e0] ss:$16 sps:$4 sm:$0xff]  }
0x1162   : > { %v7772_v39 = vpop.f32.mrf.mxu0  ;;  %v7813_v55 = vpop.f32.mrf.mxu1 }
0x1163   : > { %v7824_v30 = vmul.bf16 %v7820_v49, %v7820_v49  ;;  %v7826_v26 = vmul.bf16 %v7822_v34, %v7822_v34 }
0x1165   : > { %7862 = vmatprep.mubr.bf16.mxu0 %v7824_v30  ;;  %12952 = vmatprep.mubr.msk.bf16.mxu1 %vm1581_vm2, %v7826_v26 }
0x1166   : > { %7863 = vmatmul.mubr.bf16.vlgmr.msra.gmra.mxu0 %v7823_v38  ;;  %7903 = vmatmul.mubr.bf16.vlgmr.msra.gmra.mxu1 %v7825_v60 }
0x1167   : > { %7913 = vmatpush1.bf16.msra.mxu0 %v15775_v35  ;;  %7944 = vmatprep.mubr.bf16.mxu0 %v17823_v45 }
0x1168   : > { %7914 = vmatprep.subr.bf16.mxu0 %v15776_v54  ;;  %8748 = vmatpush1.bf16.msra.mxu1 %v14914_v56  ;;  %v15804_v56 = vld [vmem:[#allocation6 + $0x8] ss:$16 sps:$4 sm:$0xff]  }
0x1169   : > { %8749 = vmatprep.subr.bf16.mxu1 %v14919_v7  ;;  %v14956_v7 = vld [vmem:[#allocation9 + $0x10c0] ss:$16 sps:$4 sm:$0xff]  }
0x116b   : > { %7915 = vmatpush1.bf16.msra.mxu0 %v15777_v5  ;;  %v15790_v5 = vld [vmem:[#allocation6 + $0xe8] ss:$16 sps:$4 sm:$0xff]  }
0x116c   : > { %7916 = vmatprep.subr.bf16.mxu0 %v15778_v57  ;;  %8750 = vmatpush1.bf16.msra.mxu1 %v14917_v31  ;;  %v15791_v57 = vld [vmem:[#allocation6 + $0xcc] ss:$16 sps:$4 sm:$0xff]   ;;  %v14961_v31 = vld [vmem:[#allocation9 + $0x1284] ss:$16 sps:$4 sm:$0xff]  }
0x116d   : > { %8751 = vmatprep.subr.bf16.mxu1 %v14922_v24  ;;  %v14959_v24 = vld [vmem:[#allocation9 + $0x1280] ss:$16 sps:$4 sm:$0xff]  }
0x116f   : > { %7917 = vmatpush1.bf16.msra.mxu0 %v15779_v36  ;;  %v15792_v36 = vld [vmem:[#allocation6 + $0xc8] ss:$16 sps:$4 sm:$0xff]  }
0x1170   : > { %7918 = vmatprep.subr.bf16.mxu0 %v15780_v18  ;;  %8752 = vmatpush1.bf16.msra.mxu1 %v14920_v12  ;;  %v15793_v18 = vld [vmem:[#allocation6 + $0xac] ss:$16 sps:$4 sm:$0xff]   ;;  %v14964_v12 = vld [vmem:[#allocation9 + $0x10a4] ss:$16 sps:$4 sm:$0xff]  }
0x1171   : > { %8753 = vmatprep.subr.bf16.mxu1 %v14925_v16  ;;  %v14962_v16 = vld [vmem:[#allocation9 + $0x10a0] ss:$16 sps:$4 sm:$0xff]  }
0x1173   : > { %7919 = vmatpush1.bf16.msra.mxu0 %v15781_v51  ;;  %v15794_v51 = vld [vmem:[#allocation6 + $0xa8] ss:$16 sps:$4 sm:$0xff]  }
0x1174   : > { %7920 = vmatprep.subr.bf16.mxu0 %v15782_v33  ;;  %8754 = vmatpush1.bf16.msra.mxu1 %v14923_v17  ;;  %v15795_v33 = vld [vmem:[#allocation6 + $0x8c] ss:$16 sps:$4 sm:$0xff]   ;;  %v14965_v17 = vld [vmem:[#allocation9 + $0x1260] ss:$16 sps:$4 sm:$0xff]  }
0x1175   : > { %8755 = vmatprep.subr.bf16.mxu1 %v14928_v3  ;;  %v14967_v3 = vld [vmem:[#allocation9 + $0x1264] ss:$16 sps:$4 sm:$0xff]  }
0x1177   : > { %7921 = vmatpush1.bf16.msra.mxu0 %v15783_v62  ;;  %v15796_v62 = vld [vmem:[#allocation6 + $0x88] ss:$16 sps:$4 sm:$0xff]  }
0x1178   : > { %7922 = vmatprep.subr.bf16.mxu0 %v15784_v10  ;;  %8756 = vmatpush1.bf16.msra.mxu1 %v14926_v6  ;;  %v15797_v10 = vld [vmem:[#allocation6 + $0x6c] ss:$16 sps:$4 sm:$0xff]  }
0x1179   : > { %8757 = vmatprep.subr.bf16.mxu1 %v14931_v9  ;;  %v14970_v6 = vld [vmem:[#allocation9 + $0x108c] ss:$16 sps:$4 sm:$0xff]   ;;  %v14971_v9 = vld [vmem:[#allocation9 + $0x1240] ss:$16 sps:$4 sm:$0xff]  }
0x117b   : > { %7923 = vmatpush1.bf16.msra.mxu0 %v15785_v20  ;;  %v15798_v20 = vld [vmem:[#allocation6 + $0x68] ss:$16 sps:$4 sm:$0xff]  }
0x117c   : > { %7924 = vmatprep.subr.bf16.mxu0 %v15786_v14  ;;  %8758 = vmatpush1.bf16.msra.mxu1 %v14929_v46  ;;  %v15799_v14 = vld [vmem:[#allocation6 + $0x4c] ss:$16 sps:$4 sm:$0xff]   ;;  %v14973_v46 = vld [vmem:[#allocation9 + $0x1244] ss:$16 sps:$4 sm:$0xff]  }
0x117d   : > { %8759 = vmatprep.subr.bf16.mxu1 %v14934_v40  ;;  %v14977_v40 = vld [vmem:[#allocation9 + $0x1220] ss:$16 sps:$4 sm:$0xff]  }
0x117f   : > { %7925 = vmatpush1.bf16.msra.mxu0 %v15787_v61  ;;  %v15800_v61 = vld [vmem:[#allocation6 + $0x48] ss:$16 sps:$4 sm:$0xff]  }
0x1180   : > { %7926 = vmatprep.subr.bf16.mxu0 %v15788_v22  ;;  %8760 = vmatpush1.bf16.msra.mxu1 %v14932_v8  ;;  %v15801_v22 = vld [vmem:[#allocation6 + $0x2c] ss:$16 sps:$4 sm:$0xff]   ;;  %v14979_v8 = vld [vmem:[#allocation9 + $0x1224] ss:$16 sps:$4 sm:$0xff]  }
0x1181   : > { %8761 = vmatprep.subr.bf16.mxu1 %v14937_v0  ;;  %v14983_v0 = vld [vmem:[#allocation9 + $0x1200] ss:$16 sps:$4 sm:$0xff]  }
0x1183   : > { %7927 = vmatpush1.bf16.msra.mxu0 %v15789_v28  ;;  %v15802_v28 = vld [vmem:[#allocation6 + $0x28] ss:$16 sps:$4 sm:$0xff]  }
0x1184   : > { %7953 = vmatprep.subr.bf16.mxu0 %v17926_v25  ;;  %8762 = vmatpush1.bf16.msra.mxu1 %v14935_v63  ;;  %v15803_v25 = vld [vmem:[#allocation6 + $0xc] ss:$16 sps:$4 sm:$0xff]   ;;  %v14985_v63 = vld [vmem:[#allocation9 + $0x1204] ss:$16 sps:$4 sm:$0xff]  }
0x1185   : > { %8763 = vmatprep.subr.bf16.mxu1 %v14940_v32  ;;  %v14989_v32 = vld [vmem:[#allocation9 + $0x11e0] ss:$16 sps:$4 sm:$0xff]  }
0x1188   : > { %8764 = vmatpush2.bf16.msra.mxu1 %v14938_v1  ;;  %v14991_v1 = vld [vmem:[#allocation9 + $0x11e4] ss:$16 sps:$4 sm:$0xff]  }
0x1189   : > { %8765 = vmatprep.subr.bf16.mxu1 %v14943_v37  ;;  %v14995_v37 = vld [vmem:[#allocation9 + $0x11c0] ss:$16 sps:$4 sm:$0xff]  }
0x118c   : > { %8766 = vmatpush2.bf16.msra.mxu1 %v14941_v21  ;;  %v14997_v21 = vld [vmem:[#allocation9 + $0x11c4] ss:$16 sps:$4 sm:$0xff]  }
0x118d   : > { %8767 = vmatprep.subr.bf16.mxu1 %v14946_v58  ;;  %v15003_v58 = vld [vmem:[#allocation9 + $0x11a4] ss:$16 sps:$4 sm:$0xff]  }
0x1190   : > { %8768 = vmatpush2.bf16.msra.mxu1 %v14944_v27  ;;  %v15001_v27 = vld [vmem:[#allocation9 + $0x11a0] ss:$16 sps:$4 sm:$0xff]  }
0x1191   : > { %8769 = vmatprep.subr.bf16.mxu1 %v14949_v44  ;;  %v15009_v44 = vld [vmem:[#allocation9 + $0x12a4] ss:$16 sps:$4 sm:$0xff]  }
0x1194   : > { %8770 = vmatpush2.bf16.msra.mxu1 %v14947_v59  ;;  %v15007_v59 = vld [vmem:[#allocation9 + $0x12a0] ss:$16 sps:$4 sm:$0xff]  }
0x1195   : > { %8771 = vmatprep.subr.bf16.mxu1 %v14952_v41  ;;  %v15015_v41 = vld [vmem:[#allocation9 + $0x128c] ss:$16 sps:$4 sm:$0xff]  }
0x1198   : > { %8772 = vmatpush2.bf16.msra.mxu1 %v14950_v19  ;;  %v17927_v19 = vld [vmem:[#allocation21_spill] sm:$0xff] }
0x1199   : > { %8773 = vmatprep.subr.bf16.mxu1 %v14955_v29  ;;  %v17928_v29 = vld [vmem:[#allocation38_spill] sm:$0xff] }
0x119c   : > { %8774 = vmatpush2.bf16.msra.mxu1 %v14953_v43  ;;  %v8001_v43 = vrot.slane %v17928_v29, %v17927_v19 }
0x119d   : > { %8775 = vmatprep.subr.bf16.mxu1 %v14958_v4 }
0x11a0   : > { %8776 = vmatpush2.bf16.msra.mxu1 %v14956_v7 }
0x11a1   : > { %8777 = vmatprep.subr.bf16.mxu1 %v14964_v12 }
0x11a4   : > { %8778 = vmatpush2.bf16.msra.mxu1 %v14962_v16  ;;  %v15004_v16 = vld [vmem:[#allocation9 + $0xfc8] ss:$16 sps:$4 sm:$0xff]  }
0x11a5   : > { %8829 = vmatprep.subr.bf16.mxu1 %v14970_v6  ;;  %v15012_v6 = vld [vmem:[#allocation9 + $0xfac] ss:$16 sps:$4 sm:$0xff]  }
0x1226   : > { %v13639_v47 = vpop.f32.mrf.mxu0  ;;  %v7904_v23 = vpop.f32.mrf.mxu1 }
0x1228   : > { %v13640_v48 = vpop.f32.mrf.mxu0  ;;  %v7906_v49 = vpop.f32.mrf.mxu1 }
0x1229   : > { %v13641_v34 = vadd.f32 %v13640_v48, %v13639_v47  ;;  %v17929_v48 = vld [vmem:[#allocation40_spill] sm:$0xff] }
0x122a   : > { %v13642_v39 = vpop.f32.mrf.mxu0  ;;  %v7907_v55 = vpop.f32.mrf.mxu1  ;;  %v8005_v49 = vrot.slane %v17929_v48, %v17927_v19 }
0x122b   : > { %v7865_v30 = vadd.f32 1e-05, %v13641_v34  ;;  %v17930_v34 = vld [vmem:[#allocation33_spill] sm:$0xff] }
0x122c   : > { %v13643_v26 = vpop.f32.mrf.mxu0  ;;  %v7908_v38 = vpop.f32.mrf.mxu1  ;;  %v8021_v39 = vrot.slane %v17928_v29, %v17930_v34  ;;  %v15027_v29 = vld [vmem:[#allocation9 + $0x124c] ss:$16 sps:$4 sm:$0xff]  }
0x122d   : > { %v7905_v60 = vadd.f32 %v7904_v23, %v7865_v30  ;;  %v8025_v38 = vrot.slane %v17929_v48, %v17930_v34  ;;  %v15033_v48 = vld [vmem:[#allocation9 + $0x122c] ss:$16 sps:$4 sm:$0xff]  }
0x122f   : > { %15619 = vrsqrt.f32 %v7905_v60 }
0x123c   : > { %v15620_v35 = vpop.eup %15619 }
0x123d   : > { %v7911_v54 = vpack.c.bf16 %v15620_v35, %v15620_v35 }
0x123f   : > { %7945 = vmatmul.mubr.bf16.vlgmr.msra.gmra.mxu0 %v7911_v54 }
0x1240   : > { %7954 = vmatpush1.bf16.msra.mxu0 %v15790_v5  ;;  %7985 = vmatprep.mubr.bf16.mxu0 %v17823_v45 }
0x1241   : > { %7955 = vmatprep.subr.bf16.mxu0 %v15791_v57 }
0x1244   : > { %7956 = vmatpush1.bf16.msra.mxu0 %v15792_v36 }
0x1245   : > { %7957 = vmatprep.subr.bf16.mxu0 %v15793_v18 }
0x1248   : > { %7958 = vmatpush1.bf16.msra.mxu0 %v15794_v51  ;;  %v14976_v51 = vld [vmem:[#allocation9 + $0x106c] ss:$16 sps:$4 sm:$0xff]  }
0x1249   : > { %7959 = vmatprep.subr.bf16.mxu0 %v15795_v33  ;;  %v14982_v33 = vld [vmem:[#allocation9 + $0x104c] ss:$16 sps:$4 sm:$0xff]  }
0x124c   : > { %7960 = vmatpush1.bf16.msra.mxu0 %v15796_v62  ;;  %v14980_v62 = vld [vmem:[#allocation9 + $0x1048] ss:$16 sps:$4 sm:$0xff]  }
0x124d   : > { %7961 = vmatprep.subr.bf16.mxu0 %v15797_v10  ;;  %v14988_v10 = vld [vmem:[#allocation9 + $0x102c] ss:$16 sps:$4 sm:$0xff]  }
0x1250   : > { %7962 = vmatpush1.bf16.msra.mxu0 %v15798_v20  ;;  %v14986_v20 = vld [vmem:[#allocation9 + $0x1028] ss:$16 sps:$4 sm:$0xff]  }
0x1251   : > { %7963 = vmatprep.subr.bf16.mxu0 %v15799_v14  ;;  %v14994_v14 = vld [vmem:[#allocation9 + $0x100c] ss:$16 sps:$4 sm:$0xff]  }
0x1254   : > { %7964 = vmatpush1.bf16.msra.mxu0 %v15800_v61  ;;  %v14992_v61 = vld [vmem:[#allocation9 + $0x1008] ss:$16 sps:$4 sm:$0xff]  }
0x1255   : > { %7965 = vmatprep.subr.bf16.mxu0 %v15801_v22  ;;  %v15000_v22 = vld [vmem:[#allocation9 + $0xfec] ss:$16 sps:$4 sm:$0xff]  }
0x1258   : > { %7966 = vmatpush1.bf16.msra.mxu0 %v15802_v28  ;;  %v14998_v28 = vld [vmem:[#allocation9 + $0xfe8] ss:$16 sps:$4 sm:$0xff]  }
0x1259   : > { %7967 = vmatprep.subr.bf16.mxu0 %v15803_v25  ;;  %v15006_v25 = vld [vmem:[#allocation9 + $0xfcc] ss:$16 sps:$4 sm:$0xff]  }
0x125c   : > { %7968 = vmatpush1.bf16.msra.mxu0 %v15804_v56  ;;  %v15805_v56 = vld [vmem:[#allocation10 + $0x30] sm:$0x3f] }
0x125d   : > { %8788 = vmatprep.subr.bf16.mxu0 %v14961_v31  ;;  %v8009_v4 = vrot.slane %v15805_v56, %v17927_v19 }
0x125f   : > { %7986 = vmatmul.mubr.bf16.vlgmr.msra.gmra.mxu0 %v7911_v54 }
0x1260   : > { %8789 = vmatpush1.bf16.msra.mxu0 %v14959_v24  ;;  %v15806_v24 = vld [vmem:[#allocation10 + $0x38] sm:$0x3f] }
0x1261   : > { %8790 = vmatprep.subr.bf16.mxu0 %v14967_v3  ;;  %v8013_v12 = vrot.slane %v15806_v24, %v17927_v19  ;;  %v15022_v19 = vld [vmem:[#allocation9 + $0x1168] ss:$16 sps:$4 sm:$0xff]  }
0x1264   : > { %8791 = vmatpush1.bf16.msra.mxu0 %v14965_v17  ;;  %v8029_v17 = vrot.slane %v15805_v56, %v17930_v34  ;;  %v15072_v56 = vld [vmem:[#allocation9 + $0xf44] ss:$16 sps:$4 sm:$0xff]  }
0x1265   : > { %8792 = vmatprep.subr.bf16.mxu0 %v14973_v46 }
0x1268   : > { %8793 = vmatpush1.bf16.msra.mxu0 %v14971_v9 }
0x1269   : > { %8794 = vmatprep.subr.bf16.mxu0 %v14979_v8 }
0x126c   : > { %8795 = vmatpush1.bf16.msra.mxu0 %v14977_v40  ;;  %v8033_v40 = vrot.slane %v15806_v24, %v17930_v34  ;;  %v15031_v34 = vld [vmem:[#allocation9 + $0x1228] ss:$16 sps:$4 sm:$0xff]   ;;  %v15078_v24 = vld [vmem:[#allocation9 + $0xf24] ss:$16 sps:$4 sm:$0xff]  }
0x126d   : > { %8796 = vmatprep.subr.bf16.mxu0 %v14985_v63  ;;  %v15010_v63 = vld [vmem:[#allocation9 + $0xfa8] ss:$16 sps:$4 sm:$0xff]  }
0x1270   : > { %8797 = vmatpush1.bf16.msra.mxu0 %v14983_v0 }
0x1271   : > { %8798 = vmatprep.subr.bf16.mxu0 %v14991_v1  ;;  %v15018_v1 = vld [vmem:[#allocation9 + $0x118c] ss:$16 sps:$4 sm:$0xff]  }
0x1274   : > { %8799 = vmatpush1.bf16.msra.mxu0 %v14989_v32 }
0x1275   : > { %8800 = vmatprep.subr.bf16.mxu0 %v14997_v21 }
0x1278   : > { %8801 = vmatpush1.bf16.msra.mxu0 %v14995_v37 }
0x1279   : > { %8802 = vmatprep.subr.bf16.mxu0 %v15003_v58  ;;  %v15013_v58 = vld [vmem:[#allocation9 + $0x1288] ss:$16 sps:$4 sm:$0xff]  }
0x127c   : > { %8803 = vmatpush1.bf16.msra.mxu0 %v15001_v27  ;;  %v15016_v27 = vld [vmem:[#allocation9 + $0x1188] ss:$16 sps:$4 sm:$0xff]  }
0x127d   : > { %8818 = vmatprep.subr.bf16.mxu0 %v15009_v44 }
0x1280   : > { %8819 = vmatpush2.bf16.msra.mxu0 %v15007_v59  ;;  %v15024_v59 = vld [vmem:[#allocation9 + $0x116c] ss:$16 sps:$4 sm:$0xff]  }
0x1281   : > { %8870 = vmatprep.subr.bf16.mxu0 %v15015_v41  ;;  %v15019_v41 = vld [vmem:[#allocation9 + $0x1268] ss:$16 sps:$4 sm:$0xff]  }
0x12ff   : > { %v7946_v47 = vpop.f32.mrf.mxu0 }
0x1300   : > { %v7994_v23 = vmul.f32 %v7946_v47, %v17412_v13  ;;  %v14968_v13 = vld [vmem:[#allocation9 + $0x1088] ss:$16 sps:$4 sm:$0xff]  }
0x1301   : > { %v7948_v55 = vpop.f32.mrf.mxu0  ;;  %v15025_v47 = vld [vmem:[#allocation9 + $0x1248] ss:$16 sps:$4 sm:$0xff]  }
0x1302   : > { %v8014_v30 = vmul.f32 %v8001_v43, %v7994_v23  ;;  %v7995_v26 = vmul.f32 %v7948_v55, %v17418_v52  ;;  %v14974_v52 = vld [vmem:[#allocation9 + $0x1068] ss:$16 sps:$4 sm:$0xff]   ;;  %v15030_v43 = vld [vmem:[#allocation9 + $0x114c] ss:$16 sps:$4 sm:$0xff]  }
0x1303   : > { %v7950_v60 = vpop.f32.mrf.mxu0  ;;  %v15028_v23 = vld [vmem:[#allocation9 + $0x1148] ss:$16 sps:$4 sm:$0xff]   ;;  %v15039_v55 = vld [vmem:[#allocation9 + $0x120c] ss:$16 sps:$4 sm:$0xff]  }
0x1304   : > { %v8015_v35 = vmul.f32 %v8005_v49, %v7995_v26  ;;  %v8034_v54 = vadd.f32 %v8021_v39, %v8014_v30  ;;  %v15036_v49 = vld [vmem:[#allocation9 + $0x112c] ss:$16 sps:$4 sm:$0xff]   ;;  %v15034_v39 = vld [vmem:[#allocation9 + $0x1128] ss:$16 sps:$4 sm:$0xff]  }
0x1305   : > { %v7951_v5 = vpop.f32.mrf.mxu0  ;;  %v15042_v30 = vld [vmem:[#allocation9 + $0x110c] ss:$16 sps:$4 sm:$0xff]   ;;  %v15037_v26 = vld [vmem:[#allocation9 + $0x1208] ss:$16 sps:$4 sm:$0xff]  }
0x1306   : > { %v8035_v57 = vadd.f32 %v8025_v38, %v8015_v35  ;;  %v17447_v18 = vpack.c.bf16 %v8034_v54, %v8034_v54  ;;  %v15040_v38 = vld [vmem:[#allocation9 + $0x1108] ss:$16 sps:$4 sm:$0xff]   ;;  %v15045_v60 = vld [vmem:[#allocation9 + $0x11ec] ss:$16 sps:$4 sm:$0xff]  }
0x1307   : > { %v15048_v35 = vld [vmem:[#allocation9 + $0x10ec] ss:$16 sps:$4 sm:$0xff]   ;;  %v15043_v54 = vld [vmem:[#allocation9 + $0x11e8] ss:$16 sps:$4 sm:$0xff]  }
0x1308   : > { %v17445_v36 = vpack.c.bf16 %v8035_v57, %v8035_v57  ;;  %v15046_v5 = vld [vmem:[#allocation9 + $0x10e8] ss:$16 sps:$4 sm:$0xff]   ;;  %v15051_v57 = vld [vmem:[#allocation9 + $0x11cc] ss:$16 sps:$4 sm:$0xff]  }
0x130a   : > { %8779 = vmatprep.mubr.bf16.mxu1 %v17445_v36 }
0x130b   : > { %8780 = vmatmul.mubr.bf16.vlgmr.msra.gmra.mxu1 %v17447_v18 }
0x130c   : > { %8830 = vmatpush1.bf16.msra.mxu1 %v14968_v13  ;;  %8861 = vmatprep.mubr.bf16.mxu1 %v17445_v36  ;;  %v15054_v13 = vld [vmem:[#allocation9 + $0x10cc] ss:$16 sps:$4 sm:$0xff]  }
0x130d   : > { %8831 = vmatprep.subr.bf16.mxu1 %v14976_v51  ;;  %v15049_v51 = vld [vmem:[#allocation9 + $0x11c8] ss:$16 sps:$4 sm:$0xff]  }
0x1310   : > { %8832 = vmatpush1.bf16.msra.mxu1 %v14974_v52  ;;  %v15052_v52 = vld [vmem:[#allocation9 + $0x10c8] ss:$16 sps:$4 sm:$0xff]  }
0x1311   : > { %8833 = vmatprep.subr.bf16.mxu1 %v14982_v33  ;;  %v15057_v33 = vld [vmem:[#allocation9 + $0x11ac] ss:$16 sps:$4 sm:$0xff]  }
0x1314   : > { %8834 = vmatpush1.bf16.msra.mxu1 %v14980_v62  ;;  %v15060_v62 = vld [vmem:[#allocation9 + $0x10ac] ss:$16 sps:$4 sm:$0xff]  }
0x1315   : > { %8835 = vmatprep.subr.bf16.mxu1 %v14988_v10  ;;  %v15055_v10 = vld [vmem:[#allocation9 + $0x11a8] ss:$16 sps:$4 sm:$0xff]  }
0x1318   : > { %8836 = vmatpush1.bf16.msra.mxu1 %v14986_v20  ;;  %v15058_v20 = vld [vmem:[#allocation9 + $0x10a8] ss:$16 sps:$4 sm:$0xff]  }
0x1319   : > { %8837 = vmatprep.subr.bf16.mxu1 %v14994_v14  ;;  %v15063_v14 = vld [vmem:[#allocation9 + $0x12ac] ss:$16 sps:$4 sm:$0xff]  }
0x131c   : > { %8838 = vmatpush1.bf16.msra.mxu1 %v14992_v61  ;;  %v15066_v61 = vld [vmem:[#allocation9 + $0xf64] ss:$16 sps:$4 sm:$0xff]  }
0x131d   : > { %8839 = vmatprep.subr.bf16.mxu1 %v15000_v22  ;;  %v15061_v22 = vld [vmem:[#allocation9 + $0x12a8] ss:$16 sps:$4 sm:$0xff]  }
0x131f   : > { %v7987_v7 = vpop.f32.mrf.mxu0 }
0x1320   : > { %v7996_v31 = vmul.f32 %v7987_v7, %v17415_v15  ;;  %8840 = vmatpush1.bf16.msra.mxu1 %v14998_v28  ;;  %v15064_v28 = vld [vmem:[#allocation9 + $0xf60] ss:$16 sps:$4 sm:$0xff]  }
0x1321   : > { %v7989_v3 = vpop.f32.mrf.mxu0  ;;  %8841 = vmatprep.subr.bf16.mxu1 %v15006_v25  ;;  %v15069_v25 = vld [vmem:[#allocation9 + $0xd64] ss:$16 sps:$4 sm:$0xff]   ;;  %v15070_v7 = vld [vmem:[#allocation9 + $0xf40] ss:$16 sps:$4 sm:$0xff]  }
0x1322   : > { %v8016_v9 = vmul.f32 %v8009_v4, %v7996_v31  ;;  %v7997_v46 = vmul.f32 %v7989_v3, %v17421_v42  ;;  %v15021_v42 = vld [vmem:[#allocation9 + $0x126c] ss:$16 sps:$4 sm:$0xff]   ;;  %v15067_v4 = vld [vmem:[#allocation9 + $0xd60] ss:$16 sps:$4 sm:$0xff]   ;;  %v15075_v31 = vld [vmem:[#allocation9 + $0xd44] ss:$16 sps:$4 sm:$0xff]  }
0x1323   : > { %v7991_v8 = vpop.f32.mrf.mxu0  ;;  %v15084_v3 = vld [vmem:[#allocation9 + $0xf04] ss:$16 sps:$4 sm:$0xff]  }
0x1324   : > { %v8017_v0 = vmul.f32 %v8013_v12, %v7997_v46  ;;  %8842 = vmatpush1.bf16.msra.mxu1 %v15004_v16  ;;  %v8036_v15 = vadd.f32 %v8029_v17, %v8016_v9  ;;  %v15073_v12 = vld [vmem:[#allocation9 + $0xd40] ss:$16 sps:$4 sm:$0xff]   ;;  %v15081_v17 = vld [vmem:[#allocation9 + $0xd24] ss:$16 sps:$4 sm:$0xff]  }
0x1325   : > { %v7992_v32 = vpop.f32.mrf.mxu0  ;;  %8843 = vmatprep.subr.bf16.mxu1 %v15012_v6  ;;  %v15076_v16 = vld [vmem:[#allocation9 + $0xf20] ss:$16 sps:$4 sm:$0xff]   ;;  %v15087_v46 = vld [vmem:[#allocation9 + $0xd04] ss:$16 sps:$4 sm:$0xff]  }
0x1326   : > { %v8037_v37 = vadd.f32 %v8033_v40, %v8017_v0  ;;  %v17460_v44 = vpack.c.bf16 %v8036_v15, %v8036_v15  ;;  %v15079_v6 = vld [vmem:[#allocation9 + $0xd20] ss:$16 sps:$4 sm:$0xff]   ;;  %v15090_v40 = vld [vmem:[#allocation9 + $0xee4] ss:$16 sps:$4 sm:$0xff]  }
0x1327   : > { %v15082_v9 = vld [vmem:[#allocation9 + $0xf00] ss:$16 sps:$4 sm:$0xff]   ;;  %v15096_v15 = vld [vmem:[#allocation9 + $0xec4] ss:$16 sps:$4 sm:$0xff]  }
0x1328   : > { %v17458_v21 = vpack.c.bf16 %v8037_v37, %v8037_v37  ;;  %8844 = vmatpush1.bf16.msra.mxu1 %v15010_v63  ;;  %v15085_v8 = vld [vmem:[#allocation9 + $0xd00] ss:$16 sps:$4 sm:$0xff]   ;;  %v15093_v63 = vld [vmem:[#allocation9 + $0xce4] ss:$16 sps:$4 sm:$0xff]  }
0x1329   : > { %8845 = vmatprep.subr.bf16.mxu1 %v15018_v1  ;;  %v15088_v0 = vld [vmem:[#allocation9 + $0xee0] ss:$16 sps:$4 sm:$0xff]   ;;  %v15099_v37 = vld [vmem:[#allocation9 + $0xcc4] ss:$16 sps:$4 sm:$0xff]  }
0x132a   : > { %13053 = vmatprep.mubr.msk.bf16.mxu0 %vm1581_vm2, %v17458_v21  ;;  %v15091_v32 = vld [vmem:[#allocation9 + $0xce0] ss:$16 sps:$4 sm:$0xff]  }
0x132b   : > { %8821 = vmatmul.mubr.bf16.vlgmr.msra.gmra.mxu0 %v17460_v44  ;;  %v15094_v1 = vld [vmem:[#allocation9 + $0xec0] ss:$16 sps:$4 sm:$0xff]  }
0x132c   : > { %8871 = vmatpush1.bf16.msra.mxu0 %v15013_v58  ;;  %8846 = vmatpush2.bf16.msra.mxu1 %v15016_v27  ;;  %v15102_v58 = vld [vmem:[#allocation9 + $0xea4] ss:$16 sps:$4 sm:$0xff]   ;;  %v15097_v27 = vld [vmem:[#allocation9 + $0xcc0] ss:$16 sps:$4 sm:$0xff]  }
0x132d   : > { %13054 = vmatprep.mubr.msk.bf16.mxu0 %vm1581_vm2, %v17458_v21  ;;  %8872 = vmatprep.subr.bf16.mxu0 %v15021_v42  ;;  %v15100_v42 = vld [vmem:[#allocation9 + $0xea0] ss:$16 sps:$4 sm:$0xff]  }
0x132e   : > { %8847 = vmatprep.subr.bf16.mxu1 %v15024_v59  ;;  %v15105_v59 = vld [vmem:[#allocation9 + $0xca4] ss:$16 sps:$4 sm:$0xff]  }
0x1330   : > { %8873 = vmatpush1.bf16.msra.mxu0 %v15019_v41  ;;  %8848 = vmatpush2.bf16.msra.mxu1 %v15022_v19  ;;  %v15108_v41 = vld [vmem:[#allocation9 + $0xe84] ss:$16 sps:$4 sm:$0xff]   ;;  %v15103_v19 = vld [vmem:[#allocation9 + $0xca0] ss:$16 sps:$4 sm:$0xff]  }
0x1331   : > { %8874 = vmatprep.subr.bf16.mxu0 %v15027_v29  ;;  %8849 = vmatprep.subr.bf16.mxu1 %v15030_v43  ;;  %v15106_v29 = vld [vmem:[#allocation9 + $0xe80] ss:$16 sps:$4 sm:$0xff]   ;;  %v15111_v43 = vld [vmem:[#allocation9 + $0xc84] ss:$16 sps:$4 sm:$0xff]  }
0x1334   : > { %8875 = vmatpush1.bf16.msra.mxu0 %v15025_v47  ;;  %8850 = vmatpush2.bf16.msra.mxu1 %v15028_v23  ;;  %v15114_v47 = vld [vmem:[#allocation9 + $0xf84] ss:$16 sps:$4 sm:$0xff]   ;;  %v15109_v23 = vld [vmem:[#allocation9 + $0xc80] ss:$16 sps:$4 sm:$0xff]  }
0x1335   : > { %8876 = vmatprep.subr.bf16.mxu0 %v15033_v48  ;;  %8851 = vmatprep.subr.bf16.mxu1 %v15036_v49  ;;  %v15112_v48 = vld [vmem:[#allocation9 + $0xf80] ss:$16 sps:$4 sm:$0xff]   ;;  %v15117_v49 = vld [vmem:[#allocation9 + $0xe64] ss:$16 sps:$4 sm:$0xff]  }
0x1338   : > { %8877 = vmatpush1.bf16.msra.mxu0 %v15031_v34  ;;  %8852 = vmatpush2.bf16.msra.mxu1 %v15034_v39  ;;  %v15120_v34 = vld [vmem:[#allocation9 + $0xd6c] ss:$16 sps:$4 sm:$0xff]   ;;  %v15115_v39 = vld [vmem:[#allocation9 + $0xe60] ss:$16 sps:$4 sm:$0xff]  }
0x1339   : > { %8878 = vmatprep.subr.bf16.mxu0 %v15039_v55  ;;  %8853 = vmatprep.subr.bf16.mxu1 %v15042_v30  ;;  %v15118_v55 = vld [vmem:[#allocation9 + $0xd68] ss:$16 sps:$4 sm:$0xff]   ;;  %v15123_v30 = vld [vmem:[#allocation9 + $0xe44] ss:$16 sps:$4 sm:$0xff]  }
0x133c   : > { %8879 = vmatpush1.bf16.msra.mxu0 %v15037_v26  ;;  %8854 = vmatpush2.bf16.msra.mxu1 %v15040_v38  ;;  %v15126_v26 = vld [vmem:[#allocation9 + $0xd4c] ss:$16 sps:$4 sm:$0xff]   ;;  %v15121_v38 = vld [vmem:[#allocation9 + $0xe40] ss:$16 sps:$4 sm:$0xff]  }
0x133d   : > { %8880 = vmatprep.subr.bf16.mxu0 %v15045_v60  ;;  %8855 = vmatprep.subr.bf16.mxu1 %v15048_v35  ;;  %v15124_v60 = vld [vmem:[#allocation9 + $0xd48] ss:$16 sps:$4 sm:$0xff]   ;;  %v15129_v35 = vld [vmem:[#allocation9 + $0xe24] ss:$16 sps:$4 sm:$0xff]  }
0x1340   : > { %8881 = vmatpush1.bf16.msra.mxu0 %v15043_v54  ;;  %8856 = vmatpush2.bf16.msra.mxu1 %v15046_v5  ;;  %v15132_v54 = vld [vmem:[#allocation9 + $0xd2c] ss:$16 sps:$4 sm:$0xff]   ;;  %v15127_v5 = vld [vmem:[#allocation9 + $0xe20] ss:$16 sps:$4 sm:$0xff]  }
0x1341   : > { %8882 = vmatprep.subr.bf16.mxu0 %v15051_v57  ;;  %8857 = vmatprep.subr.bf16.mxu1 %v15054_v13  ;;  %v15130_v57 = vld [vmem:[#allocation9 + $0xd28] ss:$16 sps:$4 sm:$0xff]   ;;  %v15135_v13 = vld [vmem:[#allocation9 + $0xe04] ss:$16 sps:$4 sm:$0xff]  }
0x1344   : > { %8883 = vmatpush1.bf16.msra.mxu0 %v15049_v51  ;;  %8858 = vmatpush2.bf16.msra.mxu1 %v15052_v52  ;;  %v15138_v51 = vld [vmem:[#allocation9 + $0xd0c] ss:$16 sps:$4 sm:$0xff]   ;;  %v15133_v52 = vld [vmem:[#allocation9 + $0xe00] ss:$16 sps:$4 sm:$0xff]  }
0x1345   : > { %8884 = vmatprep.subr.bf16.mxu0 %v15057_v33  ;;  %8859 = vmatprep.subr.bf16.mxu1 %v15060_v62  ;;  %v15136_v33 = vld [vmem:[#allocation9 + $0xd08] ss:$16 sps:$4 sm:$0xff]   ;;  %v15141_v62 = vld [vmem:[#allocation9 + $0xde4] ss:$16 sps:$4 sm:$0xff]  }
0x1348   : > { %8885 = vmatpush1.bf16.msra.mxu0 %v15055_v10  ;;  %8860 = vmatpush2.bf16.msra.mxu1 %v15058_v20  ;;  %v15144_v10 = vld [vmem:[#allocation9 + $0xcec] ss:$16 sps:$4 sm:$0xff]   ;;  %v15139_v20 = vld [vmem:[#allocation9 + $0xde0] ss:$16 sps:$4 sm:$0xff]  }
0x1349   : > { %8900 = vmatprep.subr.bf16.mxu0 %v15063_v14  ;;  %9460 = vmatprep.subr.bf16.mxu1 %v15066_v61  ;;  %v15142_v14 = vld [vmem:[#allocation9 + $0xce8] ss:$16 sps:$4 sm:$0xff]   ;;  %v15147_v61 = vld [vmem:[#allocation9 + $0xdc4] ss:$16 sps:$4 sm:$0xff]  }
0x134b   : > { %8862 = vmatmul.mubr.bf16.vlgmr.msra.gmra.mxu1 %v17447_v18 }
0x134c   : > { %8901 = vmatpush2.bf16.msra.mxu0 %v15061_v22  ;;  %9461 = vmatpush1.bf16.msra.mxu1 %v15064_v28  ;;  %v15150_v22 = vld [vmem:[#allocation9 + $0xccc] ss:$16 sps:$4 sm:$0xff]   ;;  %v15145_v28 = vld [vmem:[#allocation9 + $0xdc0] ss:$16 sps:$4 sm:$0xff]  }
0x134d   : > { %13155 = vmatprep.mubr.msk.bf16.mxu1 %vm1581_vm2, %v17458_v21  ;;  %9419 = vmatprep.subr.bf16.mxu0 %v15069_v25  ;;  %v15148_v25 = vld [vmem:[#allocation9 + $0xcc8] ss:$16 sps:$4 sm:$0xff]  }
0x134e   : > { %9462 = vmatprep.subr.bf16.mxu1 %v15072_v56  ;;  %v15153_v56 = vld [vmem:[#allocation9 + $0xda4] ss:$16 sps:$4 sm:$0xff]  }
0x134f   : > { %8903 = vmatmul.mubr.bf16.vlgmr.msra.gmra.mxu0 %v17460_v44 }
0x1350   : > { %9420 = vmatpush1.bf16.msra.mxu0 %v15067_v4  ;;  %9451 = vmatprep.mubr.bf16.mxu0 %v17445_v36  ;;  %v15156_v4 = vld [vmem:[#allocation9 + $0xcac] ss:$16 sps:$4 sm:$0xff]  }
0x1351   : > { %9463 = vmatpush1.bf16.msra.mxu1 %v15070_v7  ;;  %9421 = vmatprep.subr.bf16.mxu0 %v15075_v31  ;;  %v15151_v7 = vld [vmem:[#allocation9 + $0xda0] ss:$16 sps:$4 sm:$0xff]   ;;  %v15154_v31 = vld [vmem:[#allocation9 + $0xca8] ss:$16 sps:$4 sm:$0xff]  }
0x1352   : > { %9464 = vmatprep.subr.bf16.mxu1 %v15078_v24  ;;  %v15159_v24 = vld [vmem:[#allocation9 + $0xd84] ss:$16 sps:$4 sm:$0xff]  }
0x1354   : > { %9422 = vmatpush1.bf16.msra.mxu0 %v15073_v12  ;;  %v15162_v12 = vld [vmem:[#allocation9 + $0xc8c] ss:$16 sps:$4 sm:$0xff]  }
0x1355   : > { %9465 = vmatpush1.bf16.msra.mxu1 %v15076_v16  ;;  %9423 = vmatprep.subr.bf16.mxu0 %v15081_v17  ;;  %v15157_v16 = vld [vmem:[#allocation9 + $0xd80] ss:$16 sps:$4 sm:$0xff]   ;;  %v15160_v17 = vld [vmem:[#allocation9 + $0xc88] ss:$16 sps:$4 sm:$0xff]  }
0x1356   : > { %9466 = vmatprep.subr.bf16.mxu1 %v15084_v3  ;;  %v15165_v3 = vld [vmem:[#allocation9 + $0xf6c] ss:$16 sps:$4 sm:$0xff]  }
0x1358   : > { %9424 = vmatpush1.bf16.msra.mxu0 %v15079_v6  ;;  %v15168_v6 = vld [vmem:[#allocation9 + $0xe6c] ss:$16 sps:$4 sm:$0xff]  }
0x1359   : > { %9467 = vmatpush1.bf16.msra.mxu1 %v15082_v9  ;;  %9425 = vmatprep.subr.bf16.mxu0 %v15087_v46  ;;  %v15163_v9 = vld [vmem:[#allocation9 + $0xf68] ss:$16 sps:$4 sm:$0xff]  }
0x135a   : > { %9468 = vmatprep.subr.bf16.mxu1 %v15090_v40  ;;  %v15166_v46 = vld [vmem:[#allocation9 + $0xe68] ss:$16 sps:$4 sm:$0xff]   ;;  %v15171_v40 = vld [vmem:[#allocation9 + $0xf4c] ss:$16 sps:$4 sm:$0xff]  }
0x135c   : > { %9426 = vmatpush1.bf16.msra.mxu0 %v15085_v8  ;;  %v15174_v8 = vld [vmem:[#allocation9 + $0xe4c] ss:$16 sps:$4 sm:$0xff]  }
0x135d   : > { %9469 = vmatpush1.bf16.msra.mxu1 %v15088_v0  ;;  %9427 = vmatprep.subr.bf16.mxu0 %v15093_v63  ;;  %v15169_v0 = vld [vmem:[#allocation9 + $0xf48] ss:$16 sps:$4 sm:$0xff]  }
0x135e   : > { %9470 = vmatprep.subr.bf16.mxu1 %v15096_v15  ;;  %v15172_v63 = vld [vmem:[#allocation9 + $0xe48] ss:$16 sps:$4 sm:$0xff]   ;;  %v15177_v15 = vld [vmem:[#allocation9 + $0xf2c] ss:$16 sps:$4 sm:$0xff]  }
0x1360   : > { %9428 = vmatpush1.bf16.msra.mxu0 %v15091_v32  ;;  %v15180_v32 = vld [vmem:[#allocation9 + $0xe2c] ss:$16 sps:$4 sm:$0xff]  }
0x1361   : > { %9471 = vmatpush1.bf16.msra.mxu1 %v15094_v1  ;;  %9429 = vmatprep.subr.bf16.mxu0 %v15099_v37  ;;  %v15175_v1 = vld [vmem:[#allocation9 + $0xf28] ss:$16 sps:$4 sm:$0xff]  }
0x1362   : > { %9472 = vmatprep.subr.bf16.mxu1 %v15102_v58  ;;  %v15178_v37 = vld [vmem:[#allocation9 + $0xe28] ss:$16 sps:$4 sm:$0xff]   ;;  %v15183_v58 = vld [vmem:[#allocation9 + $0xf0c] ss:$16 sps:$4 sm:$0xff]  }
0x1364   : > { %9430 = vmatpush1.bf16.msra.mxu0 %v15097_v27  ;;  %v15186_v27 = vld [vmem:[#allocation9 + $0xe0c] ss:$16 sps:$4 sm:$0xff]  }
0x1365   : > { %9473 = vmatpush1.bf16.msra.mxu1 %v15100_v42  ;;  %9431 = vmatprep.subr.bf16.mxu0 %v15105_v59  ;;  %v15181_v42 = vld [vmem:[#allocation9 + $0xf08] ss:$16 sps:$4 sm:$0xff]  }
0x1366   : > { %9474 = vmatprep.subr.bf16.mxu1 %v15108_v41  ;;  %v15184_v59 = vld [vmem:[#allocation9 + $0xe08] ss:$16 sps:$4 sm:$0xff]   ;;  %v15189_v41 = vld [vmem:[#allocation9 + $0xeec] ss:$16 sps:$4 sm:$0xff]  }
0x1368   : > { %9432 = vmatpush1.bf16.msra.mxu0 %v15103_v19  ;;  %v15192_v19 = vld [vmem:[#allocation9 + $0xdec] ss:$16 sps:$4 sm:$0xff]  }
0x1369   : > { %9475 = vmatpush1.bf16.msra.mxu1 %v15106_v29  ;;  %9433 = vmatprep.subr.bf16.mxu0 %v15111_v43  ;;  %v15187_v29 = vld [vmem:[#allocation9 + $0xee8] ss:$16 sps:$4 sm:$0xff]  }
0x136a   : > { %9490 = vmatprep.subr.bf16.mxu1 %v15114_v47  ;;  %v15190_v43 = vld [vmem:[#allocation9 + $0xde8] ss:$16 sps:$4 sm:$0xff]   ;;  %v15195_v47 = vld [vmem:[#allocation9 + $0xecc] ss:$16 sps:$4 sm:$0xff]  }
0x136c   : > { %9434 = vmatpush1.bf16.msra.mxu0 %v15109_v23  ;;  %v15198_v23 = vld [vmem:[#allocation9 + $0xdcc] ss:$16 sps:$4 sm:$0xff]  }
0x136d   : > { %9491 = vmatpush2.bf16.msra.mxu1 %v15112_v48  ;;  %9435 = vmatprep.subr.bf16.mxu0 %v15117_v49  ;;  %v15193_v48 = vld [vmem:[#allocation9 + $0xec8] ss:$16 sps:$4 sm:$0xff]  }
0x136e   : > { %9501 = vmatprep.subr.bf16.mxu1 %v15120_v34  ;;  %v15196_v49 = vld [vmem:[#allocation9 + $0xdc8] ss:$16 sps:$4 sm:$0xff]   ;;  %v15201_v34 = vld [vmem:[#allocation9 + $0xeac] ss:$16 sps:$4 sm:$0xff]  }
0x1370   : > { %9436 = vmatpush2.bf16.msra.mxu0 %v15115_v39  ;;  %9493 = vmatmul.mubr.bf16.vlgmr.msra.gmra.mxu1 %v17460_v44  ;;  %v15204_v39 = vld [vmem:[#allocation9 + $0xdac] ss:$16 sps:$4 sm:$0xff]  }
0x1371   : > { %9502 = vmatpush1.bf16.msra.mxu1 %v15118_v55  ;;  %9533 = vmatprep.mubr.bf16.mxu1 %v17445_v36  ;;  %v15199_v55 = vld [vmem:[#allocation9 + $0xea8] ss:$16 sps:$4 sm:$0xff]  }
0x1372   : > { %9437 = vmatprep.subr.bf16.mxu0 %v15123_v30  ;;  %9503 = vmatprep.subr.bf16.mxu1 %v15126_v26  ;;  %v15202_v30 = vld [vmem:[#allocation9 + $0xda8] ss:$16 sps:$4 sm:$0xff]   ;;  %v15207_v26 = vld [vmem:[#allocation9 + $0xe8c] ss:$16 sps:$4 sm:$0xff]  }
0x1374   : > { %9438 = vmatpush2.bf16.msra.mxu0 %v15121_v38  ;;  %v15210_v38 = vld [vmem:[#allocation9 + $0xd8c] ss:$16 sps:$4 sm:$0xff]  }
0x1375   : > { %9504 = vmatpush1.bf16.msra.mxu1 %v15124_v60  ;;  %9439 = vmatprep.subr.bf16.mxu0 %v15129_v35  ;;  %v15205_v60 = vld [vmem:[#allocation9 + $0xe88] ss:$16 sps:$4 sm:$0xff]  }
0x1376   : > { %9505 = vmatprep.subr.bf16.mxu1 %v15132_v54  ;;  %v15208_v35 = vld [vmem:[#allocation9 + $0xd88] ss:$16 sps:$4 sm:$0xff]   ;;  %v15213_v54 = vld [vmem:[#allocation9 + $0xf8c] ss:$16 sps:$4 sm:$0xff]  }
0x1378   : > { %9440 = vmatpush2.bf16.msra.mxu0 %v15127_v5  ;;  %v15216_v5 = vld [vmem:[#allocation9 + $0x15a4] ss:$16 sps:$4 sm:$0xff]  }
0x1379   : > { %9506 = vmatpush1.bf16.msra.mxu1 %v15130_v57  ;;  %9441 = vmatprep.subr.bf16.mxu0 %v15135_v13  ;;  %v15211_v57 = vld [vmem:[#allocation9 + $0xf88] ss:$16 sps:$4 sm:$0xff]   ;;  %v15214_v13 = vld [vmem:[#allocation9 + $0x15a0] ss:$16 sps:$4 sm:$0xff]  }
0x137a   : > { %9507 = vmatprep.subr.bf16.mxu1 %v15138_v51  ;;  %v15219_v51 = vld [vmem:[#allocation9 + $0x13a4] ss:$16 sps:$4 sm:$0xff]  }
0x137c   : > { %9442 = vmatpush2.bf16.msra.mxu0 %v15133_v52  ;;  %v15222_v52 = vld [vmem:[#allocation9 + $0x1584] ss:$16 sps:$4 sm:$0xff]  }
0x137d   : > { %9508 = vmatpush1.bf16.msra.mxu1 %v15136_v33  ;;  %9443 = vmatprep.subr.bf16.mxu0 %v15141_v62  ;;  %v15217_v33 = vld [vmem:[#allocation9 + $0x13a0] ss:$16 sps:$4 sm:$0xff]  }
0x137e   : > { %9509 = vmatprep.subr.bf16.mxu1 %v15144_v10  ;;  %v15220_v62 = vld [vmem:[#allocation9 + $0x1580] ss:$16 sps:$4 sm:$0xff]   ;;  %v15225_v10 = vld [vmem:[#allocation9 + $0x1384] ss:$16 sps:$4 sm:$0xff]  }
0x1380   : > { %9444 = vmatpush2.bf16.msra.mxu0 %v15139_v20  ;;  %v15228_v20 = vld [vmem:[#allocation9 + $0x1564] ss:$16 sps:$4 sm:$0xff]  }
0x1381   : > { %9510 = vmatpush1.bf16.msra.mxu1 %v15142_v14  ;;  %9445 = vmatprep.subr.bf16.mxu0 %v15147_v61  ;;  %v15223_v14 = vld [vmem:[#allocation9 + $0x1380] ss:$16 sps:$4 sm:$0xff]  }
0x1382   : > { %9511 = vmatprep.subr.bf16.mxu1 %v15150_v22  ;;  %v15226_v61 = vld [vmem:[#allocation9 + $0x1560] ss:$16 sps:$4 sm:$0xff]   ;;  %v15231_v22 = vld [vmem:[#allocation9 + $0x1364] ss:$16 sps:$4 sm:$0xff]  }
0x1384   : > { %9446 = vmatpush2.bf16.msra.mxu0 %v15145_v28  ;;  %v15234_v28 = vld [vmem:[#allocation9 + $0x1544] ss:$16 sps:$4 sm:$0xff]  }
0x1385   : > { %9512 = vmatpush1.bf16.msra.mxu1 %v15148_v25  ;;  %9447 = vmatprep.subr.bf16.mxu0 %v15153_v56  ;;  %v15229_v25 = vld [vmem:[#allocation9 + $0x1360] ss:$16 sps:$4 sm:$0xff]  }
0x1386   : > { %9513 = vmatprep.subr.bf16.mxu1 %v15156_v4  ;;  %v15232_v56 = vld [vmem:[#allocation9 + $0x1540] ss:$16 sps:$4 sm:$0xff]   ;;  %v15237_v4 = vld [vmem:[#allocation9 + $0x1344] ss:$16 sps:$4 sm:$0xff]  }
0x1388   : > { %9448 = vmatpush2.bf16.msra.mxu0 %v15151_v7  ;;  %v15240_v7 = vld [vmem:[#allocation9 + $0x1524] ss:$16 sps:$4 sm:$0xff]  }
0x1389   : > { %9514 = vmatpush1.bf16.msra.mxu1 %v15154_v31  ;;  %9449 = vmatprep.subr.bf16.mxu0 %v15159_v24  ;;  %v15235_v31 = vld [vmem:[#allocation9 + $0x1340] ss:$16 sps:$4 sm:$0xff]  }
0x138a   : > { %9515 = vmatprep.subr.bf16.mxu1 %v15162_v12  ;;  %v15238_v24 = vld [vmem:[#allocation9 + $0x1520] ss:$16 sps:$4 sm:$0xff]   ;;  %v15243_v12 = vld [vmem:[#allocation9 + $0x1324] ss:$16 sps:$4 sm:$0xff]  }
0x138c   : > { %9450 = vmatpush2.bf16.msra.mxu0 %v15157_v16  ;;  %v15246_v16 = vld [vmem:[#allocation9 + $0x1504] ss:$16 sps:$4 sm:$0xff]  }
0x138d   : > { %9516 = vmatpush1.bf16.msra.mxu1 %v15160_v17  ;;  %9542 = vmatprep.subr.bf16.mxu0 %v15165_v3  ;;  %v15241_v17 = vld [vmem:[#allocation9 + $0x1320] ss:$16 sps:$4 sm:$0xff]  }
0x138e   : > { %9517 = vmatprep.subr.bf16.mxu1 %v15168_v6  ;;  %v15244_v3 = vld [vmem:[#allocation9 + $0x1500] ss:$16 sps:$4 sm:$0xff]   ;;  %v15249_v6 = vld [vmem:[#allocation9 + $0x1304] ss:$16 sps:$4 sm:$0xff]  }
0x138f   : > { %9452 = vmatmul.mubr.bf16.vlgmr.msra.gmra.mxu0 %v17447_v18 }
0x1390   : > { %9543 = vmatpush1.bf16.msra.mxu0 %v15163_v9  ;;  %13156 = vmatprep.mubr.msk.bf16.mxu0 %vm1581_vm2, %v17458_v21  ;;  %v15252_v9 = vld [vmem:[#allocation9 + $0x14e4] ss:$16 sps:$4 sm:$0xff]  }
0x1391   : > { %9518 = vmatpush2.bf16.msra.mxu1 %v15166_v46  ;;  %9544 = vmatprep.subr.bf16.mxu0 %v15171_v40  ;;  %v15247_v46 = vld [vmem:[#allocation9 + $0x1300] ss:$16 sps:$4 sm:$0xff]  }
0x1392   : > { %9519 = vmatprep.subr.bf16.mxu1 %v15174_v8  ;;  %v15250_v40 = vld [vmem:[#allocation9 + $0x14e0] ss:$16 sps:$4 sm:$0xff]   ;;  %v15255_v8 = vld [vmem:[#allocation9 + $0x12e4] ss:$16 sps:$4 sm:$0xff]  }
0x1394   : > { %9545 = vmatpush1.bf16.msra.mxu0 %v15169_v0  ;;  %v15258_v0 = vld [vmem:[#allocation9 + $0x14c4] ss:$16 sps:$4 sm:$0xff]  }
0x1395   : > { %9520 = vmatpush2.bf16.msra.mxu1 %v15172_v63  ;;  %9546 = vmatprep.subr.bf16.mxu0 %v15177_v15  ;;  %v15253_v63 = vld [vmem:[#allocation9 + $0x12e0] ss:$16 sps:$4 sm:$0xff]  }
0x1396   : > { %9521 = vmatprep.subr.bf16.mxu1 %v15180_v32  ;;  %v15256_v15 = vld [vmem:[#allocation9 + $0x14c0] ss:$16 sps:$4 sm:$0xff]   ;;  %v15261_v32 = vld [vmem:[#allocation9 + $0x12c4] ss:$16 sps:$4 sm:$0xff]  }
0x1398   : > { %9547 = vmatpush1.bf16.msra.mxu0 %v15175_v1  ;;  %v15264_v1 = vld [vmem:[#allocation9 + $0x15c4] ss:$16 sps:$4 sm:$0xff]  }
0x1399   : > { %9522 = vmatpush2.bf16.msra.mxu1 %v15178_v37  ;;  %9548 = vmatprep.subr.bf16.mxu0 %v15183_v58  ;;  %v15259_v58 = vld [vmem:[#allocation9 + $0x12c0] ss:$16 sps:$4 sm:$0xff]  }
0x139a   : > { %9523 = vmatprep.subr.bf16.mxu1 %v15186_v27 }
0x139c   : > { %9549 = vmatpush1.bf16.msra.mxu0 %v15181_v42  ;;  %v15262_v42 = vld [vmem:[#allocation9 + $0x15c0] ss:$16 sps:$4 sm:$0xff]  }
0x139d   : > { %9524 = vmatpush2.bf16.msra.mxu1 %v15184_v59  ;;  %9550 = vmatprep.subr.bf16.mxu0 %v15189_v41  ;;  %v15267_v59 = vld [vmem:[#allocation9 + $0x14a4] ss:$16 sps:$4 sm:$0xff]   ;;  %v15270_v41 = vld [vmem:[#allocation9 + $0x13ac] ss:$16 sps:$4 sm:$0xff]  }
0x139e   : > { %9525 = vmatprep.subr.bf16.mxu1 %v15192_v19 }
0x13a0   : > { %9551 = vmatpush1.bf16.msra.mxu0 %v15187_v29  ;;  %v15265_v29 = vld [vmem:[#allocation9 + $0x14a0] ss:$16 sps:$4 sm:$0xff]  }
0x13a1   : > { %9526 = vmatpush2.bf16.msra.mxu1 %v15190_v43  ;;  %9552 = vmatprep.subr.bf16.mxu0 %v15195_v47  ;;  %v15268_v47 = vld [vmem:[#allocation9 + $0x13a8] ss:$16 sps:$4 sm:$0xff]  }
0x13a2   : > { %9527 = vmatprep.subr.bf16.mxu1 %v15198_v23  ;;  %v15273_v23 = vld [vmem:[#allocation9 + $0x1484] ss:$16 sps:$4 sm:$0xff]  }
0x13a4   : > { %9553 = vmatpush1.bf16.msra.mxu0 %v15193_v48  ;;  %v15276_v48 = vld [vmem:[#allocation9 + $0x138c] ss:$16 sps:$4 sm:$0xff]  }
0x13a5   : > { %9528 = vmatpush2.bf16.msra.mxu1 %v15196_v49  ;;  %9554 = vmatprep.subr.bf16.mxu0 %v15201_v34  ;;  %v15271_v49 = vld [vmem:[#allocation9 + $0x1480] ss:$16 sps:$4 sm:$0xff]   ;;  %v15274_v34 = vld [vmem:[#allocation9 + $0x1388] ss:$16 sps:$4 sm:$0xff]  }
0x13a6   : > { %9529 = vmatprep.subr.bf16.mxu1 %v15204_v39  ;;  %v15279_v39 = vld [vmem:[#allocation9 + $0x1464] ss:$16 sps:$4 sm:$0xff]  }
0x13a8   : > { %9555 = vmatpush1.bf16.msra.mxu0 %v15199_v55  ;;  %v15282_v55 = vld [vmem:[#allocation9 + $0x136c] ss:$16 sps:$4 sm:$0xff]  }
0x13a9   : > { %9530 = vmatpush2.bf16.msra.mxu1 %v15202_v30  ;;  %9556 = vmatprep.subr.bf16.mxu0 %v15207_v26  ;;  %v15277_v30 = vld [vmem:[#allocation9 + $0x1460] ss:$16 sps:$4 sm:$0xff]   ;;  %v15280_v26 = vld [vmem:[#allocation9 + $0x1368] ss:$16 sps:$4 sm:$0xff]  }
0x13aa   : > { %9531 = vmatprep.subr.bf16.mxu1 %v15210_v38  ;;  %v15285_v38 = vld [vmem:[#allocation9 + $0x1444] ss:$16 sps:$4 sm:$0xff]  }
0x13ac   : > { %9557 = vmatpush1.bf16.msra.mxu0 %v15205_v60  ;;  %v15288_v60 = vld [vmem:[#allocation9 + $0x134c] ss:$16 sps:$4 sm:$0xff]  }
0x13ad   : > { %9532 = vmatpush2.bf16.msra.mxu1 %v15208_v35  ;;  %9572 = vmatprep.subr.bf16.mxu0 %v15213_v54  ;;  %v15283_v35 = vld [vmem:[#allocation9 + $0x1440] ss:$16 sps:$4 sm:$0xff]   ;;  %v15286_v54 = vld [vmem:[#allocation9 + $0x1348] ss:$16 sps:$4 sm:$0xff]  }
0x13ae   : > { %10225 = vmatprep.subr.bf16.mxu1 %v15216_v5  ;;  %v15291_v5 = vld [vmem:[#allocation9 + $0x1424] ss:$16 sps:$4 sm:$0xff]  }
0x13b0   : > { %9534 = vmatmul.mubr.bf16.vlgmr.msra.gmra.mxu1 %v17447_v18  ;;  %9573 = vmatpush2.bf16.msra.mxu0 %v15211_v57  ;;  %v15294_v57 = vld [vmem:[#allocation9 + $0x132c] ss:$16 sps:$4 sm:$0xff]  }
0x13b1   : > { %10226 = vmatpush1.bf16.msra.mxu1 %v15214_v13  ;;  %13257 = vmatprep.mubr.msk.bf16.mxu1 %vm1581_vm2, %v17458_v21  ;;  %v15289_v13 = vld [vmem:[#allocation9 + $0x1420] ss:$16 sps:$4 sm:$0xff]  }
0x13b2   : > { %10184 = vmatprep.subr.bf16.mxu0 %v15219_v51  ;;  %10227 = vmatprep.subr.bf16.mxu1 %v15222_v52  ;;  %v15292_v51 = vld [vmem:[#allocation9 + $0x1328] ss:$16 sps:$4 sm:$0xff]   ;;  %v15297_v52 = vld [vmem:[#allocation9 + $0x1404] ss:$16 sps:$4 sm:$0xff]  }
0x13b3   : > { %9575 = vmatmul.mubr.bf16.vlgmr.msra.gmra.mxu0 %v17460_v44 }
0x13b4   : > { %10185 = vmatpush1.bf16.msra.mxu0 %v15217_v33  ;;  %10216 = vmatprep.mubr.bf16.mxu0 %v17445_v36  ;;  %v15300_v33 = vld [vmem:[#allocation9 + $0x130c] ss:$16 sps:$4 sm:$0xff]  }
0x13b5   : > { %10228 = vmatpush1.bf16.msra.mxu1 %v15220_v62  ;;  %10186 = vmatprep.subr.bf16.mxu0 %v15225_v10  ;;  %v15295_v62 = vld [vmem:[#allocation9 + $0x1400] ss:$16 sps:$4 sm:$0xff]   ;;  %v15298_v10 = vld [vmem:[#allocation9 + $0x1308] ss:$16 sps:$4 sm:$0xff]  }
0x13b6   : > { %10229 = vmatprep.subr.bf16.mxu1 %v15228_v20  ;;  %v15303_v20 = vld [vmem:[#allocation9 + $0x13e4] ss:$16 sps:$4 sm:$0xff]  }
0x13b8   : > { %10187 = vmatpush1.bf16.msra.mxu0 %v15223_v14  ;;  %v15306_v14 = vld [vmem:[#allocation9 + $0x12ec] ss:$16 sps:$4 sm:$0xff]  }
0x13b9   : > { %10230 = vmatpush1.bf16.msra.mxu1 %v15226_v61  ;;  %10188 = vmatprep.subr.bf16.mxu0 %v15231_v22  ;;  %v15301_v61 = vld [vmem:[#allocation9 + $0x13e0] ss:$16 sps:$4 sm:$0xff]   ;;  %v15304_v22 = vld [vmem:[#allocation9 + $0x12e8] ss:$16 sps:$4 sm:$0xff]  }
0x13ba   : > { %10231 = vmatprep.subr.bf16.mxu1 %v15234_v28  ;;  %v15309_v28 = vld [vmem:[#allocation9 + $0x13c4] ss:$16 sps:$4 sm:$0xff]  }
0x13bc   : > { %10189 = vmatpush1.bf16.msra.mxu0 %v15229_v25  ;;  %v15312_v25 = vld [vmem:[#allocation9 + $0x12cc] ss:$16 sps:$4 sm:$0xff]  }
0x13bd   : > { %10232 = vmatpush1.bf16.msra.mxu1 %v15232_v56  ;;  %10190 = vmatprep.subr.bf16.mxu0 %v15237_v4 }
0x13be   : > { %10233 = vmatprep.subr.bf16.mxu1 %v15240_v7  ;;  %v15307_v7 = vld [vmem:[#allocation9 + $0x13c0] ss:$16 sps:$4 sm:$0xff]  }
0x13c0   : > { %10191 = vmatpush1.bf16.msra.mxu0 %v15235_v31 }
0x13c1   : > { %10234 = vmatpush1.bf16.msra.mxu1 %v15238_v24  ;;  %10192 = vmatprep.subr.bf16.mxu0 %v15243_v12  ;;  %v15310_v24 = vld [vmem:[#allocation9 + $0x12c8] ss:$16 sps:$4 sm:$0xff]   ;;  %v15315_v12 = vld [vmem:[#allocation9 + $0x15ac] ss:$16 sps:$4 sm:$0xff]  }
0x13c2   : > { %10235 = vmatprep.subr.bf16.mxu1 %v15246_v16 }
0x13c4   : > { %10193 = vmatpush1.bf16.msra.mxu0 %v15241_v17  ;;  %v15318_v17 = vld [vmem:[#allocation9 + $0x14ac] ss:$16 sps:$4 sm:$0xff]  }
0x13c5   : > { %10236 = vmatpush1.bf16.msra.mxu1 %v15244_v3  ;;  %10194 = vmatprep.subr.bf16.mxu0 %v15249_v6  ;;  %v15313_v6 = vld [vmem:[#allocation9 + $0x15a8] ss:$16 sps:$4 sm:$0xff]  }
0x13c6   : > { %10237 = vmatprep.subr.bf16.mxu1 %v15252_v9 }
0x13c8   : > { %10195 = vmatpush1.bf16.msra.mxu0 %v15247_v46  ;;  %v15316_v46 = vld [vmem:[#allocation9 + $0x14a8] ss:$16 sps:$4 sm:$0xff]  }
0x13c9   : > { %10238 = vmatpush1.bf16.msra.mxu1 %v15250_v40  ;;  %10196 = vmatprep.subr.bf16.mxu0 %v15255_v8  ;;  %v15321_v40 = vld [vmem:[#allocation9 + $0x158c] ss:$16 sps:$4 sm:$0xff]  }
0x13ca   : > { %10239 = vmatprep.subr.bf16.mxu1 %v15258_v0  ;;  %v15324_v8 = vld [vmem:[#allocation9 + $0x148c] ss:$16 sps:$4 sm:$0xff]   ;;  %v15319_v0 = vld [vmem:[#allocation9 + $0x1588] ss:$16 sps:$4 sm:$0xff]  }
0x13cb   : > { %v17482_v37 = vpop.f32.mrf.mxu1 }
0x13cc   : > { %10197 = vmatpush1.bf16.msra.mxu0 %v15253_v63  ;;  %v15322_v63 = vld [vmem:[#allocation9 + $0x1488] ss:$16 sps:$4 sm:$0xff]  }
0x13cd   : > { %10240 = vmatpush1.bf16.msra.mxu1 %v15256_v15  ;;  %v17484_v27 = vpop.f32.mrf.mxu1  ;;  %10198 = vmatprep.subr.bf16.mxu0 %v15261_v32  ;;  %v15327_v15 = vld [vmem:[#allocation9 + $0x156c] ss:$16 sps:$4 sm:$0xff]  }
0x13ce   : > { %10255 = vmatprep.subr.bf16.mxu1 %v15264_v1  ;;  %v15330_v32 = vld [vmem:[#allocation9 + $0x146c] ss:$16 sps:$4 sm:$0xff]   ;;  %v15325_v1 = vld [vmem:[#allocation9 + $0x1568] ss:$16 sps:$4 sm:$0xff]  }
0x13cf   : > { %v8785_v19 = vpop.f32.mrf.mxu1 }
0x13d0   : > { %10199 = vmatpush1.bf16.msra.mxu0 %v15259_v58  ;;  %v15333_v58 = vld [vmem:[#allocation9 + $0x154c] ss:$16 sps:$4 sm:$0xff]  }
0x13d1   : > { %10256 = vmatpush2.bf16.msra.mxu1 %v15262_v42  ;;  %v8786_v43 = vpop.f32.mrf.mxu1  ;;  %10200 = vmatprep.subr.bf16.mxu0 %v15267_v59  ;;  %v15331_v42 = vld [vmem:[#allocation9 + $0x1548] ss:$16 sps:$4 sm:$0xff]   ;;  %v15342_v19 = vld [vmem:[#allocation9 + $0x142c] ss:$16 sps:$4 sm:$0xff]  }
0x13d2   : > { %10266 = vmatprep.subr.bf16.mxu1 %v15270_v41  ;;  %v15334_v59 = vld [vmem:[#allocation9 + $0x1448] ss:$16 sps:$4 sm:$0xff]   ;;  %v15339_v41 = vld [vmem:[#allocation9 + $0x152c] ss:$16 sps:$4 sm:$0xff]  }
0x13d3   : > { %v15340_v43 = vld [vmem:[#allocation9 + $0x1428] ss:$16 sps:$4 sm:$0xff]  }
0x13d4   : > { %10201 = vmatpush2.bf16.msra.mxu0 %v15265_v29  ;;  %10258 = vmatmul.mubr.bf16.vlgmr.msra.gmra.mxu1 %v17460_v44  ;;  %v15337_v29 = vld [vmem:[#allocation9 + $0x1528] ss:$16 sps:$4 sm:$0xff]  }
0x13d5   : > { %10267 = vmatpush1.bf16.msra.mxu1 %v15268_v47  ;;  %10298 = vmatprep.mubr.bf16.mxu1 %v17445_v36  ;;  %v15345_v47 = vld [vmem:[#allocation9 + $0x150c] ss:$16 sps:$4 sm:$0xff]  }
0x13d6   : > { %10202 = vmatprep.subr.bf16.mxu0 %v15273_v23  ;;  %10268 = vmatprep.subr.bf16.mxu1 %v15276_v48  ;;  %v15348_v23 = vld [vmem:[#allocation9 + $0x140c] ss:$16 sps:$4 sm:$0xff]   ;;  %v15343_v48 = vld [vmem:[#allocation9 + $0x1508] ss:$16 sps:$4 sm:$0xff]  }
0x13d8   : > { %10203 = vmatpush2.bf16.msra.mxu0 %v15271_v49  ;;  %v15346_v49 = vld [vmem:[#allocation9 + $0x1408] ss:$16 sps:$4 sm:$0xff]  }
0x13d9   : > { %10269 = vmatpush1.bf16.msra.mxu1 %v15274_v34  ;;  %10204 = vmatprep.subr.bf16.mxu0 %v15279_v39  ;;  %v15351_v34 = vld [vmem:[#allocation9 + $0x14ec] ss:$16 sps:$4 sm:$0xff]  }
0x13da   : > { %10270 = vmatprep.subr.bf16.mxu1 %v15282_v55  ;;  %v15354_v39 = vld [vmem:[#allocation9 + $0x13ec] ss:$16 sps:$4 sm:$0xff]   ;;  %v15349_v55 = vld [vmem:[#allocation9 + $0x14e8] ss:$16 sps:$4 sm:$0xff]  }
0x13dc   : > { %10205 = vmatpush2.bf16.msra.mxu0 %v15277_v30  ;;  %v15352_v30 = vld [vmem:[#allocation9 + $0x13e8] ss:$16 sps:$4 sm:$0xff]  }
0x13dd   : > { %10271 = vmatpush1.bf16.msra.mxu1 %v15280_v26  ;;  %10206 = vmatprep.subr.bf16.mxu0 %v15285_v38  ;;  %v15357_v26 = vld [vmem:[#allocation9 + $0x14cc] ss:$16 sps:$4 sm:$0xff]  }
0x13de   : > { %10272 = vmatprep.subr.bf16.mxu1 %v15288_v60  ;;  %v15360_v38 = vld [vmem:[#allocation9 + $0x13cc] ss:$16 sps:$4 sm:$0xff]  }
0x13e0   : > { %10207 = vmatpush2.bf16.msra.mxu0 %v15283_v35  ;;  %v15355_v35 = vld [vmem:[#allocation9 + $0x14c8] ss:$16 sps:$4 sm:$0xff]  }
0x13e1   : > { %10273 = vmatpush1.bf16.msra.mxu1 %v15286_v54  ;;  %10208 = vmatprep.subr.bf16.mxu0 %v15291_v5  ;;  %v15358_v5 = vld [vmem:[#allocation9 + $0x13c8] ss:$16 sps:$4 sm:$0xff]  }
0x13e2   : > { %10274 = vmatprep.subr.bf16.mxu1 %v15294_v57  ;;  %v15363_v57 = vld [vmem:[#allocation9 + $0x15cc] ss:$16 sps:$4 sm:$0xff]  }
0x13e4   : > { %10209 = vmatpush2.bf16.msra.mxu0 %v15289_v13  ;;  %v15366_v13 = vld [vmem:[#allocation9 + $0x18c4] ss:$16 sps:$4 sm:$0xff]  }
0x13e5   : > { %10275 = vmatpush1.bf16.msra.mxu1 %v15292_v51  ;;  %10210 = vmatprep.subr.bf16.mxu0 %v15297_v52 }
0x13e6   : > { %10276 = vmatprep.subr.bf16.mxu1 %v15300_v33 }
0x13e8   : > { %10211 = vmatpush2.bf16.msra.mxu0 %v15295_v62  ;;  %v15361_v62 = vld [vmem:[#allocation9 + $0x15c8] ss:$16 sps:$4 sm:$0xff]  }
0x13e9   : > { %10277 = vmatpush1.bf16.msra.mxu1 %v15298_v10  ;;  %10212 = vmatprep.subr.bf16.mxu0 %v15303_v20 }
0x13ea   : > { %10278 = vmatprep.subr.bf16.mxu1 %v15306_v14  ;;  %v15364_v14 = vld [vmem:[#allocation9 + $0x18c0] ss:$16 sps:$4 sm:$0xff]  }
0x13eb   : > { %v8822_v56 = vpop.f32.mrf.mxu0 }
0x13ec   : > { %v17489_v4 = vadd.f32 %v8822_v56, %v17482_v37  ;;  %10213 = vmatpush2.bf16.msra.mxu0 %v15301_v61  ;;  %v15328_v37 = vld [vmem:[#allocation9 + $0x1468] ss:$16 sps:$4 sm:$0xff]   ;;  %v15367_v56 = vld [vmem:[#allocation9 + $0x16c0] ss:$16 sps:$4 sm:$0xff]  }
0x13ed   : > { %10279 = vmatpush1.bf16.msra.mxu1 %v15304_v22  ;;  %v8824_v31 = vpop.f32.mrf.mxu0  ;;  %10214 = vmatprep.subr.bf16.mxu0 %v15309_v28  ;;  %v15369_v22 = vld [vmem:[#allocation9 + $0x16c4] ss:$16 sps:$4 sm:$0xff]  }
0x13ee   : > { %v17492_v16 = vadd.f32 %v8824_v31, %v17484_v27  ;;  %10280 = vmatprep.subr.bf16.mxu1 %v15312_v25  ;;  %v15336_v27 = vld [vmem:[#allocation9 + $0x144c] ss:$16 sps:$4 sm:$0xff]   ;;  %v15372_v28 = vld [vmem:[#allocation9 + $0x18a4] ss:$16 sps:$4 sm:$0xff]   ;;  %v15370_v31 = vld [vmem:[#allocation9 + $0x18a0] ss:$16 sps:$4 sm:$0xff]  }
0x13ef   : > { %v8826_v3 = vpop.f32.mrf.mxu0 }
0x13f0   : > { %10215 = vmatpush2.bf16.msra.mxu0 %v15307_v7  ;;  %v15376_v3 = vld [vmem:[#allocation9 + $0x1880] ss:$16 sps:$4 sm:$0xff]  }
0x13f1   : > { %10281 = vmatpush1.bf16.msra.mxu1 %v15310_v24  ;;  %v8827_v9 = vpop.f32.mrf.mxu0  ;;  %10307 = vmatprep.subr.bf16.mxu0 %v15315_v12  ;;  %v15375_v24 = vld [vmem:[#allocation9 + $0x16a4] ss:$16 sps:$4 sm:$0xff]  }
0x13f2   : > { %10282 = vmatprep.subr.bf16.mxu1 %v15318_v17  ;;  %v15378_v12 = vld [vmem:[#allocation9 + $0x1884] ss:$16 sps:$4 sm:$0xff]   ;;  %v15373_v17 = vld [vmem:[#allocation9 + $0x16a0] ss:$16 sps:$4 sm:$0xff]  }
0x13f3   : > { %10217 = vmatmul.mubr.bf16.vlgmr.msra.gmra.mxu0 %v17447_v18  ;;  %v15384_v9 = vld [vmem:[#allocation9 + $0x1864] ss:$16 sps:$4 sm:$0xff]  }
0x13f4   : > { %10308 = vmatpush1.bf16.msra.mxu0 %v15313_v6  ;;  %13258 = vmatprep.mubr.msk.bf16.mxu0 %vm1581_vm2, %v17458_v21  ;;  %v15381_v6 = vld [vmem:[#allocation9 + $0x1684] ss:$16 sps:$4 sm:$0xff]  }
0x13f5   : > { %10283 = vmatpush2.bf16.msra.mxu1 %v15316_v46  ;;  %10309 = vmatprep.subr.bf16.mxu0 %v15321_v40  ;;  %v15379_v46 = vld [vmem:[#allocation9 + $0x1680] ss:$16 sps:$4 sm:$0xff]  }
0x13f6   : > { %10284 = vmatprep.subr.bf16.mxu1 %v15324_v8  ;;  %v15382_v40 = vld [vmem:[#allocation9 + $0x1860] ss:$16 sps:$4 sm:$0xff]   ;;  %v15387_v8 = vld [vmem:[#allocation9 + $0x1664] ss:$16 sps:$4 sm:$0xff]  }
0x13f8   : > { %10310 = vmatpush1.bf16.msra.mxu0 %v15319_v0  ;;  %v15390_v0 = vld [vmem:[#allocation9 + $0x1844] ss:$16 sps:$4 sm:$0xff]  }
0x13f9   : > { %10285 = vmatpush2.bf16.msra.mxu1 %v15322_v63  ;;  %10311 = vmatprep.subr.bf16.mxu0 %v15327_v15  ;;  %v15385_v63 = vld [vmem:[#allocation9 + $0x1660] ss:$16 sps:$4 sm:$0xff]  }
0x13fa   : > { %10286 = vmatprep.subr.bf16.mxu1 %v15330_v32  ;;  %v15388_v15 = vld [vmem:[#allocation9 + $0x1840] ss:$16 sps:$4 sm:$0xff]   ;;  %v15393_v32 = vld [vmem:[#allocation9 + $0x1644] ss:$16 sps:$4 sm:$0xff]  }
0x13fc   : > { %10312 = vmatpush1.bf16.msra.mxu0 %v15325_v1  ;;  %v15396_v1 = vld [vmem:[#allocation9 + $0x1824] ss:$16 sps:$4 sm:$0xff]  }
0x13fd   : > { %10287 = vmatpush2.bf16.msra.mxu1 %v15328_v37  ;;  %10313 = vmatprep.subr.bf16.mxu0 %v15333_v58  ;;  %v15391_v37 = vld [vmem:[#allocation9 + $0x1640] ss:$16 sps:$4 sm:$0xff]  }
0x13fe   : > { %10288 = vmatprep.subr.bf16.mxu1 %v15336_v27  ;;  %v15394_v58 = vld [vmem:[#allocation9 + $0x1820] ss:$16 sps:$4 sm:$0xff]   ;;  %v15399_v27 = vld [vmem:[#allocation9 + $0x1624] ss:$16 sps:$4 sm:$0xff]  }
0x1400   : > { %10314 = vmatpush1.bf16.msra.mxu0 %v15331_v42  ;;  %v15402_v42 = vld [vmem:[#allocation9 + $0x1804] ss:$16 sps:$4 sm:$0xff]  }
0x1401   : > { %10289 = vmatpush2.bf16.msra.mxu1 %v15334_v59  ;;  %10315 = vmatprep.subr.bf16.mxu0 %v15339_v41  ;;  %v15397_v59 = vld [vmem:[#allocation9 + $0x1620] ss:$16 sps:$4 sm:$0xff]  }
0x1402   : > { %10290 = vmatprep.subr.bf16.mxu1 %v15342_v19  ;;  %v15400_v41 = vld [vmem:[#allocation9 + $0x1800] ss:$16 sps:$4 sm:$0xff]   ;;  %v15405_v19 = vld [vmem:[#allocation9 + $0x1604] ss:$16 sps:$4 sm:$0xff]  }
0x1404   : > { %10316 = vmatpush1.bf16.msra.mxu0 %v15337_v29  ;;  %v15408_v29 = vld [vmem:[#allocation9 + $0x17e4] ss:$16 sps:$4 sm:$0xff]  }
0x1405   : > { %10291 = vmatpush2.bf16.msra.mxu1 %v15340_v43  ;;  %10317 = vmatprep.subr.bf16.mxu0 %v15345_v47  ;;  %v15403_v43 = vld [vmem:[#allocation9 + $0x1600] ss:$16 sps:$4 sm:$0xff]  }
0x1406   : > { %10292 = vmatprep.subr.bf16.mxu1 %v15348_v23  ;;  %v15406_v47 = vld [vmem:[#allocation9 + $0x17e0] ss:$16 sps:$4 sm:$0xff]   ;;  %v15411_v23 = vld [vmem:[#allocation9 + $0x15e4] ss:$16 sps:$4 sm:$0xff]  }
0x1408   : > { %10318 = vmatpush1.bf16.msra.mxu0 %v15343_v48  ;;  %v15414_v48 = vld [vmem:[#allocation9 + $0x18e4] ss:$16 sps:$4 sm:$0xff]  }
0x1409   : > { %10293 = vmatpush2.bf16.msra.mxu1 %v15346_v49  ;;  %10319 = vmatprep.subr.bf16.mxu0 %v15351_v34  ;;  %v15409_v34 = vld [vmem:[#allocation9 + $0x15e0] ss:$16 sps:$4 sm:$0xff]  }
0x140a   : > { %10294 = vmatprep.subr.bf16.mxu1 %v15354_v39  ;;  %v15412_v39 = vld [vmem:[#allocation9 + $0x18e0] ss:$16 sps:$4 sm:$0xff]  }
0x140b   : > { %v8863_v60 = vpop.f32.mrf.mxu1 }
0x140c   : > { %10320 = vmatpush1.bf16.msra.mxu0 %v15349_v55  ;;  %v15417_v55 = vld [vmem:[#allocation9 + $0x17c4] ss:$16 sps:$4 sm:$0xff]  }
0x140d   : > { %10295 = vmatpush2.bf16.msra.mxu1 %v15352_v30  ;;  %v8865_v54 = vpop.f32.mrf.mxu1  ;;  %10321 = vmatprep.subr.bf16.mxu0 %v15357_v26  ;;  %v15420_v26 = vld [vmem:[#allocation9 + $0x16cc] ss:$16 sps:$4 sm:$0xff]  }
0x140e   : > { %10296 = vmatprep.subr.bf16.mxu1 %v15360_v38 }
0x140f   : > { %v8904_v51 = vpop.f32.mrf.mxu0  ;;  %v8867_v52 = vpop.f32.mrf.mxu1 }
0x1410   : > { %v17497_v33 = vadd.f32 %v8904_v51, %v8863_v60  ;;  %10322 = vmatpush1.bf16.msra.mxu0 %v15355_v35  ;;  %v15415_v60 = vld [vmem:[#allocation9 + $0x17c0] ss:$16 sps:$4 sm:$0xff]   ;;  %v15418_v35 = vld [vmem:[#allocation9 + $0x16c8] ss:$16 sps:$4 sm:$0xff]   ;;  %v15429_v52 = vld [vmem:[#allocation9 + $0x1784] ss:$16 sps:$4 sm:$0xff]  }
0x1411   : > { %v8906_v10 = vpop.f32.mrf.mxu0  ;;  %10297 = vmatpush2.bf16.msra.mxu1 %v15358_v5  ;;  %v8868_v20 = vpop.f32.mrf.mxu1  ;;  %10337 = vmatprep.subr.bf16.mxu0 %v15363_v57  ;;  %v15423_v5 = vld [vmem:[#allocation9 + $0x17a4] ss:$16 sps:$4 sm:$0xff]   ;;  %v15426_v57 = vld [vmem:[#allocation9 + $0x16ac] ss:$16 sps:$4 sm:$0xff]   ;;  %v15424_v51 = vld [vmem:[#allocation9 + $0x16a8] ss:$16 sps:$4 sm:$0xff]  }
0x1412   : > { %v17499_v61 = vadd.f32 %v8906_v10, %v8865_v54  ;;  %11002 = vmatprep.subr.bf16.mxu1 %v15366_v13  ;;  %v15421_v13 = vld [vmem:[#allocation9 + $0x17a0] ss:$16 sps:$4 sm:$0xff]   ;;  %v15430_v20 = vld [vmem:[#allocation9 + $0x1688] ss:$16 sps:$4 sm:$0xff]  }
0x1413   : > { %v8908_v25 = vpop.f32.mrf.mxu0  ;;  %v15427_v10 = vld [vmem:[#allocation9 + $0x1780] ss:$16 sps:$4 sm:$0xff]  }
0x1414   : > { %10299 = vmatmul.mubr.bf16.vlgmr.msra.gmra.mxu1 %v17447_v18  ;;  %10338 = vmatpush2.bf16.msra.mxu0 %v15361_v62  ;;  %v15432_v62 = vld [vmem:[#allocation9 + $0x168c] ss:$16 sps:$4 sm:$0xff]   ;;  %v15436_v25 = vld [vmem:[#allocation9 + $0x1668] ss:$16 sps:$4 sm:$0xff]  }
0x1415   : > { %v8909_v7 = vpop.f32.mrf.mxu0  ;;  %11003 = vmatpush1.bf16.msra.mxu1 %v15364_v14  ;;  %13359 = vmatprep.mubr.msk.bf16.mxu1 %vm1581_vm2, %v17458_v21  ;;  %v15435_v14 = vld [vmem:[#allocation9 + $0x1764] ss:$16 sps:$4 sm:$0xff]  }
0x1416   : > { %10961 = vmatprep.subr.bf16.mxu0 %v15369_v22  ;;  %11004 = vmatprep.subr.bf16.mxu1 %v15372_v28  ;;  %v15438_v22 = vld [vmem:[#allocation9 + $0x166c] ss:$16 sps:$4 sm:$0xff]   ;;  %v15433_v28 = vld [vmem:[#allocation9 + $0x1760] ss:$16 sps:$4 sm:$0xff]  }
0x1417   : > { %10340 = vmatmul.mubr.bf16.vlgmr.msra.gmra.mxu0 %v17460_v44  ;;  %v15439_v7 = vld [vmem:[#allocation9 + $0x1740] ss:$16 sps:$4 sm:$0xff]  }
0x1418   : > { %10962 = vmatpush1.bf16.msra.mxu0 %v15367_v56  ;;  %10993 = vmatprep.mubr.bf16.mxu0 %v17445_v36  ;;  %v15441_v56 = vld [vmem:[#allocation9 + $0x1744] ss:$16 sps:$4 sm:$0xff]  }
0x1419   : > { %11005 = vmatpush1.bf16.msra.mxu1 %v15370_v31  ;;  %10963 = vmatprep.subr.bf16.mxu0 %v15375_v24  ;;  %v15442_v31 = vld [vmem:[#allocation9 + $0x1648] ss:$16 sps:$4 sm:$0xff]   ;;  %v15447_v24 = vld [vmem:[#allocation9 + $0x1724] ss:$16 sps:$4 sm:$0xff]  }
0x141a   : > { %11006 = vmatprep.subr.bf16.mxu1 %v15378_v12  ;;  %v15450_v12 = vld [vmem:[#allocation9 + $0x162c] ss:$16 sps:$4 sm:$0xff]  }
0x141c   : > { %10964 = vmatpush1.bf16.msra.mxu0 %v15373_v17  ;;  %v15445_v17 = vld [vmem:[#allocation9 + $0x1720] ss:$16 sps:$4 sm:$0xff]  }
0x141d   : > { %11007 = vmatpush1.bf16.msra.mxu1 %v15376_v3  ;;  %10965 = vmatprep.subr.bf16.mxu0 %v15381_v6  ;;  %v15448_v3 = vld [vmem:[#allocation9 + $0x1628] ss:$16 sps:$4 sm:$0xff]   ;;  %v15453_v6 = vld [vmem:[#allocation9 + $0x1704] ss:$16 sps:$4 sm:$0xff]  }
0x141e   : > { %11008 = vmatprep.subr.bf16.mxu1 %v15384_v9  ;;  %v15456_v9 = vld [vmem:[#allocation9 + $0x160c] ss:$16 sps:$4 sm:$0xff]  }
0x1420   : > { %10966 = vmatpush1.bf16.msra.mxu0 %v15379_v46  ;;  %v8911_v46 = vrot.slane %v17489_v4, 7 }
0x1421   : > { %11009 = vmatpush1.bf16.msra.mxu1 %v15382_v40  ;;  %10967 = vmatprep.subr.bf16.mxu0 %v15387_v8  ;;  %v15451_v40 = vld [vmem:[#allocation9 + $0x1700] ss:$16 sps:$4 sm:$0xff]   ;;  %v8912_v8 = vrot.slane %v17492_v16, 7  ;;  %v15460_v16 = vld [vmem:[#allocation9 + $0x15e8] ss:$16 sps:$4 sm:$0xff]  }
0x1422   : > { %11010 = vmatprep.subr.bf16.mxu1 %v15390_v0  ;;  %v15454_v0 = vld [vmem:[#allocation9 + $0x1608] ss:$16 sps:$4 sm:$0xff]  }
0x1423   : > { %v8916_v4 = vsel %vm739_vm0, %v8912_v8, 0.0 }
0x1424   : > { %10968 = vmatpush1.bf16.msra.mxu0 %v15385_v63  ;;  %v15459_v63 = vld [vmem:[#allocation9 + $0x16e4] ss:$16 sps:$4 sm:$0xff]  }
0x1425   : > { %11011 = vmatpush1.bf16.msra.mxu1 %v15388_v15  ;;  %10969 = vmatprep.subr.bf16.mxu0 %v15393_v32  ;;  %v15462_v15 = vld [vmem:[#allocation9 + $0x15ec] ss:$16 sps:$4 sm:$0xff]  }
0x1426   : > { %11012 = vmatprep.subr.bf16.mxu1 %v15396_v1  ;;  %v17931_v32 = vld [vmem:[#allocation17_spill] sm:$0xff]  ;;  %v8915_v1 = vsel %vm739_vm0, %v8911_v46, 0.0 }
0x1427   : > { %v15513_v46 = vld [vmem:[#allocation9 + $0x18ec] ss:$16 sps:$4 sm:$0xff]   ;;  %vm11165_vm5 = vcmp.lt.s32.totalorder %v17931_v32, 4 }
0x1428   : > { %10970 = vmatpush1.bf16.msra.mxu0 %v15391_v37  ;;  %vm17577_vm6 = vmpackc.low %vm11165_vm5, %vm11165_vm5 }
0x1429   : > { %11013 = vmatpush1.bf16.msra.mxu1 %v15394_v58  ;;  %10971 = vmatprep.subr.bf16.mxu0 %v15399_v27  ;;  %v15457_v27 = vld [vmem:[#allocation9 + $0x16e0] ss:$16 sps:$4 sm:$0xff]  }
0x142a   : > { %11014 = vmatprep.subr.bf16.mxu1 %v15402_v42 }
0x142c   : > { %10972 = vmatpush1.bf16.msra.mxu0 %v15397_v59  ;;  %v15465_v59 = vld [vmem:[#allocation9 + $0x18cc] ss:$16 sps:$4 sm:$0xff]  }
0x142d   : > { %11015 = vmatpush1.bf16.msra.mxu1 %v15400_v41  ;;  %10973 = vmatprep.subr.bf16.mxu0 %v15405_v19 }
0x142e   : > { %11016 = vmatprep.subr.bf16.mxu1 %v15408_v29  ;;  %v15468_v29 = vld [vmem:[#allocation9 + $0x17cc] ss:$16 sps:$4 sm:$0xff]  }
0x1430   : > { %v17506_v49 = vpop.f32.mrf.mxu1  ;;  %10974 = vmatpush1.bf16.msra.mxu0 %v15403_v43 }
0x1431   : > { %11017 = vmatpush1.bf16.msra.mxu1 %v15406_v47  ;;  %10975 = vmatprep.subr.bf16.mxu0 %v15411_v23  ;;  %v15463_v23 = vld [vmem:[#allocation9 + $0x18c8] ss:$16 sps:$4 sm:$0xff]  }
0x1432   : > { %v17508_v30 = vpop.f32.mrf.mxu1  ;;  %11032 = vmatprep.subr.bf16.mxu1 %v15414_v48 }
0x1434   : > { %v9498_v38 = vpop.f32.mrf.mxu1  ;;  %10976 = vmatpush1.bf16.msra.mxu0 %v15409_v34  ;;  %v15466_v34 = vld [vmem:[#allocation9 + $0x17c8] ss:$16 sps:$4 sm:$0xff]  }
0x1435   : > { %11033 = vmatpush2.bf16.msra.mxu1 %v15412_v39  ;;  %10977 = vmatprep.subr.bf16.mxu0 %v15417_v55  ;;  %v15471_v39 = vld [vmem:[#allocation9 + $0x18ac] ss:$16 sps:$4 sm:$0xff]  }
0x1436   : > { %v9499_v54 = vpop.f32.mrf.mxu1  ;;  %11043 = vmatprep.subr.bf16.mxu1 %v15420_v26  ;;  %v15474_v55 = vld [vmem:[#allocation9 + $0x17ac] ss:$16 sps:$4 sm:$0xff]  }
0x1437   : > { %v15477_v26 = vld [vmem:[#allocation9 + $0x188c] ss:$16 sps:$4 sm:$0xff]  }
0x1438   : > { %10978 = vmatpush2.bf16.msra.mxu0 %v15415_v60  ;;  %11035 = vmatmul.mubr.bf16.vlgmr.msra.gmra.mxu1 %v17460_v44  ;;  %v15480_v38 = vld [vmem:[#allocation9 + $0x178c] ss:$16 sps:$4 sm:$0xff]   ;;  %v15475_v60 = vld [vmem:[#allocation9 + $0x1888] ss:$16 sps:$4 sm:$0xff]  }
0x1439   : > { %11044 = vmatpush1.bf16.msra.mxu1 %v15418_v35  ;;  %11075 = vmatprep.mubr.bf16.mxu1 %v17445_v36  ;;  %v15444_v36 = vld [vmem:[#allocation9 + $0x164c] ss:$16 sps:$4 sm:$0xff]   ;;  %v15478_v35 = vld [vmem:[#allocation9 + $0x1788] ss:$16 sps:$4 sm:$0xff]  }
0x143a   : > { %10979 = vmatprep.subr.bf16.mxu0 %v15423_v5  ;;  %11045 = vmatprep.subr.bf16.mxu1 %v15426_v57  ;;  %v15483_v54 = vld [vmem:[#allocation9 + $0x186c] ss:$16 sps:$4 sm:$0xff]   ;;  %v15481_v57 = vld [vmem:[#allocation9 + $0x1868] ss:$16 sps:$4 sm:$0xff]  }
0x143b   : > { %v15486_v5 = vld [vmem:[#allocation9 + $0x176c] ss:$16 sps:$4 sm:$0xff]  }
0x143c   : > { %10980 = vmatpush2.bf16.msra.mxu0 %v15421_v13  ;;  %v15489_v13 = vld [vmem:[#allocation9 + $0x184c] ss:$16 sps:$4 sm:$0xff]  }
0x143d   : > { %11046 = vmatpush1.bf16.msra.mxu1 %v15424_v51  ;;  %10981 = vmatprep.subr.bf16.mxu0 %v15429_v52  ;;  %v15492_v51 = vld [vmem:[#allocation9 + $0x174c] ss:$16 sps:$4 sm:$0xff]   ;;  %v15487_v52 = vld [vmem:[#allocation9 + $0x1848] ss:$16 sps:$4 sm:$0xff]  }
0x143e   : > { %11047 = vmatprep.subr.bf16.mxu1 %v15432_v62  ;;  %v15490_v62 = vld [vmem:[#allocation9 + $0x1748] ss:$16 sps:$4 sm:$0xff]  }
0x1440   : > { %10982 = vmatpush2.bf16.msra.mxu0 %v15427_v10  ;;  %v15495_v10 = vld [vmem:[#allocation9 + $0x182c] ss:$16 sps:$4 sm:$0xff]  }
0x1441   : > { %11048 = vmatpush1.bf16.msra.mxu1 %v15430_v20  ;;  %10983 = vmatprep.subr.bf16.mxu0 %v15435_v14  ;;  %v15498_v20 = vld [vmem:[#allocation9 + $0x172c] ss:$16 sps:$4 sm:$0xff]   ;;  %v15493_v14 = vld [vmem:[#allocation9 + $0x1828] ss:$16 sps:$4 sm:$0xff]  }
0x1442   : > { %11049 = vmatprep.subr.bf16.mxu1 %v15438_v22  ;;  %v15496_v22 = vld [vmem:[#allocation9 + $0x1728] ss:$16 sps:$4 sm:$0xff]  }
0x1444   : > { %10984 = vmatpush2.bf16.msra.mxu0 %v15433_v28  ;;  %v15501_v28 = vld [vmem:[#allocation9 + $0x180c] ss:$16 sps:$4 sm:$0xff]  }
0x1445   : > { %11050 = vmatpush1.bf16.msra.mxu1 %v15436_v25  ;;  %10985 = vmatprep.subr.bf16.mxu0 %v15441_v56  ;;  %v15504_v25 = vld [vmem:[#allocation9 + $0x170c] ss:$16 sps:$4 sm:$0xff]   ;;  %v8913_v56 = vrot.slane %v17497_v33, 7  ;;  %v15508_v33 = vld [vmem:[#allocation9 + $0x16e8] ss:$16 sps:$4 sm:$0xff]  }
0x1446   : > { %11051 = vmatprep.subr.bf16.mxu1 %v15444_v36  ;;  %v15499_v36 = vld [vmem:[#allocation9 + $0x1808] ss:$16 sps:$4 sm:$0xff]  }
0x1448   : > { %10986 = vmatpush2.bf16.msra.mxu0 %v15439_v7  ;;  %v15502_v7 = vld [vmem:[#allocation9 + $0x1708] ss:$16 sps:$4 sm:$0xff]  }
0x1449   : > { %11052 = vmatpush1.bf16.msra.mxu1 %v15442_v31  ;;  %10987 = vmatprep.subr.bf16.mxu0 %v15447_v24  ;;  %v15507_v31 = vld [vmem:[#allocation9 + $0x17ec] ss:$16 sps:$4 sm:$0xff]   ;;  %v8914_v24 = vrot.slane %v17499_v61, 7 }
0x144a   : > { %11053 = vmatprep.subr.bf16.mxu1 %v15450_v12  ;;  %v15510_v12 = vld [vmem:[#allocation9 + $0x16ec] ss:$16 sps:$4 sm:$0xff]  }
0x144c   : > { %10988 = vmatpush2.bf16.msra.mxu0 %v15445_v17  ;;  %v8917_v17 = vsel %vm739_vm0, %v8913_v56, 0.0 }
0x144d   : > { %11054 = vmatpush1.bf16.msra.mxu1 %v15448_v3  ;;  %10989 = vmatprep.subr.bf16.mxu0 %v15453_v6  ;;  %v15505_v6 = vld [vmem:[#allocation9 + $0x17e8] ss:$16 sps:$4 sm:$0xff]  }
0x144e   : > { %11055 = vmatprep.subr.bf16.mxu1 %v15456_v9 }
0x144f   : > { %v9453_v37 = vpop.f32.mrf.mxu0 }
0x1450   : > { %v9454_v58 = vadd.f32 %v9453_v37, %v8915_v1  ;;  %10990 = vmatpush2.bf16.msra.mxu0 %v15451_v40  ;;  %v8918_v40 = vsel %vm739_vm0, %v8914_v24, 0.0  ;;  %v15511_v1 = vld [vmem:[#allocation9 + $0x18e8] ss:$16 sps:$4 sm:$0xff]   ;;  %v15541_v24 = vld [vmem:[#allocation12 + $0xa0] sm:$0xff]  }
0x1451   : > { %v9455_v42 = vpop.f32.mrf.mxu0  ;;  %11056 = vmatpush1.bf16.msra.mxu1 %v15454_v0  ;;  %10991 = vmatprep.subr.bf16.mxu0 %v15459_v63 }
0x1452   : > { %v17519_v41 = vadd.f32 %v17506_v49, %v9454_v58  ;;  %v9456_v19 = vadd.f32 %v9455_v42, %v8916_v4  ;;  %11057 = vmatprep.subr.bf16.mxu1 %v15462_v15  ;;  %v15469_v49 = vld [vmem:[#allocation9 + $0x18a8] ss:$16 sps:$4 sm:$0xff]  }
0x1453   : > { %v9457_v43 = vpop.f32.mrf.mxu0 }
0x1454   : > { %v17522_v47 = vadd.f32 %v17508_v30, %v9456_v19  ;;  %10992 = vmatpush2.bf16.msra.mxu0 %v15457_v27  ;;  %v15472_v30 = vld [vmem:[#allocation9 + $0x17a8] ss:$16 sps:$4 sm:$0xff]   ;;  %v15516_v43 = vld [vmem:[#allocation12 + $0x70] sm:$0xff]  }
0x1455   : > { %v9458_v48 = vpop.f32.mrf.mxu0  ;;  %11058 = vmatpush1.bf16.msra.mxu1 %v15460_v16  ;;  %11084 = vmatprep.subr.bf16.mxu0 %v15465_v59  ;;  %v15514_v16 = vld [vmem:[#allocation12 + $0x78] sm:$0xff]  }
0x1456   : > { %11059 = vmatprep.subr.bf16.mxu1 %v15468_v29  ;;  %v15515_v59 = vld [vmem:[#allocation12 + $0x38] sm:$0xff]   ;;  %v15517_v48 = vld [vmem:[#allocation12 + $0x30] sm:$0xff]  }
0x1457   : > { %10994 = vmatmul.mubr.bf16.vlgmr.msra.gmra.mxu0 %v17447_v18 }
0x1458   : > { %11085 = vmatpush1.bf16.msra.mxu0 %v15463_v23  ;;  %13360 = vmatprep.mubr.msk.bf16.mxu0 %vm1581_vm2, %v17458_v21  ;;  %v15484_v21 = vld [vmem:[#allocation9 + $0x1768] ss:$16 sps:$4 sm:$0xff]  }
0x1459   : > { %11060 = vmatpush2.bf16.msra.mxu1 %v15466_v34  ;;  %11086 = vmatprep.subr.bf16.mxu0 %v15471_v39  ;;  %v15518_v39 = vld [vmem:[#allocation12 + $0x68] sm:$0xff]  }
0x145a   : > { %11061 = vmatprep.subr.bf16.mxu1 %v15474_v55  ;;  %v15519_v55 = vld [vmem:[#allocation12 + $0x28] sm:$0xff]  }
0x145c   : > { %11087 = vmatpush1.bf16.msra.mxu0 %v15469_v49  ;;  %v15521_v49 = vld [vmem:[#allocation12 + $0x20] sm:$0xff]  }
0x145d   : > { %11062 = vmatpush2.bf16.msra.mxu1 %v15472_v30  ;;  %11088 = vmatprep.subr.bf16.mxu0 %v15477_v26  ;;  %v15523_v30 = vld [vmem:[#allocation12 + $0x18] sm:$0xff]   ;;  %v15524_v26 = vld [vmem:[#allocation12 + $0x50] sm:$0xff]  }
0x145e   : > { %11063 = vmatprep.subr.bf16.mxu1 %v15480_v38  ;;  %v15525_v38 = vld [vmem:[#allocation12 + $0x10] sm:$0xff]  }
0x1460   : > { %11089 = vmatpush1.bf16.msra.mxu0 %v15475_v60  ;;  %v15526_v60 = vld [vmem:[#allocation12 + $0x48] sm:$0xff]  }
0x1461   : > { %11064 = vmatpush2.bf16.msra.mxu1 %v15478_v35  ;;  %11090 = vmatprep.subr.bf16.mxu0 %v15483_v54  ;;  %v15527_v35 = vld [vmem:[#allocation12 + $0x8] sm:$0xff]   ;;  %v15528_v54 = vld [vmem:[#allocation12 + $0x40] sm:$0xff]  }
0x1462   : > { %11065 = vmatprep.subr.bf16.mxu1 %v15486_v5  ;;  %v15529_v5 = vld [vmem:[#allocation12] sm:$0xff]  }
0x1464   : > { %11091 = vmatpush1.bf16.msra.mxu0 %v15481_v57 }
0x1465   : > { %11066 = vmatpush2.bf16.msra.mxu1 %v15484_v21  ;;  %11092 = vmatprep.subr.bf16.mxu0 %v15489_v13  ;;  %v15530_v21 = vld [vmem:[#allocation12 + $0x140] sm:$0xff]  }
0x1466   : > { %11067 = vmatprep.subr.bf16.mxu1 %v15492_v51 }
0x1468   : > { %11093 = vmatpush1.bf16.msra.mxu0 %v15487_v52 }
0x1469   : > { %11068 = vmatpush2.bf16.msra.mxu1 %v15490_v62  ;;  %11094 = vmatprep.subr.bf16.mxu0 %v15495_v10  ;;  %v15532_v10 = vld [vmem:[#allocation12 + $0xb8] sm:$0xff]  }
0x146a   : > { %11069 = vmatprep.subr.bf16.mxu1 %v15498_v20 }
0x146c   : > { %11095 = vmatpush1.bf16.msra.mxu0 %v15493_v14 }
0x146d   : > { %11070 = vmatpush2.bf16.msra.mxu1 %v15496_v22  ;;  %11096 = vmatprep.subr.bf16.mxu0 %v15501_v28 }
0x146e   : > { %11071 = vmatprep.subr.bf16.mxu1 %v15504_v25 }
0x1470   : > { %v9535_v3 = vpop.f32.mrf.mxu1  ;;  %11097 = vmatpush1.bf16.msra.mxu0 %v15499_v36  ;;  %v15535_v36 = vld [vmem:[#allocation12 + $0xb0] sm:$0xff]  }
0x1471   : > { %v9536_v9 = vadd.f32 %v9535_v3, %v8917_v17  ;;  %11072 = vmatpush2.bf16.msra.mxu1 %v15502_v7  ;;  %11098 = vmatprep.subr.bf16.mxu0 %v15507_v31  ;;  %v15538_v31 = vld [vmem:[#allocation12 + $0xa8] sm:$0xff]   ;;  %v15553_v17 = vld [vmem:[#allocation12 + $0x80] sm:$0xff]  }
0x1472   : > { %v9537_v8 = vpop.f32.mrf.mxu1  ;;  %11073 = vmatprep.subr.bf16.mxu1 %v15510_v12  ;;  %v15547_v12 = vld [vmem:[#allocation12 + $0x90] sm:$0xff]  }
0x1473   : > { %v9538_v0 = vadd.f32 %v9537_v8, %v8918_v40  ;;  %v9576_v61 = vpop.f32.mrf.mxu0 }
0x1474   : > { %v17533_v63 = vadd.f32 %v9576_v61, %v9536_v9  ;;  %v9539_v15 = vpop.f32.mrf.mxu1  ;;  %11099 = vmatpush1.bf16.msra.mxu0 %v15505_v6  ;;  %v15556_v9 = vld [vmem:[#allocation12 + $0xc0] sm:$0xff]  }
0x1475   : > { %v9578_v37 = vpop.f32.mrf.mxu0  ;;  %11074 = vmatpush2.bf16.msra.mxu1 %v15508_v33  ;;  %11114 = vmatprep.subr.bf16.mxu0 %v15513_v46 }
0x1476   : > { %v17535_v58 = vadd.f32 %v9578_v37, %v9538_v0  ;;  %v9540_v27 = vpop.f32.mrf.mxu1  ;;  %11419 = vmatprep.subr.bf16.mxu1 %v17823_v45 }
0x1477   : > { %v9580_v4 = vpop.f32.mrf.mxu0 }
0x1478   : > { %11076 = vmatmul.mubr.bf16.vlgmr.msra.gmra.mxu1 %v17447_v18  ;;  %11115 = vmatpush2.bf16.msra.mxu0 %v15511_v1  ;;  %v15520_v18 = vld [vmem:[#allocation12 + $0x60] sm:$0xff]  }
0x1479   : > { %v9581_v42 = vpop.f32.mrf.mxu0  ;;  %13645 = vmatprep.subr.bf16.mxu0 %v15514_v16  ;;  %11420 = vmatpush1.bf16.msra.mxu1 %v15532_v10 }
0x147a   : > { %11421 = vmatprep.subr.bf16.mxu1 %v17823_v45 }
0x147b   : > { %11117 = vmatmul.mubr.bf16.vlgmr.msra.gmra.mxu0 %v17460_v44  ;;  %v15522_v44 = vld [vmem:[#allocation12 + $0x58] sm:$0xff]  }
0x147c   : > { %13646 = vmatpush3.bf16.msra.mxu0 %v15515_v59 }
0x147d   : > { %13647 = vmatprep.subr.bf16.mxu0 %v15516_v43  ;;  %11422 = vmatpush1.bf16.msra.mxu1 %v15535_v36 }
0x147e   : > { %11423 = vmatprep.subr.bf16.mxu1 %v17823_v45 }
0x1480   : > { %13648 = vmatpush3.bf16.msra.mxu0 %v15517_v48 }
0x1481   : > { %13649 = vmatprep.subr.bf16.mxu0 %v15518_v39  ;;  %11424 = vmatpush1.bf16.msra.mxu1 %v15538_v31  ;;  %v15537_v31 = vld [vmem:[#allocation12 + $0xf0] sm:$0xff]  }
0x1482   : > { %11425 = vmatprep.subr.bf16.mxu1 %v17823_v45 }
0x1484   : > { %13650 = vmatpush3.bf16.msra.mxu0 %v15519_v55 }
0x1485   : > { %13651 = vmatprep.subr.bf16.mxu0 %v15520_v18  ;;  %11426 = vmatpush1.bf16.msra.mxu1 %v15541_v24 }
0x1486   : > { %11427 = vmatprep.subr.bf16.mxu1 %v17823_v45 }
0x1488   : > { %13652 = vmatpush3.bf16.msra.mxu0 %v15521_v49  ;;  %v15807_v49 = vld [vmem:[#allocation10 + $0x20] sm:$0x3f] }
0x1489   : > { %13653 = vmatprep.subr.bf16.mxu0 %v15522_v44  ;;  %v17932_v44 = vld [vmem:[#allocation35_spill] sm:$0xff] }
0x148c   : > { %13654 = vmatpush3.bf16.msra.mxu0 %v15523_v30 }
0x148d   : > { %13655 = vmatprep.subr.bf16.mxu0 %v15524_v26 }
0x1490   : > { %13656 = vmatpush3.bf16.msra.mxu0 %v15525_v38 }
0x1491   : > { %13657 = vmatprep.subr.bf16.mxu0 %v15526_v60 }
0x1494   : > { %v10259_v19 = vpop.f32.mrf.mxu1  ;;  %13658 = vmatpush3.bf16.msra.mxu0 %v15527_v35 }
0x1495   : > { %13659 = vmatprep.subr.bf16.mxu0 %v15528_v54 }
0x1496   : > { %v10261_v29 = vpop.f32.mrf.mxu1 }
0x1498   : > { %v10263_v23 = vpop.f32.mrf.mxu1  ;;  %13660 = vmatpush3.bf16.msra.mxu0 %v15529_v5 }
0x1499   : > { %13667 = vmatprep.subr.bf16.mxu0 %v15530_v21 }
0x149a   : > { %v10264_v34 = vpop.f32.mrf.mxu1 }
0x14b3   : > { %v10218_v57 = vpop.f32.mrf.mxu0 }
0x14b4   : > { %v10260_v13 = vadd.f32 %v10259_v19, %v10218_v57 }
0x14b5   : > { %v10220_v51 = vpop.f32.mrf.mxu0 }
0x14b6   : > { %v10348_v52 = vrot.slane %v10260_v13, 6  ;;  %v10262_v62 = vadd.f32 %v10261_v29, %v10220_v51 }
0x14b7   : > { %v10222_v20 = vpop.f32.mrf.mxu0 }
0x14b8   : > { %v10352_v14 = vsel %vm5632_vm3, %v10348_v52, 0.0  ;;  %v10349_v22 = vrot.slane %v10262_v62, 6 }
0x14b9   : > { %v10356_v28 = vadd.f32 %v10352_v14, %v17519_v41  ;;  %v10223_v25 = vpop.f32.mrf.mxu0  ;;  %v15544_v41 = vld [vmem:[#allocation12 + $0x98] sm:$0xff]  }
0x14ba   : > { %v10353_v56 = vsel %vm5632_vm3, %v10349_v22, 0.0  ;;  %11428 = vmatpush1.bf16.msra.mxu1 %v15544_v41  ;;  %v15531_v22 = vld [vmem:[#allocation12 + $0x100] sm:$0xff]   ;;  %v15533_v25 = vld [vmem:[#allocation12 + $0x138] sm:$0xff]  }
0x14bb   : > { %v10357_v7 = vadd.f32 %v10353_v56, %v17522_v47  ;;  %11429 = vmatprep.subr.bf16.mxu1 %v17823_v45  ;;  %v15550_v47 = vld [vmem:[#allocation12 + $0x88] sm:$0xff]   ;;  %v15536_v56 = vld [vmem:[#allocation12 + $0x130] sm:$0xff]  }
0x14be   : > { %11430 = vmatpush1.bf16.msra.mxu1 %v15547_v12  ;;  %v15539_v12 = vld [vmem:[#allocation12 + $0x128] sm:$0xff]  }
0x14bf   : > { %11431 = vmatprep.subr.bf16.mxu1 %v17823_v45 }
0x14c2   : > { %11432 = vmatpush1.bf16.msra.mxu1 %v15550_v47 }
0x14c3   : > { %11433 = vmatprep.subr.bf16.mxu1 %v17823_v45 }
0x14c6   : > { %11434 = vmatpush1.bf16.msra.mxu1 %v15553_v17 }
0x14c7   : > { %11449 = vmatprep.subr.bf16.mxu1 %v17823_v45 }
0x14ca   : > { %11450 = vmatpush2.bf16.msra.mxu1 %v15556_v9  ;;  %v15809_v9 = vld [vmem:[#allocation10 + $0x30] sm:$0x3f] }
0x14cb   : > { %11702 = vmatprep.subr.bf16.mxu1 %v17823_v45 }
0x14d4   : > { %v10300_v3 = vpop.f32.mrf.mxu1 }
0x14d6   : > { %v10302_v6 = vpop.f32.mrf.mxu1 }
0x14d7   : > { %v10341_v33 = vpop.f32.mrf.mxu0 }
0x14d8   : > { %v10342_v46 = vadd.f32 %v10341_v33, %v10300_v3  ;;  %v10304_v40 = vpop.f32.mrf.mxu1  ;;  %v11148_v33 = vrot.slane %v15809_v9, %v17932_v44  ;;  %v15587_v9 = vld [vmem:[#allocation12 + $0x210] sm:$0xff]  }
0x14d9   : > { %v10343_v8 = vpop.f32.mrf.mxu0  ;;  %v15540_v40 = vld [vmem:[#allocation12 + $0xe8] sm:$0xff]  }
0x14da   : > { %v10350_v0 = vrot.slane %v10342_v46, 6  ;;  %v10344_v61 = vadd.f32 %v10343_v8, %v10302_v6  ;;  %v10305_v15 = vpop.f32.mrf.mxu1 }
0x14db   : > { %v10345_v1 = vpop.f32.mrf.mxu0 }
0x14dc   : > { %v10354_v37 = vsel %vm5632_vm3, %v10350_v0, 0.0  ;;  %v10351_v27 = vrot.slane %v10344_v61, 6  ;;  %v15542_v61 = vld [vmem:[#allocation12 + $0x120] sm:$0xff]   ;;  %v15810_v1 = vld [vmem:[#allocation10 + $0x38] sm:$0x3f] }
0x14dd   : > { %v17558_v4 = vadd.f32 %v10354_v37, %v17533_v63  ;;  %v10346_v42 = vpop.f32.mrf.mxu0  ;;  %v11140_v63 = vrot.slane %v15807_v49, %v17932_v44  ;;  %v11152_v37 = vrot.slane %v15810_v1, %v17932_v44  ;;  %v15555_v49 = vld [vmem:[#allocation12 + $0x1c8] sm:$0xff]  }
0x14de   : > { %v10355_v16 = vsel %vm5632_vm3, %v10351_v27, 0.0 }
0x14df   : > { %v17563_v59 = vadd.f32 %v10355_v16, %v17535_v58  ;;  %v15808_v58 = vld [vmem:[#allocation10 + $0x28] sm:$0x3f] }
0x14e0   : > { %v11144_v35 = vrot.slane %v15808_v58, %v17932_v44 }
0x14f8   : > { %v11036_v19 = vpop.f32.mrf.mxu1 }
0x14fa   : > { %v11038_v29 = vpop.f32.mrf.mxu1 }
0x14fc   : > { %v11040_v43 = vpop.f32.mrf.mxu1 }
0x14fd   : > { %v15545_v43 = vld [vmem:[#allocation12 + $0x118] sm:$0xff]  }
0x14fe   : > { %v11041_v23 = vpop.f32.mrf.mxu1 }
0x1517   : > { %v10995_v48 = vpop.f32.mrf.mxu0 }
0x1518   : > { %v11037_v34 = vadd.f32 %v11036_v19, %v10995_v48  ;;  %v15546_v48 = vld [vmem:[#allocation12 + $0xd8] sm:$0xff]  }
0x1519   : > { %v10997_v39 = vpop.f32.mrf.mxu0 }
0x151a   : > { %v11125_v55 = vrot.slane %v11037_v34, 5  ;;  %v11039_v18 = vadd.f32 %v11038_v29, %v10997_v39  ;;  %v15543_v29 = vld [vmem:[#allocation12 + $0xe0] sm:$0xff]   ;;  %v15549_v34 = vld [vmem:[#allocation12 + $0xd0] sm:$0xff]   ;;  %v15551_v39 = vld [vmem:[#allocation12 + $0x108] sm:$0xff]  }
0x151b   : > { %v10999_v30 = vpop.f32.mrf.mxu0 }
0x151c   : > { %v11129_v26 = vsel %vm6412_vm4, %v11125_v55, 0.0  ;;  %v11126_v38 = vrot.slane %v11039_v18, 5  ;;  %v15552_v55 = vld [vmem:[#allocation12 + $0xc8] sm:$0xff]  }
0x151d   : > { %v11133_v60 = vadd.f32 %v11129_v26, %v10356_v28  ;;  %v11000_v54 = vpop.f32.mrf.mxu0  ;;  %v15554_v18 = vld [vmem:[#allocation12 + $0x208] sm:$0xff]  }
0x151e   : > { %v11130_v5 = vsel %vm6412_vm4, %v11126_v38, 0.0 }
0x151f   : > { %v11153_v57 = vadd.f32 %v11140_v63, %v11133_v60  ;;  %v11134_v21 = vadd.f32 %v11130_v5, %v10357_v7  ;;  %v15557_v63 = vld [vmem:[#allocation12 + $0x200] sm:$0xff]   ;;  %v15562_v5 = vld [vmem:[#allocation12 + $0x178] sm:$0xff]  }
0x1520   : > { %v15558_v60 = vld [vmem:[#allocation12 + $0x1c0] sm:$0xff]  }
0x1521   : > { %15621 = vtanh.f32 %v11153_v57  ;;  %v11154_v13 = vadd.f32 %v11144_v35, %v11134_v21  ;;  %v15559_v35 = vld [vmem:[#allocation12 + $0x180] sm:$0xff]   ;;  %v15563_v57 = vld [vmem:[#allocation12 + $0x1f0] sm:$0xff]  }
0x1522   : > { %v15564_v21 = vld [vmem:[#allocation12 + $0x1b0] sm:$0xff]  }
0x1523   : > { %15623 = vtanh.f32 %v11154_v13  ;;  %v15565_v13 = vld [vmem:[#allocation12 + $0x170] sm:$0xff]  }
0x152e   : > { %v15622_v51 = vpop.eup %15621 }
0x152f   : > { %v11161_v62 = vadd.f32 %v15622_v51, %v17320_v53  ;;  %v15534_v53 = vld [vmem:[#allocation12 + $0xf8] sm:$0xff]   ;;  %v15566_v51 = vld [vmem:[#allocation12 + $0x1e8] sm:$0xff]  }
0x1530   : > { %v15624_v52 = vpop.eup %15623 }
0x1531   : > { %v11162_v10 = vadd.f32 %v15624_v52, %v17323_v2  ;;  %v17583_v28 = vpack.c.bf16 %v11161_v62, %v11161_v62  ;;  %v15567_v52 = vld [vmem:[#allocation12 + $0x1a8] sm:$0xff]  }
0x1532   : > { %v15568_v62 = vld [vmem:[#allocation12 + $0x168] sm:$0xff]  }
0x1533   : > { %v17581_v14 = vpack.c.bf16 %v11162_v10, %v11162_v10  ;;  %v15569_v10 = vld [vmem:[#allocation12 + $0x1e0] sm:$0xff]  }
0x1535   : > { %13388 = vmatprep.mubr.msk.bf16.mxu0 %vm17577_vm6, %v17581_v14 }
0x1536   : > { %13391 = vmatmul.mubr.msk.bf16.vlgmr.msra.gmra.mxu0 %vm17577_vm6, %v17583_v28 }
0x1537   : > { %13668 = vmatpush3.bf16.msra.mxu0 %v15531_v22  ;;  %13423 = vmatprep.mubr.msk.bf16.mxu0 %vm17577_vm6, %v17581_v14  ;;  %v15571_v22 = vld [vmem:[#allocation12 + $0x160] sm:$0xff]  }
0x1538   : > { %v11077_v2 = vpop.f32.mrf.mxu1  ;;  %13669 = vmatprep.subr.bf16.mxu0 %v15533_v25  ;;  %v15572_v25 = vld [vmem:[#allocation12 + $0x1d8] sm:$0xff]  }
0x153a   : > { %v11079_v36 = vpop.f32.mrf.mxu1 }
0x153b   : > { %13670 = vmatpush3.bf16.msra.mxu0 %v15534_v53  ;;  %v11118_v7 = vpop.f32.mrf.mxu0  ;;  %v15573_v53 = vld [vmem:[#allocation12 + $0x198] sm:$0xff]  }
0x153c   : > { %v11119_v24 = vadd.f32 %v11118_v7, %v11077_v2  ;;  %v11081_v41 = vpop.f32.mrf.mxu1  ;;  %13671 = vmatprep.subr.bf16.mxu0 %v15536_v56  ;;  %v15574_v2 = vld [vmem:[#allocation12 + $0x158] sm:$0xff]   ;;  %v15575_v56 = vld [vmem:[#allocation12 + $0x1d0] sm:$0xff]  }
0x153d   : > { %v11120_v47 = vpop.f32.mrf.mxu0  ;;  %v15577_v7 = vld [vmem:[#allocation12 + $0x150] sm:$0xff]   ;;  %v15580_v41 = vld [vmem:[#allocation12 + $0x240] sm:$0xff]  }
0x153e   : > { %v11127_v17 = vrot.slane %v11119_v24, 5  ;;  %v11121_v3 = vadd.f32 %v11120_v47, %v11079_v36  ;;  %v11082_v6 = vpop.f32.mrf.mxu1  ;;  %v15576_v36 = vld [vmem:[#allocation12 + $0x190] sm:$0xff]   ;;  %v15579_v24 = vld [vmem:[#allocation12 + $0x148] sm:$0xff]   ;;  %v15582_v47 = vld [vmem:[#allocation12 + $0x238] sm:$0xff]  }
0x153f   : > { %13672 = vmatpush3.bf16.msra.mxu0 %v15537_v31  ;;  %v11122_v46 = vpop.f32.mrf.mxu0  ;;  %v15578_v31 = vld [vmem:[#allocation12 + $0x248] sm:$0xff]   ;;  %v15586_v6 = vld [vmem:[#allocation12 + $0x218] sm:$0xff]  }
0x1540   : > { %v11131_v8 = vsel %vm6412_vm4, %v11127_v17, 0.0  ;;  %v11128_v0 = vrot.slane %v11121_v3, 5  ;;  %13673 = vmatprep.subr.bf16.mxu0 %v15539_v12  ;;  %v15581_v12 = vld [vmem:[#allocation12 + $0x188] sm:$0xff]   ;;  %v15585_v3 = vld [vmem:[#allocation12 + $0x220] sm:$0xff]  }
0x1541   : > { %v11135_v15 = vadd.f32 %v11131_v8, %v17558_v4  ;;  %v11123_v27 = vpop.f32.mrf.mxu0  ;;  %v15548_v4 = vld [vmem:[#allocation12 + $0x110] sm:$0xff]   ;;  %v15584_v17 = vld [vmem:[#allocation12 + $0x228] sm:$0xff]  }
0x1542   : > { %v11132_v42 = vsel %vm6412_vm4, %v11128_v0, 0.0 }
0x1543   : > { %v11155_v16 = vadd.f32 %v11148_v33, %v11135_v15  ;;  %v11136_v19 = vadd.f32 %v11132_v42, %v17563_v59  ;;  %13674 = vmatpush3.bf16.msra.mxu0 %v15540_v40  ;;  %v15588_v33 = vld [vmem:[#allocation12 + $0x250] sm:$0xff]  }
0x1544   : > { %13675 = vmatprep.subr.bf16.mxu0 %v15542_v61 }
0x1545   : > { %15625 = vtanh.f32 %v11155_v16  ;;  %v11156_v23 = vadd.f32 %v11152_v37, %v11136_v19 }
0x1547   : > { %15627 = vtanh.f32 %v11156_v23  ;;  %13676 = vmatpush3.bf16.msra.mxu0 %v15543_v29 }
0x1548   : > { %13677 = vmatprep.subr.bf16.mxu0 %v15545_v43 }
0x154b   : > { %13678 = vmatpush3.bf16.msra.mxu0 %v15546_v48 }
0x154c   : > { %13679 = vmatprep.subr.bf16.mxu0 %v15548_v4 }
0x154f   : > { %13680 = vmatpush3.bf16.msra.mxu0 %v15549_v34 }
0x1550   : > { %13681 = vmatprep.subr.bf16.mxu0 %v15551_v39 }
0x1552   : > { %v15626_v59 = vpop.eup %15625 }
0x1553   : > { %13682 = vmatpush3.bf16.msra.mxu0 %v15552_v55  ;;  %v11163_v26 = vadd.f32 %v15626_v59, %v17351_v11  ;;  %v15561_v11 = vld [vmem:[#allocation12 + $0x1b8] sm:$0xff]  }
0x1554   : > { %v15628_v44 = vpop.eup %15627  ;;  %13689 = vmatprep.subr.bf16.mxu0 %v15554_v18 }
0x1555   : > { %v11164_v30 = vadd.f32 %v15628_v44, %v17354_v50  ;;  %v17612_v54 = vpack.c.bf16 %v11163_v26, %v11163_v26  ;;  %v15560_v50 = vld [vmem:[#allocation12 + $0x1f8] sm:$0xff]  }
0x1556   : > { %13426 = vmatmul.mubr.msk.bf16.vlgmr.msra.gmra.mxu0 %vm17577_vm6, %v17583_v28 }
0x1557   : > { %13690 = vmatpush3.bf16.msra.mxu0 %v15555_v49  ;;  %13458 = vmatprep.mubr.msk.bf16.mxu0 %vm17577_vm6, %v17581_v14  ;;  %v11171_v38 = vsel %vm11165_vm5, %v11164_v30, 0.0  ;;  %v15570_v14 = vld [vmem:[#allocation12 + $0x1a0] sm:$0xff]  }
0x1558   : > { %13691 = vmatprep.subr.bf16.mxu0 %v15557_v63  ;;  %v11175_v58 = vpack.c.bf16 %v11171_v38, %v11171_v38 }
0x155a   : > { %13392 = vmatprep.mubr.msk.bf16.mxu1 %vm1581_vm2, %v11175_v58 }
0x155b   : > { %13692 = vmatpush3.bf16.msra.mxu0 %v15558_v60  ;;  %13395 = vmatmul.mubr.msk.bf16.vlgmr.msra.gmra.mxu1 %vm17577_vm6, %v17612_v54 }
0x155c   : > { %11703 = vmatpush1.bf16.msra.mxu1 %v15559_v35  ;;  %13427 = vmatprep.mubr.msk.bf16.mxu1 %vm1581_vm2, %v11175_v58 }
0x155d   : > { %13693 = vmatprep.subr.bf16.mxu0 %v15560_v50  ;;  %11704 = vmatprep.subr.bf16.mxu1 %v17823_v45  ;;  %v13466_v50 = vld [vmem:[%s17670_s9] ss:$0 sm:$0xff] }
0x155f   : > { %13694 = vmatpush3.bf16.msra.mxu0 %v15561_v11 }
0x1560   : > { %11705 = vmatpush1.bf16.msra.mxu1 %v15562_v5  ;;  %13695 = vmatprep.subr.bf16.mxu0 %v15563_v57 }
0x1561   : > { %11706 = vmatprep.subr.bf16.mxu1 %v17823_v45 }
0x1563   : > { %13696 = vmatpush3.bf16.msra.mxu0 %v15564_v21 }
0x1564   : > { %11707 = vmatpush1.bf16.msra.mxu1 %v15565_v13  ;;  %13697 = vmatprep.subr.bf16.mxu0 %v15566_v51 }
0x1565   : > { %11708 = vmatprep.subr.bf16.mxu1 %v17823_v45 }
0x1567   : > { %13698 = vmatpush3.bf16.msra.mxu0 %v15567_v52 }
0x1568   : > { %11709 = vmatpush1.bf16.msra.mxu1 %v15568_v62  ;;  %13699 = vmatprep.subr.bf16.mxu0 %v15569_v10 }
0x1569   : > { %11710 = vmatprep.subr.bf16.mxu1 %v17823_v45 }
0x156b   : > { %13700 = vmatpush3.bf16.msra.mxu0 %v15570_v14 }
0x156c   : > { %11711 = vmatpush1.bf16.msra.mxu1 %v15571_v22  ;;  %13701 = vmatprep.subr.bf16.mxu0 %v15572_v25 }
0x156d   : > { %11712 = vmatprep.subr.bf16.mxu1 %v17823_v45 }
0x156f   : > { %13702 = vmatpush3.bf16.msra.mxu0 %v15573_v53 }
0x1570   : > { %11713 = vmatpush1.bf16.msra.mxu1 %v15574_v2  ;;  %13703 = vmatprep.subr.bf16.mxu0 %v15575_v56 }
0x1571   : > { %11714 = vmatprep.subr.bf16.mxu1 %v17823_v45 }
0x1573   : > { %13704 = vmatpush3.bf16.msra.mxu0 %v15576_v36 }
0x1574   : > { %11715 = vmatpush1.bf16.msra.mxu1 %v15577_v7  ;;  %11984 = vmatprep.subr.bf16.mxu0 %v17823_v45 }
0x1575   : > { %11716 = vmatprep.subr.bf16.mxu1 %v17823_v45 }
0x1576   : > { %13461 = vmatmul.mubr.msk.bf16.vlgmr.msra.gmra.mxu0 %vm17577_vm6, %v17583_v28  ;;  %v15583_v28 = vld [vmem:[#allocation12 + $0x230] sm:$0xff]  }
0x1577   : > { %11985 = vmatpush1.bf16.msra.mxu0 %v15578_v31  ;;  %13462 = vmatprep.mubr.msk.bf16.mxu0 %vm1581_vm2, %v11175_v58 }
0x1578   : > { %11717 = vmatpush1.bf16.msra.mxu1 %v15579_v24  ;;  %11986 = vmatprep.subr.bf16.mxu0 %v17823_v45 }
0x1579   : > { %11732 = vmatprep.subr.bf16.mxu1 %v17823_v45 }
0x157b   : > { %11987 = vmatpush1.bf16.msra.mxu0 %v15580_v41 }
0x157c   : > { %11733 = vmatpush2.bf16.msra.mxu1 %v15581_v12  ;;  %11988 = vmatprep.subr.bf16.mxu0 %v17823_v45 }
0x157f   : > { %13430 = vmatmul.mubr.msk.bf16.vlgmr.msra.gmra.mxu1 %vm17577_vm6, %v17612_v54  ;;  %11989 = vmatpush1.bf16.msra.mxu0 %v15582_v47 }
0x1580   : > { %11990 = vmatprep.subr.bf16.mxu0 %v17823_v45 }
0x1583   : > { %11991 = vmatpush1.bf16.msra.mxu0 %v15583_v28 }
0x1584   : > { %11992 = vmatprep.subr.bf16.mxu0 %v17823_v45 }
0x1587   : > { %11993 = vmatpush1.bf16.msra.mxu0 %v15584_v17 }
0x1588   : > { %11994 = vmatprep.subr.bf16.mxu0 %v17823_v45 }
0x158b   : > { %11995 = vmatpush1.bf16.msra.mxu0 %v15585_v3 }
0x158c   : > { %11996 = vmatprep.subr.bf16.mxu0 %v17823_v45 }
0x158f   : > { %11997 = vmatpush1.bf16.msra.mxu0 %v15586_v6 }
0x1590   : > { %11998 = vmatprep.subr.bf16.mxu0 %v17823_v45 }
0x1593   : > { %11999 = vmatpush1.bf16.msra.mxu0 %v15587_v9 }
0x1594   : > { %12014 = vmatprep.subr.bf16.mxu0 %v17823_v45 }
0x1597   : > { %12015 = vmatpush2.bf16.msra.mxu0 %v15588_v33 }
0x159a   : > { %13465 = vmatmul.mubr.msk.bf16.vlgmr.msra.gmra.mxu0 %vm17577_vm6, %v17612_v54 }
0x15f6   : > { %v13661_v46 = vpop.f32.mrf.mxu0 }
0x15f8   : > { %v13662_v40 = vpop.f32.mrf.mxu0 }
0x15f9   : > { %v13663_v8 = vadd.f32 %v13662_v40, %v13661_v46 }
0x15fa   : > { %v13664_v0 = vpop.f32.mrf.mxu0 }
0x15fc   : > { %v13665_v61 = vpop.f32.mrf.mxu0 }
0x1616   : > { %v13683_v15 = vpop.f32.mrf.mxu0 }
0x1618   : > { %v13684_v1 = vpop.f32.mrf.mxu0 }
0x1619   : > { %v13685_v37 = vadd.f32 %v13684_v1, %v13683_v15 }
0x161a   : > { %v13686_v27 = vpop.f32.mrf.mxu0 }
0x161b   : > { %v11453_v42 = vpop.f32.mrf.mxu1 }
0x161c   : > { %v13687_v16 = vpop.f32.mrf.mxu0  ;;  %v11454_v48 = vadd.f32 %v13663_v8, %v11453_v42 }
0x161d   : > { %v11455_v19 = vpop.f32.mrf.mxu1 }
0x161e   : > { %v11459_v34 = vrot.slane %v11454_v48, 7 }
0x161f   : > { %v11456_v29 = vpop.f32.mrf.mxu1 }
0x1620   : > { %v11460_v18 = vsel %vm739_vm0, %v11459_v34, 0.0 }
0x1621   : > { %v11457_v43 = vpop.f32.mrf.mxu1 }
0x1636   : > { %v13705_v45 = vpop.f32.mrf.mxu0 }
0x1638   : > { %v13706_v23 = vpop.f32.mrf.mxu0 }
0x1639   : > { %v13707_v30 = vadd.f32 %v13706_v23, %v13705_v45 }
0x163a   : > { %v13708_v4 = vpop.f32.mrf.mxu0 }
0x163c   : > { %v13709_v20 = vpop.f32.mrf.mxu0 }
0x163f   : > { %v11736_v39 = vpop.f32.mrf.mxu1 }
0x1640   : > { %v11737_v55 = vadd.f32 %v13685_v37, %v11736_v39 }
0x1641   : > { %v11738_v59 = vpop.f32.mrf.mxu1 }
0x1642   : > { %v11742_v49 = vadd.f32 %v11737_v55, %v11460_v18 }
0x1643   : > { %v11739_v44 = vpop.f32.mrf.mxu1 }
0x1645   : > { %v11740_v63 = vpop.f32.mrf.mxu1 }
0x165a   : > { %v12018_v26 = vpop.f32.mrf.mxu0 }
0x165b   : > { %v12019_v38 = vadd.f32 %v13707_v30, %v12018_v26 }
0x165c   : > { %v12020_v60 = vpop.f32.mrf.mxu0 }
0x165d   : > { %v12024_v58 = vrot.slane %v12019_v38, 1 }
0x165e   : > { %v12021_v35 = vpop.f32.mrf.mxu0 }
0x165f   : > { %v12025_v54 = vsel %vm1304_vm1, %v12024_v58, 0.0 }
0x1660   : > { %v12026_v11 = vadd.f32 %v12025_v54, %v11742_v49  ;;  %v12022_v5 = vpop.f32.mrf.mxu0 }
0x1662   : > { %v12034_v57 = vadd.f32 %v13466_v50, %v12026_v11 }
0x1664   : > { %v12035_v21 = vpack.c.bf16 %v12034_v57, %v12034_v57 }
0x1666   : > { %12036 = vst [vmem:[%s456_s28] sm:$0xf] %v12035_v21 }
0x1667 PF: > { %s24_s13 = sadd.s32 1, %s16015_s13  }
0x1668   : > { %p21_p3 = scmp.ge.s32.totalorder %s24_s13, 4  }
0x166a   :  { %23 = sbr.rel (!%p21_p3) target bundleno = 4 (0x4), region = 132 }
0x166f   :  { %12056 = vsyncpa [#allocation3], 1 }
0x1670   :  { %12058 = vsyncpa [#allocation3 + $0x1], 1 }
0x1671   :  { %12059 = vsyncpa [#allocation5], 1 }
0x1672   :  { %12060 = vsyncpa [#allocation8], 1 }
0x1673   :  { %12061 = vsyncpa [#allocation11], 1 }

</bundles_post_ra>
